<compile_context>
chip_gen: v7x
topology: tpu7x:2x2x1
jax: 0.10.0
libtpu: 0.0.40
codegen_flags: <defaults>
</compile_context>

<pallas_src>
import functools

import numpy as np

import jax
import jax.numpy as jnp
from jax.experimental import pallas as pl
from jax.experimental.pallas import tpu as pltpu


# ---------------------------------------------------------------------------
# Fused forward kernel (one batch tile per grid step, weights VMEM-resident).
# ---------------------------------------------------------------------------
def _battle_fused_kernel(a0_ref, m1_ref, b1_ref, m2_ref, b2_ref,
                         m3_ref, b3_ref, fcw_ref, fcb_ref, hw_ref, hb_ref,
                         out_ref, a1_ref, a2_ref, a3_ref):
    bt = out_ref.shape[0]           # batch tile (multiple of 16)

    def conv_layer(in_ref, m_ref, b_ref, o_ref):
        # in_ref : [H_in*bt,  Win*Cin(+pad)]   bf16 rows (y-major, batch-minor)
        # m_ref  : [2, Win*Cin(+pad), Wout*Cout(+pad)]  banded conv mats (dy=0,1)
        # o_ref  : [(H_in-1)*bt, Wout*Cout(+pad)]       bf16
        rows_out = o_ref.shape[0]
        x0 = in_ref[pl.ds(0, rows_out), :]      # rows for y    (aligned)
        x1 = in_ref[pl.ds(bt, rows_out), :]     # rows for y+1  (start=bt, aligned)
        acc = (jnp.dot(x0, m_ref[0], preferred_element_type=jnp.float32)
               + jnp.dot(x1, m_ref[1], preferred_element_type=jnp.float32))
        o_ref[...] = jnp.maximum(acc + b_ref[...], 0.0).astype(o_ref.dtype)

    conv_layer(a0_ref, m1_ref, b1_ref, a1_ref)   # [13bt,128] -> [12bt,384]
    conv_layer(a1_ref, m2_ref, b2_ref, a2_ref)   # [12bt,384] -> [11bt,768] (704+pad)
    conv_layer(a2_ref, m3_ref, b3_ref, a3_ref)   # [11bt,768] -> [10bt,640]

    # fc 6400 -> 64:
    #   feat[b] = relu( sum_y a3[y*bt + b, :] @ fcw[y*640:(y+1)*640, :] + fcb )
    n_y = a3_ref.shape[0] // bt                  # 10
    kw = a3_ref.shape[1]                         # 640
    partials = [
        jnp.dot(a3_ref[pl.ds(y * bt, bt), :],
                fcw_ref[pl.ds(y * kw, kw), :],
                preferred_element_type=jnp.float32)
        for y in range(n_y)
    ]
    while len(partials) > 1:                     # tree-accumulate the partials
        nxt = [partials[i] + partials[i + 1]
               for i in range(0, len(partials) - 1, 2)]
        if len(partials) % 2:
            nxt.append(partials[-1])
        partials = nxt
    feat = jnp.maximum(partials[0] + fcb_ref[...], 0.0)       # [bt, 64] f32

    # merged policy+value head, 128 output lanes (lane-dense store).
    out_ref[...] = (
        jnp.dot(feat.astype(jnp.bfloat16), hw_ref[...],
                preferred_element_type=jnp.float32)
        + hb_ref[...]
    ).astype(out_ref.dtype)


# ---------------------------------------------------------------------------
# Host-side (init-time) parameter preparation.
# ---------------------------------------------------------------------------
def _banded_conv_matrices(w_torch, w_in, pad_rows=None, pad_cols=None):
    """PyTorch conv weight [Cout, Cin, 2, 2] -> banded matrices [2, rows, cols].

    Row index  = x_in  * Cin  + ci   (x-major, channel-minor input row layout)
    Col index  = x_out * Cout + co
    M[dy][(x_out+dx)*Cin + ci, x_out*Cout + co] = w[co, ci, dy, dx]
    Extra rows / cols (pad_rows / pad_cols) are structural zeros for lane
    alignment.
    """
    w = np.asarray(w_torch, np.float32)
    cout, cin, _, _ = w.shape
    wo = w_in - 1
    rows = w_in * cin if pad_rows is None else pad_rows
    cols = wo * cout if pad_cols is None else pad_cols
    m = np.zeros((2, rows, cols), np.float32)
    for dy in range(2):
        for dx in range(2):
            blk = np.transpose(w[:, :, dy, dx])            # [Cin, Cout]
            for x in range(wo):
                r0 = (x + dx) * cin
                c0 = x * cout
                m[dy, r0:r0 + cin, c0:c0 + cout] = blk
    return m


def _tiled_bias(b, wo, pad_cols=None):
    v = np.tile(np.asarray(b, np.float32), wo)
    if pad_cols is not None:
        v = np.pad(v, (0, pad_cols - v.size))
    return v.reshape(1, -1)


def prepare_params(p, num_outputs):
    """Convert PyTorch-shaped params into the kernel's fused/banded form."""
    assert num_outputs <= 127, "merged head is padded to 128 lanes"

    m1 = _banded_conv_matrices(p["conv1_w"], 13, pad_rows=128)    # [2,128,384]
    m2 = _banded_conv_matrices(p["conv2_w"], 12, pad_cols=768)    # [2,384,768]
    m3 = _banded_conv_matrices(p["conv3_w"], 11, pad_rows=768)    # [2,768,640]

    # torch fc weight [64, 6400], input index = c*100 + y*10 + x (NCHW flatten).
    # kernel flat order = y*640 + x*64 + c  -> permute once on the host.
    fc_w = np.asarray(p["fc_w"], np.float32)
    fcw = fc_w.reshape(64, 64, 10, 10).transpose(2, 3, 1, 0).reshape(6400, 64)

    hw = np.zeros((64, 128), np.float32)
    hw[:, :num_outputs] = np.asarray(p["policy_w"], np.float32).T
    hw[:, num_outputs] = np.asarray(p["value_w"], np.float32)[0]
    hb = np.zeros((1, 128), np.float32)
    hb[0, :num_outputs] = np.asarray(p["policy_b"], np.float32)
    hb[0, num_outputs] = np.asarray(p["value_b"], np.float32)[0]

    return {
        "m1": jnp.asarray(m1, jnp.bfloat16),
        "b1r": jnp.asarray(_tiled_bias(p["conv1_b"], 12)),
        "m2": jnp.asarray(m2, jnp.bfloat16),
        "b2r": jnp.asarray(_tiled_bias(p["conv2_b"], 11, pad_cols=768)),
        "m3": jnp.asarray(m3, jnp.bfloat16),
        "b3r": jnp.asarray(_tiled_bias(p["conv3_b"], 10)),
        "fcw": jnp.asarray(fcw, jnp.bfloat16),
        "fcbr": jnp.asarray(np.asarray(p["fc_b"], np.float32).reshape(1, -1)),
        "hw": jnp.asarray(hw, jnp.bfloat16),
        "hbr": jnp.asarray(hb),
    }


# ---------------------------------------------------------------------------
# PyTorch-shaped parameters (deterministic) and forward passes.
# ---------------------------------------------------------------------------
def init_params(key, num_outputs):
    ks = jax.random.split(key, 10)

    def norm(k, shape, scale=0.05):
        return (scale * jax.random.normal(k, shape)).astype(jnp.float32)

    return {
        "conv1_w": norm(ks[0], (32, 5, 2, 2)),
        "conv1_b": norm(ks[1], (32,)),
        "conv2_w": norm(ks[2], (64, 32, 2, 2)),
        "conv2_b": norm(ks[3], (64,)),
        "conv3_w": norm(ks[4], (64, 64, 2, 2)),
        "conv3_b": norm(ks[5], (64,)),
        "fc_w": norm(ks[6], (64, 6400)),            # torch Linear: [out, in]
        "fc_b": norm(ks[7], (64,)),
        "policy_w": norm(ks[8], (num_outputs, 64)),
        "policy_b": jnp.zeros((num_outputs,), jnp.float32),
        "value_w": norm(ks[9], (1, 64)),
        "value_b": jnp.zeros((1,), jnp.float32),
    }


def battle_model_forward(kparams, obs, num_outputs, batch_tile=16):
    """obs: [B, 13, 13, 5] NHWC (the torch module permutes NHWC->NCHW itself)."""
    B, H, W, C = obs.shape
    bt = batch_tile
    assert bt % 16 == 0, "batch tile must be a multiple of the bf16 sublane tile"
    LANE = 128
    n_tiles = pl.cdiv(B, bt)
    b_pad = n_tiles * bt

    # y-major / batch-minor row layout per tile: row = (t*H + y)*bt + b,
    # column = x*C + c, lane-padded to 128, cast to bf16 (halves input DMA).
    obs_p = jnp.pad(obs, ((0, b_pad - B), (0, 0), (0, 0), (0, 0)))
    rows = obs_p.reshape(n_tiles, bt, H, W * C)
    rows = jnp.transpose(rows, (0, 2, 1, 3)).reshape(n_tiles * H * bt, W * C)
    rows = jnp.pad(rows, ((0, 0), (0, LANE - W * C))).astype(jnp.bfloat16)

    def resident(arr):
        # Full-array block with a constant index_map: DMA'd into VMEM once,
        # stays resident across all grid steps (no per-step weight reload).
        ndim = arr.ndim
        return pl.BlockSpec(arr.shape, lambda *_: (0,) * ndim)

    out = pl.pallas_call(
        _battle_fused_kernel,
        out_shape=jax.ShapeDtypeStruct((b_pad, LANE), jnp.float32),
        grid_spec=pltpu.PrefetchScalarGridSpec(
            num_scalar_prefetch=0,
            grid=(n_tiles,),
            in_specs=[
                pl.BlockSpec((H * bt, LANE), lambda i: (i, 0)),   # input rows tile
                resident(kparams["m1"]), resident(kparams["b1r"]),
                resident(kparams["m2"]), resident(kparams["b2r"]),
                resident(kparams["m3"]), resident(kparams["b3r"]),
                resident(kparams["fcw"]), resident(kparams["fcbr"]),
                resident(kparams["hw"]), resident(kparams["hbr"]),
            ],
            out_specs=pl.BlockSpec((bt, LANE), lambda i: (i, 0)),
            scratch_shapes=[
                pltpu.VMEM(((H - 1) * bt, 32 * (W - 1)), jnp.bfloat16),  # a1 [12bt,384]
                pltpu.VMEM(((H - 2) * bt, 768), jnp.bfloat16),           # a2 [11bt,768]
                pltpu.VMEM(((H - 3) * bt, 64 * (W - 3)), jnp.bfloat16),  # a3 [10bt,640]
            ],
        ),
        compiler_params=pltpu.CompilerParams(
            # batch tiles are independent -> shard across v7x's 2 TensorCores
            dimension_semantics=("parallel",),
            vmem_limit_bytes=24 * 1024 * 1024,   # ~12 MB peak incl. 2x weight bufs
        ),
    )(rows,
      kparams["m1"], kparams["b1r"],
      kparams["m2"], kparams["b2r"],
      kparams["m3"], kparams["b3r"],
      kparams["fcw"], kparams["fcbr"],
      kparams["hw"], kparams["hbr"])

    logits = out[:B, :num_outputs]
    value = out[:B, num_outputs]          # value_function() -> flattened [B]
    return logits, value


def reference_forward(params, obs, num_outputs):
    """Pure-JAX f32 port of the PyTorch module (for correctness check)."""
    def conv(x, w, b):
        w_hwio = jnp.transpose(w, (2, 3, 1, 0))
        y = jax.lax.conv_general_dilated(
            x, w_hwio, window_strides=(1, 1), padding="VALID",
            dimension_numbers=("NHWC", "HWIO", "NHWC"))
        return jax.nn.relu(y + b)

    h = conv(obs, params["conv1_w"], params["conv1_b"])
    h = conv(h, params["conv2_w"], params["conv2_b"])
    h = conv(h, params["conv3_w"], params["conv3_b"])
    flat = jnp.transpose(h, (0, 3, 1, 2)).reshape(h.shape[0], -1)  # NCHW flatten
    feat = jax.nn.relu(flat @ params["fc_w"].T + params["fc_b"])
    logits = feat @ params["policy_w"].T + params["policy_b"]
    value = feat @ params["value_w"].T + params["value_b"]
    return logits, value.reshape(-1)


if __name__ == "__main__":
    num_outputs = 9
    key = jax.random.PRNGKey(0)
    kp, kx1, kx2 = jax.random.split(key, 3)

    torch_params = init_params(kp, num_outputs)
    kparams = prepare_params(torch_params, num_outputs)

    fwd = jax.jit(functools.partial(battle_model_forward,
                                    num_outputs=num_outputs, batch_tile=16))

    # B=2 exercises a single (padded) batch tile; B=20 exercises a 2-step grid
    # with resident weights.
    for B, kx in ((2, kx1), (20, kx2)):
        obs = jax.random.uniform(kx, (B, 13, 13, 5), dtype=jnp.float32)
        logits, value = fwd(kparams, obs)
        jax.block_until_ready((logits, value))

        assert logits.shape == (B, num_outputs), logits.shape
        assert value.shape == (B,), value.shape

        # Loose tolerance: bf16 operands everywhere (f32 accumulation).
        ref_logits, ref_value = reference_forward(torch_params, obs, num_outputs)
        np.testing.assert_allclose(np.asarray(logits), np.asarray(ref_logits),
                                   rtol=0.1, atol=0.03)
        np.testing.assert_allclose(np.asarray(value), np.asarray(ref_value),
                                   rtol=0.1, atol=0.03)

    print("KERNEL_OK")
</pallas_src>

<mosaic_0001>
module attributes {stable_mosaic.version = 11 : i64} {
  func.func @_battle_fused_kernel(%arg0: i32, %arg1: memref<208x128xbf16, #tpu.memory_space<vmem>>, %arg2: memref<2x128x384xbf16, #tpu.memory_space<vmem>>, %arg3: memref<1x384xf32, #tpu.memory_space<vmem>>, %arg4: memref<2x384x768xbf16, #tpu.memory_space<vmem>>, %arg5: memref<1x768xf32, #tpu.memory_space<vmem>>, %arg6: memref<2x768x640xbf16, #tpu.memory_space<vmem>>, %arg7: memref<1x640xf32, #tpu.memory_space<vmem>>, %arg8: memref<6400x64xbf16, #tpu.memory_space<vmem>>, %arg9: memref<1x64xf32, #tpu.memory_space<vmem>>, %arg10: memref<64x128xbf16, #tpu.memory_space<vmem>>, %arg11: memref<1x128xf32, #tpu.memory_space<vmem>>, %arg12: memref<16x128xf32, #tpu.memory_space<vmem>>, %arg13: memref<192x384xbf16, #tpu.memory_space<vmem>>, %arg14: memref<176x768xbf16, #tpu.memory_space<vmem>>, %arg15: memref<160x640xbf16, #tpu.memory_space<vmem>>) attributes {dimension_semantics = [#tpu.dimension_semantics<parallel>], iteration_bounds = array<i64: 1>, scalar_prefetch = 0 : i64, scratch_operands = 3 : i64, tpu.core_type = #tpu.core_type<tc>, window_params = [{transform_indices = @transform_0, window_bounds = array<i64: 208, 128>}, {pipeline_mode = #tpu.pipeline_mode<synchronous>, transform_indices = @transform_1, window_bounds = array<i64: 2, 128, 384>}, {pipeline_mode = #tpu.pipeline_mode<synchronous>, transform_indices = @transform_2, window_bounds = array<i64: 1, 384>}, {pipeline_mode = #tpu.pipeline_mode<synchronous>, transform_indices = @transform_3, window_bounds = array<i64: 2, 384, 768>}, {pipeline_mode = #tpu.pipeline_mode<synchronous>, transform_indices = @transform_4, window_bounds = array<i64: 1, 768>}, {pipeline_mode = #tpu.pipeline_mode<synchronous>, transform_indices = @transform_5, window_bounds = array<i64: 2, 768, 640>}, {pipeline_mode = #tpu.pipeline_mode<synchronous>, transform_indices = @transform_6, window_bounds = array<i64: 1, 640>}, {pipeline_mode = #tpu.pipeline_mode<synchronous>, transform_indices = @transform_7, window_bounds = array<i64: 6400, 64>}, {pipeline_mode = #tpu.pipeline_mode<synchronous>, transform_indices = @transform_8, window_bounds = array<i64: 1, 64>}, {pipeline_mode = #tpu.pipeline_mode<synchronous>, transform_indices = @transform_9, window_bounds = array<i64: 64, 128>}, {pipeline_mode = #tpu.pipeline_mode<synchronous>, transform_indices = @transform_10, window_bounds = array<i64: 1, 128>}, {transform_indices = @transform_11, window_bounds = array<i64: 16, 128>}]} {
    %c0 = arith.constant 0 : index
    %c0_0 = arith.constant 0 : index
    %0 = vector.load %arg1[%c0, %c0_0] : memref<208x128xbf16, #tpu.memory_space<vmem>>, vector<192x128xbf16>
    %c16 = arith.constant 16 : index
    %c0_1 = arith.constant 0 : index
    %1 = vector.load %arg1[%c16, %c0_1] : memref<208x128xbf16, #tpu.memory_space<vmem>>, vector<192x128xbf16>
    %c0_2 = arith.constant 0 : index
    %c0_3 = arith.constant 0 : index
    %c0_4 = arith.constant 0 : index
    %2 = vector.load %arg2[%c0_2, %c0_3, %c0_4] : memref<2x128x384xbf16, #tpu.memory_space<vmem>>, vector<1x128x384xbf16>
    %3 = vector.shape_cast %2 : vector<1x128x384xbf16> to vector<128x384xbf16>
    %cst = arith.constant dense<0.000000e+00> : vector<192x384xf32>
    %4 = tpu.matmul %0, %3, %cst {dimension_numbers = #tpu.dot_dimension_numbers<[1], [0], [0], [1], [0, 0, 1, 1], [], []>} : vector<192x128xbf16>, vector<128x384xbf16>, vector<192x384xf32> -> vector<192x384xf32>
    %c1 = arith.constant 1 : index
    %c0_5 = arith.constant 0 : index
    %c0_6 = arith.constant 0 : index
    %5 = vector.load %arg2[%c1, %c0_5, %c0_6] : memref<2x128x384xbf16, #tpu.memory_space<vmem>>, vector<1x128x384xbf16>
    %6 = vector.shape_cast %5 : vector<1x128x384xbf16> to vector<128x384xbf16>
    %cst_7 = arith.constant dense<0.000000e+00> : vector<192x384xf32>
    %7 = tpu.matmul %1, %6, %cst_7 {dimension_numbers = #tpu.dot_dimension_numbers<[1], [0], [0], [1], [0, 0, 1, 1], [], []>} : vector<192x128xbf16>, vector<128x384xbf16>, vector<192x384xf32> -> vector<192x384xf32>
    %8 = arith.addf %4, %7 : vector<192x384xf32>
    %c0_8 = arith.constant 0 : index
    %c0_9 = arith.constant 0 : index
    %9 = vector.load %arg3[%c0_8, %c0_9] : memref<1x384xf32, #tpu.memory_space<vmem>>, vector<1x384xf32>
    %10 = vector.broadcast %9 : vector<1x384xf32> to vector<192x384xf32>
    %11 = arith.addf %8, %10 : vector<192x384xf32>
    %cst_10 = arith.constant 0.000000e+00 : f32
    %12 = vector.broadcast %cst_10 : f32 to vector<192x384xf32>
    %13 = arith.maximumf %11, %12 : vector<192x384xf32>
    %14 = arith.truncf %13 : vector<192x384xf32> to vector<192x384xbf16>
    %c0_11 = arith.constant 0 : index
    %c0_12 = arith.constant 0 : index
    %15 = vector.load %arg13[%c0_11, %c0_12] : memref<192x384xbf16, #tpu.memory_space<vmem>>, vector<192x384xbf16>
    tpu.vector_store %arg13[%c0_11, %c0_12], %14 {strides = array<i32>} : memref<192x384xbf16, #tpu.memory_space<vmem>>, vector<192x384xbf16>,
    %c0_13 = arith.constant 0 : index
    %c0_14 = arith.constant 0 : index
    %16 = vector.load %arg13[%c0_13, %c0_14] : memref<192x384xbf16, #tpu.memory_space<vmem>>, vector<176x384xbf16>
    %c16_15 = arith.constant 16 : index
    %c0_16 = arith.constant 0 : index
    %17 = vector.load %arg13[%c16_15, %c0_16] : memref<192x384xbf16, #tpu.memory_space<vmem>>, vector<176x384xbf16>
    %c0_17 = arith.constant 0 : index
    %c0_18 = arith.constant 0 : index
    %c0_19 = arith.constant 0 : index
    %18 = vector.load %arg4[%c0_17, %c0_18, %c0_19] : memref<2x384x768xbf16, #tpu.memory_space<vmem>>, vector<1x384x768xbf16>
    %19 = vector.shape_cast %18 : vector<1x384x768xbf16> to vector<384x768xbf16>
    %cst_20 = arith.constant dense<0.000000e+00> : vector<176x768xf32>
    %20 = tpu.matmul %16, %19, %cst_20 {dimension_numbers = #tpu.dot_dimension_numbers<[1], [0], [0], [1], [0, 0, 1, 1], [], []>} : vector<176x384xbf16>, vector<384x768xbf16>, vector<176x768xf32> -> vector<176x768xf32>
    %c1_21 = arith.constant 1 : index
    %c0_22 = arith.constant 0 : index
    %c0_23 = arith.constant 0 : index
    %21 = vector.load %arg4[%c1_21, %c0_22, %c0_23] : memref<2x384x768xbf16, #tpu.memory_space<vmem>>, vector<1x384x768xbf16>
    %22 = vector.shape_cast %21 : vector<1x384x768xbf16> to vector<384x768xbf16>
    %cst_24 = arith.constant dense<0.000000e+00> : vector<176x768xf32>
    %23 = tpu.matmul %17, %22, %cst_24 {dimension_numbers = #tpu.dot_dimension_numbers<[1], [0], [0], [1], [0, 0, 1, 1], [], []>} : vector<176x384xbf16>, vector<384x768xbf16>, vector<176x768xf32> -> vector<176x768xf32>
    %24 = arith.addf %20, %23 : vector<176x768xf32>
    %c0_25 = arith.constant 0 : index
    %c0_26 = arith.constant 0 : index
    %25 = vector.load %arg5[%c0_25, %c0_26] : memref<1x768xf32, #tpu.memory_space<vmem>>, vector<1x768xf32>
    %26 = vector.broadcast %25 : vector<1x768xf32> to vector<176x768xf32>
    %27 = arith.addf %24, %26 : vector<176x768xf32>
    %cst_27 = arith.constant 0.000000e+00 : f32
    %28 = vector.broadcast %cst_27 : f32 to vector<176x768xf32>
    %29 = arith.maximumf %27, %28 : vector<176x768xf32>
    %30 = arith.truncf %29 : vector<176x768xf32> to vector<176x768xbf16>
    %c0_28 = arith.constant 0 : index
    %c0_29 = arith.constant 0 : index
    %31 = vector.load %arg14[%c0_28, %c0_29] : memref<176x768xbf16, #tpu.memory_space<vmem>>, vector<176x768xbf16>
    tpu.vector_store %arg14[%c0_28, %c0_29], %30 {strides = array<i32>} : memref<176x768xbf16, #tpu.memory_space<vmem>>, vector<176x768xbf16>,
    %c0_30 = arith.constant 0 : index
    %c0_31 = arith.constant 0 : index
    %32 = vector.load %arg14[%c0_30, %c0_31] : memref<176x768xbf16, #tpu.memory_space<vmem>>, vector<160x768xbf16>
    %c16_32 = arith.constant 16 : index
    %c0_33 = arith.constant 0 : index
    %33 = vector.load %arg14[%c16_32, %c0_33] : memref<176x768xbf16, #tpu.memory_space<vmem>>, vector<160x768xbf16>
    %c0_34 = arith.constant 0 : index
    %c0_35 = arith.constant 0 : index
    %c0_36 = arith.constant 0 : index
    %34 = vector.load %arg6[%c0_34, %c0_35, %c0_36] : memref<2x768x640xbf16, #tpu.memory_space<vmem>>, vector<1x768x640xbf16>
    %35 = vector.shape_cast %34 : vector<1x768x640xbf16> to vector<768x640xbf16>
    %cst_37 = arith.constant dense<0.000000e+00> : vector<160x640xf32>
    %36 = tpu.matmul %32, %35, %cst_37 {dimension_numbers = #tpu.dot_dimension_numbers<[1], [0], [0], [1], [0, 0, 1, 1], [], []>} : vector<160x768xbf16>, vector<768x640xbf16>, vector<160x640xf32> -> vector<160x640xf32>
    %c1_38 = arith.constant 1 : index
    %c0_39 = arith.constant 0 : index
    %c0_40 = arith.constant 0 : index
    %37 = vector.load %arg6[%c1_38, %c0_39, %c0_40] : memref<2x768x640xbf16, #tpu.memory_space<vmem>>, vector<1x768x640xbf16>
    %38 = vector.shape_cast %37 : vector<1x768x640xbf16> to vector<768x640xbf16>
    %cst_41 = arith.constant dense<0.000000e+00> : vector<160x640xf32>
    %39 = tpu.matmul %33, %38, %cst_41 {dimension_numbers = #tpu.dot_dimension_numbers<[1], [0], [0], [1], [0, 0, 1, 1], [], []>} : vector<160x768xbf16>, vector<768x640xbf16>, vector<160x640xf32> -> vector<160x640xf32>
    %40 = arith.addf %36, %39 : vector<160x640xf32>
    %c0_42 = arith.constant 0 : index
    %c0_43 = arith.constant 0 : index
    %41 = vector.load %arg7[%c0_42, %c0_43] : memref<1x640xf32, #tpu.memory_space<vmem>>, vector<1x640xf32>
    %42 = vector.broadcast %41 : vector<1x640xf32> to vector<160x640xf32>
    %43 = arith.addf %40, %42 : vector<160x640xf32>
    %cst_44 = arith.constant 0.000000e+00 : f32
    %44 = vector.broadcast %cst_44 : f32 to vector<160x640xf32>
    %45 = arith.maximumf %43, %44 : vector<160x640xf32>
    %46 = arith.truncf %45 : vector<160x640xf32> to vector<160x640xbf16>
    %c0_45 = arith.constant 0 : index
    %c0_46 = arith.constant 0 : index
    %47 = vector.load %arg15[%c0_45, %c0_46] : memref<160x640xbf16, #tpu.memory_space<vmem>>, vector<160x640xbf16>
    tpu.vector_store %arg15[%c0_45, %c0_46], %46 {strides = array<i32>} : memref<160x640xbf16, #tpu.memory_space<vmem>>, vector<160x640xbf16>,
    %c0_47 = arith.constant 0 : index
    %c0_48 = arith.constant 0 : index
    %48 = vector.load %arg15[%c0_47, %c0_48] : memref<160x640xbf16, #tpu.memory_space<vmem>>, vector<16x640xbf16>
    %c0_49 = arith.constant 0 : index
    %c0_50 = arith.constant 0 : index
    %49 = vector.load %arg8[%c0_49, %c0_50] : memref<6400x64xbf16, #tpu.memory_space<vmem>>, vector<640x64xbf16>
    %cst_51 = arith.constant dense<0.000000e+00> : vector<16x64xf32>
    %50 = tpu.matmul %48, %49, %cst_51 {dimension_numbers = #tpu.dot_dimension_numbers<[1], [0], [0], [1], [0, 0, 1, 1], [], []>} : vector<16x640xbf16>, vector<640x64xbf16>, vector<16x64xf32> -> vector<16x64xf32>
    %c16_52 = arith.constant 16 : index
    %c0_53 = arith.constant 0 : index
    %51 = vector.load %arg15[%c16_52, %c0_53] : memref<160x640xbf16, #tpu.memory_space<vmem>>, vector<16x640xbf16>
    %c640 = arith.constant 640 : index
    %c0_54 = arith.constant 0 : index
    %52 = vector.load %arg8[%c640, %c0_54] : memref<6400x64xbf16, #tpu.memory_space<vmem>>, vector<640x64xbf16>
    %cst_55 = arith.constant dense<0.000000e+00> : vector<16x64xf32>
    %53 = tpu.matmul %51, %52, %cst_55 {dimension_numbers = #tpu.dot_dimension_numbers<[1], [0], [0], [1], [0, 0, 1, 1], [], []>} : vector<16x640xbf16>, vector<640x64xbf16>, vector<16x64xf32> -> vector<16x64xf32>
    %c32 = arith.constant 32 : index
    %c0_56 = arith.constant 0 : index
    %54 = vector.load %arg15[%c32, %c0_56] : memref<160x640xbf16, #tpu.memory_space<vmem>>, vector<16x640xbf16>
    %c1280 = arith.constant 1280 : index
    %c0_57 = arith.constant 0 : index
    %55 = vector.load %arg8[%c1280, %c0_57] : memref<6400x64xbf16, #tpu.memory_space<vmem>>, vector<640x64xbf16>
    %cst_58 = arith.constant dense<0.000000e+00> : vector<16x64xf32>
    %56 = tpu.matmul %54, %55, %cst_58 {dimension_numbers = #tpu.dot_dimension_numbers<[1], [0], [0], [1], [0, 0, 1, 1], [], []>} : vector<16x640xbf16>, vector<640x64xbf16>, vector<16x64xf32> -> vector<16x64xf32>
    %c48 = arith.constant 48 : index
    %c0_59 = arith.constant 0 : index
    %57 = vector.load %arg15[%c48, %c0_59] : memref<160x640xbf16, #tpu.memory_space<vmem>>, vector<16x640xbf16>
    %c1920 = arith.constant 1920 : index
    %c0_60 = arith.constant 0 : index
    %58 = vector.load %arg8[%c1920, %c0_60] : memref<6400x64xbf16, #tpu.memory_space<vmem>>, vector<640x64xbf16>
    %cst_61 = arith.constant dense<0.000000e+00> : vector<16x64xf32>
    %59 = tpu.matmul %57, %58, %cst_61 {dimension_numbers = #tpu.dot_dimension_numbers<[1], [0], [0], [1], [0, 0, 1, 1], [], []>} : vector<16x640xbf16>, vector<640x64xbf16>, vector<16x64xf32> -> vector<16x64xf32>
    %c64 = arith.constant 64 : index
    %c0_62 = arith.constant 0 : index
    %60 = vector.load %arg15[%c64, %c0_62] : memref<160x640xbf16, #tpu.memory_space<vmem>>, vector<16x640xbf16>
    %c2560 = arith.constant 2560 : index
    %c0_63 = arith.constant 0 : index
    %61 = vector.load %arg8[%c2560, %c0_63] : memref<6400x64xbf16, #tpu.memory_space<vmem>>, vector<640x64xbf16>
    %cst_64 = arith.constant dense<0.000000e+00> : vector<16x64xf32>
    %62 = tpu.matmul %60, %61, %cst_64 {dimension_numbers = #tpu.dot_dimension_numbers<[1], [0], [0], [1], [0, 0, 1, 1], [], []>} : vector<16x640xbf16>, vector<640x64xbf16>, vector<16x64xf32> -> vector<16x64xf32>
    %c80 = arith.constant 80 : index
    %c0_65 = arith.constant 0 : index
    %63 = vector.load %arg15[%c80, %c0_65] : memref<160x640xbf16, #tpu.memory_space<vmem>>, vector<16x640xbf16>
    %c3200 = arith.constant 3200 : index
    %c0_66 = arith.constant 0 : index
    %64 = vector.load %arg8[%c3200, %c0_66] : memref<6400x64xbf16, #tpu.memory_space<vmem>>, vector<640x64xbf16>
    %cst_67 = arith.constant dense<0.000000e+00> : vector<16x64xf32>
    %65 = tpu.matmul %63, %64, %cst_67 {dimension_numbers = #tpu.dot_dimension_numbers<[1], [0], [0], [1], [0, 0, 1, 1], [], []>} : vector<16x640xbf16>, vector<640x64xbf16>, vector<16x64xf32> -> vector<16x64xf32>
    %c96 = arith.constant 96 : index
    %c0_68 = arith.constant 0 : index
    %66 = vector.load %arg15[%c96, %c0_68] : memref<160x640xbf16, #tpu.memory_space<vmem>>, vector<16x640xbf16>
    %c3840 = arith.constant 3840 : index
    %c0_69 = arith.constant 0 : index
    %67 = vector.load %arg8[%c3840, %c0_69] : memref<6400x64xbf16, #tpu.memory_space<vmem>>, vector<640x64xbf16>
    %cst_70 = arith.constant dense<0.000000e+00> : vector<16x64xf32>
    %68 = tpu.matmul %66, %67, %cst_70 {dimension_numbers = #tpu.dot_dimension_numbers<[1], [0], [0], [1], [0, 0, 1, 1], [], []>} : vector<16x640xbf16>, vector<640x64xbf16>, vector<16x64xf32> -> vector<16x64xf32>
    %c112 = arith.constant 112 : index
    %c0_71 = arith.constant 0 : index
    %69 = vector.load %arg15[%c112, %c0_71] : memref<160x640xbf16, #tpu.memory_space<vmem>>, vector<16x640xbf16>
    %c4480 = arith.constant 4480 : index
    %c0_72 = arith.constant 0 : index
    %70 = vector.load %arg8[%c4480, %c0_72] : memref<6400x64xbf16, #tpu.memory_space<vmem>>, vector<640x64xbf16>
    %cst_73 = arith.constant dense<0.000000e+00> : vector<16x64xf32>
    %71 = tpu.matmul %69, %70, %cst_73 {dimension_numbers = #tpu.dot_dimension_numbers<[1], [0], [0], [1], [0, 0, 1, 1], [], []>} : vector<16x640xbf16>, vector<640x64xbf16>, vector<16x64xf32> -> vector<16x64xf32>
    %c128 = arith.constant 128 : index
    %c0_74 = arith.constant 0 : index
    %72 = vector.load %arg15[%c128, %c0_74] : memref<160x640xbf16, #tpu.memory_space<vmem>>, vector<16x640xbf16>
    %c5120 = arith.constant 5120 : index
    %c0_75 = arith.constant 0 : index
    %73 = vector.load %arg8[%c5120, %c0_75] : memref<6400x64xbf16, #tpu.memory_space<vmem>>, vector<640x64xbf16>
    %cst_76 = arith.constant dense<0.000000e+00> : vector<16x64xf32>
    %74 = tpu.matmul %72, %73, %cst_76 {dimension_numbers = #tpu.dot_dimension_numbers<[1], [0], [0], [1], [0, 0, 1, 1], [], []>} : vector<16x640xbf16>, vector<640x64xbf16>, vector<16x64xf32> -> vector<16x64xf32>
    %c144 = arith.constant 144 : index
    %c0_77 = arith.constant 0 : index
    %75 = vector.load %arg15[%c144, %c0_77] : memref<160x640xbf16, #tpu.memory_space<vmem>>, vector<16x640xbf16>
    %c5760 = arith.constant 5760 : index
    %c0_78 = arith.constant 0 : index
    %76 = vector.load %arg8[%c5760, %c0_78] : memref<6400x64xbf16, #tpu.memory_space<vmem>>, vector<640x64xbf16>
    %cst_79 = arith.constant dense<0.000000e+00> : vector<16x64xf32>
    %77 = tpu.matmul %75, %76, %cst_79 {dimension_numbers = #tpu.dot_dimension_numbers<[1], [0], [0], [1], [0, 0, 1, 1], [], []>} : vector<16x640xbf16>, vector<640x64xbf16>, vector<16x64xf32> -> vector<16x64xf32>
    %78 = arith.addf %50, %53 : vector<16x64xf32>
    %79 = arith.addf %56, %59 : vector<16x64xf32>
    %80 = arith.addf %62, %65 : vector<16x64xf32>
    %81 = arith.addf %68, %71 : vector<16x64xf32>
    %82 = arith.addf %74, %77 : vector<16x64xf32>
    %83 = arith.addf %78, %79 : vector<16x64xf32>
    %84 = arith.addf %80, %81 : vector<16x64xf32>
    %85 = arith.addf %83, %84 : vector<16x64xf32>
    %86 = arith.addf %85, %82 : vector<16x64xf32>
    %c0_80 = arith.constant 0 : index
    %c0_81 = arith.constant 0 : index
    %87 = vector.load %arg9[%c0_80, %c0_81] : memref<1x64xf32, #tpu.memory_space<vmem>>, vector<1x64xf32>
    %88 = vector.broadcast %87 : vector<1x64xf32> to vector<16x64xf32>
    %89 = arith.addf %86, %88 : vector<16x64xf32>
    %cst_82 = arith.constant 0.000000e+00 : f32
    %90 = vector.broadcast %cst_82 : f32 to vector<16x64xf32>
    %91 = arith.maximumf %89, %90 : vector<16x64xf32>
    %92 = arith.truncf %91 : vector<16x64xf32> to vector<16x64xbf16>
    %c0_83 = arith.constant 0 : index
    %c0_84 = arith.constant 0 : index
    %93 = vector.load %arg10[%c0_83, %c0_84] : memref<64x128xbf16, #tpu.memory_space<vmem>>, vector<64x128xbf16>
    %cst_85 = arith.constant dense<0.000000e+00> : vector<16x128xf32>
    %94 = tpu.matmul %92, %93, %cst_85 {dimension_numbers = #tpu.dot_dimension_numbers<[1], [0], [0], [1], [0, 0, 1, 1], [], []>} : vector<16x64xbf16>, vector<64x128xbf16>, vector<16x128xf32> -> vector<16x128xf32>
    %c0_86 = arith.constant 0 : index
    %c0_87 = arith.constant 0 : index
    %95 = vector.load %arg11[%c0_86, %c0_87] : memref<1x128xf32, #tpu.memory_space<vmem>>, vector<1x128xf32>
    %96 = vector.broadcast %95 : vector<1x128xf32> to vector<16x128xf32>
    %97 = arith.addf %94, %96 : vector<16x128xf32>
    %c0_88 = arith.constant 0 : index
    %c0_89 = arith.constant 0 : index
    %98 = vector.load %arg12[%c0_88, %c0_89] : memref<16x128xf32, #tpu.memory_space<vmem>>, vector<16x128xf32>
    tpu.vector_store %arg12[%c0_88, %c0_89], %97 {strides = array<i32>} : memref<16x128xf32, #tpu.memory_space<vmem>>, vector<16x128xf32>,
    return
  }
  func.func @transform_0(%arg0: i32) -> (i32, i32) {
    %c0_i32 = arith.constant 0 : i32
    %c0_i32_0 = arith.constant 0 : i32
    return %arg0, %c0_i32 : i32, i32
  }
  func.func @transform_1(%arg0: i32) -> (i32, i32, i32) {
    %c0_i32 = arith.constant 0 : i32
    %c0_i32_0 = arith.constant 0 : i32
    %c0_i32_1 = arith.constant 0 : i32
    %c0_i32_2 = arith.constant 0 : i32
    return %c0_i32, %c0_i32_0, %c0_i32_1 : i32, i32, i32
  }
  func.func @transform_2(%arg0: i32) -> (i32, i32) {
    %c0_i32 = arith.constant 0 : i32
    %c0_i32_0 = arith.constant 0 : i32
    %c0_i32_1 = arith.constant 0 : i32
    return %c0_i32, %c0_i32_0 : i32, i32
  }
  func.func @transform_3(%arg0: i32) -> (i32, i32, i32) {
    %c0_i32 = arith.constant 0 : i32
    %c0_i32_0 = arith.constant 0 : i32
    %c0_i32_1 = arith.constant 0 : i32
    %c0_i32_2 = arith.constant 0 : i32
    return %c0_i32, %c0_i32_0, %c0_i32_1 : i32, i32, i32
  }
  func.func @transform_4(%arg0: i32) -> (i32, i32) {
    %c0_i32 = arith.constant 0 : i32
    %c0_i32_0 = arith.constant 0 : i32
    %c0_i32_1 = arith.constant 0 : i32
    return %c0_i32, %c0_i32_0 : i32, i32
  }
  func.func @transform_5(%arg0: i32) -> (i32, i32, i32) {
    %c0_i32 = arith.constant 0 : i32
    %c0_i32_0 = arith.constant 0 : i32
    %c0_i32_1 = arith.constant 0 : i32
    %c0_i32_2 = arith.constant 0 : i32
    return %c0_i32, %c0_i32_0, %c0_i32_1 : i32, i32, i32
  }
  func.func @transform_6(%arg0: i32) -> (i32, i32) {
    %c0_i32 = arith.constant 0 : i32
    %c0_i32_0 = arith.constant 0 : i32
    %c0_i32_1 = arith.constant 0 : i32
    return %c0_i32, %c0_i32_0 : i32, i32
  }
  func.func @transform_7(%arg0: i32) -> (i32, i32) {
    %c0_i32 = arith.constant 0 : i32
    %c0_i32_0 = arith.constant 0 : i32
    %c0_i32_1 = arith.constant 0 : i32
    return %c0_i32, %c0_i32_0 : i32, i32
  }
  func.func @transform_8(%arg0: i32) -> (i32, i32) {
    %c0_i32 = arith.constant 0 : i32
    %c0_i32_0 = arith.constant 0 : i32
    %c0_i32_1 = arith.constant 0 : i32
    return %c0_i32, %c0_i32_0 : i32, i32
  }
  func.func @transform_9(%arg0: i32) -> (i32, i32) {
    %c0_i32 = arith.constant 0 : i32
    %c0_i32_0 = arith.constant 0 : i32
    %c0_i32_1 = arith.constant 0 : i32
    return %c0_i32, %c0_i32_0 : i32, i32
  }
  func.func @transform_10(%arg0: i32) -> (i32, i32) {
    %c0_i32 = arith.constant 0 : i32
    %c0_i32_0 = arith.constant 0 : i32
    %c0_i32_1 = arith.constant 0 : i32
    return %c0_i32, %c0_i32_0 : i32, i32
  }
  func.func @transform_11(%arg0: i32) -> (i32, i32) {
    %c0_i32 = arith.constant 0 : i32
    %c0_i32_0 = arith.constant 0 : i32
    return %arg0, %c0_i32 : i32, i32
  }
}

</mosaic_0001>

<bundles_post_ra>
// kernel: battle_model_forward.1
= control target key start
LH: loop header
LB: loop body
LE: loop exit
PB: predicated region body
PF: predicated region fallthrough
CT: control target
= control target key end

     0   :  { %16 = vsyncpa [#allocation6], 0  ;;  %s27053_s0 = inlined_call_operand.vmem [shape: bf16[208,128], index: 0, kind: input, shape index: {}]   ;;  %s27054_s1 = inlined_call_operand.vmem [shape: bf16[2,128,384], index: 1, kind: input, shape index: {}]   ;;  %s27055_s2 = inlined_call_operand.hbm [shape: f32[1,384], index: 2, kind: input, shape index: {}]   ;;  %s27056_s3 = inlined_call_operand.vmem [shape: bf16[2,384,768], index: 3, kind: input, shape index: {}]   ;;  %s27057_s4 = inlined_call_operand.hbm [shape: f32[1,768], index: 4, kind: input, shape index: {}]   ;;  %s27058_s5 = inlined_call_operand.vmem [shape: bf16[2,768,640], index: 5, kind: input, shape index: {}]   ;;  %s27059_s6 = inlined_call_operand.hbm [shape: f32[1,640], index: 6, kind: input, shape index: {}]   ;;  %s27060_s7 = inlined_call_operand.vmem [shape: bf16[6400,64], index: 7, kind: input, shape index: {}]   ;;  %s27061_s8 = inlined_call_operand.vmem [shape: f32[1,64], index: 8, kind: input, shape index: {}]   ;;  %s27062_s9 = inlined_call_operand.vmem [shape: bf16[64,128], index: 9, kind: input, shape index: {}]   ;;  %s27063_s10 = inlined_call_operand.vmem [shape: f32[1,128], index: 10, kind: input, shape index: {}]   ;;  %s27064_s11 = inlined_call_operand.vmem [shape: f32[16,128], index: 11, kind: output, shape index: {}]  }
   0x1   :  { %17 = vsyncpa [#allocation8], 0  ;;  %s21285_s17 = smov [#allocation7]   ;;  %s21286_s19 = smov [#allocation5]  }
   0x2   :  { %s40_s18 = sshll.u32 %s21285_s17, 4  ;;  %s28_s20 = sshll.u32 %s21286_s19, 4  ;;  %s41_s18 = int_to_ptr.vmem [resolvable:$true] %s40_s18  ;;  %s29_s20 = int_to_ptr.vmem [resolvable:$true] %s28_s20 }
   0x3   :  { %s21215_s23 = scalar_lea.hbm %s27057_s4, 96 }
   0x4   :  { %p21216_p0 = scmp.ne.s32.totalorder %s27057_s4, %s21215_s23  ;;  %p21219_p1 = scmp.lt.u32.totalorder %s21215_s23, %s27057_s4 }
   0x6   :  { %p21221_p2 = pnand %p21219_p1, %p21216_p0 }
   0x8   :  { %21224 = shalt.err (!%p21221_p2)
}
   0x9   :  { %s21225_s28 = scalar_lea.vmem %s41_s18, 96  ;;  %p21230_p4 = scmp.lt.s32.totalorder %s41_s18, %s41_s18 }
   0xa   :  { %p21226_p3 = scmp.ne.s32.totalorder %s41_s18, %s21225_s28  ;;  %p21231_p5 = scmp.lt.s32.totalorder %s21225_s28, %s21225_s28 }
   0xc   :  { %p21232_p6 = por %p21231_p5, %p21230_p4 }
   0xe   :  { %p21233_p7 = pnand %p21232_p6, %p21226_p3 }
  0x10   :  { %21236 = shalt.err (!%p21233_p7)
}
  0x11   :  { %43 = dma.hbm_to_vmem [thread:$0]  %s27057_s4, 96, %s41_s18, [#allocation8]  }
  0x12   :  { %s21237_s14 = scalar_lea.hbm %s27055_s2, 48 }
  0x13   :  { %p21238_p8 = scmp.ne.s32.totalorder %s27055_s2, %s21237_s14  ;;  %p21241_p9 = scmp.lt.u32.totalorder %s21237_s14, %s27055_s2 }
  0x15   :  { %p21243_p10 = pnand %p21241_p9, %p21238_p8 }
  0x17   :  { %21246 = shalt.err (!%p21243_p10)
}
  0x18   :  { %s21247_s21 = scalar_lea.vmem %s29_s20, 48  ;;  %s21251_s22 = scalar_lea.vmem %s29_s20, 64 }
  0x19   :  { %p21248_p11 = scmp.ne.s32.totalorder %s29_s20, %s21247_s21  ;;  %p21252_p12 = scmp.lt.s32.totalorder %s29_s20, %s29_s20 }
  0x1a   :  { %p21253_p13 = scmp.lt.s32.totalorder %s21251_s22, %s21247_s21 }
  0x1c   :  { %p21254_p0 = por %p21253_p13, %p21252_p12 }
  0x1e   :  { %p21255_p1 = pnand %p21254_p0, %p21248_p11 }
  0x20   :  { %21258 = shalt.err (!%p21255_p1)
}
  0x21   :  { %31 = dma.hbm_to_vmem [thread:$0]  %s27055_s2, 48, %s29_s20, [#allocation6]  }
  0x22   :  { %s21287_s23 = smov [#allocation9]   ;;  %s21259_s27 = scalar_lea.hbm %s27059_s6, 80 }
  0x23   :  { %s52_s24 = sshll.u32 %s21287_s23, 4  ;;  %p21260_p2 = scmp.ne.s32.totalorder %s27059_s6, %s21259_s27  ;;  %s53_s24 = int_to_ptr.vmem [resolvable:$true] %s52_s24 }
  0x24   :  { %p21263_p3 = scmp.lt.u32.totalorder %s21259_s27, %s27059_s6 }
  0x26   :  { %p21265_p4 = pnand %p21263_p3, %p21260_p2 }
  0x28   :  { %21268 = shalt.err (!%p21265_p4)
}
  0x29   :  { %s21269_s13 = scalar_lea.vmem %s53_s24, 80  ;;  %s21273_s2 = scalar_lea.vmem %s53_s24, 96 }
  0x2a   :  { %p21270_p5 = scmp.ne.s32.totalorder %s53_s24, %s21269_s13  ;;  %p21274_p6 = scmp.lt.s32.totalorder %s53_s24, %s53_s24 }
  0x2b   :  { %p21275_p7 = scmp.lt.s32.totalorder %s21273_s2, %s21269_s13 }
  0x2d   :  { %p21276_p8 = por %p21275_p7, %p21274_p6 }
  0x2f   :  { %p21277_p9 = pnand %p21276_p8, %p21270_p5 }
  0x31   :  { %21280 = shalt.err (!%p21277_p9)
}
  0x32   :  { %55 = dma.hbm_to_vmem [thread:$0]  %s27059_s6, 80, %s53_s24, [#allocation8]  }
  0x33   :  { %21281 = dma.done.wait [#allocation6], 48  }
  0x34   :  { %21282 = vsyncadd [#allocation6], 4294967248 }
  0x35   :  { %21283 = dma.done.wait [#allocation8], 176  }
  0x36   :  { %21284 = vsyncadd [#allocation8], 4294967120  ;;  %v27066_v0 = vmov 0   ;;  %v19617_v1 = vld [vmem:[%s27054_s1 + $0xc4] ss:$12 sps:$4 sm:$0xff]   ;;  %v19641_v9 = vld [vmem:[%s27053_s0 + $0x8] sm:$0xff]  }
  0x37   :  { %419 = vmatprep.mubr.bf16.mxu0 %v27066_v0  ;;  %v19619_v2 = vld [vmem:[%s27054_s1 + $0xc0] ss:$12 sps:$4 sm:$0xff]   ;;  %387 = vmatprep.subr.bf16.mxu0 %v19617_v1  ;;  %v19620_v3 = vld [vmem:[%s27054_s1 + $0xdc] ss:$12 sps:$4 sm:$0xff]   ;;  %v19622_v4 = vld [vmem:[%s27054_s1 + $0xd8] ss:$12 sps:$4 sm:$0xff]  }
  0x38   :  { %388 = vmatpush1.bf16.msra.mxu0 %v19619_v2  ;;  %v19623_v5 = vld [vmem:[%s27054_s1 + $0xf4] ss:$12 sps:$4 sm:$0xff]   ;;  %v19625_v6 = vld [vmem:[%s27054_s1 + $0xf0] ss:$12 sps:$4 sm:$0xff]   ;;  %v19626_v7 = vld [vmem:[%s27054_s1 + $0x10c] ss:$12 sps:$4 sm:$0xff]   ;;  %18467 = vmatprep.mubr.bf16.mxu1 %v19641_v9 }
  0x39   :  { %389 = vmatprep.subr.bf16.mxu0 %v19620_v3  ;;  %v19628_v8 = vld [vmem:[%s27054_s1 + $0x108] ss:$12 sps:$4 sm:$0xff]   ;;  %v19629_v10 = vld [vmem:[%s27054_s1 + $0x124] ss:$12 sps:$4 sm:$0xff]   ;;  %v19631_v11 = vld [vmem:[%s27054_s1 + $0x120] ss:$12 sps:$4 sm:$0xff]  }
  0x3a   :  { %v19632_v12 = vld [vmem:[%s27054_s1 + $0x13c] ss:$12 sps:$4 sm:$0xff]   ;;  %v19634_v13 = vld [vmem:[%s27054_s1 + $0x138] ss:$12 sps:$4 sm:$0xff]   ;;  %v19635_v14 = vld [vmem:[%s27054_s1 + $0x154] ss:$12 sps:$4 sm:$0xff]  }
  0x3b   :  { %v19637_v15 = vld [vmem:[%s27054_s1 + $0x150] ss:$12 sps:$4 sm:$0xff]   ;;  %v19638_v16 = vld [vmem:[%s27054_s1 + $0x16c] ss:$12 sps:$4 sm:$0xff]   ;;  %v19640_v17 = vld [vmem:[%s27054_s1 + $0x168] ss:$12 sps:$4 sm:$0xff]  }
  0x3c   :  { %390 = vmatpush1.bf16.msra.mxu0 %v19622_v4  ;;  %v19667_v18 = vld [vmem:[%s27054_s1 + $0xc8] ss:$12 sps:$4 sm:$0xff]   ;;  %v19644_v19 = vld [vmem:[%s27054_s1 + $0x4] ss:$12 sps:$4 sm:$0xff]   ;;  %v19669_v20 = vld [vmem:[%s27054_s1 + $0xe0] ss:$12 sps:$4 sm:$0xff]  }
  0x3d   :  { %391 = vmatprep.subr.bf16.mxu0 %v19623_v5  ;;  %18451 = vmatprep.subr.bf16.mxu1 %v19667_v18  ;;  %v19642_v21 = vld [vmem:[%s27054_s1] ss:$12 sps:$4 sm:$0xff]   ;;  %v19648_v22 = vld [vmem:[%s27054_s1 + $0x1c] ss:$12 sps:$4 sm:$0xff]   ;;  %v19670_v23 = vld [vmem:[%s27054_s1 + $0xf8] ss:$12 sps:$4 sm:$0xff]  }
  0x3e   :  { %18452 = vmatpush3.bf16.msra.mxu1 %v19667_v18  ;;  %v19646_v24 = vld [vmem:[%s27054_s1 + $0x18] ss:$12 sps:$4 sm:$0xff]   ;;  %v19675_v25 = vld [vmem:[%s27054_s1 + $0x110] ss:$12 sps:$4 sm:$0xff]   ;;  %v19653_v26 = vld [vmem:[%s27054_s1 + $0x34] ss:$12 sps:$4 sm:$0xff]  }
  0x3f   :  { %18453 = vmatprep.subr.bf16.mxu1 %v19669_v20  ;;  %v19645_v27 = vld [vmem:[%s27053_s0 + $0x10] sm:$0xff]   ;;  %v19657_v29 = vld [vmem:[%s27054_s1 + $0x4c] ss:$12 sps:$4 sm:$0xff]   ;;  %v19666_v36 = vld [vmem:[%s27054_s1 + $0x7c] ss:$12 sps:$4 sm:$0xff]   ;;  %vm21290_vm0 = vmmov 0  }
  0x40   :  { %392 = vmatpush1.bf16.msra.mxu0 %v19625_v6  ;;  %v19651_v28 = vld [vmem:[%s27054_s1 + $0x30] ss:$12 sps:$4 sm:$0xff]   ;;  %v19676_v30 = vld [vmem:[%s27054_s1 + $0x128] ss:$12 sps:$4 sm:$0xff]   ;;  %v19678_v32 = vld [vmem:[%s27054_s1 + $0x140] ss:$12 sps:$4 sm:$0xff]  }
  0x41   :  { %393 = vmatprep.subr.bf16.mxu0 %v19626_v7  ;;  %v19655_v31 = vld [vmem:[%s27054_s1 + $0x48] ss:$12 sps:$4 sm:$0xff]   ;;  %v19662_v33 = vld [vmem:[%s27054_s1 + $0x64] ss:$12 sps:$4 sm:$0xff]   ;;  %v19649_v34 = vld [vmem:[%s27053_s0 + $0x18] sm:$0xff]   ;;  %vm15656_vm1 = vcmask 523264  }
  0x42   :  { %18454 = vmatpush3.bf16.msra.mxu1 %v19669_v20  ;;  %v19660_v35 = vld [vmem:[%s27054_s1 + $0x60] ss:$12 sps:$4 sm:$0xff]   ;;  %v19682_v37 = vld [vmem:[%s27054_s1 + $0x158] ss:$12 sps:$4 sm:$0xff]   ;;  %v19684_v39 = vld [vmem:[%s27054_s1 + $0x170] ss:$12 sps:$4 sm:$0xff]  }
  0x43   :  { %18455 = vmatprep.subr.bf16.mxu1 %v19670_v23  ;;  %v19664_v38 = vld [vmem:[%s27054_s1 + $0x78] ss:$12 sps:$4 sm:$0xff]   ;;  %v19674_v40 = vld [vmem:[%s27054_s1 + $0x94] ss:$12 sps:$4 sm:$0xff]   ;;  %v19672_v42 = vld [vmem:[%s27054_s1 + $0x90] ss:$12 sps:$4 sm:$0xff]  }
  0x44   :  { %394 = vmatpush1.bf16.msra.mxu0 %v19628_v8  ;;  %v19650_v41 = vld [vmem:[%s27053_s0 + $0x20] sm:$0xff]   ;;  %v19681_v43 = vld [vmem:[%s27054_s1 + $0xac] ss:$12 sps:$4 sm:$0xff]   ;;  %v19687_v44 = vld [vmem:[%s27054_s1 + $0x8] ss:$12 sps:$4 sm:$0xff]  }
  0x45   :  { %395 = vmatprep.subr.bf16.mxu0 %v19629_v10  ;;  %v19679_v45 = vld [vmem:[%s27054_s1 + $0xa8] ss:$12 sps:$4 sm:$0xff]   ;;  %v19689_v46 = vld [vmem:[%s27054_s1 + $0x20] ss:$12 sps:$4 sm:$0xff]   ;;  %v19690_v48 = vld [vmem:[%s27054_s1 + $0x38] ss:$12 sps:$4 sm:$0xff]  }
  0x46   :  { %18456 = vmatpush3.bf16.msra.mxu1 %v19670_v23  ;;  %v19654_v47 = vld [vmem:[%s27053_s0 + $0x28] sm:$0xff]   ;;  %v19692_v49 = vld [vmem:[%s27054_s1 + $0x50] ss:$12 sps:$4 sm:$0xff]   ;;  %v19696_v54 = vld [vmem:[%s27054_s1 + $0x98] ss:$12 sps:$4 sm:$0xff]  }
  0x47   :  { %18457 = vmatprep.subr.bf16.mxu1 %v19675_v25  ;;  %v19658_v50 = vld [vmem:[%s27053_s0 + $0x30] sm:$0xff]   ;;  %v19659_v52 = vld [vmem:[%s27053_s0 + $0x38] sm:$0xff]   ;;  %v19695_v53 = vld [vmem:[%s27054_s1 + $0x80] ss:$12 sps:$4 sm:$0xff]  }
  0x48   :  { %396 = vmatpush1.bf16.msra.mxu0 %v19631_v11  ;;  %v19693_v51 = vld [vmem:[%s27054_s1 + $0x68] ss:$12 sps:$4 sm:$0xff]   ;;  %v19663_v55 = vld [vmem:[%s27053_s0 + $0x40] sm:$0xff]   ;;  %v19698_v57 = vld [vmem:[%s27054_s1 + $0xb0] ss:$12 sps:$4 sm:$0xff]  }
  0x49   :  { %397 = vmatprep.subr.bf16.mxu0 %v19632_v12  ;;  %v19668_v56 = vld [vmem:[%s27053_s0 + $0x48] sm:$0xff]   ;;  %v19707_v58 = vld [vmem:[%s27056_s3 + $0x484] ss:$24 sps:$4 sm:$0xff]   ;;  %v19671_v59 = vld [vmem:[%s27053_s0 + $0x50] sm:$0xff]  }
  0x4a   :  { %18458 = vmatpush3.bf16.msra.mxu1 %v19675_v25  ;;  %v19710_v60 = vld [vmem:[%s27056_s3 + $0x48c] ss:$24 sps:$4 sm:$0xff]   ;;  %v19677_v61 = vld [vmem:[%s27053_s0 + $0x58] sm:$0xff]   ;;  %v21600_v4 = vld [vmem:[%s27053_s0 + $0x10] sm:$0xff]  }
  0x4b   :  { %18459 = vmatprep.subr.bf16.mxu1 %v19676_v30  ;;  %v19683_v62 = vld [vmem:[%s27053_s0 + $0x60] sm:$0xff]   ;;  %v21589_v1 = vld [vmem:[%s27053_s0 + $0x8] sm:$0xff]   ;;  %v21617_v8 = vld [vmem:[%s27053_s0 + $0x18] sm:$0xff]  }
  0x4c   :  { %398 = vmatpush1.bf16.msra.mxu0 %v19634_v13  ;;  %v19685_v63 = vld [vmem:[%s27053_s0] sm:$0xff]   ;;  %v19713_v3 = vld [vmem:[%s27056_s3 + $0x4b4] ss:$24 sps:$4 sm:$0xff]   ;;  %v19711_v5 = vld [vmem:[%s27056_s3 + $0x4b0] ss:$24 sps:$4 sm:$0xff]  }
  0x4d   :  { %399 = vmatprep.subr.bf16.mxu0 %v19635_v14  ;;  %v19705_v2 = vld [vmem:[%s27056_s3 + $0x480] ss:$24 sps:$4 sm:$0xff]   ;;  %v19719_v6 = vld [vmem:[%s27056_s3 + $0x4e4] ss:$24 sps:$4 sm:$0xff]   ;;  %v19723_v11 = vld [vmem:[%s27056_s3 + $0x510] ss:$24 sps:$4 sm:$0xff]  }
  0x4e   :  { %18460 = vmatpush3.bf16.msra.mxu1 %v19676_v30  ;;  %v19717_v7 = vld [vmem:[%s27056_s3 + $0x4e0] ss:$24 sps:$4 sm:$0xff]   ;;  %v19731_v12 = vld [vmem:[%s27056_s3 + $0x544] ss:$24 sps:$4 sm:$0xff]   ;;  %v21642_v14 = vld [vmem:[%s27053_s0 + $0x28] sm:$0xff]  }
  0x4f   :  { %18461 = vmatprep.subr.bf16.mxu1 %v19678_v32  ;;  %v21625_v10 = vld [vmem:[%s27053_s0 + $0x20] sm:$0xff]   ;;  %v19714_v23 = vld [vmem:[%s27056_s3 + $0x4b8] ss:$24 sps:$4 sm:$0xff]  }
  0x50   :  { %400 = vmatpush1.bf16.msra.mxu0 %v19637_v15  ;;  %v19729_v13 = vld [vmem:[%s27056_s3 + $0x540] ss:$24 sps:$4 sm:$0xff]   ;;  %v19737_v15 = vld [vmem:[%s27056_s3 + $0x574] ss:$24 sps:$4 sm:$0xff]   ;;  %v19743_v20 = vld [vmem:[%s27056_s3 + $0x5a4] ss:$24 sps:$4 sm:$0xff]  }
  0x51   :  { %401 = vmatprep.subr.bf16.mxu0 %v19638_v16  ;;  %v21650_v16 = vld [vmem:[%s27053_s0 + $0x30] sm:$0xff]   ;;  %v19708_v18 = vld [vmem:[%s27056_s3 + $0x488] ss:$24 sps:$4 sm:$0xff]   ;;  %v19755_v30 = vld [vmem:[%s27056_s3 + $0x604] ss:$24 sps:$4 sm:$0xff]  }
  0x52   :  { %18462 = vmatpush3.bf16.msra.mxu1 %v19678_v32  ;;  %v21684_v25 = vld [vmem:[%s27053_s0 + $0x40] sm:$0xff]   ;;  %v21710_v32 = vld [vmem:[%s27053_s0 + $0x48] sm:$0xff]  }
  0x53   :  { %18463 = vmatprep.subr.bf16.mxu1 %v19682_v37 }
  0x54   :  { %402 = vmatpush1.bf16.msra.mxu0 %v19640_v17  ;;  %v19735_v17 = vld [vmem:[%s27056_s3 + $0x570] ss:$24 sps:$4 sm:$0xff]  }
  0x55   :  { %869 = vmatprep.subr.bf16.mxu0 %v19644_v19  ;;  %v19716_v19 = vld [vmem:[%s27056_s3 + $0x4bc] ss:$24 sps:$4 sm:$0xff]  }
  0x56   :  { %18464 = vmatpush3.bf16.msra.mxu1 %v19682_v37  ;;  %v19759_v37 = vld [vmem:[%s27056_s3 + $0x630] ss:$24 sps:$4 sm:$0xff]  }
  0x57   :  { %420 = vmatmul.mubr.bf16.vlgmr.msra.gmra.mrb[0].mxu0 %v19641_v9  ;;  %18465 = vmatprep.subr.bf16.mxu1 %v19684_v39  ;;  %v19725_v9 = vld [vmem:[%s27056_s3 + $0x514] ss:$24 sps:$4 sm:$0xff]  }
  0x58   :  { %870 = vmatpush1.bf16.msra.mxu0 %v19642_v21  ;;  %429 = vmatprep.mubr.bf16.mxu0 %v27066_v0  ;;  %v19741_v21 = vld [vmem:[%s27056_s3 + $0x5a0] ss:$24 sps:$4 sm:$0xff]  }
  0x59   :  { %871 = vmatprep.subr.bf16.mxu0 %v19648_v22  ;;  %v21673_v22 = vld [vmem:[%s27053_s0 + $0x38] sm:$0xff]  }
  0x5a   :  { %18466 = vmatpush3.bf16.msra.mxu1 %v19684_v39  ;;  %v19740_v39 = vld [vmem:[%s27056_s3 + $0x57c] ss:$24 sps:$4 sm:$0xff]  }
  0x5b   :  { %18491 = vmatprep.subr.bf16.mxu1 %v19687_v44 }
  0x5c   :  { %872 = vmatpush1.bf16.msra.mxu0 %v19646_v24  ;;  %v19749_v24 = vld [vmem:[%s27056_s3 + $0x5d4] ss:$24 sps:$4 sm:$0xff]  }
  0x5d   :  { %873 = vmatprep.subr.bf16.mxu0 %v19653_v26  ;;  %18468 = vmatmul.mubr.bf16.vlgmr.msra.gmra.mrb[0].mxu1 %v19645_v27  ;;  %v19722_v26 = vld [vmem:[%s27056_s3 + $0x4ec] ss:$24 sps:$4 sm:$0xff]  }
  0x5e   :  { %18471 = vmatprep.mubr.bf16.mxu1 %v19649_v34  ;;  %18492 = vmatpush3.bf16.msra.mxu1 %v19687_v44  ;;  %v19773_v44 = vld [vmem:[%s27056_s3 + $0x694] ss:$24 sps:$4 sm:$0xff]  }
  0x5f   :  { %430 = vmatmul.mubr.bf16.gmra.mrb[4].mxu0 %v19645_v27  ;;  %18493 = vmatprep.subr.bf16.mxu1 %v19689_v46  ;;  %v19747_v27 = vld [vmem:[%s27056_s3 + $0x5d0] ss:$24 sps:$4 sm:$0xff]  }
  0x60   :  { %439 = vmatprep.mubr.bf16.mxu0 %v27066_v0  ;;  %874 = vmatpush1.bf16.msra.mxu0 %v19651_v28  ;;  %v19720_v28 = vld [vmem:[%s27056_s3 + $0x4e8] ss:$24 sps:$4 sm:$0xff]  }
  0x61   :  { %875 = vmatprep.subr.bf16.mxu0 %v19657_v29  ;;  %v19728_v29 = vld [vmem:[%s27056_s3 + $0x51c] ss:$24 sps:$4 sm:$0xff]  }
  0x62   :  { %18494 = vmatpush3.bf16.msra.mxu1 %v19689_v46  ;;  %v19771_v46 = vld [vmem:[%s27056_s3 + $0x690] ss:$24 sps:$4 sm:$0xff]  }
  0x63   :  { %18495 = vmatprep.subr.bf16.mxu1 %v19690_v48 }
  0x64   :  { %876 = vmatpush1.bf16.msra.mxu0 %v19655_v31  ;;  %v19753_v31 = vld [vmem:[%s27056_s3 + $0x600] ss:$24 sps:$4 sm:$0xff]  }
  0x65   :  { %877 = vmatprep.subr.bf16.mxu0 %v19662_v33  ;;  %18472 = vmatmul.mubr.bf16.gmra.mrb[4].mxu1 %v19650_v41  ;;  %v19726_v33 = vld [vmem:[%s27056_s3 + $0x518] ss:$24 sps:$4 sm:$0xff]  }
  0x66   :  { %18475 = vmatprep.mubr.bf16.mxu1 %v19654_v47  ;;  %18496 = vmatpush3.bf16.msra.mxu1 %v19690_v48  ;;  %v19752_v48 = vld [vmem:[%s27056_s3 + $0x5dc] ss:$24 sps:$4 sm:$0xff]  }
  0x67   :  { %440 = vmatmul.mubr.bf16.gmra.mrb[8].mxu0 %v19649_v34  ;;  %18497 = vmatprep.subr.bf16.mxu1 %v19692_v49  ;;  %v19761_v34 = vld [vmem:[%s27056_s3 + $0x634] ss:$24 sps:$4 sm:$0xff]  }
  0x68   :  { %449 = vmatprep.mubr.bf16.mxu0 %v27066_v0  ;;  %878 = vmatpush1.bf16.msra.mxu0 %v19660_v35  ;;  %v21722_v35 = vld [vmem:[%s27053_s0 + $0x50] sm:$0xff]  }
  0x69   :  { %879 = vmatprep.subr.bf16.mxu0 %v19666_v36  ;;  %v19734_v36 = vld [vmem:[%s27056_s3 + $0x54c] ss:$24 sps:$4 sm:$0xff]  }
  0x6a   :  { %18498 = vmatpush3.bf16.msra.mxu1 %v19692_v49  ;;  %v19750_v49 = vld [vmem:[%s27056_s3 + $0x5d8] ss:$24 sps:$4 sm:$0xff]  }
  0x6b   :  { %18499 = vmatprep.subr.bf16.mxu1 %v19693_v51 }
  0x6c   :  { %880 = vmatpush1.bf16.msra.mxu0 %v19664_v38  ;;  %v19732_v38 = vld [vmem:[%s27056_s3 + $0x548] ss:$24 sps:$4 sm:$0xff]  }
  0x6d   :  { %881 = vmatprep.subr.bf16.mxu0 %v19674_v40  ;;  %18476 = vmatmul.mubr.bf16.gmra.mrb[8].mxu1 %v19658_v50  ;;  %v19767_v40 = vld [vmem:[%s27056_s3 + $0x664] ss:$24 sps:$4 sm:$0xff]  }
  0x6e   :  { %18479 = vmatprep.mubr.bf16.mxu1 %v19659_v52  ;;  %18500 = vmatpush3.bf16.msra.mxu1 %v19693_v51  ;;  %v19756_v51 = vld [vmem:[%s27056_s3 + $0x608] ss:$24 sps:$4 sm:$0xff]  }
  0x6f   :  { %450 = vmatmul.mubr.bf16.gmra.mrb[12].mxu0 %v19650_v41  ;;  %18501 = vmatprep.subr.bf16.mxu1 %v19695_v53  ;;  %v21745_v41 = vld [vmem:[%s27053_s0 + $0x58] sm:$0xff]  }
  0x70   :  { %459 = vmatprep.mubr.bf16.mxu0 %v27066_v0  ;;  %882 = vmatpush1.bf16.msra.mxu0 %v19672_v42  ;;  %v19765_v42 = vld [vmem:[%s27056_s3 + $0x660] ss:$24 sps:$4 sm:$0xff]  }
  0x71   :  { %883 = vmatprep.subr.bf16.mxu0 %v19681_v43  ;;  %v19738_v43 = vld [vmem:[%s27056_s3 + $0x578] ss:$24 sps:$4 sm:$0xff]  }
  0x72   :  { %18502 = vmatpush3.bf16.msra.mxu1 %v19695_v53  ;;  %v19762_v53 = vld [vmem:[%s27056_s3 + $0x638] ss:$24 sps:$4 sm:$0xff]  }
  0x73   :  { %18503 = vmatprep.subr.bf16.mxu1 %v19696_v54 }
  0x74   :  { %884 = vmatpush1.bf16.msra.mxu0 %v19679_v45  ;;  %v19746_v45 = vld [vmem:[%s27056_s3 + $0x5ac] ss:$24 sps:$4 sm:$0xff]  }
  0x75   :  { %18480 = vmatmul.mubr.bf16.gmra.mrb[12].mxu1 %v19663_v55  ;;  %2745 = vmatprep.subr.bf16.mxu0 %v19710_v60  ;;  %v19777_v60 = vld [vmem:[%s27056_s3 + $0x6c0] ss:$24 sps:$4 sm:$0xff]  }
  0x76   :  { %18483 = vmatprep.mubr.bf16.mxu1 %v19668_v56  ;;  %18504 = vmatpush3.bf16.msra.mxu1 %v19696_v54  ;;  %v19770_v54 = vld [vmem:[%s27056_s3 + $0x66c] ss:$24 sps:$4 sm:$0xff]  }
  0x77   :  { %460 = vmatmul.mubr.bf16.gmra.mrb[16].mxu0 %v19654_v47  ;;  %18505 = vmatprep.subr.bf16.mxu1 %v19698_v57  ;;  %v19744_v47 = vld [vmem:[%s27056_s3 + $0x5a8] ss:$24 sps:$4 sm:$0xff]  }
  0x78   :  { %469 = vmatprep.mubr.bf16.mxu0 %v27066_v0 }
  0x7a   :  { %18506 = vmatpush3.bf16.msra.mxu1 %v19698_v57  ;;  %v19774_v57 = vld [vmem:[%s27056_s3 + $0x698] ss:$24 sps:$4 sm:$0xff]  }
  0x7b   :  { %2459 = vmatprep.subr.bf16.mxu1 %v19707_v58  ;;  %v19779_v58 = vld [vmem:[%s27056_s3 + $0x6c4] ss:$24 sps:$4 sm:$0xff]  }
  0x7d   :  { %18484 = vmatmul.mubr.bf16.gmra.mrb[16].mxu1 %v19671_v59 }
  0x7e   :  { %18487 = vmatprep.mubr.bf16.mxu1 %v19677_v61 }
  0x7f   :  { %470 = vmatmul.mubr.bf16.gmra.mrb[20].mxu0 %v19658_v50  ;;  %v19758_v50 = vld [vmem:[%s27056_s3 + $0x60c] ss:$24 sps:$4 sm:$0xff]  }
  0x80   :  { %479 = vmatprep.mubr.bf16.mxu0 %v27066_v0 }
  0x85   :  { %18488 = vmatmul.mubr.bf16.gmra.mrb[20].mxu1 %v19683_v62 }
  0x86   :  { %18507 = vmatprep.mubr.bf16.mxu1 %v19685_v63 }
  0x87   :  { %480 = vmatmul.mubr.bf16.gmra.mrb[24].mxu0 %v19659_v52  ;;  %v19764_v52 = vld [vmem:[%s27056_s3 + $0x63c] ss:$24 sps:$4 sm:$0xff]  }
  0x88   :  { %489 = vmatprep.mubr.bf16.mxu0 %v27066_v0 }
  0x8d   :  { %18508 = vmatmul.mubr.bf16.vlgmr.msra.gmra.mrb[0].mxu1 %v21589_v1 }
  0x8e   :  { %18511 = vmatprep.mubr.bf16.mxu1 %v21600_v4  ;;  %2460 = vmatpush1.bf16.msra.mxu1 %v19705_v2  ;;  %v19786_v2 = vld [vmem:[%s27056_s3 + $0x6f8] ss:$24 sps:$4 sm:$0xff]  }
  0x8f   :  { %490 = vmatmul.mubr.bf16.gmra.mrb[28].mxu0 %v19663_v55  ;;  %2461 = vmatprep.subr.bf16.mxu1 %v19713_v3  ;;  %v19768_v55 = vld [vmem:[%s27056_s3 + $0x668] ss:$24 sps:$4 sm:$0xff]   ;;  %v19791_v3 = vld [vmem:[%s27056_s3 + $0x724] ss:$24 sps:$4 sm:$0xff]  }
  0x90   :  { %499 = vmatprep.mubr.bf16.mxu0 %v27066_v0 }
  0x92   :  { %2462 = vmatpush1.bf16.msra.mxu1 %v19711_v5  ;;  %v19789_v5 = vld [vmem:[%s27056_s3 + $0x720] ss:$24 sps:$4 sm:$0xff]  }
  0x93   :  { %2463 = vmatprep.subr.bf16.mxu1 %v19719_v6  ;;  %v19792_v6 = vld [vmem:[%s27056_s3 + $0x728] ss:$24 sps:$4 sm:$0xff]  }
  0x95   :  { %18512 = vmatmul.mubr.bf16.gmra.mrb[4].mxu1 %v21617_v8 }
  0x96   :  { %18515 = vmatprep.mubr.bf16.mxu1 %v21625_v10  ;;  %2464 = vmatpush1.bf16.msra.mxu1 %v19717_v7  ;;  %v19797_v7 = vld [vmem:[%s27056_s3 + $0x754] ss:$24 sps:$4 sm:$0xff]  }
  0x97   :  { %500 = vmatmul.mubr.bf16.gmra.mrb[32].mxu0 %v19668_v56  ;;  %2465 = vmatprep.subr.bf16.mxu1 %v19725_v9  ;;  %v19776_v56 = vld [vmem:[%s27056_s3 + $0x69c] ss:$24 sps:$4 sm:$0xff]   ;;  %v19795_v9 = vld [vmem:[%s27056_s3 + $0x750] ss:$24 sps:$4 sm:$0xff]  }
  0x98   :  { %509 = vmatprep.mubr.bf16.mxu0 %v27066_v0 }
  0x9a   :  { %2466 = vmatpush1.bf16.msra.mxu1 %v19723_v11  ;;  %v19803_v11 = vld [vmem:[%s27056_s3 + $0x784] ss:$24 sps:$4 sm:$0xff]  }
  0x9b   :  { %2467 = vmatprep.subr.bf16.mxu1 %v19731_v12  ;;  %v19821_v12 = vld [vmem:[%s27056_s3 + $0x78c] ss:$24 sps:$4 sm:$0xff]  }
  0x9d   :  { %18516 = vmatmul.mubr.bf16.gmra.mrb[8].mxu1 %v21642_v14 }
  0x9e   :  { %18519 = vmatprep.mubr.bf16.mxu1 %v21650_v16  ;;  %2468 = vmatpush1.bf16.msra.mxu1 %v19729_v13  ;;  %v1153_v13 = vlaneseq }
  0x9f   :  { %510 = vmatmul.mubr.bf16.gmra.mrb[36].mxu0 %v19671_v59  ;;  %2469 = vmatprep.subr.bf16.mxu1 %v19737_v15  ;;  %v19782_v59 = vld [vmem:[%s27056_s3 + $0x6cc] ss:$24 sps:$4 sm:$0xff]  }
  0xa0   :  { %519 = vmatprep.mubr.bf16.mxu0 %v27066_v0 }
  0xa2   :  { %2470 = vmatpush1.bf16.msra.mxu1 %v19735_v17 }
  0xa3   :  { %2471 = vmatprep.subr.bf16.mxu1 %v19743_v20 }
  0xa5   :  { %18520 = vmatmul.mubr.bf16.gmra.mrb[12].mxu1 %v21673_v22 }
  0xa6   :  { %18523 = vmatprep.mubr.bf16.mxu1 %v21684_v25  ;;  %2472 = vmatpush1.bf16.msra.mxu1 %v19741_v21 }
  0xa7   :  { %520 = vmatmul.mubr.bf16.gmra.mrb[40].mxu0 %v19677_v61  ;;  %2473 = vmatprep.subr.bf16.mxu1 %v19749_v24  ;;  %v19780_v61 = vld [vmem:[%s27056_s3 + $0x6c8] ss:$24 sps:$4 sm:$0xff]  }
  0xa8   :  { %529 = vmatprep.mubr.bf16.mxu0 %v27066_v0 }
  0xaa   :  { %2474 = vmatpush1.bf16.msra.mxu1 %v19747_v27 }
  0xab   :  { %2475 = vmatprep.subr.bf16.mxu1 %v19755_v30 }
  0xad   :  { %18524 = vmatmul.mubr.bf16.gmra.mrb[16].mxu1 %v21710_v32 }
  0xae   :  { %18527 = vmatprep.mubr.bf16.mxu1 %v21722_v35  ;;  %2476 = vmatpush1.bf16.msra.mxu1 %v19753_v31 }
  0xaf   :  { %530 = vmatmul.mubr.bf16.gmra.mrb[44].mxu0 %v19683_v62  ;;  %2477 = vmatprep.subr.bf16.mxu1 %v19761_v34  ;;  %v19785_v62 = vld [vmem:[%s27056_s3 + $0x6f4] ss:$24 sps:$4 sm:$0xff]  }
  0xb0   :  { %901 = vmatprep.mubr.bf16.mxu0 %v27066_v0 }
  0xb2   :  { %2478 = vmatpush1.bf16.msra.mxu1 %v19759_v37 }
  0xb3   :  { %2479 = vmatprep.subr.bf16.mxu1 %v19767_v40 }
  0xb5   :  { %18528 = vmatmul.mubr.bf16.gmra.mrb[20].mxu1 %v21745_v41 }
  0xb6   :  { %2480 = vmatpush1.bf16.msra.mxu1 %v19765_v42 }
  0xb7   :  { %902 = vmatmul.mubr.bf16.vlgmr.msra.gmra.mrb[0].mxu0 %v19685_v63  ;;  %2481 = vmatprep.subr.bf16.mxu1 %v19773_v44  ;;  %v19788_v63 = vld [vmem:[%s27056_s3 + $0x6fc] ss:$24 sps:$4 sm:$0xff]  }
  0xb8   :  { %911 = vmatprep.mubr.bf16.mxu0 %v27066_v0  ;;  %2746 = vmatpush1.bf16.msra.mxu0 %v19708_v18 }
  0xb9   :  { %2747 = vmatprep.subr.bf16.mxu0 %v19716_v19 }
  0xba   :  { %2482 = vmatpush1.bf16.msra.mxu1 %v19771_v46 }
  0xbb   :  { %2483 = vmatprep.subr.bf16.mxu1 %v19779_v58 }
  0xbc   :  { %2748 = vmatpush1.bf16.msra.mxu0 %v19714_v23 }
  0xbd   :  { %2749 = vmatprep.subr.bf16.mxu0 %v19722_v26 }
  0xbe   :  { %2484 = vmatpush1.bf16.msra.mxu1 %v19777_v60 }
  0xbf   :  { %912 = vmatmul.mubr.bf16.gmra.mrb[4].mxu0 %v21589_v1  ;;  %v19783_v1 = vld [vmem:[%s27056_s3 + $0x6f0] ss:$24 sps:$4 sm:$0xff]   ;;  %2485 = vmatprep.subr.bf16.mxu1 %v19785_v62 }
  0xc0   :  { %921 = vmatprep.mubr.bf16.mxu0 %v27066_v0  ;;  %2750 = vmatpush1.bf16.msra.mxu0 %v19720_v28 }
  0xc1   :  { %2751 = vmatprep.subr.bf16.mxu0 %v19728_v29 }
  0xc2   :  { %2486 = vmatpush1.bf16.msra.mxu1 %v19783_v1 }
  0xc3   :  { %2487 = vmatprep.subr.bf16.mxu1 %v19791_v3 }
  0xc4   :  { %2752 = vmatpush1.bf16.msra.mxu0 %v19726_v33 }
  0xc5   :  { %2753 = vmatprep.subr.bf16.mxu0 %v19734_v36 }
  0xc6   :  { %2488 = vmatpush1.bf16.msra.mxu1 %v19789_v5 }
  0xc7   :  { %922 = vmatmul.mubr.bf16.gmra.mrb[8].mxu0 %v21600_v4  ;;  %v19794_v4 = vld [vmem:[%s27056_s3 + $0x72c] ss:$24 sps:$4 sm:$0xff]   ;;  %2489 = vmatprep.subr.bf16.mxu1 %v19797_v7 }
  0xc8   :  { %931 = vmatprep.mubr.bf16.mxu0 %v27066_v0  ;;  %2754 = vmatpush1.bf16.msra.mxu0 %v19732_v38 }
  0xc9   :  { %2755 = vmatprep.subr.bf16.mxu0 %v19740_v39 }
  0xca   :  { %2490 = vmatpush1.bf16.msra.mxu1 %v19795_v9 }
  0xcb   :  { %2602 = vmatprep.subr.bf16.mxu1 %v19803_v11 }
  0xcc   :  { %2756 = vmatpush1.bf16.msra.mxu0 %v19738_v43 }
  0xcd   :  { %2757 = vmatprep.subr.bf16.mxu0 %v19746_v45 }
  0xcf   :  { %932 = vmatmul.mubr.bf16.gmra.mrb[12].mxu0 %v21617_v8  ;;  %v19800_v8 = vld [vmem:[%s27056_s3 + $0x75c] ss:$24 sps:$4 sm:$0xff]  }
  0xd0   :  { %941 = vmatprep.mubr.bf16.mxu0 %v27066_v0  ;;  %2758 = vmatpush1.bf16.msra.mxu0 %v19744_v47 }
  0xd1   :  { %2759 = vmatprep.subr.bf16.mxu0 %v19752_v48 }
  0xd4   :  { %2760 = vmatpush1.bf16.msra.mxu0 %v19750_v49 }
  0xd5   :  { %2761 = vmatprep.subr.bf16.mxu0 %v19758_v50 }
  0xd7   :  { %942 = vmatmul.mubr.bf16.gmra.mrb[16].mxu0 %v21625_v10  ;;  %v19798_v10 = vld [vmem:[%s27056_s3 + $0x758] ss:$24 sps:$4 sm:$0xff]  }
  0xd8   :  { %951 = vmatprep.mubr.bf16.mxu0 %v27066_v0  ;;  %2762 = vmatpush1.bf16.msra.mxu0 %v19756_v51 }
  0xd9   :  { %2763 = vmatprep.subr.bf16.mxu0 %v19764_v52 }
  0xdc   :  { %2764 = vmatpush1.bf16.msra.mxu0 %v19762_v53 }
  0xdd   :  { %2765 = vmatprep.subr.bf16.mxu0 %v19770_v54 }
  0xdf   :  { %952 = vmatmul.mubr.bf16.gmra.mrb[20].mxu0 %v21642_v14  ;;  %v21869_v14 = vshrl.u32 %v1153_v13, 7 }
  0xe0   :  { %961 = vmatprep.mubr.bf16.mxu0 %v27066_v0  ;;  %2766 = vmatpush1.bf16.msra.mxu0 %v19768_v55 }
  0xe1   :  { %2767 = vmatprep.subr.bf16.mxu0 %v19776_v56  ;;  %27162 = vst [vmem:[#allocation12_spill] sm:$0xff] %v21869_v14  ;;  %v21872_v15 = vsub.s32 2, %v21869_v14  ;;  %v21890_v43 = vsub.s32 0, %v21869_v14  ;;  %v21893_v45 = vsub.s32 1, %v21869_v14 }
  0xe3   :  { %27163 = vst [vmem:[#allocation13_spill] sm:$0xff] %v21872_v15  ;;  %27164 = vst [vmem:[#allocation14_spill] sm:$0xff] %v21890_v43 }
  0xe4   :  { %2768 = vmatpush1.bf16.msra.mxu0 %v19774_v57  ;;  %27165 = vst [vmem:[#allocation15_spill] sm:$0xff] %v21893_v45 }
  0xe5   :  { %2769 = vmatprep.subr.bf16.mxu0 %v19782_v59 }
  0xe7   :  { %962 = vmatmul.mubr.bf16.gmra.mrb[24].mxu0 %v21650_v16  ;;  %v1151_v16 = vld [vmem:[#allocation5] sm:$0x7] }
  0xe8   :  { %971 = vmatprep.mubr.bf16.mxu0 %v27066_v0  ;;  %2770 = vmatpush1.bf16.msra.mxu0 %v19780_v61  ;;  %v21875_v17 = vrot.slane %v1151_v16, %v21872_v15  ;;  %v21901_v51 = vrot.slane %v1151_v16, %v21890_v43  ;;  %v21905_v54 = vrot.slane %v1151_v16, %v21893_v45 }
  0xe9   :  { %2771 = vmatprep.subr.bf16.mxu0 %v19788_v63 }
  0xec   :  { %2772 = vmatpush1.bf16.msra.mxu0 %v19786_v2 }
  0xed   :  { %2773 = vmatprep.subr.bf16.mxu0 %v19794_v4 }
  0xef   :  { %972 = vmatmul.mubr.bf16.gmra.mrb[28].mxu0 %v21673_v22 }
  0xf0   :  { %981 = vmatprep.mubr.bf16.mxu0 %v27066_v0  ;;  %2774 = vmatpush1.bf16.msra.mxu0 %v19792_v6 }
  0xf1   :  { %2775 = vmatprep.subr.bf16.mxu0 %v19800_v8 }
  0xf4   :  { %2776 = vmatpush1.bf16.msra.mxu0 %v19798_v10 }
  0xf5   :  { %2888 = vmatprep.subr.bf16.mxu0 %v19821_v12 }
  0xf7   :  { %982 = vmatmul.mubr.bf16.gmra.mrb[32].mxu0 %v21684_v25 }
  0xf8   :  { %991 = vmatprep.mubr.bf16.mxu0 %v27066_v0 }
  0xff   :  { %992 = vmatmul.mubr.bf16.gmra.mrb[36].mxu0 %v21710_v32 }
 0x100   :  { %1001 = vmatprep.mubr.bf16.mxu0 %v27066_v0 }
 0x107   :  { %1002 = vmatmul.mubr.bf16.gmra.mrb[40].mxu0 %v21722_v35 }
 0x108   :  { %1011 = vmatprep.mubr.bf16.mxu0 %v27066_v0 }
 0x10f   :  { %1012 = vmatmul.mubr.bf16.gmra.mrb[44].mxu0 %v21745_v41 }
 0x160   :  { %v18509_v18 = vpop.f32.mrb[0].mxu1 }
 0x161   :  { %v1176_v19 = vadd.f32 %v18509_v18, %v21875_v17  ;;  %v1056_v20 = vpop.f32.mrb[1].mxu1 }
 0x162   :  { %v1170_v21 = vadd.f32 %v21875_v17, %v1056_v20  ;;  %v18510_v22 = vpop.f32.mrb[2].mxu1 }
 0x163   :  { %v1248_v23 = vmax.f32 %v1176_v19, 0.0  ;;  %v1179_v24 = vadd.f32 %v18510_v22, %v21875_v17  ;;  %v1059_v25 = vpop.f32.mrb[3].mxu1 }
 0x164   :  { %v1242_v26 = vmax.f32 %v1170_v21, 0.0  ;;  %v1173_v27 = vadd.f32 %v21875_v17, %v1059_v25 }
 0x165   :  { %v1251_v28 = vmax.f32 %v1179_v24, 0.0 }
 0x166   :  { %v1245_v29 = vmax.f32 %v1173_v27, 0.0 }
 0x167   :  { %v21881_v30 = vpack.c.bf16 %v1251_v28, %v1248_v23 }
 0x168   :  { %v21883_v31 = vpack.c.bf16 %v1245_v29, %v1242_v26  ;;  %v18513_v32 = vpop.f32.mrb[4].mxu1 }
 0x169   :  { %v1188_v33 = vadd.f32 %v18513_v32, %v21875_v17  ;;  %v1072_v34 = vpop.f32.mrb[5].mxu1 }
 0x16a   :  { %v1182_v35 = vadd.f32 %v21875_v17, %v1072_v34  ;;  %v18514_v36 = vpop.f32.mrb[6].mxu1 }
 0x16b   :  { %v1260_v37 = vmax.f32 %v1188_v33, 0.0  ;;  %v1191_v38 = vadd.f32 %v18514_v36, %v21875_v17  ;;  %v1075_v39 = vpop.f32.mrb[7].mxu1 }
 0x16c   :  { %v1254_v40 = vmax.f32 %v1182_v35, 0.0  ;;  %v1185_v41 = vadd.f32 %v21875_v17, %v1075_v39 }
 0x16d   :  { %v1263_v42 = vmax.f32 %v1191_v38, 0.0 }
 0x16e   :  { %v1257_v44 = vmax.f32 %v1185_v41, 0.0 }
 0x16f   :  { %v21895_v46 = vpack.c.bf16 %v1263_v42, %v1260_v37 }
 0x170   :  { %v21897_v47 = vpack.c.bf16 %v1257_v44, %v1254_v40  ;;  %v18517_v48 = vpop.f32.mrb[8].mxu1 }
 0x171   :  { %v1200_v49 = vadd.f32 %v18517_v48, %v21875_v17  ;;  %v1088_v50 = vpop.f32.mrb[9].mxu1 }
 0x172   :  { %v1194_v52 = vadd.f32 %v21875_v17, %v1088_v50  ;;  %v18518_v53 = vpop.f32.mrb[10].mxu1 }
 0x173   :  { %v1272_v55 = vmax.f32 %v1200_v49, 0.0  ;;  %v1203_v56 = vadd.f32 %v18518_v53, %v21875_v17  ;;  %v1091_v57 = vpop.f32.mrb[11].mxu1 }
 0x174   :  { %v1266_v58 = vmax.f32 %v1194_v52, 0.0  ;;  %v1197_v59 = vadd.f32 %v21875_v17, %v1091_v57  ;;  %v19801_v57 = vld [vmem:[%s27056_s3 + $0x780] ss:$24 sps:$4 sm:$0xff]  }
 0x175   :  { %v1275_v61 = vmax.f32 %v1203_v56, 0.0 }
 0x176   :  { %v1269_v1 = vmax.f32 %v1197_v59, 0.0 }
 0x177   :  { %v21911_v4 = vpack.c.bf16 %v1275_v61, %v1272_v55 }
 0x178   :  { %v21914_v7 = vpack.c.bf16 %v1269_v1, %v1266_v58  ;;  %v18521_v8 = vpop.f32.mrb[12].mxu1  ;;  %v19819_v58 = vld [vmem:[%s27056_s3 + $0x788] ss:$24 sps:$4 sm:$0xff]  }
 0x179   :  { %v1212_v10 = vadd.f32 %v18521_v8, %v21875_v17  ;;  %v1104_v11 = vpop.f32.mrb[13].mxu1 }
 0x17a   :  { %v1206_v18 = vadd.f32 %v21875_v17, %v1104_v11  ;;  %v18522_v19 = vpop.f32.mrb[14].mxu1 }
 0x17b   :  { %v1284_v21 = vmax.f32 %v1212_v10, 0.0  ;;  %v1215_v22 = vadd.f32 %v18522_v19, %v21875_v17  ;;  %v1107_v23 = vpop.f32.mrb[15].mxu1  ;;  %v19824_v10 = vld [vmem:[%s27056_s3 + $0x7bc] ss:$24 sps:$4 sm:$0xff]  }
 0x17c   :  { %v1278_v25 = vmax.f32 %v1206_v18, 0.0  ;;  %v1209_v26 = vadd.f32 %v21875_v17, %v1107_v23 }
 0x17d   :  { %v1287_v29 = vmax.f32 %v1215_v22, 0.0 }
 0x17e   :  { %v1281_v34 = vmax.f32 %v1209_v26, 0.0  ;;  %v19822_v26 = vld [vmem:[%s27056_s3 + $0x7b8] ss:$24 sps:$4 sm:$0xff]  }
 0x17f   :  { %v21927_v37 = vpack.c.bf16 %v1287_v29, %v1284_v21  ;;  %v19809_v21 = vld [vmem:[%s27056_s3 + $0x7e4] ss:$24 sps:$4 sm:$0xff]  }
 0x180   :  { %v21930_v40 = vpack.c.bf16 %v1281_v34, %v1278_v25  ;;  %v18525_v41 = vpop.f32.mrb[16].mxu1 }
 0x181   :  { %v1224_v44 = vadd.f32 %v18525_v41, %v21875_v17  ;;  %v1120_v48 = vpop.f32.mrb[17].mxu1  ;;  %v19807_v41 = vld [vmem:[%s27056_s3 + $0x7e0] ss:$24 sps:$4 sm:$0xff]  }
 0x182   :  { %v1218_v52 = vadd.f32 %v21875_v17, %v1120_v48  ;;  %v18526_v53 = vpop.f32.mrb[18].mxu1 }
 0x183   :  { %v1296_v59 = vmax.f32 %v1224_v44, 0.0  ;;  %v1123_v61 = vpop.f32.mrb[19].mxu1 }
 0x184   :  { %v1290_v1 = vmax.f32 %v1218_v52, 0.0  ;;  %v19812_v52 = vld [vmem:[%s27056_s3 + $0x814] ss:$24 sps:$4 sm:$0xff]  }
 0x188   :  { %v18529_v23 = vpop.f32.mrb[20].mxu1 }
 0x189   :  { %v1236_v29 = vadd.f32 %v18529_v23, %v21875_v17  ;;  %v19813_v23 = vld [vmem:[%s27056_s3 + $0x840] ss:$24 sps:$4 sm:$0xff]  }
 0x18a   :  { %v903_v60 = vpop.f32.mrb[0].mxu0 }
 0x18b   :  { %v1168_v62 = vadd.f32 %v21901_v51, %v903_v60  ;;  %v905_v63 = vpop.f32.mrb[1].mxu0  ;;  %v1227_v60 = vadd.f32 %v18526_v53, %v21875_v17  ;;  %v1308_v44 = vmax.f32 %v1236_v29, 0.0 }
 0x18c   :  { %v1169_v2 = vadd.f32 %v21905_v54, %v905_v63  ;;  %v907_v3 = vpop.f32.mrb[2].mxu0  ;;  %v19806_v63 = vld [vmem:[%s27056_s3 + $0x7b4] ss:$24 sps:$4 sm:$0xff]  }
 0x18d   :  { %v1171_v5 = vadd.f32 %v21901_v51, %v907_v3  ;;  %v909_v6 = vpop.f32.mrb[3].mxu0  ;;  %v1240_v12 = vmax.f32 %v1168_v62, 0.0 }
 0x18e   :  { %v1172_v9 = vadd.f32 %v21905_v54, %v909_v6  ;;  %v1241_v13 = vmax.f32 %v1169_v2, 0.0  ;;  %v1221_v2 = vadd.f32 %v21875_v17, %v1123_v61  ;;  %v1299_v6 = vmax.f32 %v1227_v60, 0.0  ;;  %v19833_v61 = vld [vmem:[%s27056_s3 + $0x81c] ss:$24 sps:$4 sm:$0xff]  }
 0x18f   :  { %v1243_v16 = vmax.f32 %v1171_v5, 0.0 }
 0x190   :  { %v1244_v20 = vmax.f32 %v1172_v9, 0.0  ;;  %v1293_v11 = vmax.f32 %v1221_v2, 0.0  ;;  %v21960_v18 = vpack.c.bf16 %v1299_v6, %v1296_v59 }
 0x191   :  { %v21920_v24 = vpack.c.bf16 %v1243_v16, %v1240_v12  ;;  %v19804_v16 = vld [vmem:[%s27056_s3 + $0x7b0] ss:$24 sps:$4 sm:$0xff]  }
 0x192   :  { %v21923_v27 = vpack.c.bf16 %v1244_v20, %v1241_v13  ;;  %v913_v28 = vpop.f32.mrb[4].mxu0  ;;  %v21968_v22 = vpack.c.bf16 %v1293_v11, %v1290_v1  ;;  %v19815_v11 = vld [vmem:[%s27056_s3 + $0x844] ss:$24 sps:$4 sm:$0xff]  }
 0x193   :  { %v1174_v32 = vadd.f32 %v21901_v51, %v913_v28  ;;  %v915_v33 = vpop.f32.mrb[5].mxu0  ;;  %v19827_v28 = vld [vmem:[%s27056_s3 + $0x7ec] ss:$24 sps:$4 sm:$0xff]  }
 0x194   :  { %v1175_v35 = vadd.f32 %v21905_v54, %v915_v33  ;;  %v917_v36 = vpop.f32.mrb[6].mxu0 }
 0x195   :  { %v1177_v38 = vadd.f32 %v21901_v51, %v917_v36  ;;  %v919_v39 = vpop.f32.mrb[7].mxu0  ;;  %v1246_v49 = vmax.f32 %v1174_v32, 0.0  ;;  %v1136_v32 = vpop.f32.mrb[21].mxu1 }
 0x196   :  { %v1178_v42 = vadd.f32 %v21905_v54, %v919_v39  ;;  %v1247_v55 = vmax.f32 %v1175_v35, 0.0  ;;  %v1230_v36 = vadd.f32 %v21875_v17, %v1136_v32 }
 0x197   :  { %v1249_v50 = vmax.f32 %v1177_v38, 0.0  ;;  %v18530_v38 = vpop.f32.mrb[22].mxu1 }
 0x198   :  { %v1250_v56 = vmax.f32 %v1178_v42, 0.0  ;;  %v19825_v42 = vld [vmem:[%s27056_s3 + $0x7e8] ss:$24 sps:$4 sm:$0xff]   ;;  %v1239_v48 = vadd.f32 %v18530_v38, %v21875_v17  ;;  %v1302_v53 = vmax.f32 %v1230_v36, 0.0 }
 0x199   :  { %v21942_v62 = vpack.c.bf16 %v1249_v50, %v1246_v49  ;;  %v1139_v49 = vpop.f32.mrb[23].mxu1 }
 0x19a   :  { %v21948_v3 = vpack.c.bf16 %v1250_v56, %v1247_v55  ;;  %v923_v5 = vpop.f32.mrb[8].mxu0  ;;  %v1233_v55 = vadd.f32 %v21875_v17, %v1139_v49  ;;  %v19837_v49 = vld [vmem:[%s27056_s3 + $0x878] ss:$24 sps:$4 sm:$0xff]  }
 0x19b   :  { %v1180_v8 = vadd.f32 %v21901_v51, %v923_v5  ;;  %v925_v9 = vpop.f32.mrb[9].mxu0 }
 0x19c   :  { %v1181_v12 = vadd.f32 %v21905_v54, %v925_v9  ;;  %v927_v13 = vpop.f32.mrb[10].mxu0  ;;  %2491 = vmatprep.mubr.bf16.mxu1 %v21948_v3  ;;  %2777 = vmatprep.mubr.bf16.mxu0 %v21948_v3 }
 0x19d   :  { %v1183_v19 = vadd.f32 %v21901_v51, %v927_v13  ;;  %v929_v20 = vpop.f32.mrb[11].mxu0  ;;  %2492 = vmatmul.mubr.bf16.vlgmr.msra.gmra.mrb[24].mxu1 %v21942_v62  ;;  %2778 = vmatmul.mubr.bf16.vlgmr.msra.gmra.mrb[48].mxu0 %v21942_v62  ;;  %v1252_v33 = vmax.f32 %v1180_v8, 0.0  ;;  %v19810_v8 = vld [vmem:[%s27056_s3 + $0x810] ss:$24 sps:$4 sm:$0xff]  }
 0x19e   :  { %v1184_v25 = vadd.f32 %v21905_v54, %v929_v20  ;;  %2603 = vmatpush1.bf16.msra.mxu1 %v19801_v57  ;;  %2889 = vmatpush1.bf16.msra.mxu0 %v19819_v58  ;;  %v1253_v34 = vmax.f32 %v1181_v12, 0.0  ;;  %v1311_v58 = vmax.f32 %v1239_v48, 0.0  ;;  %v19831_v12 = vld [vmem:[%s27056_s3 + $0x818] ss:$24 sps:$4 sm:$0xff]  }
 0x19f   :  { %v1255_v35 = vmax.f32 %v1183_v19, 0.0  ;;  %2604 = vmatprep.subr.bf16.mxu1 %v19806_v63  ;;  %2890 = vmatprep.subr.bf16.mxu0 %v19824_v10  ;;  %v1305_v63 = vmax.f32 %v1233_v55, 0.0  ;;  %v19836_v19 = vld [vmem:[%s27056_s3 + $0x84c] ss:$24 sps:$4 sm:$0xff]  }
 0x1a0   :  { %v1256_v39 = vmax.f32 %v1184_v25, 0.0  ;;  %v22001_v17 = vpack.c.bf16 %v1311_v58, %v1308_v44  ;;  %v19834_v25 = vld [vmem:[%s27056_s3 + $0x848] ss:$24 sps:$4 sm:$0xff]   ;;  %v19830_v44 = vld [vmem:[%s27056_s3 + $0x8a4] ss:$24 sps:$4 sm:$0xff]  }
 0x1a1   :  { %v21986_v50 = vpack.c.bf16 %v1255_v35, %v1252_v33  ;;  %v22009_v9 = vpack.c.bf16 %v1305_v63, %v1302_v53  ;;  %v19839_v35 = vld [vmem:[%s27056_s3 + $0x87c] ss:$24 sps:$4 sm:$0xff]  }
 0x1a2   :  { %v21992_v56 = vpack.c.bf16 %v1256_v39, %v1253_v34  ;;  %v933_v57 = vpop.f32.mrb[12].mxu0  ;;  %2605 = vmatpush1.bf16.msra.mxu1 %v19804_v16  ;;  %2891 = vmatpush1.bf16.msra.mxu0 %v19822_v26  ;;  %v19842_v63 = vld [vmem:[%s27056_s3 + $0x8d4] ss:$24 sps:$4 sm:$0xff]  }
 0x1a3   :  { %v1186_v59 = vadd.f32 %v21901_v51, %v933_v57  ;;  %v935_v60 = vpop.f32.mrb[13].mxu0  ;;  %2606 = vmatprep.subr.bf16.mxu1 %v19809_v21  ;;  %2892 = vmatprep.subr.bf16.mxu0 %v19827_v28  ;;  %v19818_v28 = vld [vmem:[%s27056_s3 + $0x874] ss:$24 sps:$4 sm:$0xff]  }
 0x1a4   :  { %v1187_v1 = vadd.f32 %v21905_v54, %v935_v60  ;;  %v937_v2 = vpop.f32.mrb[14].mxu0  ;;  %2501 = vmatprep.mubr.bf16.mxu1 %v21992_v56  ;;  %2787 = vmatprep.mubr.bf16.mxu0 %v21992_v56  ;;  %v19843_v60 = vld [vmem:[%s27056_s3 + $0x8a8] ss:$24 sps:$4 sm:$0xff]  }
 0x1a5   :  { %v1189_v5 = vadd.f32 %v21901_v51, %v937_v2  ;;  %v939_v6 = vpop.f32.mrb[15].mxu0  ;;  %2502 = vmatmul.mubr.bf16.gmra.mrb[28].mxu1 %v21986_v50  ;;  %2788 = vmatmul.mubr.bf16.gmra.mrb[52].mxu0 %v21986_v50  ;;  %v1258_v13 = vmax.f32 %v1186_v59, 0.0  ;;  %v19828_v59 = vld [vmem:[%s27056_s3 + $0x8a0] ss:$24 sps:$4 sm:$0xff]  }
 0x1a6   :  { %v1190_v10 = vadd.f32 %v21905_v54, %v939_v6  ;;  %2607 = vmatpush1.bf16.msra.mxu1 %v19807_v41  ;;  %2893 = vmatpush1.bf16.msra.mxu0 %v19825_v42  ;;  %v1259_v20 = vmax.f32 %v1187_v1, 0.0  ;;  %v19816_v42 = vld [vmem:[%s27056_s3 + $0x870] ss:$24 sps:$4 sm:$0xff]  }
 0x1a7   :  { %v1261_v16 = vmax.f32 %v1189_v5, 0.0  ;;  %2608 = vmatprep.subr.bf16.mxu1 %v19812_v52  ;;  %2894 = vmatprep.subr.bf16.mxu0 %v19833_v61  ;;  %v19845_v52 = vld [vmem:[%s27056_s3 + $0x8ac] ss:$24 sps:$4 sm:$0xff]  }
 0x1a8   :  { %v1262_v21 = vmax.f32 %v1190_v10, 0.0 }
 0x1a9   :  { %v22027_v26 = vpack.c.bf16 %v1261_v16, %v1258_v13  ;;  %v19840_v16 = vld [vmem:[%s27056_s3 + $0x8d0] ss:$24 sps:$4 sm:$0xff]  }
 0x1aa   :  { %v22032_v29 = vpack.c.bf16 %v1262_v21, %v1259_v20  ;;  %v943_v32 = vpop.f32.mrb[16].mxu0  ;;  %2609 = vmatpush1.bf16.msra.mxu1 %v19810_v8  ;;  %2895 = vmatpush1.bf16.msra.mxu0 %v19831_v12  ;;  %v19848_v8 = vld [vmem:[%s27056_s3 + $0x8dc] ss:$24 sps:$4 sm:$0xff]  }
 0x1ab   :  { %v1192_v33 = vadd.f32 %v21901_v51, %v943_v32  ;;  %v945_v34 = vpop.f32.mrb[17].mxu0  ;;  %2610 = vmatprep.subr.bf16.mxu1 %v19815_v11  ;;  %2896 = vmatprep.subr.bf16.mxu0 %v19836_v19  ;;  %v19846_v19 = vld [vmem:[%s27056_s3 + $0x8d8] ss:$24 sps:$4 sm:$0xff]   ;;  %v19851_v21 = vld [vmem:[%s27056_s3 + $0x494] ss:$24 sps:$4 sm:$0xff]  }
 0x1ac   :  { %v1193_v36 = vadd.f32 %v21905_v54, %v945_v34  ;;  %v947_v38 = vpop.f32.mrb[18].mxu0  ;;  %2511 = vmatprep.mubr.bf16.mxu1 %v22032_v29  ;;  %2797 = vmatprep.mubr.bf16.mxu0 %v22032_v29 }
 0x1ad   :  { %v1195_v39 = vadd.f32 %v21901_v51, %v947_v38  ;;  %v949_v41 = vpop.f32.mrb[19].mxu0  ;;  %2512 = vmatmul.mubr.bf16.gmra.mrb[32].mxu1 %v22027_v26  ;;  %2798 = vmatmul.mubr.bf16.gmra.mrb[56].mxu0 %v22027_v26  ;;  %v1264_v53 = vmax.f32 %v1192_v33, 0.0 }
 0x1ae   :  { %v1196_v48 = vadd.f32 %v21905_v54, %v949_v41  ;;  %2611 = vmatpush1.bf16.msra.mxu1 %v19813_v23  ;;  %2897 = vmatpush1.bf16.msra.mxu0 %v19834_v25  ;;  %v1265_v57 = vmax.f32 %v1193_v36, 0.0  ;;  %v19866_v23 = vld [vmem:[%s27056_s3 + $0xc] ss:$24 sps:$4 sm:$0xff]  }
 0x1af   :  { %v1267_v55 = vmax.f32 %v1195_v39, 0.0  ;;  %2612 = vmatprep.subr.bf16.mxu1 %v19818_v28  ;;  %2898 = vmatprep.subr.bf16.mxu0 %v19839_v35 }
 0x1b0   :  { %v1268_v58 = vmax.f32 %v1196_v48, 0.0 }
 0x1b1   :  { %v22063_v61 = vpack.c.bf16 %v1267_v55, %v1264_v53 }
 0x1b2   :  { %v22068_v1 = vpack.c.bf16 %v1268_v58, %v1265_v57  ;;  %v953_v2 = vpop.f32.mrb[20].mxu0  ;;  %2613 = vmatpush1.bf16.msra.mxu1 %v19816_v42  ;;  %2899 = vmatpush1.bf16.msra.mxu0 %v19837_v49 }
 0x1b3   :  { %v1198_v5 = vadd.f32 %v21901_v51, %v953_v2  ;;  %v955_v6 = vpop.f32.mrb[21].mxu0  ;;  %2614 = vmatprep.subr.bf16.mxu1 %v19830_v44  ;;  %2900 = vmatprep.subr.bf16.mxu0 %v19845_v52 }
 0x1b4   :  { %v1199_v10 = vadd.f32 %v21905_v54, %v955_v6  ;;  %v957_v11 = vpop.f32.mrb[22].mxu0  ;;  %2521 = vmatprep.mubr.bf16.mxu1 %v22068_v1  ;;  %2807 = vmatprep.mubr.bf16.mxu0 %v22068_v1 }
 0x1b5   :  { %v1201_v12 = vadd.f32 %v21901_v51, %v957_v11  ;;  %v959_v13 = vpop.f32.mrb[23].mxu0  ;;  %2522 = vmatmul.mubr.bf16.gmra.mrb[36].mxu1 %v22063_v61  ;;  %2808 = vmatmul.mubr.bf16.gmra.mrb[60].mxu0 %v22063_v61  ;;  %v1270_v25 = vmax.f32 %v1198_v5, 0.0 }
 0x1b6   :  { %v1202_v20 = vadd.f32 %v21905_v54, %v959_v13  ;;  %2615 = vmatpush1.bf16.msra.mxu1 %v19828_v59  ;;  %2901 = vmatpush1.bf16.msra.mxu0 %v19843_v60  ;;  %v1271_v32 = vmax.f32 %v1199_v10, 0.0 }
 0x1b7   :  { %v1273_v28 = vmax.f32 %v1201_v12, 0.0  ;;  %2616 = vmatprep.subr.bf16.mxu1 %v19842_v63  ;;  %2902 = vmatprep.subr.bf16.mxu0 %v19848_v8 }
 0x1b8   :  { %v1274_v33 = vmax.f32 %v1202_v20, 0.0 }
 0x1b9   :  { %v22093_v34 = vpack.c.bf16 %v1273_v28, %v1270_v25 }
 0x1ba   :  { %v22095_v35 = vpack.c.bf16 %v1274_v33, %v1271_v32  ;;  %v963_v36 = vpop.f32.mrb[24].mxu0  ;;  %2617 = vmatpush1.bf16.msra.mxu1 %v19840_v16  ;;  %2903 = vmatpush1.bf16.msra.mxu0 %v19846_v19 }
 0x1bb   :  { %v1204_v38 = vadd.f32 %v21901_v51, %v963_v36  ;;  %v965_v39 = vpop.f32.mrb[25].mxu0  ;;  %3031 = vmatprep.subr.bf16.mxu1 %v19851_v21  ;;  %4323 = vmatprep.subr.bf16.mxu0 %v19866_v23 }
 0x1bc   :  { %v1205_v41 = vadd.f32 %v21905_v54, %v965_v39  ;;  %v967_v42 = vpop.f32.mrb[26].mxu0  ;;  %2531 = vmatprep.mubr.bf16.mxu1 %v22095_v35  ;;  %2817 = vmatprep.mubr.bf16.mxu0 %v22095_v35 }
 0x1bd   :  { %v1207_v44 = vadd.f32 %v21901_v51, %v967_v42  ;;  %v969_v48 = vpop.f32.mrb[27].mxu0  ;;  %2532 = vmatmul.mubr.bf16.gmra.mrb[40].mxu1 %v22093_v34  ;;  %2818 = vmatmul.mubr.bf16.gmra.mrb[64].mxu0 %v22093_v34  ;;  %v1276_v52 = vmax.f32 %v1204_v38, 0.0 }
 0x1be   :  { %v1208_v49 = vadd.f32 %v21905_v54, %v969_v48  ;;  %v1277_v55 = vmax.f32 %v1205_v41, 0.0 }
 0x1bf   :  { %v1279_v53 = vmax.f32 %v1207_v44, 0.0 }
 0x1c0   :  { %v1280_v57 = vmax.f32 %v1208_v49, 0.0 }
 0x1c1   :  { %v22105_v58 = vpack.c.bf16 %v1279_v53, %v1276_v52 }
 0x1c2   :  { %v22107_v59 = vpack.c.bf16 %v1280_v57, %v1277_v55  ;;  %v973_v60 = vpop.f32.mrb[28].mxu0 }
 0x1c3   :  { %v1210_v63 = vadd.f32 %v21901_v51, %v973_v60  ;;  %v975_v2 = vpop.f32.mrb[29].mxu0 }
 0x1c4   :  { %v1211_v5 = vadd.f32 %v21905_v54, %v975_v2  ;;  %v977_v6 = vpop.f32.mrb[30].mxu0  ;;  %2541 = vmatprep.mubr.bf16.mxu1 %v22107_v59  ;;  %2827 = vmatprep.mubr.bf16.mxu0 %v22107_v59 }
 0x1c5   :  { %v1213_v8 = vadd.f32 %v21901_v51, %v977_v6  ;;  %v979_v10 = vpop.f32.mrb[31].mxu0  ;;  %2542 = vmatmul.mubr.bf16.gmra.mrb[44].mxu1 %v22105_v58  ;;  %2828 = vmatmul.mubr.bf16.gmra.mrb[68].mxu0 %v22105_v58  ;;  %v1282_v12 = vmax.f32 %v1210_v63, 0.0 }
 0x1c6   :  { %v1214_v11 = vadd.f32 %v21905_v54, %v979_v10  ;;  %v1283_v13 = vmax.f32 %v1211_v5, 0.0 }
 0x1c7   :  { %v1285_v16 = vmax.f32 %v1213_v8, 0.0 }
 0x1c8   :  { %v1286_v19 = vmax.f32 %v1214_v11, 0.0 }
 0x1c9   :  { %v22117_v20 = vpack.c.bf16 %v1285_v16, %v1282_v12 }
 0x1ca   :  { %v22119_v21 = vpack.c.bf16 %v1286_v19, %v1283_v13  ;;  %v983_v23 = vpop.f32.mrb[32].mxu0 }
 0x1cb   :  { %v1216_v25 = vadd.f32 %v21901_v51, %v983_v23  ;;  %v985_v28 = vpop.f32.mrb[33].mxu0 }
 0x1cc   :  { %v1217_v32 = vadd.f32 %v21905_v54, %v985_v28  ;;  %v987_v33 = vpop.f32.mrb[34].mxu0  ;;  %2551 = vmatprep.mubr.bf16.mxu1 %v22119_v21  ;;  %2837 = vmatprep.mubr.bf16.mxu0 %v22119_v21 }
 0x1cd   :  { %v1288_v36 = vmax.f32 %v1216_v25, 0.0  ;;  %v1219_v38 = vadd.f32 %v21901_v51, %v987_v33  ;;  %v989_v39 = vpop.f32.mrb[35].mxu0  ;;  %2552 = vmatmul.mubr.bf16.gmra.mrb[48].mxu1 %v22117_v20  ;;  %2838 = vmatmul.mubr.bf16.gmra.mrb[72].mxu0 %v22117_v20 }
 0x1ce   :  { %v1289_v41 = vmax.f32 %v1217_v32, 0.0  ;;  %v1220_v42 = vadd.f32 %v21905_v54, %v989_v39 }
 0x1cf   :  { %v1291_v44 = vmax.f32 %v1219_v38, 0.0 }
 0x1d0   :  { %v1292_v48 = vmax.f32 %v1220_v42, 0.0 }
 0x1d1   :  { %v22129_v49 = vpack.c.bf16 %v1291_v44, %v1288_v36 }
 0x1d2   :  { %v22131_v52 = vpack.c.bf16 %v1292_v48, %v1289_v41  ;;  %v993_v53 = vpop.f32.mrb[36].mxu0 }
 0x1d3   :  { %v1222_v55 = vadd.f32 %v21901_v51, %v993_v53  ;;  %v995_v57 = vpop.f32.mrb[37].mxu0 }
 0x1d4   :  { %v1223_v60 = vadd.f32 %v21905_v54, %v995_v57  ;;  %v997_v63 = vpop.f32.mrb[38].mxu0  ;;  %2561 = vmatprep.mubr.bf16.mxu1 %v22131_v52  ;;  %2847 = vmatprep.mubr.bf16.mxu0 %v22131_v52 }
 0x1d5   :  { %v1225_v2 = vadd.f32 %v21901_v51, %v997_v63  ;;  %v999_v5 = vpop.f32.mrb[39].mxu0  ;;  %2562 = vmatmul.mubr.bf16.gmra.mrb[52].mxu1 %v22129_v49  ;;  %2848 = vmatmul.mubr.bf16.gmra.mrb[76].mxu0 %v22129_v49  ;;  %v1294_v6 = vmax.f32 %v1222_v55, 0.0 }
 0x1d6   :  { %v1295_v8 = vmax.f32 %v1223_v60, 0.0  ;;  %v1226_v10 = vadd.f32 %v21905_v54, %v999_v5 }
 0x1d7   :  { %v1297_v11 = vmax.f32 %v1225_v2, 0.0 }
 0x1d8   :  { %v1298_v12 = vmax.f32 %v1226_v10, 0.0 }
 0x1d9   :  { %v22141_v13 = vpack.c.bf16 %v1297_v11, %v1294_v6 }
 0x1da   :  { %v22143_v16 = vpack.c.bf16 %v1298_v12, %v1295_v8  ;;  %v1003_v19 = vpop.f32.mrb[40].mxu0 }
 0x1db   :  { %v1228_v23 = vadd.f32 %v21901_v51, %v1003_v19  ;;  %v1005_v25 = vpop.f32.mrb[41].mxu0 }
 0x1dc   :  { %v1229_v28 = vadd.f32 %v21905_v54, %v1005_v25  ;;  %v1007_v32 = vpop.f32.mrb[42].mxu0  ;;  %2571 = vmatprep.mubr.bf16.mxu1 %v22143_v16  ;;  %2857 = vmatprep.mubr.bf16.mxu0 %v22143_v16 }
 0x1dd   :  { %v1231_v33 = vadd.f32 %v21901_v51, %v1007_v32  ;;  %v1009_v36 = vpop.f32.mrb[43].mxu0  ;;  %2572 = vmatmul.mubr.bf16.gmra.mrb[56].mxu1 %v22141_v13  ;;  %2858 = vmatmul.mubr.bf16.gmra.mrb[80].mxu0 %v22141_v13  ;;  %v1300_v39 = vmax.f32 %v1228_v23, 0.0  ;;  %v19872_v32 = vld [vmem:[%s27056_s3 + $0x3c] ss:$24 sps:$4 sm:$0xff]  }
 0x1de   :  { %v1232_v38 = vadd.f32 %v21905_v54, %v1009_v36  ;;  %v1301_v42 = vmax.f32 %v1229_v28, 0.0  ;;  %v19864_v28 = vld [vmem:[%s27056_s3 + $0x8] ss:$24 sps:$4 sm:$0xff]   ;;  %v19857_v36 = vld [vmem:[%s27056_s3 + $0x4f4] ss:$24 sps:$4 sm:$0xff]  }
 0x1df   :  { %v1303_v41 = vmax.f32 %v1231_v33, 0.0  ;;  %v19852_v33 = vld [vmem:[%s27056_s3 + $0x4c0] ss:$24 sps:$4 sm:$0xff]  }
 0x1e0   :  { %v1304_v44 = vmax.f32 %v1232_v38, 0.0  ;;  %v19870_v38 = vld [vmem:[%s27056_s3 + $0x38] ss:$24 sps:$4 sm:$0xff]  }
 0x1e1   :  { %v22153_v48 = vpack.c.bf16 %v1303_v41, %v1300_v39  ;;  %v19855_v39 = vld [vmem:[%s27056_s3 + $0x4f0] ss:$24 sps:$4 sm:$0xff]   ;;  %v19860_v41 = vld [vmem:[%s27056_s3 + $0x524] ss:$24 sps:$4 sm:$0xff]  }
 0x1e2   :  { %v22155_v53 = vpack.c.bf16 %v1304_v44, %v1301_v42  ;;  %v1013_v55 = vpop.f32.mrb[44].mxu0  ;;  %v19875_v42 = vld [vmem:[%s27056_s3 + $0x6c] ss:$24 sps:$4 sm:$0xff]   ;;  %v19873_v44 = vld [vmem:[%s27056_s3 + $0x68] ss:$24 sps:$4 sm:$0xff]  }
 0x1e3   :  { %v1234_v57 = vadd.f32 %v21901_v51, %v1013_v55  ;;  %v1015_v60 = vpop.f32.mrb[45].mxu0  ;;  %v19858_v55 = vld [vmem:[%s27056_s3 + $0x520] ss:$24 sps:$4 sm:$0xff]  }
 0x1e4   :  { %v1235_v63 = vadd.f32 %v21905_v54, %v1015_v60  ;;  %v1017_v2 = vpop.f32.mrb[46].mxu0  ;;  %2581 = vmatprep.mubr.bf16.mxu1 %v22155_v53  ;;  %2867 = vmatprep.mubr.bf16.mxu0 %v22155_v53  ;;  %v19881_v60 = vld [vmem:[%s27056_s3 + $0x9c] ss:$24 sps:$4 sm:$0xff]  }
 0x1e5   :  { %v1237_v5 = vadd.f32 %v21901_v51, %v1017_v2  ;;  %v1019_v6 = vpop.f32.mrb[47].mxu0  ;;  %2582 = vmatmul.mubr.bf16.gmra.mrb[60].mxu1 %v22153_v48  ;;  %2868 = vmatmul.mubr.bf16.gmra.mrb[84].mxu0 %v22153_v48  ;;  %v1306_v10 = vmax.f32 %v1234_v57, 0.0  ;;  %v19849_v51 = vld [vmem:[%s27056_s3 + $0x490] ss:$24 sps:$4 sm:$0xff]   ;;  %v19863_v57 = vld [vmem:[%s27056_s3 + $0x554] ss:$24 sps:$4 sm:$0xff]  }
 0x1e6   :  { %v1238_v8 = vadd.f32 %v21905_v54, %v1019_v6  ;;  %v1307_v12 = vmax.f32 %v1235_v63, 0.0  ;;  %v19854_v54 = vld [vmem:[%s27056_s3 + $0x4c4] ss:$24 sps:$4 sm:$0xff]   ;;  %v19861_v63 = vld [vmem:[%s27056_s3 + $0x550] ss:$24 sps:$4 sm:$0xff]  }
 0x1e7   :  { %v1309_v11 = vmax.f32 %v1237_v5, 0.0  ;;  %v19879_v2 = vld [vmem:[%s27056_s3 + $0x98] ss:$24 sps:$4 sm:$0xff]   ;;  %v19869_v5 = vld [vmem:[%s27056_s3 + $0x584] ss:$24 sps:$4 sm:$0xff]  }
 0x1e8   :  { %v1310_v19 = vmax.f32 %v1238_v8, 0.0  ;;  %v19887_v6 = vld [vmem:[%s27056_s3 + $0xcc] ss:$24 sps:$4 sm:$0xff]   ;;  %v19867_v8 = vld [vmem:[%s27056_s3 + $0x580] ss:$24 sps:$4 sm:$0xff]  }
 0x1e9   :  { %v22165_v23 = vpack.c.bf16 %v1309_v11, %v1306_v10  ;;  %v19878_v10 = vld [vmem:[%s27056_s3 + $0x5b4] ss:$24 sps:$4 sm:$0xff]   ;;  %v19885_v11 = vld [vmem:[%s27056_s3 + $0xc8] ss:$24 sps:$4 sm:$0xff]  }
 0x1ea   :  { %v22167_v25 = vpack.c.bf16 %v1310_v19, %v1307_v12  ;;  %v19893_v12 = vld [vmem:[%s27056_s3 + $0xfc] ss:$24 sps:$4 sm:$0xff]   ;;  %v19876_v19 = vld [vmem:[%s27056_s3 + $0x5b0] ss:$24 sps:$4 sm:$0xff]  }
 0x1ec   :  { %2591 = vmatprep.mubr.bf16.mxu1 %v22167_v25  ;;  %2877 = vmatprep.mubr.bf16.mxu0 %v22167_v25 }
 0x1ed   :  { %2592 = vmatmul.mubr.bf16.gmra.mrb[64].mxu1 %v22165_v23  ;;  %2878 = vmatmul.mubr.bf16.gmra.mrb[88].mxu0 %v22165_v23 }
 0x1ee   :  { %2634 = vmatprep.mubr.bf16.mxu1 %v27066_v0  ;;  %2920 = vmatprep.mubr.bf16.mxu0 %v27066_v0 }
 0x1f5   :  { %2635 = vmatmul.mubr.bf16.vlgmr.msra.gmra.mrb[24].mxu1 %v21881_v30  ;;  %2921 = vmatmul.mubr.bf16.vlgmr.msra.gmra.mrb[48].mxu0 %v21881_v30 }
 0x1f6   :  { %3032 = vmatpush1.bf16.msra.mxu1 %v19849_v51  ;;  %2644 = vmatprep.mubr.bf16.mxu1 %v27066_v0  ;;  %v19891_v51 = vld [vmem:[%s27056_s3 + $0xf8] ss:$24 sps:$4 sm:$0xff]  }
 0x1f7   :  { %3033 = vmatprep.subr.bf16.mxu1 %v19854_v54  ;;  %2930 = vmatprep.mubr.bf16.mxu0 %v27066_v0  ;;  %v19884_v54 = vld [vmem:[%s27056_s3 + $0x5e4] ss:$24 sps:$4 sm:$0xff]  }
 0x1f8   :  { %4324 = vmatpush1.bf16.msra.mxu0 %v19864_v28  ;;  %v19896_v28 = vld [vmem:[%s27056_s3 + $0x12c] ss:$24 sps:$4 sm:$0xff]  }
 0x1f9   :  { %4325 = vmatprep.subr.bf16.mxu0 %v19872_v32  ;;  %v19882_v32 = vld [vmem:[%s27056_s3 + $0x5e0] ss:$24 sps:$4 sm:$0xff]  }
 0x1fa   :  { %3034 = vmatpush1.bf16.msra.mxu1 %v19852_v33  ;;  %v19890_v33 = vld [vmem:[%s27056_s3 + $0x614] ss:$24 sps:$4 sm:$0xff]  }
 0x1fb   :  { %3035 = vmatprep.subr.bf16.mxu1 %v19857_v36  ;;  %v19894_v36 = vld [vmem:[%s27056_s3 + $0x128] ss:$24 sps:$4 sm:$0xff]  }
 0x1fc   :  { %4326 = vmatpush1.bf16.msra.mxu0 %v19870_v38  ;;  %v19902_v38 = vld [vmem:[%s27056_s3 + $0x15c] ss:$24 sps:$4 sm:$0xff]  }
 0x1fd   :  { %2645 = vmatmul.mubr.bf16.gmra.mrb[28].mxu1 %v21897_v47  ;;  %2931 = vmatmul.mubr.bf16.gmra.mrb[52].mxu0 %v21897_v47 }
 0x1fe   :  { %3036 = vmatpush1.bf16.msra.mxu1 %v19855_v39  ;;  %2654 = vmatprep.mubr.bf16.mxu1 %v27066_v0  ;;  %v19888_v39 = vld [vmem:[%s27056_s3 + $0x610] ss:$24 sps:$4 sm:$0xff]  }
 0x1ff   :  { %2940 = vmatprep.mubr.bf16.mxu0 %v27066_v0  ;;  %3037 = vmatprep.subr.bf16.mxu1 %v19860_v41  ;;  %v19900_v41 = vld [vmem:[%s27056_s3 + $0x158] ss:$24 sps:$4 sm:$0xff]  }
 0x200   :  { %4327 = vmatprep.subr.bf16.mxu0 %v19875_v42  ;;  %v19899_v42 = vld [vmem:[%s27056_s3 + $0x644] ss:$24 sps:$4 sm:$0xff]  }
 0x201   :  { %4328 = vmatpush1.bf16.msra.mxu0 %v19873_v44  ;;  %v19908_v44 = vld [vmem:[%s27056_s3 + $0x18c] ss:$24 sps:$4 sm:$0xff]  }
 0x202   :  { %3038 = vmatpush1.bf16.msra.mxu1 %v19858_v55  ;;  %4329 = vmatprep.subr.bf16.mxu0 %v19881_v60  ;;  %v19897_v55 = vld [vmem:[%s27056_s3 + $0x640] ss:$24 sps:$4 sm:$0xff]  }
 0x203   :  { %3039 = vmatprep.subr.bf16.mxu1 %v19863_v57  ;;  %v19905_v57 = vld [vmem:[%s27056_s3 + $0x674] ss:$24 sps:$4 sm:$0xff]   ;;  %v19906_v60 = vld [vmem:[%s27056_s3 + $0x188] ss:$24 sps:$4 sm:$0xff]  }
 0x205   :  { %2655 = vmatmul.mubr.bf16.gmra.mrb[32].mxu1 %v21895_v46  ;;  %2941 = vmatmul.mubr.bf16.gmra.mrb[56].mxu0 %v21895_v46 }
 0x206   :  { %2664 = vmatprep.mubr.bf16.mxu1 %v27066_v0  ;;  %2950 = vmatprep.mubr.bf16.mxu0 %v27066_v0 }
 0x207   :  { %3040 = vmatpush1.bf16.msra.mxu1 %v19861_v63  ;;  %4330 = vmatpush1.bf16.msra.mxu0 %v19879_v2  ;;  %v19911_v63 = vld [vmem:[%s27056_s3 + $0x1bc] ss:$24 sps:$4 sm:$0xff]   ;;  %v19903_v2 = vld [vmem:[%s27056_s3 + $0x670] ss:$24 sps:$4 sm:$0xff]  }
 0x208   :  { %3041 = vmatprep.subr.bf16.mxu1 %v19869_v5  ;;  %4331 = vmatprep.subr.bf16.mxu0 %v19887_v6  ;;  %v19909_v5 = vld [vmem:[%s27056_s3 + $0x1b8] ss:$24 sps:$4 sm:$0xff]   ;;  %v19914_v6 = vld [vmem:[%s27056_s3 + $0x6a4] ss:$24 sps:$4 sm:$0xff]  }
 0x20b   :  { %3042 = vmatpush1.bf16.msra.mxu1 %v19867_v8  ;;  %4332 = vmatpush1.bf16.msra.mxu0 %v19885_v11  ;;  %v19917_v8 = vld [vmem:[%s27056_s3 + $0x1ec] ss:$24 sps:$4 sm:$0xff]   ;;  %v19915_v11 = vld [vmem:[%s27056_s3 + $0x1e8] ss:$24 sps:$4 sm:$0xff]  }
 0x20c   :  { %3043 = vmatprep.subr.bf16.mxu1 %v19878_v10  ;;  %4333 = vmatprep.subr.bf16.mxu0 %v19893_v12  ;;  %v19912_v10 = vld [vmem:[%s27056_s3 + $0x6a0] ss:$24 sps:$4 sm:$0xff]   ;;  %v19920_v12 = vld [vmem:[%s27056_s3 + $0x6d4] ss:$24 sps:$4 sm:$0xff]  }
 0x20d   :  { %2665 = vmatmul.mubr.bf16.gmra.mrb[36].mxu1 %v21914_v7  ;;  %2951 = vmatmul.mubr.bf16.gmra.mrb[60].mxu0 %v21914_v7 }
 0x20e   :  { %2674 = vmatprep.mubr.bf16.mxu1 %v27066_v0  ;;  %2960 = vmatprep.mubr.bf16.mxu0 %v27066_v0 }
 0x20f   :  { %3044 = vmatpush1.bf16.msra.mxu1 %v19876_v19  ;;  %4334 = vmatpush1.bf16.msra.mxu0 %v19891_v51  ;;  %v19923_v19 = vld [vmem:[%s27056_s3 + $0x21c] ss:$24 sps:$4 sm:$0xff]   ;;  %v19918_v51 = vld [vmem:[%s27056_s3 + $0x6d0] ss:$24 sps:$4 sm:$0xff]  }
 0x210   :  { %3045 = vmatprep.subr.bf16.mxu1 %v19884_v54  ;;  %4335 = vmatprep.subr.bf16.mxu0 %v19896_v28  ;;  %v19921_v54 = vld [vmem:[%s27056_s3 + $0x218] ss:$24 sps:$4 sm:$0xff]   ;;  %v19926_v28 = vld [vmem:[%s27056_s3 + $0x704] ss:$24 sps:$4 sm:$0xff]  }
 0x213   :  { %3046 = vmatpush1.bf16.msra.mxu1 %v19882_v32  ;;  %4336 = vmatpush1.bf16.msra.mxu0 %v19894_v36  ;;  %v19929_v32 = vld [vmem:[%s27056_s3 + $0x24c] ss:$24 sps:$4 sm:$0xff]   ;;  %v19927_v36 = vld [vmem:[%s27056_s3 + $0x248] ss:$24 sps:$4 sm:$0xff]  }
 0x214   :  { %3047 = vmatprep.subr.bf16.mxu1 %v19890_v33  ;;  %4337 = vmatprep.subr.bf16.mxu0 %v19902_v38  ;;  %v19924_v33 = vld [vmem:[%s27056_s3 + $0x700] ss:$24 sps:$4 sm:$0xff]   ;;  %v19932_v38 = vld [vmem:[%s27056_s3 + $0x27c] ss:$24 sps:$4 sm:$0xff]  }
 0x215   :  { %2675 = vmatmul.mubr.bf16.gmra.mrb[40].mxu1 %v21911_v4  ;;  %2961 = vmatmul.mubr.bf16.gmra.mrb[64].mxu0 %v21911_v4 }
 0x216   :  { %2684 = vmatprep.mubr.bf16.mxu1 %v27066_v0  ;;  %2970 = vmatprep.mubr.bf16.mxu0 %v27066_v0 }
 0x217   :  { %3048 = vmatpush1.bf16.msra.mxu1 %v19888_v39  ;;  %4338 = vmatpush1.bf16.msra.mxu0 %v19900_v41  ;;  %v19935_v39 = vld [vmem:[%s27056_s3 + $0x734] ss:$24 sps:$4 sm:$0xff]   ;;  %v19930_v41 = vld [vmem:[%s27056_s3 + $0x278] ss:$24 sps:$4 sm:$0xff]  }
 0x218   :  { %3049 = vmatprep.subr.bf16.mxu1 %v19899_v42  ;;  %4339 = vmatprep.subr.bf16.mxu0 %v19908_v44  ;;  %v19933_v42 = vld [vmem:[%s27056_s3 + $0x730] ss:$24 sps:$4 sm:$0xff]   ;;  %v19938_v44 = vld [vmem:[%s27056_s3 + $0x2ac] ss:$24 sps:$4 sm:$0xff]  }
 0x21b   :  { %3050 = vmatpush1.bf16.msra.mxu1 %v19897_v55  ;;  %4340 = vmatpush1.bf16.msra.mxu0 %v19906_v60  ;;  %v19941_v55 = vld [vmem:[%s27056_s3 + $0x764] ss:$24 sps:$4 sm:$0xff]   ;;  %v19939_v60 = vld [vmem:[%s27056_s3 + $0x760] ss:$24 sps:$4 sm:$0xff]  }
 0x21c   :  { %3051 = vmatprep.subr.bf16.mxu1 %v19905_v57  ;;  %4341 = vmatprep.subr.bf16.mxu0 %v19911_v63  ;;  %v19936_v57 = vld [vmem:[%s27056_s3 + $0x2a8] ss:$24 sps:$4 sm:$0xff]   ;;  %v19944_v63 = vld [vmem:[%s27056_s3 + $0x2dc] ss:$24 sps:$4 sm:$0xff]  }
 0x21d   :  { %2685 = vmatmul.mubr.bf16.gmra.mrb[44].mxu1 %v21930_v40  ;;  %2971 = vmatmul.mubr.bf16.gmra.mrb[68].mxu0 %v21930_v40 }
 0x21e   :  { %2694 = vmatprep.mubr.bf16.mxu1 %v27066_v0  ;;  %2980 = vmatprep.mubr.bf16.mxu0 %v27066_v0 }
 0x21f   :  { %3052 = vmatpush1.bf16.msra.mxu1 %v19903_v2  ;;  %4342 = vmatpush1.bf16.msra.mxu0 %v19909_v5  ;;  %v19947_v2 = vld [vmem:[%s27056_s3 + $0x794] ss:$24 sps:$4 sm:$0xff]   ;;  %v19942_v5 = vld [vmem:[%s27056_s3 + $0x2d8] ss:$24 sps:$4 sm:$0xff]  }
 0x220   :  { %3053 = vmatprep.subr.bf16.mxu1 %v19914_v6  ;;  %4343 = vmatprep.subr.bf16.mxu0 %v19917_v8  ;;  %v19965_v6 = vld [vmem:[%s27056_s3 + $0x30c] ss:$24 sps:$4 sm:$0xff]   ;;  %v19945_v8 = vld [vmem:[%s27056_s3 + $0x790] ss:$24 sps:$4 sm:$0xff]  }
 0x223   :  { %3054 = vmatpush1.bf16.msra.mxu1 %v19912_v10  ;;  %4344 = vmatpush1.bf16.msra.mxu0 %v19915_v11  ;;  %v19950_v10 = vld [vmem:[%s27056_s3 + $0x7c4] ss:$24 sps:$4 sm:$0xff]   ;;  %v19963_v11 = vld [vmem:[%s27056_s3 + $0x308] ss:$24 sps:$4 sm:$0xff]  }
 0x224   :  { %3055 = vmatprep.subr.bf16.mxu1 %v19920_v12  ;;  %4345 = vmatprep.subr.bf16.mxu0 %v19923_v19  ;;  %v19948_v12 = vld [vmem:[%s27056_s3 + $0x7c0] ss:$24 sps:$4 sm:$0xff]   ;;  %v19953_v19 = vld [vmem:[%s27056_s3 + $0x7f4] ss:$24 sps:$4 sm:$0xff]  }
 0x225   :  { %2695 = vmatmul.mubr.bf16.gmra.mrb[48].mxu1 %v21927_v37  ;;  %2981 = vmatmul.mubr.bf16.gmra.mrb[72].mxu0 %v21927_v37 }
 0x226   :  { %2704 = vmatprep.mubr.bf16.mxu1 %v27066_v0  ;;  %2990 = vmatprep.mubr.bf16.mxu0 %v27066_v0 }
 0x227   :  { %3056 = vmatpush1.bf16.msra.mxu1 %v19918_v51  ;;  %4346 = vmatpush1.bf16.msra.mxu0 %v19921_v54  ;;  %v19968_v51 = vld [vmem:[%s27056_s3 + $0x33c] ss:$24 sps:$4 sm:$0xff]   ;;  %v19966_v54 = vld [vmem:[%s27056_s3 + $0x338] ss:$24 sps:$4 sm:$0xff]  }
 0x228   :  { %3057 = vmatprep.subr.bf16.mxu1 %v19926_v28  ;;  %4347 = vmatprep.subr.bf16.mxu0 %v19929_v32  ;;  %v19951_v28 = vld [vmem:[%s27056_s3 + $0x7f0] ss:$24 sps:$4 sm:$0xff]   ;;  %v19971_v32 = vld [vmem:[%s27056_s3 + $0x36c] ss:$24 sps:$4 sm:$0xff]  }
 0x22b   :  { %3058 = vmatpush1.bf16.msra.mxu1 %v19924_v33  ;;  %4348 = vmatpush1.bf16.msra.mxu0 %v19927_v36  ;;  %v19956_v33 = vld [vmem:[%s27056_s3 + $0x824] ss:$24 sps:$4 sm:$0xff]   ;;  %v19969_v36 = vld [vmem:[%s27056_s3 + $0x368] ss:$24 sps:$4 sm:$0xff]  }
 0x22c   :  { %4349 = vmatprep.subr.bf16.mxu0 %v19932_v38  ;;  %3059 = vmatprep.subr.bf16.mxu1 %v19935_v39  ;;  %v19954_v38 = vld [vmem:[%s27056_s3 + $0x820] ss:$24 sps:$4 sm:$0xff]   ;;  %v19977_v39 = vld [vmem:[%s27056_s3 + $0x39c] ss:$24 sps:$4 sm:$0xff]  }
 0x22d   :  { %2705 = vmatmul.mubr.bf16.gmra.mrb[52].mxu1 %v21968_v22  ;;  %2991 = vmatmul.mubr.bf16.gmra.mrb[76].mxu0 %v21968_v22 }
 0x22e   :  { %2714 = vmatprep.mubr.bf16.mxu1 %v27066_v0  ;;  %3000 = vmatprep.mubr.bf16.mxu0 %v27066_v0 }
 0x22f   :  { %4350 = vmatpush1.bf16.msra.mxu0 %v19930_v41  ;;  %3060 = vmatpush1.bf16.msra.mxu1 %v19933_v42  ;;  %v19959_v41 = vld [vmem:[%s27056_s3 + $0x854] ss:$24 sps:$4 sm:$0xff]   ;;  %v19975_v42 = vld [vmem:[%s27056_s3 + $0x398] ss:$24 sps:$4 sm:$0xff]  }
 0x230   :  { %4351 = vmatprep.subr.bf16.mxu0 %v19938_v44  ;;  %3061 = vmatprep.subr.bf16.mxu1 %v19941_v55  ;;  %v19957_v44 = vld [vmem:[%s27056_s3 + $0x850] ss:$24 sps:$4 sm:$0xff]   ;;  %v19980_v55 = vld [vmem:[%s27056_s3 + $0x3cc] ss:$24 sps:$4 sm:$0xff]  }
 0x233   :  { %4352 = vmatpush1.bf16.msra.mxu0 %v19936_v57  ;;  %3062 = vmatpush1.bf16.msra.mxu1 %v19939_v60  ;;  %v19962_v57 = vld [vmem:[%s27056_s3 + $0x884] ss:$24 sps:$4 sm:$0xff]   ;;  %v19978_v60 = vld [vmem:[%s27056_s3 + $0x3c8] ss:$24 sps:$4 sm:$0xff]  }
 0x234   :  { %4353 = vmatprep.subr.bf16.mxu0 %v19944_v63  ;;  %3174 = vmatprep.subr.bf16.mxu1 %v19947_v2  ;;  %v19960_v63 = vld [vmem:[%s27056_s3 + $0x880] ss:$24 sps:$4 sm:$0xff]   ;;  %v19983_v2 = vld [vmem:[%s27056_s3 + $0x3fc] ss:$24 sps:$4 sm:$0xff]  }
 0x235   :  { %2715 = vmatmul.mubr.bf16.gmra.mrb[56].mxu1 %v21960_v18  ;;  %3001 = vmatmul.mubr.bf16.gmra.mrb[80].mxu0 %v21960_v18 }
 0x236   :  { %2724 = vmatprep.mubr.bf16.mxu1 %v27066_v0  ;;  %3010 = vmatprep.mubr.bf16.mxu0 %v27066_v0 }
 0x237   :  { %4354 = vmatpush1.bf16.msra.mxu0 %v19942_v5  ;;  %v19974_v5 = vld [vmem:[%s27056_s3 + $0x8b4] ss:$24 sps:$4 sm:$0xff]  }
 0x238   :  { %4466 = vmatprep.subr.bf16.mxu0 %v19965_v6  ;;  %v19981_v6 = vld [vmem:[%s27056_s3 + $0x3f8] ss:$24 sps:$4 sm:$0xff]  }
 0x23d   :  { %2725 = vmatmul.mubr.bf16.gmra.mrb[60].mxu1 %v22009_v9  ;;  %3011 = vmatmul.mubr.bf16.gmra.mrb[84].mxu0 %v22009_v9 }
 0x23e   :  { %2734 = vmatprep.mubr.bf16.mxu1 %v27066_v0  ;;  %3020 = vmatprep.mubr.bf16.mxu0 %v27066_v0 }
 0x245   :  { %2735 = vmatmul.mubr.bf16.gmra.mrb[64].mxu1 %v22001_v17  ;;  %3021 = vmatmul.mubr.bf16.gmra.mrb[88].mxu0 %v22001_v17 }
 0x246   :  { %3063 = vmatprep.mubr.bf16.mxu1 %v21948_v3  ;;  %4355 = vmatprep.mubr.bf16.mxu0 %v21923_v27 }
 0x24d   :  { %3064 = vmatmul.mubr.bf16.vlgmr.msra.gmra.mrb[68].mxu1 %v21942_v62  ;;  %4356 = vmatmul.mubr.bf16.vlgmr.msra.gmra.mrb[48].mxu0 %v21920_v24 }
 0x24e   :  { %3073 = vmatprep.mubr.bf16.mxu1 %v21992_v56  ;;  %3175 = vmatpush1.bf16.msra.mxu1 %v19945_v8  ;;  %v19972_v8 = vld [vmem:[%s27056_s3 + $0x8b0] ss:$24 sps:$4 sm:$0xff]  }
 0x24f   :  { %4365 = vmatprep.mubr.bf16.mxu0 %v21948_v3  ;;  %3176 = vmatprep.subr.bf16.mxu1 %v19950_v10  ;;  %v19989_v10 = vld [vmem:[%s27056_s3 + $0x42c] ss:$24 sps:$4 sm:$0xff]  }
 0x250   :  { %4467 = vmatpush1.bf16.msra.mxu0 %v19963_v11  ;;  %v19986_v11 = vld [vmem:[%s27056_s3 + $0x8e4] ss:$24 sps:$4 sm:$0xff]  }
 0x251   :  { %4468 = vmatprep.subr.bf16.mxu0 %v19968_v51  ;;  %v19992_v51 = vld [vmem:[%s27056_s3 + $0x45c] ss:$24 sps:$4 sm:$0xff]  }
 0x252   :  { %3177 = vmatpush1.bf16.msra.mxu1 %v19948_v12  ;;  %v19987_v12 = vld [vmem:[%s27056_s3 + $0x428] ss:$24 sps:$4 sm:$0xff]  }
 0x253   :  { %3178 = vmatprep.subr.bf16.mxu1 %v19953_v19  ;;  %v19984_v19 = vld [vmem:[%s27056_s3 + $0x8e0] ss:$24 sps:$4 sm:$0xff]  }
 0x254   :  { %4469 = vmatpush1.bf16.msra.mxu0 %v19966_v54  ;;  %v19990_v54 = vld [vmem:[%s27056_s3 + $0x458] ss:$24 sps:$4 sm:$0xff]  }
 0x255   :  { %3074 = vmatmul.mubr.bf16.gmra.mrb[72].mxu1 %v21986_v50  ;;  %4366 = vmatmul.mubr.bf16.gmra.mrb[52].mxu0 %v21942_v62 }
 0x256   :  { %3083 = vmatprep.mubr.bf16.mxu1 %v22032_v29  ;;  %4375 = vmatprep.mubr.bf16.mxu0 %v21992_v56 }
 0x257   :  { %3179 = vmatpush1.bf16.msra.mxu1 %v19951_v28  ;;  %4470 = vmatprep.subr.bf16.mxu0 %v19971_v32  ;;  %v19995_v28 = vld [vmem:[%s27056_s3 + $0x4] ss:$24 sps:$4 sm:$0xff]   ;;  %v19993_v32 = vld [vmem:[%s27056_s3] ss:$24 sps:$4 sm:$0xff]  }
 0x258   :  { %3180 = vmatprep.subr.bf16.mxu1 %v19956_v33  ;;  %4471 = vmatpush1.bf16.msra.mxu0 %v19969_v36  ;;  %v19998_v33 = vld [vmem:[%s27056_s3 + $0x34] ss:$24 sps:$4 sm:$0xff]   ;;  %v19999_v36 = vld [vmem:[%s27056_s3 + $0x60] ss:$24 sps:$4 sm:$0xff]  }
 0x259   :  { %4472 = vmatprep.subr.bf16.mxu0 %v19977_v39  ;;  %v20002_v39 = vld [vmem:[%s27056_s3 + $0x90] ss:$24 sps:$4 sm:$0xff]  }
 0x25b   :  { %3181 = vmatpush1.bf16.msra.mxu1 %v19954_v38  ;;  %v20004_v38 = vld [vmem:[%s27056_s3 + $0x94] ss:$24 sps:$4 sm:$0xff]  }
 0x25c   :  { %3182 = vmatprep.subr.bf16.mxu1 %v19959_v41  ;;  %4473 = vmatpush1.bf16.msra.mxu0 %v19975_v42  ;;  %v20007_v41 = vld [vmem:[%s27056_s3 + $0xc4] ss:$24 sps:$4 sm:$0xff]   ;;  %v20005_v42 = vld [vmem:[%s27056_s3 + $0xc0] ss:$24 sps:$4 sm:$0xff]  }
 0x25d   :  { %3084 = vmatmul.mubr.bf16.gmra.mrb[76].mxu1 %v22027_v26  ;;  %4376 = vmatmul.mubr.bf16.gmra.mrb[56].mxu0 %v21986_v50 }
 0x25e   :  { %3093 = vmatprep.mubr.bf16.mxu1 %v22068_v1  ;;  %4385 = vmatprep.mubr.bf16.mxu0 %v22032_v29 }
 0x25f   :  { %3183 = vmatpush1.bf16.msra.mxu1 %v19957_v44  ;;  %4474 = vmatprep.subr.bf16.mxu0 %v19980_v55  ;;  %v20010_v44 = vld [vmem:[%s27056_s3 + $0xf4] ss:$24 sps:$4 sm:$0xff]   ;;  %v20008_v55 = vld [vmem:[%s27056_s3 + $0xf0] ss:$24 sps:$4 sm:$0xff]  }
 0x260   :  { %3184 = vmatprep.subr.bf16.mxu1 %v19962_v57  ;;  %4475 = vmatpush1.bf16.msra.mxu0 %v19978_v60  ;;  %v20013_v57 = vld [vmem:[%s27056_s3 + $0x124] ss:$24 sps:$4 sm:$0xff]   ;;  %v20011_v60 = vld [vmem:[%s27056_s3 + $0x120] ss:$24 sps:$4 sm:$0xff]  }
 0x261   :  { %4476 = vmatprep.subr.bf16.mxu0 %v19983_v2  ;;  %v20014_v2 = vld [vmem:[%s27056_s3 + $0x150] ss:$24 sps:$4 sm:$0xff]  }
 0x263   :  { %3185 = vmatpush1.bf16.msra.mxu1 %v19960_v63  ;;  %v20016_v63 = vld [vmem:[%s27056_s3 + $0x154] ss:$24 sps:$4 sm:$0xff]  }
 0x264   :  { %3186 = vmatprep.subr.bf16.mxu1 %v19974_v5  ;;  %4477 = vmatpush1.bf16.msra.mxu0 %v19981_v6  ;;  %v20019_v5 = vld [vmem:[%s27056_s3 + $0x184] ss:$24 sps:$4 sm:$0xff]   ;;  %v20017_v6 = vld [vmem:[%s27056_s3 + $0x180] ss:$24 sps:$4 sm:$0xff]  }
 0x265   :  { %3094 = vmatmul.mubr.bf16.gmra.mrb[80].mxu1 %v22063_v61  ;;  %4386 = vmatmul.mubr.bf16.gmra.mrb[60].mxu0 %v22027_v26 }
 0x266   :  { %3103 = vmatprep.mubr.bf16.mxu1 %v22095_v35  ;;  %4395 = vmatprep.mubr.bf16.mxu0 %v22068_v1 }
 0x267   :  { %3187 = vmatpush1.bf16.msra.mxu1 %v19972_v8  ;;  %4478 = vmatprep.subr.bf16.mxu0 %v19989_v10  ;;  %v20022_v8 = vld [vmem:[%s27056_s3 + $0x1b4] ss:$24 sps:$4 sm:$0xff]   ;;  %v20020_v10 = vld [vmem:[%s27056_s3 + $0x1b0] ss:$24 sps:$4 sm:$0xff]  }
 0x268   :  { %3188 = vmatprep.subr.bf16.mxu1 %v19986_v11  ;;  %4479 = vmatpush1.bf16.msra.mxu0 %v19987_v12  ;;  %v20025_v11 = vld [vmem:[%s27056_s3 + $0x1e4] ss:$24 sps:$4 sm:$0xff]   ;;  %v20023_v12 = vld [vmem:[%s27056_s3 + $0x1e0] ss:$24 sps:$4 sm:$0xff]  }
 0x269   :  { %4480 = vmatprep.subr.bf16.mxu0 %v19992_v51  ;;  %v20026_v51 = vld [vmem:[%s27056_s3 + $0x210] ss:$24 sps:$4 sm:$0xff]  }
 0x26b   :  { %3189 = vmatpush1.bf16.msra.mxu1 %v19984_v19  ;;  %v20028_v19 = vld [vmem:[%s27056_s3 + $0x214] ss:$24 sps:$4 sm:$0xff]  }
 0x26c   :  { %4481 = vmatpush1.bf16.msra.mxu0 %v19990_v54  ;;  %4037 = vmatprep.subr.bf16.mxu1 %v19995_v28  ;;  %v20031_v54 = vld [vmem:[%s27056_s3 + $0x244] ss:$24 sps:$4 sm:$0xff]   ;;  %v20029_v28 = vld [vmem:[%s27056_s3 + $0x240] ss:$24 sps:$4 sm:$0xff]  }
 0x26d   :  { %3104 = vmatmul.mubr.bf16.gmra.mrb[84].mxu1 %v22093_v34  ;;  %4396 = vmatmul.mubr.bf16.gmra.mrb[64].mxu0 %v22063_v61 }
 0x26e   :  { %3113 = vmatprep.mubr.bf16.mxu1 %v22107_v59  ;;  %4405 = vmatprep.mubr.bf16.mxu0 %v22095_v35 }
 0x275   :  { %3114 = vmatmul.mubr.bf16.gmra.mrb[88].mxu1 %v22105_v58  ;;  %4406 = vmatmul.mubr.bf16.gmra.mrb[68].mxu0 %v22093_v34 }
 0x276   :  { %3123 = vmatprep.mubr.bf16.mxu1 %v22119_v21  ;;  %4415 = vmatprep.mubr.bf16.mxu0 %v22107_v59 }
 0x27d   :  { %3124 = vmatmul.mubr.bf16.gmra.mrb[92].mxu1 %v22117_v20  ;;  %4416 = vmatmul.mubr.bf16.gmra.mrb[72].mxu0 %v22105_v58 }
 0x27e   :  { %3133 = vmatprep.mubr.bf16.mxu1 %v22131_v52  ;;  %4425 = vmatprep.mubr.bf16.mxu0 %v22119_v21 }
 0x285   :  { %3134 = vmatmul.mubr.bf16.gmra.mrb[96].mxu1 %v22129_v49  ;;  %4426 = vmatmul.mubr.bf16.gmra.mrb[76].mxu0 %v22117_v20 }
 0x286   :  { %3143 = vmatprep.mubr.bf16.mxu1 %v22143_v16  ;;  %4435 = vmatprep.mubr.bf16.mxu0 %v22131_v52 }
 0x28d   :  { %3144 = vmatmul.mubr.bf16.gmra.mrb[100].mxu1 %v22141_v13  ;;  %4436 = vmatmul.mubr.bf16.gmra.mrb[80].mxu0 %v22129_v49 }
 0x28e   :  { %3153 = vmatprep.mubr.bf16.mxu1 %v22155_v53  ;;  %4445 = vmatprep.mubr.bf16.mxu0 %v22143_v16 }
 0x295   :  { %3154 = vmatmul.mubr.bf16.gmra.mrb[104].mxu1 %v22153_v48  ;;  %4446 = vmatmul.mubr.bf16.gmra.mrb[84].mxu0 %v22141_v13 }
 0x296   :  { %3163 = vmatprep.mubr.bf16.mxu1 %v22167_v25  ;;  %4455 = vmatprep.mubr.bf16.mxu0 %v22155_v53  ;;  %v20001_v25 = vld [vmem:[%s27056_s3 + $0x64] ss:$24 sps:$4 sm:$0xff]  }
 0x29d   :  { %3164 = vmatmul.mubr.bf16.gmra.mrb[108].mxu1 %v22165_v23  ;;  %4456 = vmatmul.mubr.bf16.gmra.mrb[88].mxu0 %v22153_v48  ;;  %v19996_v23 = vld [vmem:[%s27056_s3 + $0x30] ss:$24 sps:$4 sm:$0xff]  }
 0x29e   :  { %3206 = vmatprep.mubr.bf16.mxu1 %v27066_v0  ;;  %4498 = vmatprep.mubr.bf16.mxu0 %v27066_v0 }
 0x2a5   :  { %3207 = vmatmul.mubr.bf16.vlgmr.msra.gmra.mrb[68].mxu1 %v21881_v30  ;;  %4499 = vmatmul.mubr.bf16.vlgmr.msra.gmra.mrb[48].mxu0 %v21883_v31 }
 0x2a6   :  { %4038 = vmatpush1.bf16.msra.mxu1 %v19993_v32  ;;  %3216 = vmatprep.mubr.bf16.mxu1 %v27066_v0  ;;  %v20034_v32 = vld [vmem:[%s27056_s3 + $0x274] ss:$24 sps:$4 sm:$0xff]  }
 0x2a7   :  { %4039 = vmatprep.subr.bf16.mxu1 %v19998_v33  ;;  %4508 = vmatprep.mubr.bf16.mxu0 %v27066_v0  ;;  %v20032_v33 = vld [vmem:[%s27056_s3 + $0x270] ss:$24 sps:$4 sm:$0xff]  }
 0x2aa   :  { %4040 = vmatpush1.bf16.msra.mxu1 %v19996_v23  ;;  %v20037_v23 = vld [vmem:[%s27056_s3 + $0x2a4] ss:$24 sps:$4 sm:$0xff]  }
 0x2ab   :  { %4041 = vmatprep.subr.bf16.mxu1 %v20001_v25  ;;  %v20035_v25 = vld [vmem:[%s27056_s3 + $0x2a0] ss:$24 sps:$4 sm:$0xff]  }
 0x2ad   :  { %3217 = vmatmul.mubr.bf16.gmra.mrb[72].mxu1 %v21897_v47  ;;  %4509 = vmatmul.mubr.bf16.gmra.mrb[52].mxu0 %v21881_v30 }
 0x2ae   :  { %4042 = vmatpush1.bf16.msra.mxu1 %v19999_v36  ;;  %3226 = vmatprep.mubr.bf16.mxu1 %v27066_v0  ;;  %v20040_v36 = vld [vmem:[%s27056_s3 + $0x2d4] ss:$24 sps:$4 sm:$0xff]  }
 0x2af   :  { %4518 = vmatprep.mubr.bf16.mxu0 %v27066_v0  ;;  %4043 = vmatprep.subr.bf16.mxu1 %v20004_v38  ;;  %v20038_v38 = vld [vmem:[%s27056_s3 + $0x2d0] ss:$24 sps:$4 sm:$0xff]  }
 0x2b2   :  { %4044 = vmatpush1.bf16.msra.mxu1 %v20002_v39  ;;  %v20043_v39 = vld [vmem:[%s27056_s3 + $0x304] ss:$24 sps:$4 sm:$0xff]  }
 0x2b3   :  { %4045 = vmatprep.subr.bf16.mxu1 %v20007_v41  ;;  %v20041_v41 = vld [vmem:[%s27056_s3 + $0x300] ss:$24 sps:$4 sm:$0xff]  }
 0x2b5   :  { %3227 = vmatmul.mubr.bf16.gmra.mrb[76].mxu1 %v21895_v46  ;;  %4519 = vmatmul.mubr.bf16.gmra.mrb[56].mxu0 %v21897_v47 }
 0x2b6   :  { %3236 = vmatprep.mubr.bf16.mxu1 %v27066_v0  ;;  %4046 = vmatpush1.bf16.msra.mxu1 %v20005_v42  ;;  %v20046_v42 = vld [vmem:[%s27056_s3 + $0x334] ss:$24 sps:$4 sm:$0xff]  }
 0x2b7   :  { %4528 = vmatprep.mubr.bf16.mxu0 %v27066_v0  ;;  %4047 = vmatprep.subr.bf16.mxu1 %v20010_v44  ;;  %v20049_v44 = vld [vmem:[%s27056_s3 + $0x364] ss:$24 sps:$4 sm:$0xff]  }
 0x2ba   :  { %4048 = vmatpush1.bf16.msra.mxu1 %v20008_v55  ;;  %v20047_v55 = vld [vmem:[%s27056_s3 + $0x360] ss:$24 sps:$4 sm:$0xff]  }
 0x2bb   :  { %4049 = vmatprep.subr.bf16.mxu1 %v20013_v57  ;;  %v20052_v57 = vld [vmem:[%s27056_s3 + $0x394] ss:$24 sps:$4 sm:$0xff]  }
 0x2bd   :  { %3237 = vmatmul.mubr.bf16.gmra.mrb[80].mxu1 %v21914_v7  ;;  %4529 = vmatmul.mubr.bf16.gmra.mrb[60].mxu0 %v21895_v46 }
 0x2be   :  { %3246 = vmatprep.mubr.bf16.mxu1 %v27066_v0  ;;  %4538 = vmatprep.mubr.bf16.mxu0 %v27066_v0 }
 0x2bf   :  { %4050 = vmatpush1.bf16.msra.mxu1 %v20011_v60  ;;  %v20050_v60 = vld [vmem:[%s27056_s3 + $0x390] ss:$24 sps:$4 sm:$0xff]  }
 0x2c0   :  { %4051 = vmatprep.subr.bf16.mxu1 %v20016_v63  ;;  %v20055_v63 = vld [vmem:[%s27056_s3 + $0x3c4] ss:$24 sps:$4 sm:$0xff]  }
 0x2c3   :  { %4052 = vmatpush1.bf16.msra.mxu1 %v20014_v2  ;;  %v20053_v2 = vld [vmem:[%s27056_s3 + $0x3c0] ss:$24 sps:$4 sm:$0xff]  }
 0x2c4   :  { %4053 = vmatprep.subr.bf16.mxu1 %v20019_v5  ;;  %v20058_v5 = vld [vmem:[%s27056_s3 + $0x3f4] ss:$24 sps:$4 sm:$0xff]  }
 0x2c5   :  { %3247 = vmatmul.mubr.bf16.gmra.mrb[84].mxu1 %v21911_v4  ;;  %4539 = vmatmul.mubr.bf16.gmra.mrb[64].mxu0 %v21914_v7 }
 0x2c6   :  { %3256 = vmatprep.mubr.bf16.mxu1 %v27066_v0  ;;  %4548 = vmatprep.mubr.bf16.mxu0 %v27066_v0 }
 0x2c7   :  { %4054 = vmatpush1.bf16.msra.mxu1 %v20017_v6  ;;  %v20056_v6 = vld [vmem:[%s27056_s3 + $0x3f0] ss:$24 sps:$4 sm:$0xff]  }
 0x2c8   :  { %4055 = vmatprep.subr.bf16.mxu1 %v20022_v8  ;;  %v20061_v8 = vld [vmem:[%s27056_s3 + $0x424] ss:$24 sps:$4 sm:$0xff]  }
 0x2cb   :  { %4056 = vmatpush1.bf16.msra.mxu1 %v20020_v10  ;;  %v20059_v10 = vld [vmem:[%s27056_s3 + $0x420] ss:$24 sps:$4 sm:$0xff]  }
 0x2cc   :  { %4057 = vmatprep.subr.bf16.mxu1 %v20025_v11  ;;  %v20064_v11 = vld [vmem:[%s27056_s3 + $0x454] ss:$24 sps:$4 sm:$0xff]  }
 0x2cd   :  { %3257 = vmatmul.mubr.bf16.gmra.mrb[88].mxu1 %v21930_v40  ;;  %4549 = vmatmul.mubr.bf16.gmra.mrb[68].mxu0 %v21911_v4 }
 0x2ce   :  { %3266 = vmatprep.mubr.bf16.mxu1 %v27066_v0  ;;  %4558 = vmatprep.mubr.bf16.mxu0 %v27066_v0 }
 0x2cf   :  { %4058 = vmatpush1.bf16.msra.mxu1 %v20023_v12  ;;  %v20062_v12 = vld [vmem:[%s27056_s3 + $0x450] ss:$24 sps:$4 sm:$0xff]  }
 0x2d0   :  { %4059 = vmatprep.subr.bf16.mxu1 %v20028_v19  ;;  %v20067_v19 = vld [vmem:[%s27056_s3 + $0x14] ss:$24 sps:$4 sm:$0xff]  }
 0x2d3   :  { %4060 = vmatpush1.bf16.msra.mxu1 %v20026_v51  ;;  %v20065_v51 = vld [vmem:[%s27056_s3 + $0x10] ss:$24 sps:$4 sm:$0xff]  }
 0x2d4   :  { %4061 = vmatprep.subr.bf16.mxu1 %v20031_v54  ;;  %v20070_v54 = vld [vmem:[%s27056_s3 + $0x44] ss:$24 sps:$4 sm:$0xff]  }
 0x2d5   :  { %3267 = vmatmul.mubr.bf16.gmra.mrb[92].mxu1 %v21927_v37  ;;  %4559 = vmatmul.mubr.bf16.gmra.mrb[72].mxu0 %v21930_v40 }
 0x2d6   :  { %3276 = vmatprep.mubr.bf16.mxu1 %v27066_v0  ;;  %4568 = vmatprep.mubr.bf16.mxu0 %v27066_v0 }
 0x2d7   :  { %4062 = vmatpush1.bf16.msra.mxu1 %v20029_v28  ;;  %v20068_v28 = vld [vmem:[%s27056_s3 + $0x40] ss:$24 sps:$4 sm:$0xff]  }
 0x2d8   :  { %4063 = vmatprep.subr.bf16.mxu1 %v20034_v32  ;;  %v20073_v32 = vld [vmem:[%s27056_s3 + $0x74] ss:$24 sps:$4 sm:$0xff]  }
 0x2db   :  { %4064 = vmatpush1.bf16.msra.mxu1 %v20032_v33  ;;  %v20071_v33 = vld [vmem:[%s27056_s3 + $0x70] ss:$24 sps:$4 sm:$0xff]  }
 0x2dc   :  { %4065 = vmatprep.subr.bf16.mxu1 %v20037_v23  ;;  %v20076_v23 = vld [vmem:[%s27056_s3 + $0xa4] ss:$24 sps:$4 sm:$0xff]  }
 0x2dd   :  { %3277 = vmatmul.mubr.bf16.gmra.mrb[96].mxu1 %v21968_v22  ;;  %4569 = vmatmul.mubr.bf16.gmra.mrb[76].mxu0 %v21927_v37 }
 0x2de   :  { %3286 = vmatprep.mubr.bf16.mxu1 %v27066_v0  ;;  %4578 = vmatprep.mubr.bf16.mxu0 %v27066_v0 }
 0x2df   :  { %4066 = vmatpush1.bf16.msra.mxu1 %v20035_v25  ;;  %v20074_v25 = vld [vmem:[%s27056_s3 + $0xa0] ss:$24 sps:$4 sm:$0xff]  }
 0x2e0   :  { %4067 = vmatprep.subr.bf16.mxu1 %v20040_v36  ;;  %v20079_v36 = vld [vmem:[%s27056_s3 + $0xd4] ss:$24 sps:$4 sm:$0xff]  }
 0x2e3   :  { %4068 = vmatpush1.bf16.msra.mxu1 %v20038_v38  ;;  %v20077_v38 = vld [vmem:[%s27056_s3 + $0xd0] ss:$24 sps:$4 sm:$0xff]  }
 0x2e4   :  { %4180 = vmatprep.subr.bf16.mxu1 %v20043_v39  ;;  %v20082_v39 = vld [vmem:[%s27056_s3 + $0x104] ss:$24 sps:$4 sm:$0xff]  }
 0x2e5   :  { %3287 = vmatmul.mubr.bf16.gmra.mrb[100].mxu1 %v21960_v18  ;;  %4579 = vmatmul.mubr.bf16.gmra.mrb[80].mxu0 %v21968_v22 }
 0x2e6   :  { %3296 = vmatprep.mubr.bf16.mxu1 %v27066_v0  ;;  %4588 = vmatprep.mubr.bf16.mxu0 %v27066_v0 }
 0x2ed   :  { %3297 = vmatmul.mubr.bf16.gmra.mrb[104].mxu1 %v22009_v9  ;;  %4589 = vmatmul.mubr.bf16.gmra.mrb[84].mxu0 %v21960_v18 }
 0x2ee   :  { %3306 = vmatprep.mubr.bf16.mxu1 %v27066_v0  ;;  %4598 = vmatprep.mubr.bf16.mxu0 %v27066_v0 }
 0x2f5   :  { %3307 = vmatmul.mubr.bf16.gmra.mrb[108].mxu1 %v22001_v17  ;;  %4599 = vmatmul.mubr.bf16.gmra.mrb[88].mxu0 %v22009_v9  ;;  %v20044_v17 = vld [vmem:[%s27056_s3 + $0x330] ss:$24 sps:$4 sm:$0xff]  }
 0x2f6   :  { %4069 = vmatprep.mubr.bf16.mxu1 %v21923_v27 }
 0x2fd   :  { %4070 = vmatmul.mubr.bf16.vlgmr.msra.gmra.mrb[24].mxu1 %v21920_v24 }
 0x2fe   :  { %4079 = vmatprep.mubr.bf16.mxu1 %v21948_v3  ;;  %4181 = vmatpush1.bf16.msra.mxu1 %v20041_v41  ;;  %v20080_v41 = vld [vmem:[%s27056_s3 + $0x100] ss:$24 sps:$4 sm:$0xff]  }
 0x2ff   :  { %4182 = vmatprep.subr.bf16.mxu1 %v20046_v42  ;;  %v20085_v42 = vld [vmem:[%s27056_s3 + $0x134] ss:$24 sps:$4 sm:$0xff]  }
 0x302   :  { %4183 = vmatpush1.bf16.msra.mxu1 %v20044_v17  ;;  %v20083_v17 = vld [vmem:[%s27056_s3 + $0x130] ss:$24 sps:$4 sm:$0xff]  }
 0x303   :  { %4184 = vmatprep.subr.bf16.mxu1 %v20049_v44  ;;  %v20088_v44 = vld [vmem:[%s27056_s3 + $0x164] ss:$24 sps:$4 sm:$0xff]  }
 0x305   :  { %4080 = vmatmul.mubr.bf16.gmra.mrb[28].mxu1 %v21942_v62 }
 0x306   :  { %4089 = vmatprep.mubr.bf16.mxu1 %v21992_v56  ;;  %4185 = vmatpush1.bf16.msra.mxu1 %v20047_v55  ;;  %v20086_v55 = vld [vmem:[%s27056_s3 + $0x160] ss:$24 sps:$4 sm:$0xff]  }
 0x307   :  { %4186 = vmatprep.subr.bf16.mxu1 %v20052_v57  ;;  %v20134_v57 = vld [vmem:[%s27058_s5 + $0x780] ss:$20 sps:$4 sm:$0xff]  }
 0x30a   :  { %4187 = vmatpush1.bf16.msra.mxu1 %v20050_v60  ;;  %v20091_v60 = vld [vmem:[%s27056_s3 + $0x194] ss:$24 sps:$4 sm:$0xff]  }
 0x30b   :  { %4188 = vmatprep.subr.bf16.mxu1 %v20055_v63  ;;  %v20136_v63 = vld [vmem:[%s27058_s5 + $0x784] ss:$20 sps:$4 sm:$0xff]  }
 0x30c   :  { %7268 = vmatprep.subr.bf16.mxu0 %v20136_v63 }
 0x30d   :  { %4090 = vmatmul.mubr.bf16.gmra.mrb[32].mxu1 %v21986_v50  ;;  %7269 = vmatpush1.bf16.msra.mxu0 %v20134_v57  ;;  %v20145_v57 = vld [vmem:[%s27058_s5 + $0x7d4] ss:$20 sps:$4 sm:$0xff]  }
 0x30e   :  { %4099 = vmatprep.mubr.bf16.mxu1 %v22032_v29  ;;  %4189 = vmatpush1.bf16.msra.mxu1 %v20053_v2  ;;  %v22819_v2 = vld [vmem:[#allocation7] sm:$0x3f] }
 0x30f   :  { %4190 = vmatprep.subr.bf16.mxu1 %v20058_v5  ;;  %v27065_v5 = vsub.s32 3, %v21869_v14 }
 0x312   :  { %4191 = vmatpush1.bf16.msra.mxu1 %v20056_v6  ;;  %v20089_v6 = vld [vmem:[%s27056_s3 + $0x190] ss:$24 sps:$4 sm:$0xff]  }
 0x313   :  { %4192 = vmatprep.subr.bf16.mxu1 %v20061_v8  ;;  %v20094_v8 = vld [vmem:[%s27056_s3 + $0x1c4] ss:$24 sps:$4 sm:$0xff]  }
 0x315   :  { %4100 = vmatmul.mubr.bf16.gmra.mrb[36].mxu1 %v22027_v26 }
 0x316   :  { %4109 = vmatprep.mubr.bf16.mxu1 %v22068_v1  ;;  %4193 = vmatpush1.bf16.msra.mxu1 %v20059_v10  ;;  %v22831_v10 = vrot.slane %v22819_v2, %v21872_v15 }
 0x317   :  { %4194 = vmatprep.subr.bf16.mxu1 %v20064_v11  ;;  %v22836_v11 = vrot.slane %v22819_v2, %v27065_v5 }
 0x31a   :  { %4195 = vmatpush1.bf16.msra.mxu1 %v20062_v12  ;;  %v20092_v12 = vld [vmem:[%s27056_s3 + $0x1c0] ss:$24 sps:$4 sm:$0xff]  }
 0x31b   :  { %4609 = vmatprep.subr.bf16.mxu1 %v20067_v19  ;;  %v20137_v19 = vld [vmem:[%s27058_s5 + $0x7a8] ss:$20 sps:$4 sm:$0xff]  }
 0x31d   :  { %4110 = vmatmul.mubr.bf16.gmra.mrb[40].mxu1 %v22063_v61 }
 0x31e   :  { %4119 = vmatprep.mubr.bf16.mxu1 %v22095_v35 }
 0x325   :  { %4120 = vmatmul.mubr.bf16.gmra.mrb[44].mxu1 %v22093_v34 }
 0x326   :  { %4129 = vmatprep.mubr.bf16.mxu1 %v22107_v59 }
 0x32d   :  { %4130 = vmatmul.mubr.bf16.gmra.mrb[48].mxu1 %v22105_v58 }
 0x32e   :  { %4139 = vmatprep.mubr.bf16.mxu1 %v22119_v21 }
 0x335   :  { %4140 = vmatmul.mubr.bf16.gmra.mrb[52].mxu1 %v22117_v20 }
 0x336   :  { %4149 = vmatprep.mubr.bf16.mxu1 %v22131_v52 }
 0x33d   :  { %4150 = vmatmul.mubr.bf16.gmra.mrb[56].mxu1 %v22129_v49 }
 0x33e   :  { %4159 = vmatprep.mubr.bf16.mxu1 %v22143_v16 }
 0x345   :  { %4160 = vmatmul.mubr.bf16.gmra.mrb[60].mxu1 %v22141_v13 }
 0x346   :  { %4169 = vmatprep.mubr.bf16.mxu1 %v22155_v53 }
 0x34d   :  { %4170 = vmatmul.mubr.bf16.gmra.mrb[64].mxu1 %v22153_v48 }
 0x34e   :  { %4212 = vmatprep.mubr.bf16.mxu1 %v27066_v0 }
 0x355   :  { %4213 = vmatmul.mubr.bf16.vlgmr.msra.gmra.mrb[24].mxu1 %v21883_v31 }
 0x356   :  { %4610 = vmatpush1.bf16.msra.mxu1 %v20065_v51  ;;  %4222 = vmatprep.mubr.bf16.mxu1 %v27066_v0  ;;  %v20139_v51 = vld [vmem:[%s27058_s5 + $0x7ac] ss:$20 sps:$4 sm:$0xff]  }
 0x357   :  { %4611 = vmatprep.subr.bf16.mxu1 %v20070_v54  ;;  %v20097_v54 = vld [vmem:[%s27056_s3 + $0x1f4] ss:$24 sps:$4 sm:$0xff]   ;;  %7270 = vmatprep.subr.bf16.mxu0 %v20139_v51 }
 0x358   :  { %7271 = vmatpush1.bf16.msra.mxu0 %v20137_v19  ;;  %v20103_v19 = vld [vmem:[%s27056_s3 + $0x254] ss:$24 sps:$4 sm:$0xff]  }
 0x359   :  { %7272 = vmatprep.subr.bf16.mxu0 %v20145_v57  ;;  %v20151_v57 = vld [vmem:[%s27058_s5 + $0x824] ss:$20 sps:$4 sm:$0xff]  }
 0x35a   :  { %4612 = vmatpush1.bf16.msra.mxu1 %v20068_v28 }
 0x35b   :  { %4613 = vmatprep.subr.bf16.mxu1 %v20073_v32 }
 0x35d   :  { %4223 = vmatmul.mubr.bf16.gmra.mrb[28].mxu1 %v21881_v30 }
 0x35e   :  { %4614 = vmatpush1.bf16.msra.mxu1 %v20071_v33  ;;  %4232 = vmatprep.mubr.bf16.mxu1 %v27066_v0 }
 0x35f   :  { %4615 = vmatprep.subr.bf16.mxu1 %v20076_v23 }
 0x362   :  { %4616 = vmatpush1.bf16.msra.mxu1 %v20074_v25 }
 0x363   :  { %4617 = vmatprep.subr.bf16.mxu1 %v20079_v36  ;;  %v20095_v36 = vld [vmem:[%s27056_s3 + $0x1f0] ss:$24 sps:$4 sm:$0xff]  }
 0x365   :  { %4233 = vmatmul.mubr.bf16.gmra.mrb[32].mxu1 %v21897_v47 }
 0x366   :  { %4242 = vmatprep.mubr.bf16.mxu1 %v27066_v0  ;;  %4618 = vmatpush1.bf16.msra.mxu1 %v20077_v38 }
 0x367   :  { %4619 = vmatprep.subr.bf16.mxu1 %v20082_v39 }
 0x36a   :  { %4620 = vmatpush1.bf16.msra.mxu1 %v20080_v41  ;;  %v20100_v41 = vld [vmem:[%s27056_s3 + $0x224] ss:$24 sps:$4 sm:$0xff]  }
 0x36b   :  { %4621 = vmatprep.subr.bf16.mxu1 %v20085_v42 }
 0x36d   :  { %4243 = vmatmul.mubr.bf16.gmra.mrb[36].mxu1 %v21895_v46 }
 0x36e   :  { %4252 = vmatprep.mubr.bf16.mxu1 %v27066_v0  ;;  %4622 = vmatpush1.bf16.msra.mxu1 %v20083_v17 }
 0x36f   :  { %4623 = vmatprep.subr.bf16.mxu1 %v20088_v44 }
 0x372   :  { %4624 = vmatpush1.bf16.msra.mxu1 %v20086_v55  ;;  %v20143_v55 = vld [vmem:[%s27058_s5 + $0x7d0] ss:$20 sps:$4 sm:$0xff]  }
 0x373   :  { %4625 = vmatprep.subr.bf16.mxu1 %v20091_v60  ;;  %7273 = vmatpush1.bf16.msra.mxu0 %v20143_v55  ;;  %v20149_v55 = vld [vmem:[%s27058_s5 + $0x820] ss:$20 sps:$4 sm:$0xff]  }
 0x375   :  { %4253 = vmatmul.mubr.bf16.gmra.mrb[40].mxu1 %v21914_v7 }
 0x376   :  { %4262 = vmatprep.mubr.bf16.mxu1 %v27066_v0  ;;  %4626 = vmatpush1.bf16.msra.mxu1 %v20089_v6  ;;  %v20098_v6 = vld [vmem:[%s27056_s3 + $0x220] ss:$24 sps:$4 sm:$0xff]  }
 0x377   :  { %4627 = vmatprep.subr.bf16.mxu1 %v20094_v8  ;;  %v20148_v8 = vld [vmem:[%s27058_s5 + $0x7fc] ss:$20 sps:$4 sm:$0xff]  }
 0x378   :  { %v4500_v28 = vpop.f32.mrb[48].mxu0  ;;  %7274 = vmatprep.subr.bf16.mxu0 %v20148_v8 }
 0x379   :  { %v4929_v32 = vadd.f32 %v22831_v10, %v4500_v28  ;;  %v4502_v33 = vpop.f32.mrb[49].mxu0  ;;  %v20146_v28 = vld [vmem:[%s27058_s5 + $0x7f8] ss:$20 sps:$4 sm:$0xff]  }
 0x37a   :  { %v4930_v23 = vadd.f32 %v22836_v11, %v4502_v33  ;;  %v4504_v25 = vpop.f32.mrb[50].mxu0  ;;  %4628 = vmatpush1.bf16.msra.mxu1 %v20092_v12  ;;  %7275 = vmatpush1.bf16.msra.mxu0 %v20146_v28 }
 0x37b   :  { %v4935_v38 = vadd.f32 %v22831_v10, %v4504_v25  ;;  %v4506_v39 = vpop.f32.mrb[51].mxu0  ;;  %4629 = vmatprep.subr.bf16.mxu1 %v20097_v54  ;;  %v5061_v17 = vmax.f32 %v4929_v32, 0.0  ;;  %7276 = vmatprep.subr.bf16.mxu0 %v20151_v57  ;;  %v20154_v57 = vld [vmem:[%s27058_s5 + $0x84c] ss:$20 sps:$4 sm:$0xff]  }
 0x37c   :  { %v4936_v42 = vadd.f32 %v22836_v11, %v4506_v39  ;;  %v5062_v60 = vmax.f32 %v4930_v23, 0.0 }
 0x37d   :  { %v5067_v44 = vmax.f32 %v4935_v38, 0.0  ;;  %4263 = vmatmul.mubr.bf16.gmra.mrb[44].mxu1 %v21911_v4 }
 0x37e   :  { %v5068_v63 = vmax.f32 %v4936_v42, 0.0  ;;  %4272 = vmatprep.mubr.bf16.mxu1 %v27066_v0  ;;  %4630 = vmatpush1.bf16.msra.mxu1 %v20095_v36  ;;  %v20101_v36 = vld [vmem:[%s27056_s3 + $0x250] ss:$24 sps:$4 sm:$0xff]  }
 0x37f   :  { %v22875_v12 = vpack.c.bf16 %v5067_v44, %v5061_v17  ;;  %4631 = vmatprep.subr.bf16.mxu1 %v20100_v41  ;;  %v20106_v41 = vld [vmem:[%s27056_s3 + $0x284] ss:$24 sps:$4 sm:$0xff]   ;;  %7277 = vmatpush1.bf16.msra.mxu0 %v20149_v55 }
 0x380   :  { %v22880_v51 = vpack.c.bf16 %v5068_v63, %v5062_v60  ;;  %v4510_v54 = vpop.f32.mrb[52].mxu0  ;;  %v20152_v55 = vld [vmem:[%s27058_s5 + $0x848] ss:$20 sps:$4 sm:$0xff]   ;;  %7278 = vmatprep.subr.bf16.mxu0 %v20154_v57 }
 0x381   :  { %27166 = vst [vmem:[#allocation16_spill] sm:$0xff] %v22875_v12  ;;  %v4941_v32 = vadd.f32 %v22831_v10, %v4510_v54  ;;  %v4512_v33 = vpop.f32.mrb[53].mxu0  ;;  %v20178_v12 = vld [vmem:[%s27058_s5 + $0x98c] ss:$20 sps:$4 sm:$0xff]  }
 0x382   :  { %v4942_v23 = vadd.f32 %v22836_v11, %v4512_v33  ;;  %v4514_v25 = vpop.f32.mrb[54].mxu0  ;;  %4632 = vmatpush1.bf16.msra.mxu1 %v20098_v6  ;;  %v20104_v6 = vld [vmem:[%s27056_s3 + $0x280] ss:$24 sps:$4 sm:$0xff]  }
 0x383   :  { %v4947_v38 = vadd.f32 %v22831_v10, %v4514_v25  ;;  %v4516_v39 = vpop.f32.mrb[55].mxu0  ;;  %4633 = vmatprep.subr.bf16.mxu1 %v20103_v19  ;;  %v5073_v17 = vmax.f32 %v4941_v32, 0.0  ;;  %v20109_v19 = vld [vmem:[%s27056_s3 + $0x2b4] ss:$24 sps:$4 sm:$0xff]   ;;  %7279 = vmatpush1.bf16.msra.mxu0 %v20152_v55 }
 0x384   :  { %v4948_v42 = vadd.f32 %v22836_v11, %v4516_v39  ;;  %v5074_v60 = vmax.f32 %v4942_v23, 0.0 }
 0x385   :  { %v5079_v44 = vmax.f32 %v4947_v38, 0.0  ;;  %4273 = vmatmul.mubr.bf16.gmra.mrb[48].mxu1 %v21930_v40 }
 0x386   :  { %v5080_v63 = vmax.f32 %v4948_v42, 0.0  ;;  %4282 = vmatprep.mubr.bf16.mxu1 %v27066_v0  ;;  %4634 = vmatpush1.bf16.msra.mxu1 %v20101_v36  ;;  %v20107_v36 = vld [vmem:[%s27056_s3 + $0x2b0] ss:$24 sps:$4 sm:$0xff]  }
 0x387   :  { %v22906_v8 = vpack.c.bf16 %v5079_v44, %v5073_v17  ;;  %4635 = vmatprep.subr.bf16.mxu1 %v20106_v41  ;;  %v20112_v41 = vld [vmem:[%s27056_s3 + $0x2e4] ss:$24 sps:$4 sm:$0xff]  }
 0x388   :  { %v22911_v54 = vpack.c.bf16 %v5080_v63, %v5074_v60  ;;  %v4520_v28 = vpop.f32.mrb[56].mxu0 }
 0x389   :  { %v4953_v32 = vadd.f32 %v22831_v10, %v4520_v28  ;;  %v4522_v33 = vpop.f32.mrb[57].mxu0 }
 0x38a   :  { %27167 = vst [vmem:[#allocation17_spill] sm:$0xff] %v22911_v54  ;;  %v4954_v23 = vadd.f32 %v22836_v11, %v4522_v33  ;;  %v4524_v25 = vpop.f32.mrb[58].mxu0  ;;  %4636 = vmatpush1.bf16.msra.mxu1 %v20104_v6  ;;  %v20110_v6 = vld [vmem:[%s27056_s3 + $0x2e0] ss:$24 sps:$4 sm:$0xff]  }
 0x38b   :  { %v4959_v38 = vadd.f32 %v22831_v10, %v4524_v25  ;;  %v4526_v39 = vpop.f32.mrb[59].mxu0  ;;  %4637 = vmatprep.subr.bf16.mxu1 %v20109_v19  ;;  %v5085_v17 = vmax.f32 %v4953_v32, 0.0  ;;  %v20157_v19 = vld [vmem:[%s27058_s5 + $0x874] ss:$20 sps:$4 sm:$0xff]   ;;  %v20155_v25 = vld [vmem:[%s27058_s5 + $0x870] ss:$20 sps:$4 sm:$0xff]  }
 0x38c   :  { %v4960_v42 = vadd.f32 %v22836_v11, %v4526_v39  ;;  %v5086_v60 = vmax.f32 %v4954_v23, 0.0  ;;  %v20115_v32 = vld [vmem:[%s27056_s3 + $0x314] ss:$24 sps:$4 sm:$0xff]   ;;  %7280 = vmatprep.subr.bf16.mxu0 %v20157_v19 }
 0x38d   :  { %v5091_v44 = vmax.f32 %v4959_v38, 0.0  ;;  %4283 = vmatmul.mubr.bf16.gmra.mrb[52].mxu1 %v21927_v37  ;;  %7281 = vmatpush1.bf16.msra.mxu0 %v20155_v25 }
 0x38e   :  { %v5092_v63 = vmax.f32 %v4960_v42, 0.0  ;;  %4292 = vmatprep.mubr.bf16.mxu1 %v27066_v0  ;;  %4638 = vmatpush1.bf16.msra.mxu1 %v20107_v36 }
 0x38f   :  { %v22937_v28 = vpack.c.bf16 %v5091_v44, %v5085_v17  ;;  %4639 = vmatprep.subr.bf16.mxu1 %v20112_v41 }
 0x390   :  { %v22942_v33 = vpack.c.bf16 %v5092_v63, %v5086_v60  ;;  %v4530_v23 = vpop.f32.mrb[60].mxu0  ;;  %v20158_v60 = vld [vmem:[%s27058_s5 + $0x898] ss:$20 sps:$4 sm:$0xff]   ;;  %v20160_v63 = vld [vmem:[%s27058_s5 + $0x89c] ss:$20 sps:$4 sm:$0xff]  }
 0x391   :  { %v4965_v36 = vadd.f32 %v22831_v10, %v4530_v23  ;;  %v4532_v38 = vpop.f32.mrb[61].mxu0  ;;  %7282 = vmatprep.subr.bf16.mxu0 %v20160_v63 }
 0x392   :  { %27168 = vst [vmem:[#allocation18_spill] sm:$0xff] %v22942_v33  ;;  %v4966_v39 = vadd.f32 %v22836_v11, %v4532_v38  ;;  %v4534_v41 = vpop.f32.mrb[62].mxu0  ;;  %4640 = vmatpush1.bf16.msra.mxu1 %v20110_v6  ;;  %7283 = vmatpush1.bf16.msra.mxu0 %v20158_v60  ;;  %v20161_v38 = vld [vmem:[%s27058_s5 + $0x8c0] ss:$20 sps:$4 sm:$0xff]   ;;  %v20164_v60 = vld [vmem:[%s27058_s5 + $0x8e8] ss:$20 sps:$4 sm:$0xff]  }
 0x393   :  { %v4971_v42 = vadd.f32 %v22831_v10, %v4534_v41  ;;  %v4536_v17 = vpop.f32.mrb[63].mxu0  ;;  %4752 = vmatprep.subr.bf16.mxu1 %v20115_v32  ;;  %v5097_v55 = vmax.f32 %v4965_v36, 0.0  ;;  %v20163_v32 = vld [vmem:[%s27058_s5 + $0x8c4] ss:$20 sps:$4 sm:$0xff]  }
 0x394   :  { %v4972_v44 = vadd.f32 %v22836_v11, %v4536_v17  ;;  %v5098_v6 = vmax.f32 %v4966_v39, 0.0  ;;  %7284 = vmatprep.subr.bf16.mxu0 %v20163_v32 }
 0x395   :  { %v5103_v57 = vmax.f32 %v4971_v42, 0.0  ;;  %4293 = vmatmul.mubr.bf16.gmra.mrb[56].mxu1 %v21968_v22 }
 0x396   :  { %v5104_v19 = vmax.f32 %v4972_v44, 0.0  ;;  %4302 = vmatprep.mubr.bf16.mxu1 %v27066_v0  ;;  %7285 = vmatpush1.bf16.msra.mxu0 %v20161_v38  ;;  %v20169_v38 = vld [vmem:[%s27058_s5 + $0x914] ss:$20 sps:$4 sm:$0xff]  }
 0x397   :  { %v22962_v23 = vpack.c.bf16 %v5103_v57, %v5097_v55 }
 0x398   :  { %v22964_v25 = vpack.c.bf16 %v5104_v19, %v5098_v6  ;;  %v4540_v36 = vpop.f32.mrb[64].mxu0  ;;  %v20166_v19 = vld [vmem:[%s27058_s5 + $0x8ec] ss:$20 sps:$4 sm:$0xff]  }
 0x399   :  { %v4977_v39 = vadd.f32 %v22831_v10, %v4540_v36  ;;  %v4542_v41 = vpop.f32.mrb[65].mxu0  ;;  %7286 = vmatprep.subr.bf16.mxu0 %v20166_v19 }
 0x39a   :  { %v4978_v42 = vadd.f32 %v22836_v11, %v4542_v41  ;;  %v4544_v17 = vpop.f32.mrb[66].mxu0  ;;  %7287 = vmatpush1.bf16.msra.mxu0 %v20164_v60  ;;  %v20170_v60 = vld [vmem:[%s27058_s5 + $0x938] ss:$20 sps:$4 sm:$0xff]  }
 0x39b   :  { %v4983_v44 = vadd.f32 %v22831_v10, %v4544_v17  ;;  %v4546_v55 = vpop.f32.mrb[67].mxu0  ;;  %v5109_v63 = vmax.f32 %v4977_v39, 0.0  ;;  %7288 = vmatprep.subr.bf16.mxu0 %v20169_v38 }
 0x39c   :  { %v4984_v57 = vadd.f32 %v22836_v11, %v4546_v55  ;;  %v5110_v32 = vmax.f32 %v4978_v42, 0.0 }
 0x39d   :  { %v5115_v6 = vmax.f32 %v4983_v44, 0.0  ;;  %4303 = vmatmul.mubr.bf16.gmra.mrb[60].mxu1 %v21960_v18  ;;  %v20167_v44 = vld [vmem:[%s27058_s5 + $0x910] ss:$20 sps:$4 sm:$0xff]  }
 0x39e   :  { %v5116_v36 = vmax.f32 %v4984_v57, 0.0  ;;  %4312 = vmatprep.mubr.bf16.mxu1 %v27066_v0  ;;  %7289 = vmatpush1.bf16.msra.mxu0 %v20167_v44 }
 0x39f   :  { %v22984_v39 = vpack.c.bf16 %v5115_v6, %v5109_v63 }
 0x3a0   :  { %v22986_v41 = vpack.c.bf16 %v5116_v36, %v5110_v32  ;;  %v4550_v17 = vpop.f32.mrb[68].mxu0  ;;  %v20172_v36 = vld [vmem:[%s27058_s5 + $0x93c] ss:$20 sps:$4 sm:$0xff]  }
 0x3a1   :  { %v4989_v42 = vadd.f32 %v22831_v10, %v4550_v17  ;;  %v4552_v55 = vpop.f32.mrb[69].mxu0  ;;  %7290 = vmatprep.subr.bf16.mxu0 %v20172_v36 }
 0x3a2   :  { %v4990_v57 = vadd.f32 %v22836_v11, %v4552_v55  ;;  %v4554_v5 = vpop.f32.mrb[70].mxu0  ;;  %7291 = vmatpush1.bf16.msra.mxu0 %v20170_v60  ;;  %v20173_v60 = vld [vmem:[%s27058_s5 + $0x960] ss:$20 sps:$4 sm:$0xff]  }
 0x3a3   :  { %v4995_v0 = vadd.f32 %v22831_v10, %v4554_v5  ;;  %v4556_v63 = vpop.f32.mrb[71].mxu0  ;;  %v5121_v19 = vmax.f32 %v4989_v42, 0.0 }
 0x3a4   :  { %v4996_v6 = vadd.f32 %v22836_v11, %v4556_v63  ;;  %v5122_v38 = vmax.f32 %v4990_v57, 0.0  ;;  %v20113_v57 = vld [vmem:[%s27056_s3 + $0x310] ss:$24 sps:$4 sm:$0xff]  }
 0x3a5   :  { %v5127_v32 = vmax.f32 %v4995_v0, 0.0  ;;  %4313 = vmatmul.mubr.bf16.gmra.mrb[64].mxu1 %v22009_v9 }
 0x3a6   :  { %v5128_v17 = vmax.f32 %v4996_v6, 0.0  ;;  %4641 = vmatprep.mubr.bf16.mxu1 %v21923_v27  ;;  %v20175_v27 = vld [vmem:[%s27058_s5 + $0x964] ss:$20 sps:$4 sm:$0xff]  }
 0x3a7   :  { %v23003_v5 = vpack.c.bf16 %v5127_v32, %v5121_v19  ;;  %v20118_v32 = vld [vmem:[%s27056_s3 + $0x344] ss:$24 sps:$4 sm:$0xff]   ;;  %7292 = vmatprep.subr.bf16.mxu0 %v20175_v27 }
 0x3a8   :  { %v23005_v44 = vpack.c.bf16 %v5128_v17, %v5122_v38  ;;  %v4560_v0 = vpop.f32.mrb[72].mxu0  ;;  %7293 = vmatpush1.bf16.msra.mxu0 %v20173_v60 }
 0x3a9   :  { %27169 = vst [vmem:[#allocation19_spill] sm:$0xff] %v23003_v5  ;;  %v5001_v42 = vadd.f32 %v22831_v10, %v4560_v0  ;;  %v4562_v55 = vpop.f32.mrb[73].mxu0  ;;  %7294 = vmatprep.subr.bf16.mxu0 %v20178_v12  ;;  %v20124_v12 = vld [vmem:[%s27056_s3 + $0x3a4] ss:$24 sps:$4 sm:$0xff]  }
 0x3aa   :  { %v5002_v63 = vadd.f32 %v22836_v11, %v4562_v55  ;;  %v4564_v15 = vpop.f32.mrb[74].mxu0 }
 0x3ab   :  { %v5007_v6 = vadd.f32 %v22831_v10, %v4564_v15  ;;  %v4566_v19 = vpop.f32.mrb[75].mxu0  ;;  %v5133_v38 = vmax.f32 %v5001_v42, 0.0  ;;  %v20116_v15 = vld [vmem:[%s27056_s3 + $0x340] ss:$24 sps:$4 sm:$0xff]  }
 0x3ac   :  { %v5008_v36 = vadd.f32 %v22836_v11, %v4566_v19  ;;  %v5134_v0 = vmax.f32 %v5002_v63, 0.0 }
 0x3ad   :  { %v5139_v17 = vmax.f32 %v5007_v6, 0.0  ;;  %4642 = vmatmul.mubr.bf16.vlgmr.msra.gmra.mrb[68].mxu1 %v21920_v24  ;;  %v20121_v24 = vld [vmem:[%s27056_s3 + $0x374] ss:$24 sps:$4 sm:$0xff]  }
 0x3ae   :  { %v5140_v55 = vmax.f32 %v5008_v36, 0.0  ;;  %4651 = vmatprep.mubr.bf16.mxu1 %v21948_v3  ;;  %4753 = vmatpush1.bf16.msra.mxu1 %v20113_v57  ;;  %v20176_v3 = vld [vmem:[%s27058_s5 + $0x988] ss:$20 sps:$4 sm:$0xff]  }
 0x3af   :  { %v23031_v19 = vpack.c.bf16 %v5139_v17, %v5133_v38  ;;  %4754 = vmatprep.subr.bf16.mxu1 %v20118_v32  ;;  %7295 = vmatpush1.bf16.msra.mxu0 %v20176_v3  ;;  %v20119_v32 = vld [vmem:[%s27056_s3 + $0x370] ss:$24 sps:$4 sm:$0xff]  }
 0x3b0   :  { %v23039_v42 = vpack.c.bf16 %v5140_v55, %v5134_v0  ;;  %v4570_v63 = vpop.f32.mrb[76].mxu0  ;;  %v20181_v36 = vld [vmem:[%s27058_s5 + $0x9b4] ss:$20 sps:$4 sm:$0xff]   ;;  %v20179_v0 = vld [vmem:[%s27058_s5 + $0x9b0] ss:$20 sps:$4 sm:$0xff]  }
 0x3b1   :  { %27170 = vst [vmem:[#allocation20_spill] sm:$0xff] %v23031_v19  ;;  %v5013_v57 = vadd.f32 %v22831_v10, %v4570_v63  ;;  %v4572_v27 = vpop.f32.mrb[77].mxu0  ;;  %7296 = vmatprep.subr.bf16.mxu0 %v20181_v36 }
 0x3b2   :  { %27171 = vst [vmem:[#allocation21_spill] sm:$0xff] %v23039_v42  ;;  %v5014_v6 = vadd.f32 %v22836_v11, %v4572_v27  ;;  %v4574_v60 = vpop.f32.mrb[78].mxu0  ;;  %4755 = vmatpush1.bf16.msra.mxu1 %v20116_v15 }
 0x3b3   :  { %v5019_v38 = vadd.f32 %v22831_v10, %v4574_v60  ;;  %v4576_v17 = vpop.f32.mrb[79].mxu0  ;;  %4756 = vmatprep.subr.bf16.mxu1 %v20121_v24  ;;  %v5145_v15 = vmax.f32 %v5013_v57, 0.0  ;;  %7297 = vmatpush1.bf16.msra.mxu0 %v20179_v0  ;;  %v20122_v24 = vld [vmem:[%s27056_s3 + $0x3a0] ss:$24 sps:$4 sm:$0xff]   ;;  %v20184_v60 = vld [vmem:[%s27058_s5 + $0x9dc] ss:$20 sps:$4 sm:$0xff]  }
 0x3b4   :  { %v5020_v55 = vadd.f32 %v22836_v11, %v4576_v17  ;;  %v5146_v63 = vmax.f32 %v5014_v6, 0.0  ;;  %7298 = vmatprep.subr.bf16.mxu0 %v20184_v60 }
 0x3b5   :  { %v5151_v3 = vmax.f32 %v5019_v38, 0.0  ;;  %4652 = vmatmul.mubr.bf16.gmra.mrb[72].mxu1 %v21942_v62  ;;  %v20127_v62 = vld [vmem:[%s27056_s3 + $0x3d4] ss:$24 sps:$4 sm:$0xff]  }
 0x3b6   :  { %v5152_v27 = vmax.f32 %v5020_v55, 0.0  ;;  %4661 = vmatprep.mubr.bf16.mxu1 %v21992_v56  ;;  %4757 = vmatpush1.bf16.msra.mxu1 %v20119_v32  ;;  %v20182_v56 = vld [vmem:[%s27058_s5 + $0x9d8] ss:$20 sps:$4 sm:$0xff]  }
 0x3b7   :  { %v23065_v17 = vpack.c.bf16 %v5151_v3, %v5145_v15  ;;  %4758 = vmatprep.subr.bf16.mxu1 %v20124_v12  ;;  %7299 = vmatpush1.bf16.msra.mxu0 %v20182_v56  ;;  %v20125_v12 = vld [vmem:[%s27056_s3 + $0x3d0] ss:$24 sps:$4 sm:$0xff]   ;;  %v20130_v3 = vld [vmem:[%s27056_s3 + $0x404] ss:$24 sps:$4 sm:$0xff]  }
 0x3b8   :  { %v23073_v57 = vpack.c.bf16 %v5152_v27, %v5146_v63  ;;  %v4580_v6 = vpop.f32.mrb[80].mxu0 }
 0x3b9   :  { %27172 = vst [vmem:[#allocation22_spill] sm:$0xff] %v23065_v17  ;;  %v5025_v32 = vadd.f32 %v22831_v10, %v4580_v6  ;;  %v4582_v36 = vpop.f32.mrb[81].mxu0  ;;  %v20128_v6 = vld [vmem:[%s27056_s3 + $0x400] ss:$24 sps:$4 sm:$0xff]  }
 0x3ba   :  { %27173 = vst [vmem:[#allocation23_spill] sm:$0xff] %v23073_v57  ;;  %v5026_v38 = vadd.f32 %v22836_v11, %v4582_v36  ;;  %v4584_v0 = vpop.f32.mrb[82].mxu0  ;;  %4759 = vmatpush1.bf16.msra.mxu1 %v20122_v24  ;;  %v20133_v36 = vld [vmem:[%s27056_s3 + $0x434] ss:$24 sps:$4 sm:$0xff]  }
 0x3bb   :  { %v5031_v55 = vadd.f32 %v22831_v10, %v4584_v0  ;;  %v4586_v15 = vpop.f32.mrb[83].mxu0  ;;  %4760 = vmatprep.subr.bf16.mxu1 %v20127_v62  ;;  %v5157_v27 = vmax.f32 %v5025_v32, 0.0 }
 0x3bc   :  { %v5032_v63 = vadd.f32 %v22836_v11, %v4586_v15  ;;  %v5158_v56 = vmax.f32 %v5026_v38, 0.0 }
 0x3bd   :  { %v5163_v60 = vmax.f32 %v5031_v55, 0.0  ;;  %4662 = vmatmul.mubr.bf16.gmra.mrb[76].mxu1 %v21986_v50  ;;  %v20131_v55 = vld [vmem:[%s27056_s3 + $0x430] ss:$24 sps:$4 sm:$0xff]  }
 0x3be   :  { %v5164_v24 = vmax.f32 %v5032_v63, 0.0  ;;  %4671 = vmatprep.mubr.bf16.mxu1 %v22032_v29  ;;  %4761 = vmatpush1.bf16.msra.mxu1 %v20125_v12  ;;  %v20142_v63 = vld [vmem:[%s27056_s3 + $0x464] ss:$24 sps:$4 sm:$0xff]  }
 0x3bf   :  { %v23090_v62 = vpack.c.bf16 %v5163_v60, %v5157_v27  ;;  %4762 = vmatprep.subr.bf16.mxu1 %v20130_v3 }
 0x3c0   :  { %v23095_v32 = vpack.c.bf16 %v5164_v24, %v5158_v56  ;;  %v4590_v0 = vpop.f32.mrb[84].mxu0 }
 0x3c1   :  { %27174 = vst [vmem:[#allocation24_spill] sm:$0xff] %v23090_v62  ;;  %v5037_v50 = vadd.f32 %v22831_v10, %v4590_v0  ;;  %v4592_v38 = vpop.f32.mrb[85].mxu0  ;;  %v20140_v0 = vld [vmem:[%s27056_s3 + $0x460] ss:$24 sps:$4 sm:$0xff]  }
 0x3c2   :  { %27175 = vst [vmem:[#allocation25_spill] sm:$0xff] %v23095_v32  ;;  %v5038_v29 = vadd.f32 %v22836_v11, %v4592_v38  ;;  %v4594_v12 = vpop.f32.mrb[86].mxu0  ;;  %4763 = vmatpush1.bf16.msra.mxu1 %v20128_v6  ;;  %v20185_v38 = vld [vmem:[%s27058_s5 + $0x8d0] ss:$20 sps:$4 sm:$0xff]  }
 0x3c3   :  { %v5043_v15 = vadd.f32 %v22831_v10, %v4594_v12  ;;  %v4596_v3 = vpop.f32.mrb[87].mxu0  ;;  %4764 = vmatprep.subr.bf16.mxu1 %v20133_v36  ;;  %v5169_v60 = vmax.f32 %v5037_v50, 0.0 }
 0x3c4   :  { %v5044_v27 = vadd.f32 %v22836_v11, %v4596_v3  ;;  %v5170_v24 = vmax.f32 %v5038_v29, 0.0 }
 0x3c5   :  { %v5175_v56 = vmax.f32 %v5043_v15, 0.0  ;;  %4672 = vmatmul.mubr.bf16.gmra.mrb[80].mxu1 %v22027_v26  ;;  %v20195_v15 = vld [vmem:[%s27058_s5 + $0xa04] ss:$20 sps:$4 sm:$0xff]  }
 0x3c6   :  { %v5176_v6 = vmax.f32 %v5044_v27, 0.0  ;;  %4681 = vmatprep.mubr.bf16.mxu1 %v22068_v1  ;;  %4765 = vmatpush1.bf16.msra.mxu1 %v20131_v55 }
 0x3c7   :  { %v23112_v36 = vpack.c.bf16 %v5175_v56, %v5169_v60  ;;  %4766 = vmatprep.subr.bf16.mxu1 %v20142_v63  ;;  %7401 = vmatprep.subr.bf16.mxu0 %v20195_v15 }
 0x3c8   :  { %v23117_v50 = vpack.c.bf16 %v5176_v6, %v5170_v24  ;;  %v4600_v12 = vpop.f32.mrb[88].mxu0 }
 0x3c9   :  { %27176 = vst [vmem:[#allocation26_spill] sm:$0xff] %v23112_v36  ;;  %v5049_v26 = vadd.f32 %v22831_v10, %v4600_v12  ;;  %v4602_v29 = vpop.f32.mrb[89].mxu0 }
 0x3ca   :  { %27177 = vst [vmem:[#allocation27_spill] sm:$0xff] %v23117_v50  ;;  %v5050_v1 = vadd.f32 %v22836_v11, %v4602_v29  ;;  %v4604_v55 = vpop.f32.mrb[90].mxu0  ;;  %4767 = vmatpush1.bf16.msra.mxu1 %v20140_v0 }
 0x3cb   :  { %v5055_v3 = vadd.f32 %v22831_v10, %v4604_v55  ;;  %v4606_v63 = vpop.f32.mrb[91].mxu0  ;;  %17460 = vmatprep.subr.bf16.mxu1 %v20185_v38  ;;  %v5181_v60 = vmax.f32 %v5049_v26, 0.0  ;;  %v20249_v10 = vld [vmem:[%s27058_s5 + $0xb50] ss:$20 sps:$4 sm:$0xff]  }
 0x3cc   :  { %v5056_v27 = vadd.f32 %v22836_v11, %v4606_v63  ;;  %v5182_v24 = vmax.f32 %v5050_v1, 0.0  ;;  %v23203_v11 = vrot.slane %v22819_v2, %v21890_v43 }
 0x3cd   :  { %v5187_v56 = vmax.f32 %v5055_v3, 0.0  ;;  %4682 = vmatmul.mubr.bf16.gmra.mrb[84].mxu1 %v22063_v61  ;;  %v27179_v61 = vmov 0  }
 0x3ce   :  { %v5188_v6 = vmax.f32 %v5056_v27, 0.0  ;;  %4691 = vmatprep.mubr.bf16.mxu1 %v22095_v35  ;;  %v20187_v35 = vld [vmem:[%s27058_s5 + $0x8f8] ss:$20 sps:$4 sm:$0xff]  }
 0x3cf   :  { %v23128_v0 = vpack.c.bf16 %v5187_v56, %v5181_v60 }
 0x3d0   :  { %v23130_v12 = vpack.c.bf16 %v5188_v6, %v5182_v24 }
 0x3d1   :  { %27178 = vst [vmem:[#allocation28_spill] sm:$0xff] %v23128_v0 }
 0x3d5   :  { %4692 = vmatmul.mubr.bf16.gmra.mrb[88].mxu1 %v22093_v34  ;;  %v20186_v34 = vld [vmem:[%s27058_s5 + $0x790] ss:$20 sps:$4 sm:$0xff]  }
 0x3d6   :  { %4701 = vmatprep.mubr.bf16.mxu1 %v22107_v59  ;;  %v20189_v59 = vld [vmem:[%s27058_s5 + $0x920] ss:$20 sps:$4 sm:$0xff]  }
 0x3dd   :  { %4702 = vmatmul.mubr.bf16.gmra.mrb[92].mxu1 %v22105_v58  ;;  %v20188_v58 = vld [vmem:[%s27058_s5 + $0x7b8] ss:$20 sps:$4 sm:$0xff]  }
 0x3de   :  { %4711 = vmatprep.mubr.bf16.mxu1 %v22119_v21  ;;  %v20192_v21 = vld [vmem:[%s27058_s5 + $0x808] ss:$20 sps:$4 sm:$0xff]  }
 0x3e5   :  { %4712 = vmatmul.mubr.bf16.gmra.mrb[96].mxu1 %v22117_v20  ;;  %v20190_v20 = vld [vmem:[%s27058_s5 + $0x7e0] ss:$20 sps:$4 sm:$0xff]  }
 0x3e6   :  { %4721 = vmatprep.mubr.bf16.mxu1 %v22131_v52  ;;  %v20197_v52 = vld [vmem:[%s27058_s5 + $0x830] ss:$20 sps:$4 sm:$0xff]  }
 0x3ed   :  { %4722 = vmatmul.mubr.bf16.gmra.mrb[100].mxu1 %v22129_v49  ;;  %v20196_v49 = vld [vmem:[%s27058_s5 + $0x970] ss:$20 sps:$4 sm:$0xff]  }
 0x3ee   :  { %4731 = vmatprep.mubr.bf16.mxu1 %v22143_v16  ;;  %v20206_v16 = vld [vmem:[%s27058_s5 + $0x9c0] ss:$20 sps:$4 sm:$0xff]  }
 0x3f5   :  { %4732 = vmatmul.mubr.bf16.gmra.mrb[104].mxu1 %v22141_v13  ;;  %v20202_v13 = vld [vmem:[%s27058_s5 + $0x858] ss:$20 sps:$4 sm:$0xff]  }
 0x3f6   :  { %4741 = vmatprep.mubr.bf16.mxu1 %v22155_v53  ;;  %v20212_v53 = vld [vmem:[%s27058_s5 + $0x8a8] ss:$20 sps:$4 sm:$0xff]  }
 0x3fd   :  { %4742 = vmatmul.mubr.bf16.gmra.mrb[108].mxu1 %v22153_v48  ;;  %v20207_v48 = vld [vmem:[%s27058_s5 + $0x880] ss:$20 sps:$4 sm:$0xff]  }
 0x3fe   :  { %4784 = vmatprep.mubr.bf16.mxu1 %v27179_v61 }
 0x405   :  { %4785 = vmatmul.mubr.bf16.vlgmr.msra.gmra.mrb[68].mxu1 %v21883_v31  ;;  %v20191_v31 = vld [vmem:[%s27058_s5 + $0x948] ss:$20 sps:$4 sm:$0xff]  }
 0x406   :  { %4794 = vmatprep.mubr.bf16.mxu1 %v27179_v61  ;;  %17461 = vmatpush3.bf16.msra.mxu1 %v20186_v34 }
 0x407   :  { %17462 = vmatprep.subr.bf16.mxu1 %v20187_v35 }
 0x40a   :  { %17463 = vmatpush3.bf16.msra.mxu1 %v20188_v58 }
 0x40b   :  { %17464 = vmatprep.subr.bf16.mxu1 %v20189_v59 }
 0x40d   :  { %4795 = vmatmul.mubr.bf16.gmra.mrb[72].mxu1 %v21881_v30  ;;  %v20201_v30 = vld [vmem:[%s27058_s5 + $0x998] ss:$20 sps:$4 sm:$0xff]  }
 0x40e   :  { %4804 = vmatprep.mubr.bf16.mxu1 %v27179_v61  ;;  %17465 = vmatpush3.bf16.msra.mxu1 %v20190_v20 }
 0x40f   :  { %17466 = vmatprep.subr.bf16.mxu1 %v20191_v31 }
 0x412   :  { %17467 = vmatpush3.bf16.msra.mxu1 %v20192_v21 }
 0x413   :  { %17468 = vmatprep.subr.bf16.mxu1 %v20196_v49 }
 0x415   :  { %4805 = vmatmul.mubr.bf16.gmra.mrb[76].mxu1 %v21897_v47  ;;  %v20211_v47 = vld [vmem:[%s27058_s5 + $0x9e8] ss:$20 sps:$4 sm:$0xff]  }
 0x416   :  { %4814 = vmatprep.mubr.bf16.mxu1 %v27179_v61  ;;  %17469 = vmatpush3.bf16.msra.mxu1 %v20197_v52 }
 0x417   :  { %17470 = vmatprep.subr.bf16.mxu1 %v20201_v30 }
 0x41a   :  { %17471 = vmatpush3.bf16.msra.mxu1 %v20202_v13 }
 0x41b   :  { %17472 = vmatprep.subr.bf16.mxu1 %v20206_v16 }
 0x41d   :  { %4815 = vmatmul.mubr.bf16.gmra.mrb[80].mxu1 %v21895_v46  ;;  %v23207_v46 = vrot.slane %v22819_v2, %v21893_v45 }
 0x41e   :  { %4824 = vmatprep.mubr.bf16.mxu1 %v27179_v61  ;;  %17473 = vmatpush3.bf16.msra.mxu1 %v20207_v48 }
 0x41f   :  { %17474 = vmatprep.subr.bf16.mxu1 %v20211_v47  ;;  %v20193_v47 = vld [vmem:[%s27058_s5 + $0xa00] ss:$20 sps:$4 sm:$0xff]  }
 0x422   :  { %17475 = vmatpush3.bf16.msra.mxu1 %v20212_v53 }
 0x423   :  { %17536 = vmatprep.subr.bf16.mxu1 %v20249_v10 }
 0x425   :  { %4825 = vmatmul.mubr.bf16.gmra.mrb[84].mxu1 %v21914_v7 }
 0x426   :  { %4834 = vmatprep.mubr.bf16.mxu1 %v27179_v61 }
 0x428   :  { %v4214_v38 = vpop.f32.mrb[24].mxu1 }
 0x429   :  { %v4927_v26 = vadd.f32 %v23203_v11, %v4214_v38  ;;  %v4216_v29 = vpop.f32.mrb[25].mxu1 }
 0x42a   :  { %v4928_v1 = vadd.f32 %v23207_v46, %v4216_v29  ;;  %v4218_v55 = vpop.f32.mrb[26].mxu1 }
 0x42b   :  { %v4933_v15 = vadd.f32 %v23203_v11, %v4218_v55  ;;  %v4220_v7 = vpop.f32.mrb[27].mxu1  ;;  %v5059_v63 = vmax.f32 %v4927_v26, 0.0 }
 0x42c   :  { %v4934_v3 = vadd.f32 %v23207_v46, %v4220_v7  ;;  %v5060_v2 = vmax.f32 %v4928_v1, 0.0 }
 0x42d   :  { %v5065_v27 = vmax.f32 %v4933_v15, 0.0  ;;  %4835 = vmatmul.mubr.bf16.gmra.mrb[88].mxu1 %v21911_v4  ;;  %v20198_v15 = vld [vmem:[%s27058_s5 + $0xa28] ss:$20 sps:$4 sm:$0xff]  }
 0x42e   :  { %v5066_v60 = vmax.f32 %v4934_v3, 0.0  ;;  %4844 = vmatprep.mubr.bf16.mxu1 %v27179_v61 }
 0x42f   :  { %v23216_v56 = vpack.c.bf16 %v5065_v27, %v5059_v63  ;;  %v20205_v63 = vld [vmem:[%s27058_s5 + $0xa54] ss:$20 sps:$4 sm:$0xff]  }
 0x430   :  { %v4224_v24 = vpop.f32.mrb[28].mxu1  ;;  %v23218_v6 = vpack.c.bf16 %v5066_v60, %v5060_v2 }
 0x431   :  { %27180 = vst [vmem:[#allocation29_spill] sm:$0xff] %v23216_v56  ;;  %v4939_v34 = vadd.f32 %v23203_v11, %v4224_v24  ;;  %v4226_v35 = vpop.f32.mrb[29].mxu1 }
 0x432   :  { %27181 = vst [vmem:[#allocation30_spill] sm:$0xff] %v23218_v6  ;;  %v4940_v58 = vadd.f32 %v23207_v46, %v4226_v35  ;;  %v4228_v59 = vpop.f32.mrb[30].mxu1  ;;  %v20203_v35 = vld [vmem:[%s27058_s5 + $0xa50] ss:$20 sps:$4 sm:$0xff]  }
 0x433   :  { %v4945_v20 = vadd.f32 %v23203_v11, %v4228_v59  ;;  %v4230_v31 = vpop.f32.mrb[31].mxu1  ;;  %v5071_v21 = vmax.f32 %v4939_v34, 0.0  ;;  %v20210_v59 = vld [vmem:[%s27058_s5 + $0xa7c] ss:$20 sps:$4 sm:$0xff]  }
 0x434   :  { %v4946_v4 = vadd.f32 %v23207_v46, %v4230_v31  ;;  %v5072_v52 = vmax.f32 %v4940_v58, 0.0 }
 0x435   :  { %v5077_v49 = vmax.f32 %v4945_v20, 0.0  ;;  %4845 = vmatmul.mubr.bf16.gmra.mrb[92].mxu1 %v21930_v40  ;;  %v20200_v40 = vld [vmem:[%s27058_s5 + $0xa2c] ss:$20 sps:$4 sm:$0xff]  }
 0x436   :  { %v5078_v30 = vmax.f32 %v4946_v4, 0.0  ;;  %4854 = vmatprep.mubr.bf16.mxu1 %v27179_v61 }
 0x437   :  { %v23226_v13 = vpack.c.bf16 %v5077_v49, %v5071_v21 }
 0x438   :  { %v23228_v16 = vpack.c.bf16 %v5078_v30, %v5072_v52  ;;  %v4234_v48 = vpop.f32.mrb[32].mxu1  ;;  %v20208_v52 = vld [vmem:[%s27058_s5 + $0xa78] ss:$20 sps:$4 sm:$0xff]  }
 0x439   :  { %27182 = vst [vmem:[#allocation31_spill] sm:$0xff] %v23226_v13  ;;  %v4951_v53 = vadd.f32 %v23203_v11, %v4234_v48  ;;  %v4236_v10 = vpop.f32.mrb[33].mxu1 }
 0x43a   :  { %27183 = vst [vmem:[#allocation32_spill] sm:$0xff] %v23228_v16  ;;  %v4952_v38 = vadd.f32 %v23207_v46, %v4236_v10  ;;  %v4238_v26 = vpop.f32.mrb[34].mxu1  ;;  %7300 = vmatprep.mubr.bf16.mxu0 %v23228_v16 }
 0x43b   :  { %v4957_v29 = vadd.f32 %v23203_v11, %v4238_v26  ;;  %v4240_v1 = vpop.f32.mrb[35].mxu1  ;;  %7301 = vmatmul.mubr.bf16.vlgmr.msra.gmra.mrb[92].mxu0 %v23226_v13  ;;  %v5083_v7 = vmax.f32 %v4951_v53, 0.0 }
 0x43c   :  { %v4958_v55 = vadd.f32 %v23207_v46, %v4240_v1  ;;  %7402 = vmatpush1.bf16.msra.mxu0 %v20193_v47  ;;  %v5084_v27 = vmax.f32 %v4952_v38, 0.0  ;;  %v20215_v47 = vld [vmem:[%s27058_s5 + $0xaa4] ss:$20 sps:$4 sm:$0xff]  }
 0x43d   :  { %v5089_v3 = vmax.f32 %v4957_v29, 0.0  ;;  %4855 = vmatmul.mubr.bf16.gmra.mrb[96].mxu1 %v21927_v37  ;;  %7403 = vmatprep.subr.bf16.mxu0 %v20200_v40  ;;  %v20213_v29 = vld [vmem:[%s27058_s5 + $0xaa0] ss:$20 sps:$4 sm:$0xff]  }
 0x43e   :  { %v5090_v2 = vmax.f32 %v4958_v55, 0.0  ;;  %4864 = vmatprep.mubr.bf16.mxu1 %v27179_v61  ;;  %v20218_v55 = vld [vmem:[%s27058_s5 + $0xacc] ss:$20 sps:$4 sm:$0xff]  }
 0x43f   :  { %v23250_v60 = vpack.c.bf16 %v5089_v3, %v5083_v7 }
 0x440   :  { %v23252_v24 = vpack.c.bf16 %v5090_v2, %v5084_v27  ;;  %v4244_v34 = vpop.f32.mrb[36].mxu1  ;;  %7404 = vmatpush1.bf16.msra.mxu0 %v20198_v15  ;;  %v20216_v2 = vld [vmem:[%s27058_s5 + $0xac8] ss:$20 sps:$4 sm:$0xff]  }
 0x441   :  { %27184 = vst [vmem:[#allocation33_spill] sm:$0xff] %v23250_v60  ;;  %v4963_v37 = vadd.f32 %v23203_v11, %v4244_v34  ;;  %v4246_v58 = vpop.f32.mrb[37].mxu1  ;;  %7405 = vmatprep.subr.bf16.mxu0 %v20205_v63 }
 0x442   :  { %27185 = vst [vmem:[#allocation34_spill] sm:$0xff] %v23252_v24  ;;  %v4964_v20 = vadd.f32 %v23207_v46, %v4246_v58  ;;  %v4248_v31 = vpop.f32.mrb[38].mxu1  ;;  %7310 = vmatprep.mubr.bf16.mxu0 %v23252_v24 }
 0x443   :  { %v4969_v4 = vadd.f32 %v23203_v11, %v4248_v31  ;;  %v4250_v21 = vpop.f32.mrb[39].mxu1  ;;  %7311 = vmatmul.mubr.bf16.gmra.mrb[96].mxu0 %v23250_v60  ;;  %v5095_v30 = vmax.f32 %v4963_v37, 0.0  ;;  %v20221_v37 = vld [vmem:[%s27058_s5 + $0xaf4] ss:$20 sps:$4 sm:$0xff]  }
 0x444   :  { %v4970_v49 = vadd.f32 %v23207_v46, %v4250_v21  ;;  %7406 = vmatpush1.bf16.msra.mxu0 %v20203_v35  ;;  %v5096_v53 = vmax.f32 %v4964_v20, 0.0  ;;  %v20219_v21 = vld [vmem:[%s27058_s5 + $0xaf0] ss:$20 sps:$4 sm:$0xff]  }
 0x445   :  { %v5101_v48 = vmax.f32 %v4969_v4, 0.0  ;;  %4865 = vmatmul.mubr.bf16.gmra.mrb[100].mxu1 %v21968_v22  ;;  %7407 = vmatprep.subr.bf16.mxu0 %v20210_v59 }
 0x446   :  { %v5102_v10 = vmax.f32 %v4970_v49, 0.0  ;;  %4874 = vmatprep.mubr.bf16.mxu1 %v27179_v61 }
 0x447   :  { %v23274_v40 = vpack.c.bf16 %v5101_v48, %v5095_v30 }
 0x448   :  { %v23276_v38 = vpack.c.bf16 %v5102_v10, %v5096_v53  ;;  %v4254_v26 = vpop.f32.mrb[40].mxu1  ;;  %7408 = vmatpush1.bf16.msra.mxu0 %v20208_v52  ;;  %v20224_v52 = vld [vmem:[%s27058_s5 + $0xb1c] ss:$20 sps:$4 sm:$0xff]   ;;  %v20222_v10 = vld [vmem:[%s27058_s5 + $0xb18] ss:$20 sps:$4 sm:$0xff]  }
 0x449   :  { %27186 = vst [vmem:[#allocation35_spill] sm:$0xff] %v23274_v40  ;;  %v4975_v22 = vadd.f32 %v23203_v11, %v4254_v26  ;;  %v4256_v1 = vpop.f32.mrb[41].mxu1  ;;  %7409 = vmatprep.subr.bf16.mxu0 %v20215_v47 }
 0x44a   :  { %27187 = vst [vmem:[#allocation36_spill] sm:$0xff] %v23276_v38  ;;  %v4976_v15 = vadd.f32 %v23207_v46, %v4256_v1  ;;  %v4258_v7 = vpop.f32.mrb[42].mxu1  ;;  %7320 = vmatprep.mubr.bf16.mxu0 %v23276_v38 }
 0x44b   :  { %v4981_v3 = vadd.f32 %v23203_v11, %v4258_v7  ;;  %v4260_v63 = vpop.f32.mrb[43].mxu1  ;;  %7321 = vmatmul.mubr.bf16.gmra.mrb[100].mxu0 %v23274_v40  ;;  %v5107_v34 = vmax.f32 %v4975_v22, 0.0  ;;  %v20227_v22 = vld [vmem:[%s27058_s5 + $0xb44] ss:$20 sps:$4 sm:$0xff]  }
 0x44c   :  { %v4982_v27 = vadd.f32 %v23207_v46, %v4260_v63  ;;  %7410 = vmatpush1.bf16.msra.mxu0 %v20213_v29  ;;  %v5108_v58 = vmax.f32 %v4976_v15, 0.0  ;;  %v20225_v63 = vld [vmem:[%s27058_s5 + $0xb40] ss:$20 sps:$4 sm:$0xff]  }
 0x44d   :  { %v5113_v35 = vmax.f32 %v4981_v3, 0.0  ;;  %4875 = vmatmul.mubr.bf16.gmra.mrb[104].mxu1 %v21960_v18  ;;  %7411 = vmatprep.subr.bf16.mxu0 %v20218_v55 }
 0x44e   :  { %v5114_v59 = vmax.f32 %v4982_v27, 0.0  ;;  %4884 = vmatprep.mubr.bf16.mxu1 %v27179_v61 }
 0x44f   :  { %v23298_v20 = vpack.c.bf16 %v5113_v35, %v5107_v34 }
 0x450   :  { %v23300_v31 = vpack.c.bf16 %v5114_v59, %v5108_v58  ;;  %v4264_v4 = vpop.f32.mrb[44].mxu1  ;;  %7412 = vmatpush1.bf16.msra.mxu0 %v20216_v2  ;;  %v20230_v2 = vld [vmem:[%s27058_s5 + $0xb6c] ss:$20 sps:$4 sm:$0xff]  }
 0x451   :  { %27188 = vst [vmem:[#allocation37_spill] sm:$0xff] %v23298_v20  ;;  %v4987_v18 = vadd.f32 %v23203_v11, %v4264_v4  ;;  %v4266_v49 = vpop.f32.mrb[45].mxu1  ;;  %7413 = vmatprep.subr.bf16.mxu0 %v20221_v37  ;;  %v20250_v37 = vld [vmem:[%s27058_s5 + $0xa10] ss:$20 sps:$4 sm:$0xff]   ;;  %v20251_v4 = vld [vmem:[%s27058_s5 + $0xb78] ss:$20 sps:$4 sm:$0xff]  }
 0x452   :  { %27189 = vst [vmem:[#allocation38_spill] sm:$0xff] %v23300_v31  ;;  %v4988_v61 = vadd.f32 %v23207_v46, %v4266_v49  ;;  %v4268_v30 = vpop.f32.mrb[46].mxu1  ;;  %7330 = vmatprep.mubr.bf16.mxu0 %v23300_v31 }
 0x453   :  { %v4993_v48 = vadd.f32 %v23203_v11, %v4268_v30  ;;  %v4270_v47 = vpop.f32.mrb[47].mxu1  ;;  %7331 = vmatmul.mubr.bf16.gmra.mrb[104].mxu0 %v23298_v20  ;;  %v5119_v26 = vmax.f32 %v4987_v18, 0.0  ;;  %v20228_v18 = vld [vmem:[%s27058_s5 + $0xb68] ss:$20 sps:$4 sm:$0xff]  }
 0x454   :  { %v4994_v53 = vadd.f32 %v23207_v46, %v4270_v47  ;;  %7414 = vmatpush1.bf16.msra.mxu0 %v20219_v21  ;;  %v5120_v1 = vmax.f32 %v4988_v61, 0.0  ;;  %v20233_v61 = vld [vmem:[%s27058_s5 + $0xb94] ss:$20 sps:$4 sm:$0xff]   ;;  %v20252_v47 = vld [vmem:[%s27058_s5 + $0xa38] ss:$20 sps:$4 sm:$0xff]  }
 0x455   :  { %v5125_v29 = vmax.f32 %v4993_v48, 0.0  ;;  %4885 = vmatmul.mubr.bf16.gmra.mrb[108].mxu1 %v22009_v9  ;;  %7415 = vmatprep.subr.bf16.mxu0 %v20224_v52 }
 0x456   :  { %v5126_v55 = vmax.f32 %v4994_v53, 0.0  ;;  %8098 = vmatprep.mubr.bf16.mxu1 %v23228_v16 }
 0x457   :  { %v23322_v15 = vpack.c.bf16 %v5125_v29, %v5119_v26 }
 0x458   :  { %v23324_v7 = vpack.c.bf16 %v5126_v55, %v5120_v1  ;;  %v4274_v3 = vpop.f32.mrb[48].mxu1  ;;  %7416 = vmatpush1.bf16.msra.mxu0 %v20222_v10  ;;  %v20253_v10 = vld [vmem:[%s27058_s5 + $0xba0] ss:$20 sps:$4 sm:$0xff]  }
 0x459   :  { %27190 = vst [vmem:[#allocation39_spill] sm:$0xff] %v23322_v15  ;;  %v4999_v9 = vadd.f32 %v23203_v11, %v4274_v3  ;;  %v4276_v27 = vpop.f32.mrb[49].mxu1  ;;  %7417 = vmatprep.subr.bf16.mxu0 %v20227_v22  ;;  %v20231_v22 = vld [vmem:[%s27058_s5 + $0xb90] ss:$20 sps:$4 sm:$0xff]  }
 0x45a   :  { %27191 = vst [vmem:[#allocation40_spill] sm:$0xff] %v23324_v7  ;;  %v5000_v34 = vadd.f32 %v23207_v46, %v4276_v27  ;;  %v4278_v35 = vpop.f32.mrb[50].mxu1  ;;  %7340 = vmatprep.mubr.bf16.mxu0 %v23324_v7  ;;  %v20236_v3 = vld [vmem:[%s27058_s5 + $0xbbc] ss:$20 sps:$4 sm:$0xff]   ;;  %v20254_v27 = vld [vmem:[%s27058_s5 + $0xa60] ss:$20 sps:$4 sm:$0xff]  }
 0x45b   :  { %v5005_v58 = vadd.f32 %v23203_v11, %v4278_v35  ;;  %v4280_v59 = vpop.f32.mrb[51].mxu1  ;;  %7341 = vmatmul.mubr.bf16.gmra.mrb[108].mxu0 %v23322_v15  ;;  %v5131_v49 = vmax.f32 %v4999_v9, 0.0  ;;  %v20255_v35 = vld [vmem:[%s27058_s5 + $0xbc8] ss:$20 sps:$4 sm:$0xff]  }
 0x45c   :  { %v5006_v21 = vadd.f32 %v23207_v46, %v4280_v59  ;;  %7418 = vmatpush1.bf16.msra.mxu0 %v20225_v63  ;;  %v5132_v30 = vmax.f32 %v5000_v34, 0.0 }
 0x45d   :  { %v5137_v52 = vmax.f32 %v5005_v58, 0.0  ;;  %8099 = vmatmul.mubr.bf16.vlgmr.msra.gmra.mrb[112].mxu1 %v23226_v13  ;;  %7419 = vmatprep.subr.bf16.mxu0 %v20230_v2  ;;  %v20234_v58 = vld [vmem:[%s27058_s5 + $0xbb8] ss:$20 sps:$4 sm:$0xff]  }
 0x45e   :  { %v5138_v48 = vmax.f32 %v5006_v21, 0.0  ;;  %8106 = vmatprep.mubr.bf16.mxu1 %v23252_v24  ;;  %17537 = vmatpush3.bf16.msra.mxu1 %v20250_v37  ;;  %v20239_v21 = vld [vmem:[%s27058_s5 + $0xbe4] ss:$20 sps:$4 sm:$0xff]  }
 0x45f   :  { %v23355_v53 = vpack.c.bf16 %v5137_v52, %v5131_v49  ;;  %17538 = vmatprep.subr.bf16.mxu1 %v20251_v4  ;;  %v20256_v52 = vld [vmem:[%s27058_s5 + $0xa88] ss:$20 sps:$4 sm:$0xff]  }
 0x460   :  { %v23360_v26 = vpack.c.bf16 %v5138_v48, %v5132_v30  ;;  %v4284_v29 = vpop.f32.mrb[52].mxu1  ;;  %7420 = vmatpush1.bf16.msra.mxu0 %v20228_v18  ;;  %v20260_v30 = vld [vmem:[%s27058_s5 + $0xbf0] ss:$20 sps:$4 sm:$0xff]  }
 0x461   :  { %v5011_v1 = vadd.f32 %v23203_v11, %v4284_v29  ;;  %v4286_v55 = vpop.f32.mrb[53].mxu1  ;;  %7421 = vmatprep.subr.bf16.mxu0 %v20233_v61 }
 0x462   :  { %27192 = vst [vmem:[#allocation41_spill] sm:$0xff] %v23360_v26  ;;  %v5012_v63 = vadd.f32 %v23207_v46, %v4286_v55  ;;  %v4288_v9 = vpop.f32.mrb[54].mxu1  ;;  %7350 = vmatprep.mubr.bf16.mxu0 %v23360_v26  ;;  %17539 = vmatpush3.bf16.msra.mxu1 %v20252_v47 }
 0x463   :  { %v5017_v2 = vadd.f32 %v23203_v11, %v4288_v9  ;;  %v4290_v34 = vpop.f32.mrb[55].mxu1  ;;  %7351 = vmatmul.mubr.bf16.gmra.mrb[112].mxu0 %v23355_v53  ;;  %17540 = vmatprep.subr.bf16.mxu1 %v20253_v10  ;;  %v5143_v59 = vmax.f32 %v5011_v1, 0.0  ;;  %v20237_v10 = vld [vmem:[%s27058_s5 + $0xbe0] ss:$20 sps:$4 sm:$0xff]  }
 0x464   :  { %v5018_v37 = vadd.f32 %v23207_v46, %v4290_v34  ;;  %7422 = vmatpush1.bf16.msra.mxu0 %v20231_v22  ;;  %v5144_v18 = vmax.f32 %v5012_v63, 0.0  ;;  %v20242_v1 = vld [vmem:[%s27058_s5 + $0xc0c] ss:$20 sps:$4 sm:$0xff]   ;;  %v20261_v63 = vld [vmem:[%s27058_s5 + $0xab0] ss:$20 sps:$4 sm:$0xff]  }
 0x465   :  { %v5149_v4 = vmax.f32 %v5017_v2, 0.0  ;;  %8107 = vmatmul.mubr.bf16.gmra.mrb[116].mxu1 %v23250_v60  ;;  %7423 = vmatprep.subr.bf16.mxu0 %v20236_v3  ;;  %v20265_v2 = vld [vmem:[%s27058_s5 + $0xc18] ss:$20 sps:$4 sm:$0xff]  }
 0x466   :  { %v5150_v49 = vmax.f32 %v5018_v37, 0.0  ;;  %8114 = vmatprep.mubr.bf16.mxu1 %v23276_v38  ;;  %17541 = vmatpush3.bf16.msra.mxu1 %v20254_v27 }
 0x467   :  { %v23391_v61 = vpack.c.bf16 %v5149_v4, %v5143_v59  ;;  %17542 = vmatprep.subr.bf16.mxu1 %v20255_v35  ;;  %v20240_v35 = vld [vmem:[%s27058_s5 + $0xc08] ss:$20 sps:$4 sm:$0xff]  }
 0x468   :  { %v23396_v48 = vpack.c.bf16 %v5150_v49, %v5144_v18  ;;  %v4294_v47 = vpop.f32.mrb[56].mxu1  ;;  %7424 = vmatpush1.bf16.msra.mxu0 %v20234_v58  ;;  %v20245_v59 = vld [vmem:[%s27058_s5 + $0xc34] ss:$20 sps:$4 sm:$0xff]   ;;  %v20266_v18 = vld [vmem:[%s27058_s5 + $0xad8] ss:$20 sps:$4 sm:$0xff]  }
 0x469   :  { %27193 = vst [vmem:[#allocation42_spill] sm:$0xff] %v23391_v61  ;;  %v5023_v29 = vadd.f32 %v23203_v11, %v4294_v47  ;;  %v4296_v22 = vpop.f32.mrb[57].mxu1  ;;  %7425 = vmatprep.subr.bf16.mxu0 %v20239_v21 }
 0x46a   :  { %27194 = vst [vmem:[#allocation43_spill] sm:$0xff] %v23396_v48  ;;  %v5024_v55 = vadd.f32 %v23207_v46, %v4296_v22  ;;  %v4298_v3 = vpop.f32.mrb[58].mxu1  ;;  %7360 = vmatprep.mubr.bf16.mxu0 %v23396_v48  ;;  %17543 = vmatpush3.bf16.msra.mxu1 %v20256_v52  ;;  %v20270_v52 = vld [vmem:[%s27058_s5 + $0xc40] ss:$20 sps:$4 sm:$0xff]  }
 0x46b   :  { %v5029_v9 = vadd.f32 %v23203_v11, %v4298_v3  ;;  %v4300_v27 = vpop.f32.mrb[59].mxu1  ;;  %7361 = vmatmul.mubr.bf16.gmra.mrb[116].mxu0 %v23391_v61  ;;  %17544 = vmatprep.subr.bf16.mxu1 %v20260_v30  ;;  %v5155_v37 = vmax.f32 %v5023_v29, 0.0 }
 0x46c   :  { %v5030_v34 = vadd.f32 %v23207_v46, %v4300_v27  ;;  %7426 = vmatpush1.bf16.msra.mxu0 %v20237_v10  ;;  %v5156_v4 = vmax.f32 %v5024_v55, 0.0  ;;  %v20243_v10 = vld [vmem:[%s27058_s5 + $0xc30] ss:$20 sps:$4 sm:$0xff]  }
 0x46d   :  { %v5161_v58 = vmax.f32 %v5029_v9, 0.0  ;;  %8115 = vmatmul.mubr.bf16.gmra.mrb[120].mxu1 %v23274_v40  ;;  %7427 = vmatprep.subr.bf16.mxu0 %v20242_v1  ;;  %v20248_v1 = vld [vmem:[%s27058_s5 + $0xc5c] ss:$20 sps:$4 sm:$0xff]  }
 0x46e   :  { %v5162_v21 = vmax.f32 %v5030_v34, 0.0  ;;  %8122 = vmatprep.mubr.bf16.mxu1 %v23300_v31  ;;  %17545 = vmatpush3.bf16.msra.mxu1 %v20261_v63  ;;  %v20271_v63 = vld [vmem:[%s27058_s5 + $0xb00] ss:$20 sps:$4 sm:$0xff]  }
 0x46f   :  { %v23427_v49 = vpack.c.bf16 %v5161_v58, %v5155_v37  ;;  %17546 = vmatprep.subr.bf16.mxu1 %v20265_v2  ;;  %v20272_v2 = vld [vmem:[%s27058_s5 + $0xc68] ss:$20 sps:$4 sm:$0xff]  }
 0x470   :  { %v23432_v30 = vpack.c.bf16 %v5162_v21, %v5156_v4  ;;  %v4304_v47 = vpop.f32.mrb[60].mxu1  ;;  %7428 = vmatpush1.bf16.msra.mxu0 %v20240_v35  ;;  %v20246_v35 = vld [vmem:[%s27058_s5 + $0xc58] ss:$20 sps:$4 sm:$0xff]  }
 0x471   :  { %v5035_v29 = vadd.f32 %v23203_v11, %v4304_v47  ;;  %v4306_v22 = vpop.f32.mrb[61].mxu1  ;;  %7429 = vmatprep.subr.bf16.mxu0 %v20245_v59  ;;  %v20259_v59 = vld [vmem:[%s27058_s5 + $0xc84] ss:$20 sps:$4 sm:$0xff]  }
 0x472   :  { %27195 = vst [vmem:[#allocation44_spill] sm:$0xff] %v23432_v30  ;;  %v5036_v55 = vadd.f32 %v23207_v46, %v4306_v22  ;;  %v4308_v3 = vpop.f32.mrb[62].mxu1  ;;  %7370 = vmatprep.mubr.bf16.mxu0 %v23432_v30  ;;  %17547 = vmatpush3.bf16.msra.mxu1 %v20266_v18  ;;  %v20276_v18 = vld [vmem:[%s27058_s5 + $0xb28] ss:$20 sps:$4 sm:$0xff]   ;;  %v20307_v47 = vld [vmem:[%s27058_s5 + $0xdd0] ss:$20 sps:$4 sm:$0xff]  }
 0x473   :  { %v5041_v9 = vadd.f32 %v23203_v11, %v4308_v3  ;;  %v4310_v27 = vpop.f32.mrb[63].mxu1  ;;  %7371 = vmatmul.mubr.bf16.gmra.mrb[120].mxu0 %v23427_v49  ;;  %17548 = vmatprep.subr.bf16.mxu1 %v20270_v52  ;;  %v5167_v37 = vmax.f32 %v5035_v29, 0.0 }
 0x474   :  { %v5042_v34 = vadd.f32 %v23207_v46, %v4310_v27  ;;  %7430 = vmatpush1.bf16.msra.mxu0 %v20243_v10  ;;  %v5168_v4 = vmax.f32 %v5036_v55, 0.0 }
 0x475   :  { %v5173_v58 = vmax.f32 %v5041_v9, 0.0  ;;  %8123 = vmatmul.mubr.bf16.gmra.mrb[124].mxu1 %v23298_v20  ;;  %7431 = vmatprep.subr.bf16.mxu0 %v20248_v1 }
 0x476   :  { %v5174_v21 = vmax.f32 %v5042_v34, 0.0  ;;  %8130 = vmatprep.mubr.bf16.mxu1 %v23324_v7  ;;  %17549 = vmatpush3.bf16.msra.mxu1 %v20271_v63 }
 0x477   :  { %v23463_v52 = vpack.c.bf16 %v5173_v58, %v5167_v37  ;;  %17550 = vmatprep.subr.bf16.mxu1 %v20272_v2 }
 0x478   :  { %v23468_v10 = vpack.c.bf16 %v5174_v21, %v5168_v4  ;;  %v4314_v29 = vpop.f32.mrb[64].mxu1  ;;  %7432 = vmatpush1.bf16.msra.mxu0 %v20246_v35  ;;  %v20262_v4 = vld [vmem:[%s27058_s5 + $0xca8] ss:$20 sps:$4 sm:$0xff]  }
 0x479   :  { %v5047_v22 = vadd.f32 %v23203_v11, %v4314_v29  ;;  %v4316_v1 = vpop.f32.mrb[65].mxu1  ;;  %7534 = vmatprep.subr.bf16.mxu0 %v20259_v59  ;;  %v20269_v21 = vld [vmem:[%s27058_s5 + $0xcd4] ss:$20 sps:$4 sm:$0xff]   ;;  %v20273_v29 = vld [vmem:[%s27058_s5 + $0xcf8] ss:$20 sps:$4 sm:$0xff]  }
 0x47a   :  { %27196 = vst [vmem:[#allocation45_spill] sm:$0xff] %v23468_v10  ;;  %v5048_v55 = vadd.f32 %v23207_v46, %v4316_v1  ;;  %v4318_v3 = vpop.f32.mrb[66].mxu1  ;;  %7380 = vmatprep.mubr.bf16.mxu0 %v23468_v10  ;;  %17551 = vmatpush3.bf16.msra.mxu1 %v20276_v18  ;;  %v20267_v18 = vld [vmem:[%s27058_s5 + $0xcd0] ss:$20 sps:$4 sm:$0xff]   ;;  %v20277_v1 = vld [vmem:[%s27058_s5 + $0xd20] ss:$20 sps:$4 sm:$0xff]  }
 0x47b   :  { %v5053_v63 = vadd.f32 %v23203_v11, %v4318_v3  ;;  %v4320_v9 = vpop.f32.mrb[67].mxu1  ;;  %7381 = vmatmul.mubr.bf16.gmra.mrb[124].mxu0 %v23463_v52  ;;  %17612 = vmatprep.subr.bf16.mxu1 %v20307_v47  ;;  %v5179_v2 = vmax.f32 %v5047_v22, 0.0  ;;  %v20257_v11 = vld [vmem:[%s27058_s5 + $0xc80] ss:$20 sps:$4 sm:$0xff]   ;;  %v20275_v47 = vld [vmem:[%s27058_s5 + $0xcfc] ss:$20 sps:$4 sm:$0xff]  }
 0x47c   :  { %v5054_v27 = vadd.f32 %v23207_v46, %v4320_v9  ;;  %v5180_v35 = vmax.f32 %v5048_v55, 0.0  ;;  %v20264_v46 = vld [vmem:[%s27058_s5 + $0xcac] ss:$20 sps:$4 sm:$0xff]   ;;  %v20279_v22 = vld [vmem:[%s27058_s5 + $0xd24] ss:$20 sps:$4 sm:$0xff]  }
 0x47d   :  { %v5185_v34 = vmax.f32 %v5053_v63, 0.0  ;;  %8131 = vmatmul.mubr.bf16.gmra.mrb[128].mxu1 %v23322_v15  ;;  %v20282_v55 = vld [vmem:[%s27058_s5 + $0xd4c] ss:$20 sps:$4 sm:$0xff]   ;;  %v20280_v3 = vld [vmem:[%s27058_s5 + $0xd48] ss:$20 sps:$4 sm:$0xff]  }
 0x47e   :  { %v5186_v37 = vmax.f32 %v5054_v27, 0.0  ;;  %8138 = vmatprep.mubr.bf16.mxu1 %v23360_v26  ;;  %v20285_v63 = vld [vmem:[%s27058_s5 + $0xd74] ss:$20 sps:$4 sm:$0xff]   ;;  %v20283_v9 = vld [vmem:[%s27058_s5 + $0xd70] ss:$20 sps:$4 sm:$0xff]  }
 0x47f   :  { %v23478_v58 = vpack.c.bf16 %v5185_v34, %v5179_v2  ;;  %v20288_v27 = vld [vmem:[%s27058_s5 + $0xd9c] ss:$20 sps:$4 sm:$0xff]   ;;  %v20286_v2 = vld [vmem:[%s27058_s5 + $0xd98] ss:$20 sps:$4 sm:$0xff]  }
 0x480   :  { %v23480_v59 = vpack.c.bf16 %v5186_v37, %v5180_v35  ;;  %v20291_v34 = vld [vmem:[%s27058_s5 + $0xdc4] ss:$20 sps:$4 sm:$0xff]   ;;  %v20289_v35 = vld [vmem:[%s27058_s5 + $0xdc0] ss:$20 sps:$4 sm:$0xff]  }
 0x481   :  { %v20294_v37 = vld [vmem:[%s27058_s5 + $0xdec] ss:$20 sps:$4 sm:$0xff]  }
 0x482   :  { %7390 = vmatprep.mubr.bf16.mxu0 %v23480_v59 }
 0x483   :  { %7391 = vmatmul.mubr.bf16.gmra.mrb[128].mxu0 %v23478_v58 }
 0x484   :  { %7433 = vmatprep.mubr.bf16.mxu0 %v22911_v54 }
 0x485   :  { %8139 = vmatmul.mubr.bf16.gmra.mrb[132].mxu1 %v23355_v53 }
 0x486   :  { %8146 = vmatprep.mubr.bf16.mxu1 %v23396_v48 }
 0x48b   :  { %7434 = vmatmul.mubr.bf16.vlgmr.msra.gmra.mrb[92].mxu0 %v22906_v8 }
 0x48c   :  { %7443 = vmatprep.mubr.bf16.mxu0 %v22942_v33  ;;  %7535 = vmatpush1.bf16.msra.mxu0 %v20257_v11  ;;  %v20308_v11 = vld [vmem:[%s27058_s5 + $0xc90] ss:$20 sps:$4 sm:$0xff]  }
 0x48d   :  { %8147 = vmatmul.mubr.bf16.gmra.mrb[136].mxu1 %v23391_v61  ;;  %7536 = vmatprep.subr.bf16.mxu0 %v20264_v46  ;;  %v20312_v46 = vld [vmem:[%s27058_s5 + $0xdf8] ss:$20 sps:$4 sm:$0xff]  }
 0x48e   :  { %8154 = vmatprep.mubr.bf16.mxu1 %v23432_v30 }
 0x490   :  { %7537 = vmatpush1.bf16.msra.mxu0 %v20262_v4  ;;  %v20292_v4 = vld [vmem:[%s27058_s5 + $0xde8] ss:$20 sps:$4 sm:$0xff]  }
 0x491   :  { %7538 = vmatprep.subr.bf16.mxu0 %v20269_v21  ;;  %v20297_v21 = vld [vmem:[%s27058_s5 + $0xe14] ss:$20 sps:$4 sm:$0xff]  }
 0x493   :  { %7444 = vmatmul.mubr.bf16.gmra.mrb[96].mxu0 %v22937_v28 }
 0x494   :  { %7453 = vmatprep.mubr.bf16.mxu0 %v22964_v25  ;;  %7539 = vmatpush1.bf16.msra.mxu0 %v20267_v18  ;;  %v20313_v18 = vld [vmem:[%s27058_s5 + $0xcb8] ss:$20 sps:$4 sm:$0xff]  }
 0x495   :  { %8155 = vmatmul.mubr.bf16.gmra.mrb[140].mxu1 %v23427_v49  ;;  %7540 = vmatprep.subr.bf16.mxu0 %v20275_v47  ;;  %v20314_v47 = vld [vmem:[%s27058_s5 + $0xe20] ss:$20 sps:$4 sm:$0xff]  }
 0x496   :  { %8162 = vmatprep.mubr.bf16.mxu1 %v23468_v10 }
 0x498   :  { %7541 = vmatpush1.bf16.msra.mxu0 %v20273_v29  ;;  %v20295_v29 = vld [vmem:[%s27058_s5 + $0xe10] ss:$20 sps:$4 sm:$0xff]  }
 0x499   :  { %7542 = vmatprep.subr.bf16.mxu0 %v20279_v22  ;;  %v20300_v22 = vld [vmem:[%s27058_s5 + $0xe3c] ss:$20 sps:$4 sm:$0xff]  }
 0x49b   :  { %7454 = vmatmul.mubr.bf16.gmra.mrb[100].mxu0 %v22962_v23 }
 0x49c   :  { %7463 = vmatprep.mubr.bf16.mxu0 %v22986_v41  ;;  %7543 = vmatpush1.bf16.msra.mxu0 %v20277_v1  ;;  %v20318_v1 = vld [vmem:[%s27058_s5 + $0xce0] ss:$20 sps:$4 sm:$0xff]  }
 0x49d   :  { %8163 = vmatmul.mubr.bf16.gmra.mrb[144].mxu1 %v23463_v52  ;;  %7544 = vmatprep.subr.bf16.mxu0 %v20282_v55  ;;  %v20319_v55 = vld [vmem:[%s27058_s5 + $0xe48] ss:$20 sps:$4 sm:$0xff]  }
 0x49e   :  { %8170 = vmatprep.mubr.bf16.mxu1 %v23480_v59 }
 0x4a0   :  { %7545 = vmatpush1.bf16.msra.mxu0 %v20280_v3  ;;  %v20298_v3 = vld [vmem:[%s27058_s5 + $0xe38] ss:$20 sps:$4 sm:$0xff]  }
 0x4a1   :  { %7546 = vmatprep.subr.bf16.mxu0 %v20285_v63  ;;  %v20303_v63 = vld [vmem:[%s27058_s5 + $0xe64] ss:$20 sps:$4 sm:$0xff]  }
 0x4a3   :  { %7464 = vmatmul.mubr.bf16.gmra.mrb[104].mxu0 %v22984_v39 }
 0x4a4   :  { %7473 = vmatprep.mubr.bf16.mxu0 %v23005_v44  ;;  %7547 = vmatpush1.bf16.msra.mxu0 %v20283_v9  ;;  %v20320_v9 = vld [vmem:[%s27058_s5 + $0xd08] ss:$20 sps:$4 sm:$0xff]  }
 0x4a5   :  { %8171 = vmatmul.mubr.bf16.gmra.mrb[148].mxu1 %v23478_v58  ;;  %7548 = vmatprep.subr.bf16.mxu0 %v20288_v27  ;;  %v20324_v27 = vld [vmem:[%s27058_s5 + $0xe70] ss:$20 sps:$4 sm:$0xff]  }
 0x4a6   :  { %8211 = vmatprep.mubr.bf16.mxu1 %v22911_v54 }
 0x4a8   :  { %7549 = vmatpush1.bf16.msra.mxu0 %v20286_v2  ;;  %v20301_v2 = vld [vmem:[%s27058_s5 + $0xe60] ss:$20 sps:$4 sm:$0xff]  }
 0x4a9   :  { %7550 = vmatprep.subr.bf16.mxu0 %v20291_v34  ;;  %v20306_v34 = vld [vmem:[%s27058_s5 + $0xe8c] ss:$20 sps:$4 sm:$0xff]  }
 0x4ab   :  { %7474 = vmatmul.mubr.bf16.gmra.mrb[108].mxu0 %v23003_v5 }
 0x4ac   :  { %7483 = vmatprep.mubr.bf16.mxu0 %v23039_v42  ;;  %7551 = vmatpush1.bf16.msra.mxu0 %v20289_v35  ;;  %v20325_v35 = vld [vmem:[%s27058_s5 + $0xd30] ss:$20 sps:$4 sm:$0xff]  }
 0x4ad   :  { %8212 = vmatmul.mubr.bf16.vlgmr.msra.gmra.mrb[152].mxu1 %v22906_v8  ;;  %7552 = vmatprep.subr.bf16.mxu0 %v20294_v37  ;;  %v20329_v37 = vld [vmem:[%s27058_s5 + $0xe98] ss:$20 sps:$4 sm:$0xff]  }
 0x4ae   :  { %8219 = vmatprep.mubr.bf16.mxu1 %v22942_v33  ;;  %17613 = vmatpush3.bf16.msra.mxu1 %v20308_v11  ;;  %v20304_v11 = vld [vmem:[%s27058_s5 + $0xe88] ss:$20 sps:$4 sm:$0xff]  }
 0x4af   :  { %17614 = vmatprep.subr.bf16.mxu1 %v20312_v46  ;;  %v20311_v46 = vld [vmem:[%s27058_s5 + $0xeb4] ss:$20 sps:$4 sm:$0xff]  }
 0x4b0   :  { %7553 = vmatpush1.bf16.msra.mxu0 %v20292_v4  ;;  %v20330_v4 = vld [vmem:[%s27058_s5 + $0xd58] ss:$20 sps:$4 sm:$0xff]  }
 0x4b1   :  { %7554 = vmatprep.subr.bf16.mxu0 %v20297_v21  ;;  %v20334_v21 = vld [vmem:[%s27058_s5 + $0xec0] ss:$20 sps:$4 sm:$0xff]  }
 0x4b2   :  { %17615 = vmatpush3.bf16.msra.mxu1 %v20313_v18  ;;  %v20309_v18 = vld [vmem:[%s27058_s5 + $0xeb0] ss:$20 sps:$4 sm:$0xff]  }
 0x4b3   :  { %7484 = vmatmul.mubr.bf16.gmra.mrb[112].mxu0 %v23031_v19  ;;  %17616 = vmatprep.subr.bf16.mxu1 %v20314_v47  ;;  %v20317_v47 = vld [vmem:[%s27058_s5 + $0xedc] ss:$20 sps:$4 sm:$0xff]  }
 0x4b4   :  { %7493 = vmatprep.mubr.bf16.mxu0 %v23073_v57  ;;  %7555 = vmatpush1.bf16.msra.mxu0 %v20295_v29  ;;  %v20335_v29 = vld [vmem:[%s27058_s5 + $0xd80] ss:$20 sps:$4 sm:$0xff]  }
 0x4b5   :  { %8220 = vmatmul.mubr.bf16.gmra.mrb[156].mxu1 %v22937_v28  ;;  %7556 = vmatprep.subr.bf16.mxu0 %v20300_v22  ;;  %v20336_v22 = vld [vmem:[%s27058_s5 + $0xee8] ss:$20 sps:$4 sm:$0xff]  }
 0x4b6   :  { %8227 = vmatprep.mubr.bf16.mxu1 %v22964_v25  ;;  %17617 = vmatpush3.bf16.msra.mxu1 %v20318_v1  ;;  %v20315_v1 = vld [vmem:[%s27058_s5 + $0xed8] ss:$20 sps:$4 sm:$0xff]  }
 0x4b7   :  { %17618 = vmatprep.subr.bf16.mxu1 %v20319_v55  ;;  %v20323_v55 = vld [vmem:[%s27058_s5 + $0x78c] ss:$20 sps:$4 sm:$0xff]  }
 0x4b8   :  { %7557 = vmatpush1.bf16.msra.mxu0 %v20298_v3  ;;  %v20340_v3 = vld [vmem:[%s27058_s5 + $0xda8] ss:$20 sps:$4 sm:$0xff]  }
 0x4b9   :  { %7558 = vmatprep.subr.bf16.mxu0 %v20303_v63  ;;  %v20371_v63 = vld [vmem:[%s27058_s5 + $0x150] ss:$20 sps:$4 sm:$0xff]  }
 0x4ba   :  { %17619 = vmatpush3.bf16.msra.mxu1 %v20320_v9  ;;  %v27070_v9 = vsub.s32 4, %v21869_v14 }
 0x4bb   :  { %7494 = vmatmul.mubr.bf16.gmra.mrb[116].mxu0 %v23065_v17  ;;  %17620 = vmatprep.subr.bf16.mxu1 %v20324_v27  ;;  %v4919_v27 = vsub.s32 5, %v21869_v14 }
 0x4bc   :  { %7503 = vmatprep.mubr.bf16.mxu0 %v23095_v32  ;;  %7559 = vmatpush1.bf16.msra.mxu0 %v20301_v2  ;;  %v21213_v2 = vld [vmem:[#allocation7] sm:$0x3f] }
 0x4bd   :  { %8228 = vmatmul.mubr.bf16.gmra.mrb[160].mxu1 %v22962_v23  ;;  %7560 = vmatprep.subr.bf16.mxu0 %v20306_v34  ;;  %v23673_v34 = vrot.slane %v21213_v2, %v27070_v9 }
 0x4be   :  { %8235 = vmatprep.mubr.bf16.mxu1 %v22986_v41  ;;  %17621 = vmatpush3.bf16.msra.mxu1 %v20325_v35  ;;  %v23676_v35 = vrot.slane %v21213_v2, %v4919_v27 }
 0x4bf   :  { %17622 = vmatprep.subr.bf16.mxu1 %v20329_v37 }
 0x4c0   :  { %7561 = vmatpush1.bf16.msra.mxu0 %v20304_v11 }
 0x4c1   :  { %7562 = vmatprep.subr.bf16.mxu0 %v20311_v46 }
 0x4c2   :  { %17623 = vmatpush3.bf16.msra.mxu1 %v20330_v4 }
 0x4c3   :  { %7504 = vmatmul.mubr.bf16.gmra.mrb[120].mxu0 %v23090_v62  ;;  %17624 = vmatprep.subr.bf16.mxu1 %v20334_v21 }
 0x4c4   :  { %7513 = vmatprep.mubr.bf16.mxu0 %v23117_v50  ;;  %7563 = vmatpush1.bf16.msra.mxu0 %v20309_v18 }
 0x4c5   :  { %8236 = vmatmul.mubr.bf16.gmra.mrb[164].mxu1 %v22984_v39  ;;  %7564 = vmatprep.subr.bf16.mxu0 %v20317_v47 }
 0x4c6   :  { %8243 = vmatprep.mubr.bf16.mxu1 %v23005_v44  ;;  %17625 = vmatpush3.bf16.msra.mxu1 %v20335_v29 }
 0x4c7   :  { %17626 = vmatprep.subr.bf16.mxu1 %v20336_v22 }
 0x4c8   :  { %7565 = vmatpush1.bf16.msra.mxu0 %v20315_v1 }
 0x4c9   :  { %7667 = vmatprep.subr.bf16.mxu0 %v20323_v55 }
 0x4ca   :  { %17627 = vmatpush3.bf16.msra.mxu1 %v20340_v3 }
 0x4cb   :  { %7514 = vmatmul.mubr.bf16.gmra.mrb[124].mxu0 %v23112_v36  ;;  %17688 = vmatprep.subr.bf16.mxu1 %v20371_v63 }
 0x4cc   :  { %7523 = vmatprep.mubr.bf16.mxu0 %v23130_v12 }
 0x4cd   :  { %8244 = vmatmul.mubr.bf16.gmra.mrb[168].mxu1 %v23003_v5 }
 0x4ce   :  { %8251 = vmatprep.mubr.bf16.mxu1 %v23039_v42 }
 0x4d3   :  { %7524 = vmatmul.mubr.bf16.gmra.mrb[128].mxu0 %v23128_v0 }
 0x4d5   :  { %8252 = vmatmul.mubr.bf16.gmra.mrb[172].mxu1 %v23031_v19 }
 0x4d6   :  { %8259 = vmatprep.mubr.bf16.mxu1 %v23073_v57 }
 0x4d8   :  { %v4786_v37 = vpop.f32.mrb[68].mxu1 }
 0x4d9   :  { %v4931_v11 = vadd.f32 %v23673_v34, %v4786_v37  ;;  %v4788_v46 = vpop.f32.mrb[69].mxu1 }
 0x4da   :  { %v4932_v4 = vadd.f32 %v23676_v35, %v4788_v46  ;;  %v4790_v21 = vpop.f32.mrb[70].mxu1 }
 0x4db   :  { %v4937_v18 = vadd.f32 %v23673_v34, %v4790_v21  ;;  %v4792_v47 = vpop.f32.mrb[71].mxu1  ;;  %v5063_v22 = vmax.f32 %v4931_v11, 0.0 }
 0x4dc   :  { %v4938_v29 = vadd.f32 %v23676_v35, %v4792_v47  ;;  %v5064_v55 = vmax.f32 %v4932_v4, 0.0 }
 0x4dd   :  { %v5069_v1 = vmax.f32 %v4937_v18, 0.0  ;;  %8260 = vmatmul.mubr.bf16.gmra.mrb[176].mxu1 %v23065_v17 }
 0x4de   :  { %v5070_v3 = vmax.f32 %v4938_v29, 0.0  ;;  %8267 = vmatprep.mubr.bf16.mxu1 %v23095_v32 }
 0x4df   :  { %v23684_v63 = vpack.c.bf16 %v5069_v1, %v5063_v22 }
 0x4e0   :  { %v4796_v27 = vpop.f32.mrb[72].mxu1  ;;  %v23686_v2 = vpack.c.bf16 %v5070_v3, %v5064_v55 }
 0x4e1   :  { %27197 = vst [vmem:[#allocation46_spill] sm:$0xff] %v23684_v63  ;;  %v4943_v37 = vadd.f32 %v23673_v34, %v4796_v27  ;;  %v4798_v46 = vpop.f32.mrb[73].mxu1 }
 0x4e2   :  { %27198 = vst [vmem:[#allocation47_spill] sm:$0xff] %v23686_v2  ;;  %v4944_v21 = vadd.f32 %v23676_v35, %v4798_v46  ;;  %v4800_v9 = vpop.f32.mrb[74].mxu1 }
 0x4e3   :  { %v4949_v11 = vadd.f32 %v23673_v34, %v4800_v9  ;;  %v4802_v18 = vpop.f32.mrb[75].mxu1  ;;  %v5075_v4 = vmax.f32 %v4943_v37, 0.0  ;;  %v20321_v9 = vld [vmem:[%s27058_s5 + $0x788] ss:$20 sps:$4 sm:$0xff]  }
 0x4e4   :  { %v4950_v47 = vadd.f32 %v23676_v35, %v4802_v18  ;;  %v5076_v22 = vmax.f32 %v4944_v21, 0.0  ;;  %v20328_v37 = vld [vmem:[%s27058_s5 + $0x7b4] ss:$20 sps:$4 sm:$0xff]  }
 0x4e5   :  { %v5081_v29 = vmax.f32 %v4949_v11, 0.0  ;;  %8268 = vmatmul.mubr.bf16.gmra.mrb[180].mxu1 %v23090_v62 }
 0x4e6   :  { %v5082_v1 = vmax.f32 %v4950_v47, 0.0  ;;  %8275 = vmatprep.mubr.bf16.mxu1 %v23117_v50 }
 0x4e7   :  { %v23694_v55 = vpack.c.bf16 %v5081_v29, %v5075_v4 }
 0x4e8   :  { %v23696_v3 = vpack.c.bf16 %v5082_v1, %v5076_v22  ;;  %v4806_v27 = vpop.f32.mrb[76].mxu1  ;;  %v20326_v22 = vld [vmem:[%s27058_s5 + $0x7b0] ss:$20 sps:$4 sm:$0xff]  }
 0x4e9   :  { %27199 = vst [vmem:[#allocation48_spill] sm:$0xff] %v23694_v55  ;;  %v4955_v46 = vadd.f32 %v23673_v34, %v4806_v27  ;;  %v4808_v18 = vpop.f32.mrb[77].mxu1 }
 0x4ea   :  { %27200 = vst [vmem:[#allocation49_spill] sm:$0xff] %v23696_v3  ;;  %v4956_v21 = vadd.f32 %v23676_v35, %v4808_v18  ;;  %v4810_v11 = vpop.f32.mrb[78].mxu1  ;;  %7566 = vmatprep.mubr.bf16.mxu0 %v23696_v3  ;;  %v20333_v18 = vld [vmem:[%s27058_s5 + $0x7dc] ss:$20 sps:$4 sm:$0xff]  }
 0x4eb   :  { %v4961_v47 = vadd.f32 %v23673_v34, %v4810_v11  ;;  %v4812_v4 = vpop.f32.mrb[79].mxu1  ;;  %7567 = vmatmul.mubr.bf16.vlgmr.msra.gmra.mrb[92].mxu0 %v23694_v55  ;;  %v5087_v1 = vmax.f32 %v4955_v46, 0.0  ;;  %v20331_v46 = vld [vmem:[%s27058_s5 + $0x7d8] ss:$20 sps:$4 sm:$0xff]  }
 0x4ec   :  { %v4962_v29 = vadd.f32 %v23676_v35, %v4812_v4  ;;  %7668 = vmatpush1.bf16.msra.mxu0 %v20321_v9  ;;  %v5088_v11 = vmax.f32 %v4956_v21, 0.0  ;;  %v20339_v21 = vld [vmem:[%s27058_s5 + $0x804] ss:$20 sps:$4 sm:$0xff]  }
 0x4ed   :  { %v5093_v27 = vmax.f32 %v4961_v47, 0.0  ;;  %8276 = vmatmul.mubr.bf16.gmra.mrb[184].mxu1 %v23112_v36  ;;  %7669 = vmatprep.subr.bf16.mxu0 %v20328_v37 }
 0x4ee   :  { %v5094_v45 = vmax.f32 %v4962_v29, 0.0  ;;  %8283 = vmatprep.mubr.bf16.mxu1 %v23130_v12 }
 0x4ef   :  { %v23718_v43 = vpack.c.bf16 %v5093_v27, %v5087_v1 }
 0x4f0   :  { %v23720_v9 = vpack.c.bf16 %v5094_v45, %v5088_v11  ;;  %v4816_v4 = vpop.f32.mrb[80].mxu1  ;;  %7670 = vmatpush1.bf16.msra.mxu0 %v20326_v22 }
 0x4f1   :  { %27201 = vst [vmem:[#allocation50_spill] sm:$0xff] %v23718_v43  ;;  %v4967_v37 = vadd.f32 %v23673_v34, %v4816_v4  ;;  %v4818_v47 = vpop.f32.mrb[81].mxu1  ;;  %7671 = vmatprep.subr.bf16.mxu0 %v20333_v18  ;;  %v20337_v18 = vld [vmem:[%s27058_s5 + $0x800] ss:$20 sps:$4 sm:$0xff]  }
 0x4f2   :  { %27202 = vst [vmem:[#allocation51_spill] sm:$0xff] %v23720_v9  ;;  %v4968_v29 = vadd.f32 %v23676_v35, %v4818_v47  ;;  %v4820_v1 = vpop.f32.mrb[82].mxu1  ;;  %7576 = vmatprep.mubr.bf16.mxu0 %v23720_v9  ;;  %v20343_v47 = vld [vmem:[%s27058_s5 + $0x82c] ss:$20 sps:$4 sm:$0xff]  }
 0x4f3   :  { %v4973_v45 = vadd.f32 %v23673_v34, %v4820_v1  ;;  %v4822_v22 = vpop.f32.mrb[83].mxu1  ;;  %7577 = vmatmul.mubr.bf16.gmra.mrb[96].mxu0 %v23718_v43  ;;  %v5099_v11 = vmax.f32 %v4967_v37, 0.0  ;;  %v20341_v37 = vld [vmem:[%s27058_s5 + $0x828] ss:$20 sps:$4 sm:$0xff]  }
 0x4f4   :  { %v4974_v27 = vadd.f32 %v23676_v35, %v4822_v22  ;;  %7672 = vmatpush1.bf16.msra.mxu0 %v20331_v46  ;;  %v5100_v1 = vmax.f32 %v4968_v29, 0.0  ;;  %v20346_v29 = vld [vmem:[%s27058_s5 + $0x854] ss:$20 sps:$4 sm:$0xff]  }
 0x4f5   :  { %v5105_v4 = vmax.f32 %v4973_v45, 0.0  ;;  %8284 = vmatmul.mubr.bf16.gmra.mrb[188].mxu1 %v23128_v0  ;;  %7673 = vmatprep.subr.bf16.mxu0 %v20339_v21 }
 0x4f6   :  { %v5106_v14 = vmax.f32 %v4974_v27, 0.0  ;;  %8324 = vmatprep.mubr.bf16.mxu1 %v23696_v3 }
 0x4f7   :  { %v23742_v63 = vpack.c.bf16 %v5105_v4, %v5099_v11 }
 0x4f8   :  { %v23744_v46 = vpack.c.bf16 %v5106_v14, %v5100_v1  ;;  %v4826_v22 = vpop.f32.mrb[84].mxu1  ;;  %7674 = vmatpush1.bf16.msra.mxu0 %v20337_v18  ;;  %v20372_v14 = vld [vmem:[%s27058_s5 + $0x10] ss:$20 sps:$4 sm:$0xff]  }
 0x4f9   :  { %27203 = vst [vmem:[#allocation52_spill] sm:$0xff] %v23742_v63  ;;  %v4979_v21 = vadd.f32 %v23673_v34, %v4826_v22  ;;  %v4828_v45 = vpop.f32.mrb[85].mxu1  ;;  %7675 = vmatprep.subr.bf16.mxu0 %v20343_v47  ;;  %v20376_v47 = vld [vmem:[%s27058_s5 + $0x178] ss:$20 sps:$4 sm:$0xff]   ;;  %v20344_v22 = vld [vmem:[%s27058_s5 + $0x850] ss:$20 sps:$4 sm:$0xff]  }
 0x4fa   :  { %27204 = vst [vmem:[#allocation53_spill] sm:$0xff] %v23744_v46  ;;  %v4980_v27 = vadd.f32 %v23676_v35, %v4828_v45  ;;  %v4830_v11 = vpop.f32.mrb[86].mxu1  ;;  %7586 = vmatprep.mubr.bf16.mxu0 %v23744_v46 }
 0x4fb   :  { %v4985_v18 = vadd.f32 %v23673_v34, %v4830_v11  ;;  %v4832_v4 = vpop.f32.mrb[87].mxu1  ;;  %7587 = vmatmul.mubr.bf16.gmra.mrb[100].mxu0 %v23742_v63  ;;  %v5111_v45 = vmax.f32 %v4979_v21, 0.0  ;;  %v20349_v11 = vld [vmem:[%s27058_s5 + $0x87c] ss:$20 sps:$4 sm:$0xff]   ;;  %v20378_v21 = vld [vmem:[%s27058_s5 + $0x1a0] ss:$20 sps:$4 sm:$0xff]  }
 0x4fc   :  { %v4986_v1 = vadd.f32 %v23676_v35, %v4832_v4  ;;  %7676 = vmatpush1.bf16.msra.mxu0 %v20341_v37  ;;  %v5112_v3 = vmax.f32 %v4980_v27, 0.0  ;;  %v20377_v37 = vld [vmem:[%s27058_s5 + $0x38] ss:$20 sps:$4 sm:$0xff]  }
 0x4fd   :  { %v5117_v2 = vmax.f32 %v4985_v18, 0.0  ;;  %8325 = vmatmul.mubr.bf16.vlgmr.msra.gmra.mrb[192].mxu1 %v23694_v55  ;;  %7677 = vmatprep.subr.bf16.mxu0 %v20346_v29  ;;  %v20347_v27 = vld [vmem:[%s27058_s5 + $0x878] ss:$20 sps:$4 sm:$0xff]  }
 0x4fe   :  { %v5118_v0 = vmax.f32 %v4986_v1, 0.0  ;;  %8332 = vmatprep.mubr.bf16.mxu1 %v23720_v9  ;;  %17689 = vmatpush3.bf16.msra.mxu1 %v20372_v14 }
 0x4ff   :  { %v23775_v4 = vpack.c.bf16 %v5117_v2, %v5111_v45  ;;  %17690 = vmatprep.subr.bf16.mxu1 %v20376_v47  ;;  %v20352_v2 = vld [vmem:[%s27058_s5 + $0x8a4] ss:$20 sps:$4 sm:$0xff]  }
 0x500   :  { %v23780_v29 = vpack.c.bf16 %v5118_v0, %v5112_v3  ;;  %v4836_v18 = vpop.f32.mrb[88].mxu1  ;;  %7678 = vmatpush1.bf16.msra.mxu0 %v20344_v22  ;;  %v20382_v0 = vld [vmem:[%s27058_s5 + $0x60] ss:$20 sps:$4 sm:$0xff]  }
 0x501   :  { %v4991_v14 = vadd.f32 %v23673_v34, %v4836_v18  ;;  %v4838_v1 = vpop.f32.mrb[89].mxu1  ;;  %7679 = vmatprep.subr.bf16.mxu0 %v20349_v11  ;;  %v20383_v11 = vld [vmem:[%s27058_s5 + $0x1c8] ss:$20 sps:$4 sm:$0xff]  }
 0x502   :  { %27205 = vst [vmem:[#allocation54_spill] sm:$0xff] %v23780_v29  ;;  %v4992_v47 = vadd.f32 %v23676_v35, %v4838_v1  ;;  %v4840_v45 = vpop.f32.mrb[90].mxu1  ;;  %7596 = vmatprep.mubr.bf16.mxu0 %v23780_v29  ;;  %17691 = vmatpush3.bf16.msra.mxu1 %v20377_v37  ;;  %v20350_v37 = vld [vmem:[%s27058_s5 + $0x8a0] ss:$20 sps:$4 sm:$0xff]  }
 0x503   :  { %v4997_v3 = vadd.f32 %v23673_v34, %v4840_v45  ;;  %v4842_v22 = vpop.f32.mrb[91].mxu1  ;;  %7597 = vmatmul.mubr.bf16.gmra.mrb[104].mxu0 %v23775_v4  ;;  %17692 = vmatprep.subr.bf16.mxu1 %v20378_v21  ;;  %v5123_v1 = vmax.f32 %v4991_v14, 0.0  ;;  %v20355_v21 = vld [vmem:[%s27058_s5 + $0x8cc] ss:$20 sps:$4 sm:$0xff]   ;;  %v20388_v14 = vld [vmem:[%s27058_s5 + $0x1f0] ss:$20 sps:$4 sm:$0xff]  }
 0x504   :  { %v4998_v18 = vadd.f32 %v23676_v35, %v4842_v22  ;;  %7680 = vmatpush1.bf16.msra.mxu0 %v20347_v27  ;;  %v5124_v45 = vmax.f32 %v4992_v47, 0.0  ;;  %v20384_v27 = vld [vmem:[%s27058_s5 + $0x88] ss:$20 sps:$4 sm:$0xff]  }
 0x505   :  { %v5129_v9 = vmax.f32 %v4997_v3, 0.0  ;;  %8333 = vmatmul.mubr.bf16.gmra.mrb[196].mxu1 %v23718_v43  ;;  %7681 = vmatprep.subr.bf16.mxu0 %v20352_v2  ;;  %v20353_v47 = vld [vmem:[%s27058_s5 + $0x8c8] ss:$20 sps:$4 sm:$0xff]  }
 0x506   :  { %v5130_v55 = vmax.f32 %v4998_v18, 0.0  ;;  %8340 = vmatprep.mubr.bf16.mxu1 %v23744_v46  ;;  %17693 = vmatpush3.bf16.msra.mxu1 %v20382_v0 }
 0x507   :  { %v23811_v22 = vpack.c.bf16 %v5129_v9, %v5123_v1  ;;  %17694 = vmatprep.subr.bf16.mxu1 %v20383_v11  ;;  %v20358_v9 = vld [vmem:[%s27058_s5 + $0x8f4] ss:$20 sps:$4 sm:$0xff]  }
 0x508   :  { %v23816_v2 = vpack.c.bf16 %v5130_v55, %v5124_v45  ;;  %v4846_v3 = vpop.f32.mrb[92].mxu1  ;;  %7682 = vmatpush1.bf16.msra.mxu0 %v20350_v37  ;;  %v20389_v55 = vld [vmem:[%s27058_s5 + $0xb0] ss:$20 sps:$4 sm:$0xff]  }
 0x509   :  { %27206 = vst [vmem:[#allocation55_spill] sm:$0xff] %v23811_v22  ;;  %v5003_v0 = vadd.f32 %v23673_v34, %v4846_v3  ;;  %v4848_v18 = vpop.f32.mrb[93].mxu1  ;;  %7683 = vmatprep.subr.bf16.mxu0 %v20355_v21  ;;  %v20393_v21 = vld [vmem:[%s27058_s5 + $0x218] ss:$20 sps:$4 sm:$0xff]  }
 0x50a   :  { %27207 = vst [vmem:[#allocation56_spill] sm:$0xff] %v23816_v2  ;;  %v5004_v11 = vadd.f32 %v23676_v35, %v4848_v18  ;;  %v4850_v1 = vpop.f32.mrb[94].mxu1  ;;  %7606 = vmatprep.mubr.bf16.mxu0 %v23816_v2  ;;  %17695 = vmatpush3.bf16.msra.mxu1 %v20384_v27  ;;  %v20356_v27 = vld [vmem:[%s27058_s5 + $0x8f0] ss:$20 sps:$4 sm:$0xff]  }
 0x50b   :  { %v5009_v37 = vadd.f32 %v23673_v34, %v4850_v1  ;;  %v4852_v45 = vpop.f32.mrb[95].mxu1  ;;  %7607 = vmatmul.mubr.bf16.gmra.mrb[108].mxu0 %v23811_v22  ;;  %17696 = vmatprep.subr.bf16.mxu1 %v20388_v14  ;;  %v5135_v18 = vmax.f32 %v5003_v0, 0.0  ;;  %v20361_v14 = vld [vmem:[%s27058_s5 + $0x91c] ss:$20 sps:$4 sm:$0xff]   ;;  %v20398_v0 = vld [vmem:[%s27058_s5 + $0x240] ss:$20 sps:$4 sm:$0xff]  }
 0x50c   :  { %v5010_v3 = vadd.f32 %v23676_v35, %v4852_v45  ;;  %7684 = vmatpush1.bf16.msra.mxu0 %v20353_v47  ;;  %v5136_v1 = vmax.f32 %v5004_v11, 0.0  ;;  %v20394_v47 = vld [vmem:[%s27058_s5 + $0xd8] ss:$20 sps:$4 sm:$0xff]  }
 0x50d   :  { %v5141_v46 = vmax.f32 %v5009_v37, 0.0  ;;  %8341 = vmatmul.mubr.bf16.gmra.mrb[200].mxu1 %v23742_v63  ;;  %7685 = vmatprep.subr.bf16.mxu0 %v20358_v9  ;;  %v20359_v11 = vld [vmem:[%s27058_s5 + $0x918] ss:$20 sps:$4 sm:$0xff]  }
 0x50e   :  { %v5142_v43 = vmax.f32 %v5010_v3, 0.0  ;;  %8348 = vmatprep.mubr.bf16.mxu1 %v23780_v29  ;;  %17697 = vmatpush3.bf16.msra.mxu1 %v20389_v55 }
 0x50f   :  { %v23847_v45 = vpack.c.bf16 %v5141_v46, %v5135_v18  ;;  %17698 = vmatprep.subr.bf16.mxu1 %v20393_v21  ;;  %v20364_v46 = vld [vmem:[%s27058_s5 + $0x944] ss:$20 sps:$4 sm:$0xff]  }
 0x510   :  { %v23852_v9 = vpack.c.bf16 %v5142_v43, %v5136_v1  ;;  %v4856_v37 = vpop.f32.mrb[96].mxu1  ;;  %7686 = vmatpush1.bf16.msra.mxu0 %v20356_v27  ;;  %v20399_v43 = vld [vmem:[%s27058_s5 + $0x100] ss:$20 sps:$4 sm:$0xff]  }
 0x511   :  { %27208 = vst [vmem:[#allocation57_spill] sm:$0xff] %v23847_v45  ;;  %v5015_v55 = vadd.f32 %v23673_v34, %v4856_v37  ;;  %v4858_v3 = vpop.f32.mrb[97].mxu1  ;;  %7687 = vmatprep.subr.bf16.mxu0 %v20361_v14  ;;  %v20400_v14 = vld [vmem:[%s27058_s5 + $0x268] ss:$20 sps:$4 sm:$0xff]  }
 0x512   :  { %27209 = vst [vmem:[#allocation58_spill] sm:$0xff] %v23852_v9  ;;  %v5016_v21 = vadd.f32 %v23676_v35, %v4858_v3  ;;  %v4860_v18 = vpop.f32.mrb[98].mxu1  ;;  %7616 = vmatprep.mubr.bf16.mxu0 %v23852_v9  ;;  %17699 = vmatpush3.bf16.msra.mxu1 %v20394_v47  ;;  %v20362_v47 = vld [vmem:[%s27058_s5 + $0x940] ss:$20 sps:$4 sm:$0xff]  }
 0x513   :  { %v5021_v27 = vadd.f32 %v23673_v34, %v4860_v18  ;;  %v4862_v1 = vpop.f32.mrb[99].mxu1  ;;  %7617 = vmatmul.mubr.bf16.gmra.mrb[112].mxu0 %v23847_v45  ;;  %17700 = vmatprep.subr.bf16.mxu1 %v20398_v0  ;;  %v5147_v3 = vmax.f32 %v5015_v55, 0.0  ;;  %v20367_v0 = vld [vmem:[%s27058_s5 + $0x96c] ss:$20 sps:$4 sm:$0xff]   ;;  %v20435_v55 = vld [vmem:[%s27058_s5 + $0x3d0] ss:$20 sps:$4 sm:$0xff]  }
 0x514   :  { %v5022_v37 = vadd.f32 %v23676_v35, %v4862_v1  ;;  %7688 = vmatpush1.bf16.msra.mxu0 %v20359_v11  ;;  %v5148_v18 = vmax.f32 %v5016_v21, 0.0  ;;  %v20404_v11 = vld [vmem:[%s27058_s5 + $0x128] ss:$20 sps:$4 sm:$0xff]  }
 0x515   :  { %v5153_v29 = vmax.f32 %v5021_v27, 0.0  ;;  %8349 = vmatmul.mubr.bf16.gmra.mrb[204].mxu1 %v23775_v4  ;;  %7689 = vmatprep.subr.bf16.mxu0 %v20364_v46  ;;  %v20365_v21 = vld [vmem:[%s27058_s5 + $0x968] ss:$20 sps:$4 sm:$0xff]  }
 0x516   :  { %v5154_v63 = vmax.f32 %v5022_v37, 0.0  ;;  %8356 = vmatprep.mubr.bf16.mxu1 %v23816_v2  ;;  %17701 = vmatpush3.bf16.msra.mxu1 %v20399_v43 }
 0x517   :  { %v23883_v1 = vpack.c.bf16 %v5153_v29, %v5147_v3  ;;  %17702 = vmatprep.subr.bf16.mxu1 %v20400_v14  ;;  %v20370_v29 = vld [vmem:[%s27058_s5 + $0x994] ss:$20 sps:$4 sm:$0xff]  }
 0x518   :  { %v23888_v46 = vpack.c.bf16 %v5154_v63, %v5148_v18  ;;  %v4866_v27 = vpop.f32.mrb[100].mxu1  ;;  %7690 = vmatpush1.bf16.msra.mxu0 %v20362_v47 }
 0x519   :  { %v5027_v43 = vadd.f32 %v23673_v34, %v4866_v27  ;;  %v4868_v37 = vpop.f32.mrb[101].mxu1  ;;  %7691 = vmatprep.subr.bf16.mxu0 %v20367_v0  ;;  %v20368_v0 = vld [vmem:[%s27058_s5 + $0x990] ss:$20 sps:$4 sm:$0xff]  }
 0x51a   :  { %27210 = vst [vmem:[#allocation59_spill] sm:$0xff] %v23888_v46  ;;  %v5028_v14 = vadd.f32 %v23676_v35, %v4868_v37  ;;  %v4870_v3 = vpop.f32.mrb[102].mxu1  ;;  %7626 = vmatprep.mubr.bf16.mxu0 %v23888_v46  ;;  %17703 = vmatpush3.bf16.msra.mxu1 %v20404_v11  ;;  %v20375_v11 = vld [vmem:[%s27058_s5 + $0x9bc] ss:$20 sps:$4 sm:$0xff]  }
 0x51b   :  { %v5033_v63 = vadd.f32 %v23673_v34, %v4870_v3  ;;  %v4872_v47 = vpop.f32.mrb[103].mxu1  ;;  %7627 = vmatmul.mubr.bf16.gmra.mrb[116].mxu0 %v23883_v1  ;;  %17764 = vmatprep.subr.bf16.mxu1 %v20435_v55  ;;  %v5159_v27 = vmax.f32 %v5027_v43, 0.0  ;;  %v20373_v43 = vld [vmem:[%s27058_s5 + $0x9b8] ss:$20 sps:$4 sm:$0xff]  }
 0x51c   :  { %v5034_v18 = vadd.f32 %v23676_v35, %v4872_v47  ;;  %7692 = vmatpush1.bf16.msra.mxu0 %v20365_v21  ;;  %v5160_v37 = vmax.f32 %v5028_v14, 0.0  ;;  %v20381_v14 = vld [vmem:[%s27058_s5 + $0x9e4] ss:$20 sps:$4 sm:$0xff]  }
 0x51d   :  { %v5165_v2 = vmax.f32 %v5033_v63, 0.0  ;;  %8357 = vmatmul.mubr.bf16.gmra.mrb[208].mxu1 %v23811_v22  ;;  %7693 = vmatprep.subr.bf16.mxu0 %v20370_v29 }
 0x51e   :  { %v5166_v3 = vmax.f32 %v5034_v18, 0.0  ;;  %8364 = vmatprep.mubr.bf16.mxu1 %v23852_v9 }
 0x51f   :  { %v23910_v55 = vpack.c.bf16 %v5165_v2, %v5159_v27 }
 0x520   :  { %v23912_v21 = vpack.c.bf16 %v5166_v3, %v5160_v37  ;;  %v4876_v47 = vpop.f32.mrb[104].mxu1  ;;  %7694 = vmatpush1.bf16.msra.mxu0 %v20368_v0 }
 0x521   :  { %v5039_v29 = vadd.f32 %v23673_v34, %v4876_v47  ;;  %v4878_v63 = vpop.f32.mrb[105].mxu1  ;;  %7695 = vmatprep.subr.bf16.mxu0 %v20375_v11  ;;  %v20379_v11 = vld [vmem:[%s27058_s5 + $0x9e0] ss:$20 sps:$4 sm:$0xff]  }
 0x522   :  { %v5040_v18 = vadd.f32 %v23676_v35, %v4878_v63  ;;  %v4880_v2 = vpop.f32.mrb[106].mxu1  ;;  %7636 = vmatprep.mubr.bf16.mxu0 %v23912_v21  ;;  %v20387_v63 = vld [vmem:[%s27058_s5 + $0xa0c] ss:$20 sps:$4 sm:$0xff]  }
 0x523   :  { %v5045_v27 = vadd.f32 %v23673_v34, %v4880_v2  ;;  %v4882_v0 = vpop.f32.mrb[107].mxu1  ;;  %7637 = vmatmul.mubr.bf16.gmra.mrb[120].mxu0 %v23910_v55  ;;  %v5171_v3 = vmax.f32 %v5039_v29, 0.0 }
 0x524   :  { %v5046_v37 = vadd.f32 %v23676_v35, %v4882_v0  ;;  %7696 = vmatpush1.bf16.msra.mxu0 %v20373_v43  ;;  %v5172_v2 = vmax.f32 %v5040_v18, 0.0 }
 0x525   :  { %v5177_v47 = vmax.f32 %v5045_v27, 0.0  ;;  %8365 = vmatmul.mubr.bf16.gmra.mrb[212].mxu1 %v23847_v45  ;;  %7697 = vmatprep.subr.bf16.mxu0 %v20381_v14 }
 0x526   :  { %v5178_v9 = vmax.f32 %v5046_v37, 0.0  ;;  %8372 = vmatprep.mubr.bf16.mxu1 %v23888_v46 }
 0x527   :  { %v23934_v22 = vpack.c.bf16 %v5177_v47, %v5171_v3 }
 0x528   :  { %v23936_v43 = vpack.c.bf16 %v5178_v9, %v5172_v2  ;;  %v4886_v0 = vpop.f32.mrb[108].mxu1  ;;  %7698 = vmatpush1.bf16.msra.mxu0 %v20379_v11 }
 0x529   :  { %27211 = vst [vmem:[#allocation60_spill] sm:$0xff] %v23934_v22  ;;  %v5051_v29 = vadd.f32 %v23673_v34, %v4886_v0  ;;  %v4888_v27 = vpop.f32.mrb[109].mxu1  ;;  %7800 = vmatprep.subr.bf16.mxu0 %v20387_v63 }
 0x52a   :  { %v5052_v14 = vadd.f32 %v23676_v35, %v4888_v27  ;;  %v4890_v45 = vpop.f32.mrb[110].mxu1  ;;  %7646 = vmatprep.mubr.bf16.mxu0 %v23936_v43 }
 0x52b   :  { %v5057_v18 = vadd.f32 %v23673_v34, %v4890_v45  ;;  %v4892_v37 = vpop.f32.mrb[111].mxu1  ;;  %7647 = vmatmul.mubr.bf16.gmra.mrb[124].mxu0 %v23934_v22  ;;  %v5183_v9 = vmax.f32 %v5051_v29, 0.0 }
 0x52c   :  { %v5058_v3 = vadd.f32 %v23676_v35, %v4892_v37  ;;  %v5184_v11 = vmax.f32 %v5052_v14, 0.0  ;;  %v20392_v37 = vld [vmem:[%s27058_s5 + $0xa34] ss:$20 sps:$4 sm:$0xff]  }
 0x52d   :  { %v5189_v47 = vmax.f32 %v5057_v18, 0.0  ;;  %8373 = vmatmul.mubr.bf16.gmra.mrb[216].mxu1 %v23883_v1 }
 0x52e   :  { %v5190_v2 = vmax.f32 %v5058_v3, 0.0  ;;  %8380 = vmatprep.mubr.bf16.mxu1 %v23912_v21 }
 0x52f   :  { %v23946_v63 = vpack.c.bf16 %v5189_v47, %v5183_v9 }
 0x530   :  { %v17476_v0 = vpop.f32.mrb[112].mxu1  ;;  %v23948_v27 = vpack.c.bf16 %v5190_v2, %v5184_v11  ;;  %v20390_v2 = vld [vmem:[%s27058_s5 + $0xa30] ss:$20 sps:$4 sm:$0xff]  }
 0x531   :  { %27212 = vst [vmem:[#allocation61_spill] sm:$0xff] %v23946_v63  ;;  %v17477_v46 = vpop.f32.mrb[113].mxu1 }
 0x532   :  { %27213 = vst [vmem:[#allocation62_spill] sm:$0xff] %v23948_v27  ;;  %v23950_v34 = vadd.f32 %v17477_v46, %v17476_v0  ;;  %7656 = vmatprep.mubr.bf16.mxu0 %v23948_v27  ;;  %v17479_v45 = vpop.f32.mrb[114].mxu1  ;;  %v20385_v46 = vld [vmem:[%s27058_s5 + $0xa08] ss:$20 sps:$4 sm:$0xff]  }
 0x533   :  { %7657 = vmatmul.mubr.bf16.gmra.mrb[128].mxu0 %v23946_v63  ;;  %v17480_v35 = vpop.f32.mrb[115].mxu1  ;;  %v20397_v0 = vld [vmem:[%s27058_s5 + $0xa5c] ss:$20 sps:$4 sm:$0xff]  }
 0x534   :  { %v23954_v29 = vadd.f32 %v17480_v35, %v17479_v45  ;;  %7699 = vmatprep.mubr.bf16.mxu0 %v23228_v16  ;;  %v20395_v35 = vld [vmem:[%s27058_s5 + $0xa58] ss:$20 sps:$4 sm:$0xff]  }
 0x535   :  { %8381 = vmatmul.mubr.bf16.gmra.mrb[220].mxu1 %v23910_v55 }
 0x536   :  { %8388 = vmatprep.mubr.bf16.mxu1 %v23936_v43 }
 0x538   :  { %v17482_v14 = vpop.f32.mrb[116].mxu1 }
 0x539   :  { %v17483_v18 = vpop.f32.mrb[117].mxu1 }
 0x53a   :  { %v23965_v3 = vadd.f32 %v17483_v18, %v17482_v14  ;;  %v17485_v9 = vpop.f32.mrb[118].mxu1 }
 0x53b   :  { %7700 = vmatmul.mubr.bf16.vlgmr.msra.gmra.mrb[132].mxu0 %v23226_v13  ;;  %v17486_v47 = vpop.f32.mrb[119].mxu1 }
 0x53c   :  { %v23968_v11 = vadd.f32 %v17486_v47, %v17485_v9  ;;  %7709 = vmatprep.mubr.bf16.mxu0 %v23252_v24  ;;  %7801 = vmatpush1.bf16.msra.mxu0 %v20385_v46  ;;  %v20403_v46 = vld [vmem:[%s27058_s5 + $0xa84] ss:$20 sps:$4 sm:$0xff]  }
 0x53d   :  { %8389 = vmatmul.mubr.bf16.gmra.mrb[224].mxu1 %v23934_v22  ;;  %7802 = vmatprep.subr.bf16.mxu0 %v20392_v37 }
 0x53e   :  { %8396 = vmatprep.mubr.bf16.mxu1 %v23948_v27 }
 0x540   :  { %v17488_v45 = vpop.f32.mrb[120].mxu1  ;;  %7803 = vmatpush1.bf16.msra.mxu0 %v20390_v2  ;;  %v20401_v2 = vld [vmem:[%s27058_s5 + $0xa80] ss:$20 sps:$4 sm:$0xff]  }
 0x541   :  { %v17489_v14 = vpop.f32.mrb[121].mxu1  ;;  %7804 = vmatprep.subr.bf16.mxu0 %v20397_v0  ;;  %v20407_v0 = vld [vmem:[%s27058_s5 + $0xaac] ss:$20 sps:$4 sm:$0xff]  }
 0x542   :  { %v23985_v18 = vadd.f32 %v17489_v14, %v17488_v45  ;;  %v17491_v37 = vpop.f32.mrb[122].mxu1  ;;  %v20405_v14 = vld [vmem:[%s27058_s5 + $0xaa8] ss:$20 sps:$4 sm:$0xff]  }
 0x543   :  { %7710 = vmatmul.mubr.bf16.gmra.mrb[136].mxu0 %v23250_v60  ;;  %v17492_v9 = vpop.f32.mrb[123].mxu1 }
 0x544   :  { %v23988_v47 = vadd.f32 %v17492_v9, %v17491_v37  ;;  %7719 = vmatprep.mubr.bf16.mxu0 %v23276_v38  ;;  %7805 = vmatpush1.bf16.msra.mxu0 %v20395_v35  ;;  %v20410_v37 = vld [vmem:[%s27058_s5 + $0xad4] ss:$20 sps:$4 sm:$0xff]  }
 0x545   :  { %8397 = vmatmul.mubr.bf16.gmra.mrb[228].mxu1 %v23946_v63  ;;  %7806 = vmatprep.subr.bf16.mxu0 %v20403_v46  ;;  %v20436_v63 = vld [vmem:[%s27058_s5 + $0x290] ss:$20 sps:$4 sm:$0xff]  }
 0x546   :  { %10483 = vmatprep.mubr.bf16.mxu1 %v23218_v6  ;;  %v20440_v6 = vld [vmem:[%s27058_s5 + $0x3f8] ss:$20 sps:$4 sm:$0xff]  }
 0x548   :  { %v17494_v45 = vpop.f32.mrb[124].mxu1  ;;  %7807 = vmatpush1.bf16.msra.mxu0 %v20401_v2 }
 0x549   :  { %v17495_v35 = vpop.f32.mrb[125].mxu1  ;;  %7808 = vmatprep.subr.bf16.mxu0 %v20407_v0  ;;  %v20408_v0 = vld [vmem:[%s27058_s5 + $0xad0] ss:$20 sps:$4 sm:$0xff]  }
 0x54a   :  { %v24005_v9 = vadd.f32 %v17495_v35, %v17494_v45  ;;  %v17497_v46 = vpop.f32.mrb[126].mxu1  ;;  %v20413_v45 = vld [vmem:[%s27058_s5 + $0xafc] ss:$20 sps:$4 sm:$0xff]   ;;  %v20441_v35 = vld [vmem:[%s27058_s5 + $0x2b8] ss:$20 sps:$4 sm:$0xff]  }
 0x54b   :  { %7720 = vmatmul.mubr.bf16.gmra.mrb[140].mxu0 %v23274_v40  ;;  %v17498_v2 = vpop.f32.mrb[127].mxu1 }
 0x54c   :  { %v24014_v27 = vadd.f32 %v17498_v2, %v17497_v46  ;;  %7729 = vmatprep.mubr.bf16.mxu0 %v23300_v31  ;;  %7809 = vmatpush1.bf16.msra.mxu0 %v20405_v14  ;;  %v20442_v14 = vld [vmem:[%s27058_s5 + $0x420] ss:$20 sps:$4 sm:$0xff]  }
 0x54d   :  { %10484 = vmatmul.mubr.bf16.vlgmr.msra.gmra.mrb[232].mxu1 %v23216_v56  ;;  %7810 = vmatprep.subr.bf16.mxu0 %v20410_v37  ;;  %v20411_v37 = vld [vmem:[%s27058_s5 + $0xaf8] ss:$20 sps:$4 sm:$0xff]  }
 0x54e   :  { %10491 = vmatprep.mubr.bf16.mxu1 %v23228_v16  ;;  %17765 = vmatpush3.bf16.msra.mxu1 %v20436_v63  ;;  %v20416_v63 = vld [vmem:[%s27058_s5 + $0xb24] ss:$20 sps:$4 sm:$0xff]  }
 0x54f   :  { %17766 = vmatprep.subr.bf16.mxu1 %v20440_v6  ;;  %v20446_v6 = vld [vmem:[%s27058_s5 + $0x2e0] ss:$20 sps:$4 sm:$0xff]  }
 0x550   :  { %v17500_v46 = vpop.f32.mrb[128].mxu1  ;;  %7811 = vmatpush1.bf16.msra.mxu0 %v20408_v0 }
 0x551   :  { %v17501_v2 = vpop.f32.mrb[129].mxu1  ;;  %7812 = vmatprep.subr.bf16.mxu0 %v20413_v45  ;;  %v20447_v45 = vld [vmem:[%s27058_s5 + $0x448] ss:$20 sps:$4 sm:$0xff]  }
 0x552   :  { %v24037_v16 = vadd.f32 %v17501_v2, %v17500_v46  ;;  %v17503_v56 = vpop.f32.mrb[130].mxu1  ;;  %17767 = vmatpush3.bf16.msra.mxu1 %v20441_v35  ;;  %v20414_v35 = vld [vmem:[%s27058_s5 + $0xb20] ss:$20 sps:$4 sm:$0xff]   ;;  %v20452_v46 = vld [vmem:[%s27058_s5 + $0x470] ss:$20 sps:$4 sm:$0xff]  }
 0x553   :  { %7730 = vmatmul.mubr.bf16.gmra.mrb[144].mxu0 %v23298_v20  ;;  %v17504_v0 = vpop.f32.mrb[131].mxu1  ;;  %17768 = vmatprep.subr.bf16.mxu1 %v20442_v14  ;;  %v20419_v14 = vld [vmem:[%s27058_s5 + $0xb4c] ss:$20 sps:$4 sm:$0xff]   ;;  %v20417_v2 = vld [vmem:[%s27058_s5 + $0xb48] ss:$20 sps:$4 sm:$0xff]  }
 0x554   :  { %v24046_v22 = vadd.f32 %v17504_v0, %v17503_v56  ;;  %7739 = vmatprep.mubr.bf16.mxu0 %v23324_v7  ;;  %7813 = vmatpush1.bf16.msra.mxu0 %v20411_v37  ;;  %v20448_v56 = vld [vmem:[%s27058_s5 + $0x308] ss:$20 sps:$4 sm:$0xff]  }
 0x555   :  { %10492 = vmatmul.mubr.bf16.gmra.mrb[236].mxu1 %v23226_v13  ;;  %7814 = vmatprep.subr.bf16.mxu0 %v20416_v63 }
 0x556   :  { %10499 = vmatprep.mubr.bf16.mxu1 %v23252_v24  ;;  %17769 = vmatpush3.bf16.msra.mxu1 %v20446_v6  ;;  %v20422_v6 = vld [vmem:[%s27058_s5 + $0xb74] ss:$20 sps:$4 sm:$0xff]  }
 0x557   :  { %17770 = vmatprep.subr.bf16.mxu1 %v20447_v45  ;;  %v20453_v45 = vld [vmem:[%s27058_s5 + $0x330] ss:$20 sps:$4 sm:$0xff]  }
 0x558   :  { %v17506_v37 = vpop.f32.mrb[132].mxu1  ;;  %7815 = vmatpush1.bf16.msra.mxu0 %v20414_v35 }
 0x559   :  { %v17507_v63 = vpop.f32.mrb[133].mxu1  ;;  %7816 = vmatprep.subr.bf16.mxu0 %v20419_v14  ;;  %v20457_v14 = vld [vmem:[%s27058_s5 + $0x498] ss:$20 sps:$4 sm:$0xff]  }
 0x55a   :  { %v24069_v0 = vadd.f32 %v17507_v63, %v17506_v37  ;;  %v17509_v24 = vpop.f32.mrb[134].mxu1  ;;  %17771 = vmatpush3.bf16.msra.mxu1 %v20448_v56  ;;  %v20420_v56 = vld [vmem:[%s27058_s5 + $0xb70] ss:$20 sps:$4 sm:$0xff]   ;;  %v20462_v37 = vld [vmem:[%s27058_s5 + $0x4c0] ss:$20 sps:$4 sm:$0xff]  }
 0x55b   :  { %7740 = vmatmul.mubr.bf16.gmra.mrb[148].mxu0 %v23322_v15  ;;  %v17510_v35 = vpop.f32.mrb[135].mxu1  ;;  %17772 = vmatprep.subr.bf16.mxu1 %v20452_v46  ;;  %v20425_v46 = vld [vmem:[%s27058_s5 + $0xb9c] ss:$20 sps:$4 sm:$0xff]   ;;  %v20423_v63 = vld [vmem:[%s27058_s5 + $0xb98] ss:$20 sps:$4 sm:$0xff]  }
 0x55c   :  { %v24078_v13 = vadd.f32 %v17510_v35, %v17509_v24  ;;  %7749 = vmatprep.mubr.bf16.mxu0 %v23360_v26  ;;  %7817 = vmatpush1.bf16.msra.mxu0 %v20417_v2  ;;  %v20458_v24 = vld [vmem:[%s27058_s5 + $0x358] ss:$20 sps:$4 sm:$0xff]  }
 0x55d   :  { %10500 = vmatmul.mubr.bf16.gmra.mrb[240].mxu1 %v23250_v60  ;;  %7818 = vmatprep.subr.bf16.mxu0 %v20422_v6 }
 0x55e   :  { %10507 = vmatprep.mubr.bf16.mxu1 %v23276_v38  ;;  %17773 = vmatpush3.bf16.msra.mxu1 %v20453_v45  ;;  %v20428_v45 = vld [vmem:[%s27058_s5 + $0xbc4] ss:$20 sps:$4 sm:$0xff]  }
 0x55f   :  { %17774 = vmatprep.subr.bf16.mxu1 %v20457_v14  ;;  %v20463_v14 = vld [vmem:[%s27058_s5 + $0x380] ss:$20 sps:$4 sm:$0xff]  }
 0x560   :  { %v17512_v2 = vpop.f32.mrb[136].mxu1  ;;  %7819 = vmatpush1.bf16.msra.mxu0 %v20420_v56 }
 0x561   :  { %v17513_v6 = vpop.f32.mrb[137].mxu1  ;;  %7820 = vmatprep.subr.bf16.mxu0 %v20425_v46  ;;  %v20464_v46 = vld [vmem:[%s27058_s5 + $0x4e8] ss:$20 sps:$4 sm:$0xff]  }
 0x562   :  { %v24101_v35 = vadd.f32 %v17513_v6, %v17512_v2  ;;  %v17515_v38 = vpop.f32.mrb[138].mxu1  ;;  %17775 = vmatpush3.bf16.msra.mxu1 %v20458_v24  ;;  %v20426_v24 = vld [vmem:[%s27058_s5 + $0xbc0] ss:$20 sps:$4 sm:$0xff]   ;;  %v20499_v2 = vld [vmem:[%s27058_s5 + $0x650] ss:$20 sps:$4 sm:$0xff]  }
 0x563   :  { %7750 = vmatmul.mubr.bf16.gmra.mrb[152].mxu0 %v23355_v53  ;;  %v17516_v56 = vpop.f32.mrb[139].mxu1  ;;  %17776 = vmatprep.subr.bf16.mxu1 %v20462_v37  ;;  %v20431_v37 = vld [vmem:[%s27058_s5 + $0xbec] ss:$20 sps:$4 sm:$0xff]   ;;  %v20429_v6 = vld [vmem:[%s27058_s5 + $0xbe8] ss:$20 sps:$4 sm:$0xff]  }
 0x564   :  { %v24110_v60 = vadd.f32 %v17516_v56, %v17515_v38  ;;  %7759 = vmatprep.mubr.bf16.mxu0 %v23396_v48  ;;  %7821 = vmatpush1.bf16.msra.mxu0 %v20423_v63  ;;  %v20468_v38 = vld [vmem:[%s27058_s5 + $0x3a8] ss:$20 sps:$4 sm:$0xff]  }
 0x565   :  { %10508 = vmatmul.mubr.bf16.gmra.mrb[244].mxu1 %v23274_v40  ;;  %7822 = vmatprep.subr.bf16.mxu0 %v20428_v45 }
 0x566   :  { %10515 = vmatprep.mubr.bf16.mxu1 %v23300_v31  ;;  %17777 = vmatpush3.bf16.msra.mxu1 %v20463_v14  ;;  %v20434_v14 = vld [vmem:[%s27058_s5 + $0xc14] ss:$20 sps:$4 sm:$0xff]  }
 0x567   :  { %17778 = vmatprep.subr.bf16.mxu1 %v20464_v46 }
 0x568   :  { %v17518_v63 = vpop.f32.mrb[140].mxu1  ;;  %7823 = vmatpush1.bf16.msra.mxu0 %v20426_v24  ;;  %v20432_v24 = vld [vmem:[%s27058_s5 + $0xc10] ss:$20 sps:$4 sm:$0xff]  }
 0x569   :  { %v17519_v45 = vpop.f32.mrb[141].mxu1  ;;  %7824 = vmatprep.subr.bf16.mxu0 %v20431_v37  ;;  %v20439_v37 = vld [vmem:[%s27058_s5 + $0xc3c] ss:$20 sps:$4 sm:$0xff]  }
 0x56a   :  { %v24133_v56 = vadd.f32 %v17519_v45, %v17518_v63  ;;  %v17521_v31 = vpop.f32.mrb[142].mxu1  ;;  %17779 = vmatpush3.bf16.msra.mxu1 %v20468_v38  ;;  %v20445_v63 = vld [vmem:[%s27058_s5 + $0xc64] ss:$20 sps:$4 sm:$0xff]  }
 0x56b   :  { %7760 = vmatmul.mubr.bf16.gmra.mrb[156].mxu0 %v23391_v61  ;;  %v17522_v46 = vpop.f32.mrb[143].mxu1  ;;  %17840 = vmatprep.subr.bf16.mxu1 %v20499_v2 }
 0x56c   :  { %v24136_v40 = vadd.f32 %v17522_v46, %v17521_v31  ;;  %7769 = vmatprep.mubr.bf16.mxu0 %v23432_v30  ;;  %7825 = vmatpush1.bf16.msra.mxu0 %v20429_v6  ;;  %v20437_v31 = vld [vmem:[%s27058_s5 + $0xc38] ss:$20 sps:$4 sm:$0xff]  }
 0x56d   :  { %10516 = vmatmul.mubr.bf16.gmra.mrb[248].mxu1 %v23298_v20  ;;  %7826 = vmatprep.subr.bf16.mxu0 %v20434_v14 }
 0x56e   :  { %10523 = vmatprep.mubr.bf16.mxu1 %v23324_v7 }
 0x570   :  { %v17524_v38 = vpop.f32.mrb[144].mxu1  ;;  %7827 = vmatpush1.bf16.msra.mxu0 %v20432_v24  ;;  %v20443_v24 = vld [vmem:[%s27058_s5 + $0xc60] ss:$20 sps:$4 sm:$0xff]  }
 0x571   :  { %v17525_v2 = vpop.f32.mrb[145].mxu1  ;;  %7828 = vmatprep.subr.bf16.mxu0 %v20439_v37  ;;  %v20451_v37 = vld [vmem:[%s27058_s5 + $0xc8c] ss:$20 sps:$4 sm:$0xff]  }
 0x572   :  { %v24153_v6 = vadd.f32 %v17525_v2, %v17524_v38  ;;  %v17527_v45 = vpop.f32.mrb[146].mxu1 }
 0x573   :  { %7770 = vmatmul.mubr.bf16.gmra.mrb[160].mxu0 %v23427_v49  ;;  %v17528_v14 = vpop.f32.mrb[147].mxu1 }
 0x574   :  { %v24156_v46 = vadd.f32 %v17528_v14, %v17527_v45  ;;  %7779 = vmatprep.mubr.bf16.mxu0 %v23468_v10  ;;  %7829 = vmatpush1.bf16.msra.mxu0 %v20437_v31 }
 0x575   :  { %10524 = vmatmul.mubr.bf16.gmra.mrb[252].mxu1 %v23322_v15  ;;  %7830 = vmatprep.subr.bf16.mxu0 %v20445_v63 }
 0x576   :  { %10531 = vmatprep.mubr.bf16.mxu1 %v23360_v26 }
 0x578   :  { %v17530_v38 = vpop.f32.mrb[148].mxu1  ;;  %7831 = vmatpush1.bf16.msra.mxu0 %v20443_v24 }
 0x579   :  { %v17531_v2 = vpop.f32.mrb[149].mxu1  ;;  %7933 = vmatprep.subr.bf16.mxu0 %v20451_v37 }
 0x57a   :  { %v24167_v45 = vadd.f32 %v17531_v2, %v17530_v38  ;;  %v17533_v31 = vpop.f32.mrb[150].mxu1 }
 0x57b   :  { %7780 = vmatmul.mubr.bf16.gmra.mrb[164].mxu0 %v23463_v52  ;;  %v17534_v14 = vpop.f32.mrb[151].mxu1 }
 0x57c   :  { %v24170_v7 = vadd.f32 %v17534_v14, %v17533_v31  ;;  %7789 = vmatprep.mubr.bf16.mxu0 %v23480_v59  ;;  %v20456_v14 = vld [vmem:[%s27058_s5 + $0xcb4] ss:$20 sps:$4 sm:$0xff]  }
 0x57d   :  { %10532 = vmatmul.mubr.bf16.gmra.mrb[0].mxu1 %v23355_v53 }
 0x57e   :  { %10539 = vmatprep.mubr.bf16.mxu1 %v23396_v48 }
 0x580   :  { %v17552_v63 = vpop.f32.mrb[152].mxu1 }
 0x581   :  { %v17553_v26 = vpop.f32.mrb[153].mxu1 }
 0x582   :  { %v17554_v15 = vadd.f32 %v17553_v26, %v17552_v63  ;;  %v17555_v24 = vpop.f32.mrb[154].mxu1  ;;  %v20449_v26 = vld [vmem:[%s27058_s5 + $0xc88] ss:$20 sps:$4 sm:$0xff]  }
 0x583   :  { %7790 = vmatmul.mubr.bf16.gmra.mrb[168].mxu0 %v23478_v58  ;;  %v17556_v37 = vpop.f32.mrb[155].mxu1 }
 0x584   :  { %v17557_v38 = vadd.f32 %v17556_v37, %v17555_v24  ;;  %7832 = vmatprep.mubr.bf16.mxu0 %v22911_v54  ;;  %v24178_v2 = vadd.f32 %v17554_v15, %v23950_v34 }
 0x585   :  { %10540 = vmatmul.mubr.bf16.gmra.mrb[4].mxu1 %v23391_v61 }
 0x586   :  { %10547 = vmatprep.mubr.bf16.mxu1 %v23432_v30  ;;  %v24183_v59 = vadd.f32 %v17557_v38, %v23954_v29  ;;  %v20454_v29 = vld [vmem:[%s27058_s5 + $0xcb0] ss:$20 sps:$4 sm:$0xff]  }
 0x587   :  { %v20461_v38 = vld [vmem:[%s27058_s5 + $0xcdc] ss:$20 sps:$4 sm:$0xff]  }
 0x588   :  { %v17558_v31 = vpop.f32.mrb[156].mxu1 }
 0x589   :  { %v17559_v58 = vpop.f32.mrb[157].mxu1 }
 0x58a   :  { %v17560_v63 = vadd.f32 %v17559_v58, %v17558_v31  ;;  %v17561_v15 = vpop.f32.mrb[158].mxu1  ;;  %v20459_v58 = vld [vmem:[%s27058_s5 + $0xcd8] ss:$20 sps:$4 sm:$0xff]  }
 0x58b   :  { %7833 = vmatmul.mubr.bf16.vlgmr.msra.gmra.mrb[132].mxu0 %v22906_v8  ;;  %v17562_v34 = vpop.f32.mrb[159].mxu1 }
 0x58c   :  { %v17563_v24 = vadd.f32 %v17562_v34, %v17561_v15  ;;  %7842 = vmatprep.mubr.bf16.mxu0 %v22942_v33  ;;  %7934 = vmatpush1.bf16.msra.mxu0 %v20449_v26  ;;  %v24197_v37 = vadd.f32 %v17560_v63, %v23965_v3 }
 0x58d   :  { %10548 = vmatmul.mubr.bf16.gmra.mrb[8].mxu1 %v23427_v49  ;;  %7935 = vmatprep.subr.bf16.mxu0 %v20456_v14  ;;  %v20467_v14 = vld [vmem:[%s27058_s5 + $0xd04] ss:$20 sps:$4 sm:$0xff]  }
 0x58e   :  { %10555 = vmatprep.mubr.bf16.mxu1 %v23468_v10  ;;  %v24205_v31 = vadd.f32 %v17563_v24, %v23968_v11  ;;  %v20465_v11 = vld [vmem:[%s27058_s5 + $0xd00] ss:$20 sps:$4 sm:$0xff]  }
 0x590   :  { %v17564_v26 = vpop.f32.mrb[160].mxu1  ;;  %7936 = vmatpush1.bf16.msra.mxu0 %v20454_v29  ;;  %v20471_v29 = vld [vmem:[%s27058_s5 + $0xd2c] ss:$20 sps:$4 sm:$0xff]  }
 0x591   :  { %v17565_v3 = vpop.f32.mrb[161].mxu1  ;;  %7937 = vmatprep.subr.bf16.mxu0 %v20461_v38 }
 0x592   :  { %v17566_v63 = vadd.f32 %v17565_v3, %v17564_v26  ;;  %v17567_v15 = vpop.f32.mrb[162].mxu1  ;;  %v20474_v3 = vld [vmem:[%s27058_s5 + $0xd54] ss:$20 sps:$4 sm:$0xff]  }
 0x593   :  { %7843 = vmatmul.mubr.bf16.gmra.mrb[136].mxu0 %v22937_v28  ;;  %v17568_v34 = vpop.f32.mrb[163].mxu1 }
 0x594   :  { %v17569_v10 = vadd.f32 %v17568_v34, %v17567_v15  ;;  %7852 = vmatprep.mubr.bf16.mxu0 %v22964_v25  ;;  %7938 = vmatpush1.bf16.msra.mxu0 %v20459_v58  ;;  %v24219_v24 = vadd.f32 %v17566_v63, %v23985_v18  ;;  %v20469_v58 = vld [vmem:[%s27058_s5 + $0xd28] ss:$20 sps:$4 sm:$0xff]   ;;  %v20500_v15 = vld [vmem:[%s27058_s5 + $0x510] ss:$20 sps:$4 sm:$0xff]  }
 0x595   :  { %10556 = vmatmul.mubr.bf16.gmra.mrb[12].mxu1 %v23463_v52  ;;  %7939 = vmatprep.subr.bf16.mxu0 %v20467_v14 }
 0x596   :  { %10596 = vmatprep.mubr.bf16.mxu1 %v22880_v51  ;;  %v24227_v38 = vadd.f32 %v17569_v10, %v23988_v47  ;;  %v20504_v47 = vld [vmem:[%s27058_s5 + $0x678] ss:$20 sps:$4 sm:$0xff]  }
 0x598   :  { %v17570_v26 = vpop.f32.mrb[164].mxu1  ;;  %7940 = vmatpush1.bf16.msra.mxu0 %v20465_v11  ;;  %v20472_v11 = vld [vmem:[%s27058_s5 + $0xd50] ss:$20 sps:$4 sm:$0xff]  }
 0x599   :  { %v17571_v18 = vpop.f32.mrb[165].mxu1  ;;  %7941 = vmatprep.subr.bf16.mxu0 %v20471_v29 }
 0x59a   :  { %v17572_v14 = vadd.f32 %v17571_v18, %v17570_v26  ;;  %v17573_v63 = vpop.f32.mrb[166].mxu1  ;;  %v27214_v26 = vld [vmem:[#allocation16_spill] sm:$0xff] }
 0x59b   :  { %7853 = vmatmul.mubr.bf16.gmra.mrb[140].mxu0 %v22962_v23  ;;  %v17574_v10 = vpop.f32.mrb[167].mxu1  ;;  %v20477_v18 = vld [vmem:[%s27058_s5 + $0xd7c] ss:$20 sps:$4 sm:$0xff]  }
 0x59c   :  { %v17575_v34 = vadd.f32 %v17574_v10, %v17573_v63  ;;  %7862 = vmatprep.mubr.bf16.mxu0 %v22986_v41  ;;  %7942 = vmatpush1.bf16.msra.mxu0 %v20469_v58  ;;  %v24247_v29 = vadd.f32 %v17572_v14, %v24005_v9  ;;  %v20505_v58 = vld [vmem:[%s27058_s5 + $0x538] ss:$20 sps:$4 sm:$0xff]   ;;  %v20506_v9 = vld [vmem:[%s27058_s5 + $0x6a0] ss:$20 sps:$4 sm:$0xff]  }
 0x59d   :  { %10597 = vmatmul.mubr.bf16.vlgmr.msra.gmra.mrb[16].mxu1 %v27214_v26  ;;  %7943 = vmatprep.subr.bf16.mxu0 %v20474_v3  ;;  %v20475_v14 = vld [vmem:[%s27058_s5 + $0xd78] ss:$20 sps:$4 sm:$0xff]  }
 0x59e   :  { %10604 = vmatprep.mubr.bf16.mxu1 %v22911_v54  ;;  %17841 = vmatpush3.bf16.msra.mxu1 %v20500_v15  ;;  %v24258_v63 = vadd.f32 %v17575_v34, %v24014_v27  ;;  %v20480_v15 = vld [vmem:[%s27058_s5 + $0xda4] ss:$20 sps:$4 sm:$0xff]  }
 0x59f   :  { %17842 = vmatprep.subr.bf16.mxu1 %v20504_v47  ;;  %v20510_v47 = vld [vmem:[%s27058_s5 + $0x560] ss:$20 sps:$4 sm:$0xff]  }
 0x5a0   :  { %v17576_v3 = vpop.f32.mrb[168].mxu1  ;;  %7944 = vmatpush1.bf16.msra.mxu0 %v20472_v11  ;;  %v20511_v11 = vld [vmem:[%s27058_s5 + $0x6c8] ss:$20 sps:$4 sm:$0xff]  }
 0x5a1   :  { %v17577_v10 = vpop.f32.mrb[169].mxu1  ;;  %7945 = vmatprep.subr.bf16.mxu0 %v20477_v18 }
 0x5a2   :  { %v17578_v54 = vadd.f32 %v17577_v10, %v17576_v3  ;;  %v17579_v27 = vpop.f32.mrb[170].mxu1  ;;  %17843 = vmatpush3.bf16.msra.mxu1 %v20505_v58  ;;  %v20478_v58 = vld [vmem:[%s27058_s5 + $0xda0] ss:$20 sps:$4 sm:$0xff]  }
 0x5a3   :  { %7863 = vmatmul.mubr.bf16.gmra.mrb[144].mxu0 %v22984_v39  ;;  %v17580_v34 = vpop.f32.mrb[171].mxu1  ;;  %17844 = vmatprep.subr.bf16.mxu1 %v20506_v9  ;;  %v20483_v9 = vld [vmem:[%s27058_s5 + $0xdcc] ss:$20 sps:$4 sm:$0xff]  }
 0x5a4   :  { %v17581_v18 = vadd.f32 %v17580_v34, %v17579_v27  ;;  %7872 = vmatprep.mubr.bf16.mxu0 %v23005_v44  ;;  %7946 = vmatpush1.bf16.msra.mxu0 %v20475_v14  ;;  %v24281_v3 = vadd.f32 %v17578_v54, %v24037_v16  ;;  %v20512_v14 = vld [vmem:[%s27058_s5 + $0x588] ss:$20 sps:$4 sm:$0xff]   ;;  %v20516_v54 = vld [vmem:[%s27058_s5 + $0x6f0] ss:$20 sps:$4 sm:$0xff]  }
 0x5a5   :  { %10605 = vmatmul.mubr.bf16.gmra.mrb[20].mxu1 %v22906_v8  ;;  %7947 = vmatprep.subr.bf16.mxu0 %v20480_v15  ;;  %v20481_v15 = vld [vmem:[%s27058_s5 + $0xdc8] ss:$20 sps:$4 sm:$0xff]  }
 0x5a6   :  { %10612 = vmatprep.mubr.bf16.mxu1 %v22942_v33  ;;  %17845 = vmatpush3.bf16.msra.mxu1 %v20510_v47  ;;  %v24292_v10 = vadd.f32 %v17581_v18, %v24046_v22  ;;  %v20486_v47 = vld [vmem:[%s27058_s5 + $0xdf4] ss:$20 sps:$4 sm:$0xff]  }
 0x5a7   :  { %17846 = vmatprep.subr.bf16.mxu1 %v20511_v11  ;;  %v20517_v11 = vld [vmem:[%s27058_s5 + $0x5b0] ss:$20 sps:$4 sm:$0xff]  }
 0x5a8   :  { %v17582_v16 = vpop.f32.mrb[172].mxu1  ;;  %7948 = vmatpush1.bf16.msra.mxu0 %v20478_v58  ;;  %v20521_v58 = vld [vmem:[%s27058_s5 + $0x718] ss:$20 sps:$4 sm:$0xff]  }
 0x5a9   :  { %v17583_v27 = vpop.f32.mrb[173].mxu1  ;;  %7949 = vmatprep.subr.bf16.mxu0 %v20483_v9 }
 0x5aa   :  { %v17584_v34 = vadd.f32 %v17583_v27, %v17582_v16  ;;  %v17585_v22 = vpop.f32.mrb[174].mxu1  ;;  %17847 = vmatpush3.bf16.msra.mxu1 %v20512_v14  ;;  %v20484_v14 = vld [vmem:[%s27058_s5 + $0xdf0] ss:$20 sps:$4 sm:$0xff]  }
 0x5ab   :  { %7873 = vmatmul.mubr.bf16.gmra.mrb[148].mxu0 %v23003_v5  ;;  %v17586_v18 = vpop.f32.mrb[175].mxu1  ;;  %17848 = vmatprep.subr.bf16.mxu1 %v20516_v54  ;;  %v20489_v54 = vld [vmem:[%s27058_s5 + $0xe1c] ss:$20 sps:$4 sm:$0xff]  }
 0x5ac   :  { %v24311_v9 = vadd.f32 %v17584_v34, %v24069_v0  ;;  %v17587_v33 = vadd.f32 %v17586_v18, %v17585_v22  ;;  %7882 = vmatprep.mubr.bf16.mxu0 %v23039_v42  ;;  %7950 = vmatpush1.bf16.msra.mxu0 %v20481_v15  ;;  %v20522_v0 = vld [vmem:[%s27058_s5 + $0x5d8] ss:$20 sps:$4 sm:$0xff]   ;;  %v20526_v15 = vld [vmem:[%s27058_s5 + $0x740] ss:$20 sps:$4 sm:$0xff]  }
 0x5ad   :  { %10613 = vmatmul.mubr.bf16.gmra.mrb[24].mxu1 %v22937_v28  ;;  %7951 = vmatprep.subr.bf16.mxu0 %v20486_v47  ;;  %v20487_v47 = vld [vmem:[%s27058_s5 + $0xe18] ss:$20 sps:$4 sm:$0xff]  }
 0x5ae   :  { %v24322_v16 = vadd.f32 %v17587_v33, %v24078_v13  ;;  %10620 = vmatprep.mubr.bf16.mxu1 %v22964_v25  ;;  %17849 = vmatpush3.bf16.msra.mxu1 %v20517_v11  ;;  %v20492_v13 = vld [vmem:[%s27058_s5 + $0xe44] ss:$20 sps:$4 sm:$0xff]   ;;  %v20527_v11 = vld [vmem:[%s27058_s5 + $0x600] ss:$20 sps:$4 sm:$0xff]  }
 0x5af   :  { %17850 = vmatprep.subr.bf16.mxu1 %v20521_v58  ;;  %v20528_v58 = vld [vmem:[%s27058_s5 + $0x768] ss:$20 sps:$4 sm:$0xff]  }
 0x5b0   :  { %v17588_v27 = vpop.f32.mrb[176].mxu1  ;;  %7952 = vmatpush1.bf16.msra.mxu0 %v20484_v14 }
 0x5b1   :  { %v17589_v33 = vpop.f32.mrb[177].mxu1  ;;  %7953 = vmatprep.subr.bf16.mxu0 %v20489_v54 }
 0x5b2   :  { %v17590_v34 = vadd.f32 %v17589_v33, %v17588_v27  ;;  %v17591_v22 = vpop.f32.mrb[178].mxu1  ;;  %17851 = vmatpush3.bf16.msra.mxu1 %v20522_v0  ;;  %v20490_v0 = vld [vmem:[%s27058_s5 + $0xe40] ss:$20 sps:$4 sm:$0xff]   ;;  %v20493_v33 = vld [vmem:[%s27058_s5 + $0xe68] ss:$20 sps:$4 sm:$0xff]  }
 0x5b3   :  { %7883 = vmatmul.mubr.bf16.gmra.mrb[152].mxu0 %v23031_v19  ;;  %v17592_v18 = vpop.f32.mrb[179].mxu1  ;;  %17852 = vmatprep.subr.bf16.mxu1 %v20526_v15  ;;  %v20495_v15 = vld [vmem:[%s27058_s5 + $0xe6c] ss:$20 sps:$4 sm:$0xff]  }
 0x5b4   :  { %v24345_v14 = vadd.f32 %v17590_v34, %v24101_v35  ;;  %v17593_v54 = vadd.f32 %v17592_v18, %v17591_v22  ;;  %7892 = vmatprep.mubr.bf16.mxu0 %v23073_v57  ;;  %7954 = vmatpush1.bf16.msra.mxu0 %v20487_v47  ;;  %v20532_v35 = vld [vmem:[%s27058_s5 + $0x628] ss:$20 sps:$4 sm:$0xff]  }
 0x5b5   :  { %10621 = vmatmul.mubr.bf16.gmra.mrb[28].mxu1 %v22962_v23  ;;  %7955 = vmatprep.subr.bf16.mxu0 %v20492_v13 }
 0x5b6   :  { %v24356_v27 = vadd.f32 %v17593_v54, %v24110_v60  ;;  %10628 = vmatprep.mubr.bf16.mxu1 %v22986_v41  ;;  %17853 = vmatpush3.bf16.msra.mxu1 %v20527_v11  ;;  %v20498_v60 = vld [vmem:[%s27058_s5 + $0xe94] ss:$20 sps:$4 sm:$0xff]   ;;  %v20496_v54 = vld [vmem:[%s27058_s5 + $0xe90] ss:$20 sps:$4 sm:$0xff]  }
 0x5b7   :  { %17854 = vmatprep.subr.bf16.mxu1 %v20528_v58 }
 0x5b8   :  { %v17594_v47 = vpop.f32.mrb[180].mxu1  ;;  %7956 = vmatpush1.bf16.msra.mxu0 %v20490_v0  ;;  %v20503_v0 = vld [vmem:[%s27058_s5 + $0xebc] ss:$20 sps:$4 sm:$0xff]  }
 0x5b9   :  { %v17595_v13 = vpop.f32.mrb[181].mxu1  ;;  %7957 = vmatprep.subr.bf16.mxu0 %v20495_v15 }
 0x5ba   :  { %v17596_v34 = vadd.f32 %v17595_v13, %v17594_v47  ;;  %v17597_v22 = vpop.f32.mrb[182].mxu1  ;;  %17855 = vmatpush3.bf16.msra.mxu1 %v20532_v35  ;;  %v20501_v35 = vld [vmem:[%s27058_s5 + $0xeb8] ss:$20 sps:$4 sm:$0xff]  }
 0x5bb   :  { %7893 = vmatmul.mubr.bf16.gmra.mrb[156].mxu0 %v23065_v17  ;;  %v17598_v11 = vpop.f32.mrb[183].mxu1 }
 0x5bc   :  { %v24370_v18 = vadd.f32 %v17596_v34, %v24133_v56  ;;  %v17599_v58 = vadd.f32 %v17598_v11, %v17597_v22  ;;  %7902 = vmatprep.mubr.bf16.mxu0 %v23095_v32  ;;  %7958 = vmatpush1.bf16.msra.mxu0 %v20493_v33  ;;  %v20509_v33 = vld [vmem:[%s27058_s5 + $0xee4] ss:$20 sps:$4 sm:$0xff]   ;;  %v20507_v11 = vld [vmem:[%s27058_s5 + $0xee0] ss:$20 sps:$4 sm:$0xff]  }
 0x5bd   :  { %10629 = vmatmul.mubr.bf16.gmra.mrb[32].mxu1 %v22984_v39  ;;  %7959 = vmatprep.subr.bf16.mxu0 %v20498_v60 }
 0x5be   :  { %v24381_v15 = vadd.f32 %v17599_v58, %v24136_v40  ;;  %10636 = vmatprep.mubr.bf16.mxu1 %v23005_v44  ;;  %v20515_v58 = vld [vmem:[%s27058_s5 + $0x4] ss:$20 sps:$4 sm:$0xff]  }
 0x5c0   :  { %v17600_v56 = vpop.f32.mrb[184].mxu1  ;;  %7960 = vmatpush1.bf16.msra.mxu0 %v20496_v54 }
 0x5c1   :  { %v17601_v47 = vpop.f32.mrb[185].mxu1  ;;  %7961 = vmatprep.subr.bf16.mxu0 %v20503_v0 }
 0x5c2   :  { %v17602_v13 = vadd.f32 %v17601_v47, %v17600_v56  ;;  %v17603_v60 = vpop.f32.mrb[186].mxu1 }
 0x5c3   :  { %7903 = vmatmul.mubr.bf16.gmra.mrb[160].mxu0 %v23090_v62  ;;  %v17604_v40 = vpop.f32.mrb[187].mxu1 }
 0x5c4   :  { %v24392_v34 = vadd.f32 %v17602_v13, %v24153_v6  ;;  %v17605_v22 = vadd.f32 %v17604_v40, %v17603_v60  ;;  %7912 = vmatprep.mubr.bf16.mxu0 %v23117_v50  ;;  %7962 = vmatpush1.bf16.msra.mxu0 %v20501_v35 }
 0x5c5   :  { %10637 = vmatmul.mubr.bf16.gmra.mrb[36].mxu1 %v23003_v5  ;;  %7963 = vmatprep.subr.bf16.mxu0 %v20509_v33 }
 0x5c6   :  { %v24403_v54 = vadd.f32 %v17605_v22, %v24156_v46  ;;  %10644 = vmatprep.mubr.bf16.mxu1 %v23039_v42 }
 0x5c8   :  { %v17606_v6 = vpop.f32.mrb[188].mxu1  ;;  %7964 = vmatpush1.bf16.msra.mxu0 %v20507_v11 }
 0x5c9   :  { %v17607_v0 = vpop.f32.mrb[189].mxu1  ;;  %9653 = vmatprep.subr.bf16.mxu0 %v20515_v58  ;;  %v27215_v58 = vld [vmem:[#allocation28_spill] sm:$0xff] }
 0x5ca   :  { %v17608_v56 = vadd.f32 %v17607_v0, %v17606_v6  ;;  %v17609_v35 = vpop.f32.mrb[190].mxu1 }
 0x5cb   :  { %7913 = vmatmul.mubr.bf16.gmra.mrb[164].mxu0 %v23112_v36  ;;  %v17610_v47 = vpop.f32.mrb[191].mxu1 }
 0x5cc   :  { %v24408_v33 = vadd.f32 %v17608_v56, %v24167_v45  ;;  %v17611_v13 = vadd.f32 %v17610_v47, %v17609_v35  ;;  %7922 = vmatprep.mubr.bf16.mxu0 %v23130_v12  ;;  %v27216_v56 = vld [vmem:[#allocation49_spill] sm:$0xff]  ;;  %v20513_v35 = vld [vmem:[%s27058_s5] ss:$20 sps:$4 sm:$0xff]  }
 0x5cd   :  { %10645 = vmatmul.mubr.bf16.gmra.mrb[40].mxu1 %v23031_v19 }
 0x5ce   :  { %v24413_v46 = vadd.f32 %v17611_v13, %v24170_v7  ;;  %10652 = vmatprep.mubr.bf16.mxu1 %v23073_v57 }
 0x5d0   :  { %v17628_v60 = vpop.f32.mrb[192].mxu1 }
 0x5d1   :  { %v17629_v40 = vpop.f32.mrb[193].mxu1 }
 0x5d2   :  { %v17630_v22 = vadd.f32 %v17629_v40, %v17628_v60  ;;  %v17631_v11 = vpop.f32.mrb[194].mxu1  ;;  %v27217_v40 = vld [vmem:[#allocation48_spill] sm:$0xff] }
 0x5d3   :  { %7923 = vmatmul.mubr.bf16.gmra.mrb[168].mxu0 %v27215_v58  ;;  %v17632_v6 = vpop.f32.mrb[195].mxu1  ;;  %v27218_v58 = vld [vmem:[#allocation51_spill] sm:$0xff] }
 0x5d4   :  { %v24418_v45 = vadd.f32 %v17630_v22, %v24178_v2  ;;  %v17633_v0 = vadd.f32 %v17632_v6, %v17631_v11  ;;  %7965 = vmatprep.mubr.bf16.mxu0 %v27216_v56  ;;  %v20520_v2 = vld [vmem:[%s27058_s5 + $0x2c] ss:$20 sps:$4 sm:$0xff]   ;;  %v20518_v6 = vld [vmem:[%s27058_s5 + $0x28] ss:$20 sps:$4 sm:$0xff]  }
 0x5d5   :  { %10653 = vmatmul.mubr.bf16.gmra.mrb[44].mxu1 %v23065_v17 }
 0x5d6   :  { %v24423_v12 = vadd.f32 %v17633_v0, %v24183_v59  ;;  %10660 = vmatprep.mubr.bf16.mxu1 %v23095_v32  ;;  %v20525_v0 = vld [vmem:[%s27058_s5 + $0x54] ss:$20 sps:$4 sm:$0xff]   ;;  %v27224_v32 = vld [vmem:[#allocation46_spill] sm:$0xff] }
 0x5d8   :  { %v17634_v7 = vpop.f32.mrb[196].mxu1 }
 0x5d9   :  { %v17635_v47 = vpop.f32.mrb[197].mxu1 }
 0x5da   :  { %v17636_v13 = vadd.f32 %v17635_v47, %v17634_v7  ;;  %v17637_v60 = vpop.f32.mrb[198].mxu1 }
 0x5db   :  { %7966 = vmatmul.mubr.bf16.vlgmr.msra.gmra.mrb[132].mxu0 %v27217_v40  ;;  %v17638_v22 = vpop.f32.mrb[199].mxu1 }
 0x5dc   :  { %v24434_v59 = vadd.f32 %v17636_v13, %v24197_v37  ;;  %v17639_v11 = vadd.f32 %v17638_v22, %v17637_v60  ;;  %7975 = vmatprep.mubr.bf16.mxu0 %v27218_v58  ;;  %9654 = vmatpush1.bf16.msra.mxu0 %v20513_v35  ;;  %v20523_v35 = vld [vmem:[%s27058_s5 + $0x50] ss:$20 sps:$4 sm:$0xff]  }
 0x5dd   :  { %10661 = vmatmul.mubr.bf16.gmra.mrb[48].mxu1 %v23090_v62  ;;  %9655 = vmatprep.subr.bf16.mxu0 %v20520_v2  ;;  %v20531_v2 = vld [vmem:[%s27058_s5 + $0x7c] ss:$20 sps:$4 sm:$0xff]   ;;  %v27219_v22 = vld [vmem:[#allocation50_spill] sm:$0xff] }
 0x5de   :  { %v24445_v7 = vadd.f32 %v17639_v11, %v24205_v31  ;;  %10668 = vmatprep.mubr.bf16.mxu1 %v23117_v50  ;;  %v27222_v62 = vld [vmem:[#allocation52_spill] sm:$0xff] }
 0x5e0   :  { %v17640_v37 = vpop.f32.mrb[200].mxu1  ;;  %9656 = vmatpush1.bf16.msra.mxu0 %v20518_v6  ;;  %v27220_v6 = vld [vmem:[#allocation53_spill] sm:$0xff] }
 0x5e1   :  { %v17641_v47 = vpop.f32.mrb[201].mxu1  ;;  %9657 = vmatprep.subr.bf16.mxu0 %v20525_v0  ;;  %v20529_v0 = vld [vmem:[%s27058_s5 + $0x78] ss:$20 sps:$4 sm:$0xff]  }
 0x5e2   :  { %v17642_v13 = vadd.f32 %v17641_v47, %v17640_v37  ;;  %v17643_v60 = vpop.f32.mrb[202].mxu1  ;;  %v20535_v37 = vld [vmem:[%s27058_s5 + $0xa4] ss:$20 sps:$4 sm:$0xff]  }
 0x5e3   :  { %7976 = vmatmul.mubr.bf16.gmra.mrb[136].mxu0 %v27219_v22  ;;  %v17644_v31 = vpop.f32.mrb[203].mxu1 }
 0x5e4   :  { %v24456_v11 = vadd.f32 %v17642_v13, %v24219_v24  ;;  %v17645_v50 = vadd.f32 %v17644_v31, %v17643_v60  ;;  %7985 = vmatprep.mubr.bf16.mxu0 %v27220_v6  ;;  %9658 = vmatpush1.bf16.msra.mxu0 %v20523_v35  ;;  %v27221_v24 = vld [vmem:[#allocation47_spill] sm:$0xff]  ;;  %v20533_v35 = vld [vmem:[%s27058_s5 + $0xa0] ss:$20 sps:$4 sm:$0xff]  }
 0x5e5   :  { %10669 = vmatmul.mubr.bf16.gmra.mrb[52].mxu1 %v23112_v36  ;;  %9659 = vmatprep.subr.bf16.mxu0 %v20531_v2  ;;  %v20538_v2 = vld [vmem:[%s27058_s5 + $0xcc] ss:$20 sps:$4 sm:$0xff]  }
 0x5e6   :  { %v24467_v47 = vadd.f32 %v17645_v50, %v24227_v38  ;;  %10709 = vmatprep.mubr.bf16.mxu1 %v27221_v24 }
 0x5e8   :  { %v17646_v13 = vpop.f32.mrb[204].mxu1  ;;  %9660 = vmatpush1.bf16.msra.mxu0 %v20529_v0  ;;  %v27223_v0 = vld [vmem:[#allocation54_spill] sm:$0xff] }
 0x5e9   :  { %v17647_v60 = vpop.f32.mrb[205].mxu1  ;;  %9661 = vmatprep.subr.bf16.mxu0 %v20535_v37  ;;  %v20536_v37 = vld [vmem:[%s27058_s5 + $0xc8] ss:$20 sps:$4 sm:$0xff]  }
 0x5ea   :  { %v17648_v31 = vadd.f32 %v17647_v60, %v17646_v13  ;;  %v17649_v36 = vpop.f32.mrb[206].mxu1  ;;  %v20541_v13 = vld [vmem:[%s27058_s5 + $0xf4] ss:$20 sps:$4 sm:$0xff]  }
 0x5eb   :  { %7986 = vmatmul.mubr.bf16.gmra.mrb[140].mxu0 %v27222_v62  ;;  %v17650_v50 = vpop.f32.mrb[207].mxu1 }
 0x5ec   :  { %v24478_v38 = vadd.f32 %v17648_v31, %v24247_v29  ;;  %v17651_v24 = vadd.f32 %v17650_v50, %v17649_v36  ;;  %7995 = vmatprep.mubr.bf16.mxu0 %v27223_v0  ;;  %9662 = vmatpush1.bf16.msra.mxu0 %v20533_v35  ;;  %v20539_v29 = vld [vmem:[%s27058_s5 + $0xf0] ss:$20 sps:$4 sm:$0xff]  }
 0x5ed   :  { %10710 = vmatmul.mubr.bf16.vlgmr.msra.gmra.mrb[56].mxu1 %v27224_v32  ;;  %9663 = vmatprep.subr.bf16.mxu0 %v20538_v2  ;;  %v20544_v2 = vld [vmem:[%s27058_s5 + $0x11c] ss:$20 sps:$4 sm:$0xff]  }
 0x5ee   :  { %v24489_v60 = vadd.f32 %v17651_v24, %v24258_v63  ;;  %10717 = vmatprep.mubr.bf16.mxu1 %v27216_v56 }
 0x5f0   :  { %v17652_v36 = vpop.f32.mrb[208].mxu1  ;;  %9664 = vmatpush1.bf16.msra.mxu0 %v20536_v37  ;;  %v27225_v37 = vld [vmem:[#allocation56_spill] sm:$0xff] }
 0x5f1   :  { %v17653_v35 = vpop.f32.mrb[209].mxu1  ;;  %9665 = vmatprep.subr.bf16.mxu0 %v20541_v13  ;;  %v20542_v13 = vld [vmem:[%s27058_s5 + $0x118] ss:$20 sps:$4 sm:$0xff]  }
 0x5f2   :  { %v17654_v31 = vadd.f32 %v17653_v35, %v17652_v36  ;;  %v17655_v50 = vpop.f32.mrb[210].mxu1  ;;  %v20547_v36 = vld [vmem:[%s27058_s5 + $0x144] ss:$20 sps:$4 sm:$0xff]  }
 0x5f3   :  { %7996 = vmatmul.mubr.bf16.gmra.mrb[144].mxu0 %v23775_v4  ;;  %v17656_v63 = vpop.f32.mrb[211].mxu1 }
 0x5f4   :  { %v24500_v24 = vadd.f32 %v17654_v31, %v24281_v3  ;;  %v17657_v56 = vadd.f32 %v17656_v63, %v17655_v50  ;;  %8005 = vmatprep.mubr.bf16.mxu0 %v27225_v37  ;;  %9666 = vmatpush1.bf16.msra.mxu0 %v20539_v29  ;;  %v20545_v29 = vld [vmem:[%s27058_s5 + $0x140] ss:$20 sps:$4 sm:$0xff]  }
 0x5f5   :  { %10718 = vmatmul.mubr.bf16.gmra.mrb[60].mxu1 %v27217_v40  ;;  %9667 = vmatprep.subr.bf16.mxu0 %v20544_v2  ;;  %v20550_v2 = vld [vmem:[%s27058_s5 + $0x16c] ss:$20 sps:$4 sm:$0xff]  }
 0x5f6   :  { %v24511_v35 = vadd.f32 %v17657_v56, %v24292_v10  ;;  %10725 = vmatprep.mubr.bf16.mxu1 %v27218_v58  ;;  %v27226_v40 = vld [vmem:[#allocation55_spill] sm:$0xff] }
 0x5f8   :  { %v17658_v3 = vpop.f32.mrb[212].mxu1  ;;  %9668 = vmatpush1.bf16.msra.mxu0 %v20542_v13  ;;  %v27227_v13 = vld [vmem:[#allocation58_spill] sm:$0xff] }
 0x5f9   :  { %v17659_v31 = vpop.f32.mrb[213].mxu1  ;;  %9669 = vmatprep.subr.bf16.mxu0 %v20547_v36  ;;  %v20548_v36 = vld [vmem:[%s27058_s5 + $0x168] ss:$20 sps:$4 sm:$0xff]  }
 0x5fa   :  { %v17660_v50 = vadd.f32 %v17659_v31, %v17658_v3  ;;  %v17661_v63 = vpop.f32.mrb[214].mxu1  ;;  %v20553_v3 = vld [vmem:[%s27058_s5 + $0x194] ss:$20 sps:$4 sm:$0xff]  }
 0x5fb   :  { %8006 = vmatmul.mubr.bf16.gmra.mrb[148].mxu0 %v27226_v40  ;;  %v17662_v10 = vpop.f32.mrb[215].mxu1 }
 0x5fc   :  { %v24522_v56 = vadd.f32 %v17660_v50, %v24311_v9  ;;  %v17663_v58 = vadd.f32 %v17662_v10, %v17661_v63  ;;  %8015 = vmatprep.mubr.bf16.mxu0 %v27227_v13  ;;  %9670 = vmatpush1.bf16.msra.mxu0 %v20545_v29  ;;  %v20551_v29 = vld [vmem:[%s27058_s5 + $0x190] ss:$20 sps:$4 sm:$0xff]  }
 0x5fd   :  { %10726 = vmatmul.mubr.bf16.gmra.mrb[64].mxu1 %v27219_v22  ;;  %9671 = vmatprep.subr.bf16.mxu0 %v20550_v2  ;;  %v20556_v2 = vld [vmem:[%s27058_s5 + $0x1bc] ss:$20 sps:$4 sm:$0xff]  }
 0x5fe   :  { %v24533_v31 = vadd.f32 %v17663_v58, %v24322_v16  ;;  %10733 = vmatprep.mubr.bf16.mxu1 %v27220_v6  ;;  %v27228_v22 = vld [vmem:[#allocation57_spill] sm:$0xff] }
 0x600   :  { %v17664_v9 = vpop.f32.mrb[216].mxu1  ;;  %9672 = vmatpush1.bf16.msra.mxu0 %v20548_v36  ;;  %v27229_v36 = vld [vmem:[#allocation59_spill] sm:$0xff] }
 0x601   :  { %v17665_v50 = vpop.f32.mrb[217].mxu1  ;;  %9673 = vmatprep.subr.bf16.mxu0 %v20553_v3  ;;  %v20554_v3 = vld [vmem:[%s27058_s5 + $0x1b8] ss:$20 sps:$4 sm:$0xff]  }
 0x602   :  { %v17666_v63 = vadd.f32 %v17665_v50, %v17664_v9  ;;  %v17667_v10 = vpop.f32.mrb[218].mxu1  ;;  %v20559_v9 = vld [vmem:[%s27058_s5 + $0x1e4] ss:$20 sps:$4 sm:$0xff]  }
 0x603   :  { %8016 = vmatmul.mubr.bf16.gmra.mrb[152].mxu0 %v27228_v22  ;;  %v17668_v16 = vpop.f32.mrb[219].mxu1 }
 0x604   :  { %v24544_v58 = vadd.f32 %v17666_v63, %v24345_v14  ;;  %v17669_v6 = vadd.f32 %v17668_v16, %v17667_v10  ;;  %8025 = vmatprep.mubr.bf16.mxu0 %v27229_v36  ;;  %9674 = vmatpush1.bf16.msra.mxu0 %v20551_v29  ;;  %v20557_v29 = vld [vmem:[%s27058_s5 + $0x1e0] ss:$20 sps:$4 sm:$0xff]  }
 0x605   :  { %10734 = vmatmul.mubr.bf16.gmra.mrb[68].mxu1 %v27222_v62  ;;  %9675 = vmatprep.subr.bf16.mxu0 %v20556_v2  ;;  %v20562_v2 = vld [vmem:[%s27058_s5 + $0x20c] ss:$20 sps:$4 sm:$0xff]  }
 0x606   :  { %v24555_v50 = vadd.f32 %v17669_v6, %v24356_v27  ;;  %10741 = vmatprep.mubr.bf16.mxu1 %v27223_v0 }
 0x608   :  { %v17670_v14 = vpop.f32.mrb[220].mxu1  ;;  %9676 = vmatpush1.bf16.msra.mxu0 %v20554_v3  ;;  %v20560_v3 = vld [vmem:[%s27058_s5 + $0x208] ss:$20 sps:$4 sm:$0xff]  }
 0x609   :  { %v17671_v63 = vpop.f32.mrb[221].mxu1  ;;  %9677 = vmatprep.subr.bf16.mxu0 %v20559_v9  ;;  %v20565_v9 = vld [vmem:[%s27058_s5 + $0x234] ss:$20 sps:$4 sm:$0xff]  }
 0x60a   :  { %v17672_v10 = vadd.f32 %v17671_v63, %v17670_v14  ;;  %v17673_v16 = vpop.f32.mrb[222].mxu1 }
 0x60b   :  { %8026 = vmatmul.mubr.bf16.gmra.mrb[156].mxu0 %v23883_v1  ;;  %v17674_v27 = vpop.f32.mrb[223].mxu1 }
 0x60c   :  { %v24566_v6 = vadd.f32 %v17672_v10, %v24370_v18  ;;  %v17675_v0 = vadd.f32 %v17674_v27, %v17673_v16  ;;  %8035 = vmatprep.mubr.bf16.mxu0 %v23912_v21  ;;  %9678 = vmatpush1.bf16.msra.mxu0 %v20557_v29  ;;  %v20563_v29 = vld [vmem:[%s27058_s5 + $0x230] ss:$20 sps:$4 sm:$0xff]  }
 0x60d   :  { %10742 = vmatmul.mubr.bf16.gmra.mrb[72].mxu1 %v23775_v4  ;;  %9679 = vmatprep.subr.bf16.mxu0 %v20562_v2  ;;  %v20568_v2 = vld [vmem:[%s27058_s5 + $0x25c] ss:$20 sps:$4 sm:$0xff]  }
 0x60e   :  { %v24577_v14 = vadd.f32 %v17675_v0, %v24381_v15  ;;  %10749 = vmatprep.mubr.bf16.mxu1 %v27225_v37  ;;  %v27231_v37 = vld [vmem:[#allocation62_spill] sm:$0xff] }
 0x610   :  { %v17676_v18 = vpop.f32.mrb[224].mxu1  ;;  %9680 = vmatpush1.bf16.msra.mxu0 %v20560_v3  ;;  %v20566_v3 = vld [vmem:[%s27058_s5 + $0x258] ss:$20 sps:$4 sm:$0xff]  }
 0x611   :  { %v17677_v63 = vpop.f32.mrb[225].mxu1  ;;  %9681 = vmatprep.subr.bf16.mxu0 %v20565_v9  ;;  %v20571_v9 = vld [vmem:[%s27058_s5 + $0x284] ss:$20 sps:$4 sm:$0xff]  }
 0x612   :  { %v17678_v10 = vadd.f32 %v17677_v63, %v17676_v18  ;;  %v17679_v16 = vpop.f32.mrb[226].mxu1 }
 0x613   :  { %8036 = vmatmul.mubr.bf16.gmra.mrb[160].mxu0 %v23910_v55  ;;  %v17680_v15 = vpop.f32.mrb[227].mxu1 }
 0x614   :  { %v24588_v0 = vadd.f32 %v17678_v10, %v24392_v34  ;;  %v17681_v27 = vadd.f32 %v17680_v15, %v17679_v16  ;;  %8045 = vmatprep.mubr.bf16.mxu0 %v23936_v43  ;;  %9682 = vmatpush1.bf16.msra.mxu0 %v20563_v29  ;;  %v27230_v16 = vld [vmem:[#allocation60_spill] sm:$0xff] }
 0x615   :  { %10750 = vmatmul.mubr.bf16.gmra.mrb[76].mxu1 %v27226_v40  ;;  %9683 = vmatprep.subr.bf16.mxu0 %v20568_v2 }
 0x616   :  { %v24599_v18 = vadd.f32 %v17681_v27, %v24403_v54  ;;  %10757 = vmatprep.mubr.bf16.mxu1 %v27227_v13 }
 0x618   :  { %v17682_v34 = vpop.f32.mrb[228].mxu1  ;;  %9684 = vmatpush1.bf16.msra.mxu0 %v20566_v3 }
 0x619   :  { %v17683_v63 = vpop.f32.mrb[229].mxu1  ;;  %9786 = vmatprep.subr.bf16.mxu0 %v20571_v9 }
 0x61a   :  { %v17684_v29 = vadd.f32 %v17683_v63, %v17682_v34  ;;  %v17685_v10 = vpop.f32.mrb[230].mxu1  ;;  %v27232_v63 = vld [vmem:[#allocation61_spill] sm:$0xff] }
 0x61b   :  { %8046 = vmatmul.mubr.bf16.gmra.mrb[164].mxu0 %v27230_v16  ;;  %v17686_v15 = vpop.f32.mrb[231].mxu1 }
 0x61c   :  { %v24604_v2 = vadd.f32 %v17684_v29, %v24408_v33  ;;  %v17687_v40 = vadd.f32 %v17686_v15, %v17685_v10  ;;  %8055 = vmatprep.mubr.bf16.mxu0 %v27231_v37  ;;  %v27233_v10 = vld [vmem:[#allocation30_spill] sm:$0xff] }
 0x61d   :  { %10758 = vmatmul.mubr.bf16.gmra.mrb[80].mxu1 %v27228_v22  ;;  %v20569_v37 = vld [vmem:[%s27058_s5 + $0x280] ss:$20 sps:$4 sm:$0xff]  }
 0x61e   :  { %v24609_v54 = vadd.f32 %v17687_v40, %v24413_v46  ;;  %10765 = vmatprep.mubr.bf16.mxu1 %v27229_v36 }
 0x620   :  { %v17704_v27 = vpop.f32.mrb[232].mxu1 }
 0x621   :  { %v17705_v3 = vpop.f32.mrb[233].mxu1 }
 0x622   :  { %v17706_v9 = vadd.f32 %v17705_v3, %v17704_v27  ;;  %v17707_v34 = vpop.f32.mrb[234].mxu1  ;;  %v27234_v3 = vld [vmem:[#allocation29_spill] sm:$0xff] }
 0x623   :  { %8056 = vmatmul.mubr.bf16.gmra.mrb[168].mxu0 %v27232_v63  ;;  %v17708_v13 = vpop.f32.mrb[235].mxu1  ;;  %v27235_v63 = vld [vmem:[#allocation32_spill] sm:$0xff] }
 0x624   :  { %v24614_v33 = vadd.f32 %v17706_v9, %v24418_v45  ;;  %v17709_v29 = vadd.f32 %v17708_v13, %v17707_v34  ;;  %9685 = vmatprep.mubr.bf16.mxu0 %v27233_v10  ;;  %v20574_v45 = vld [vmem:[%s27058_s5 + $0x2ac] ss:$20 sps:$4 sm:$0xff]  }
 0x625   :  { %10766 = vmatmul.mubr.bf16.gmra.mrb[84].mxu1 %v23883_v1 }
 0x626   :  { %v24619_v46 = vadd.f32 %v17709_v29, %v24423_v12  ;;  %10773 = vmatprep.mubr.bf16.mxu1 %v23912_v21  ;;  %v20572_v29 = vld [vmem:[%s27058_s5 + $0x2a8] ss:$20 sps:$4 sm:$0xff]  }
 0x628   :  { %v17710_v40 = vpop.f32.mrb[236].mxu1 }
 0x629   :  { %v17711_v15 = vpop.f32.mrb[237].mxu1 }
 0x62a   :  { %v17712_v13 = vadd.f32 %v17711_v15, %v17710_v40  ;;  %v17713_v27 = vpop.f32.mrb[238].mxu1  ;;  %v20577_v40 = vld [vmem:[%s27058_s5 + $0x2d4] ss:$20 sps:$4 sm:$0xff]  }
 0x62b   :  { %9686 = vmatmul.mubr.bf16.vlgmr.msra.gmra.mrb[92].mxu0 %v27234_v3  ;;  %v17714_v9 = vpop.f32.mrb[239].mxu1 }
 0x62c   :  { %v24630_v12 = vadd.f32 %v17712_v13, %v24434_v59  ;;  %v17715_v34 = vadd.f32 %v17714_v9, %v17713_v27  ;;  %9695 = vmatprep.mubr.bf16.mxu0 %v27235_v63  ;;  %9787 = vmatpush1.bf16.msra.mxu0 %v20569_v37  ;;  %v20575_v37 = vld [vmem:[%s27058_s5 + $0x2d0] ss:$20 sps:$4 sm:$0xff]   ;;  %v27236_v63 = vld [vmem:[#allocation31_spill] sm:$0xff] }
 0x62d   :  { %10774 = vmatmul.mubr.bf16.gmra.mrb[88].mxu1 %v23910_v55  ;;  %9788 = vmatprep.subr.bf16.mxu0 %v20574_v45  ;;  %v20580_v45 = vld [vmem:[%s27058_s5 + $0x2fc] ss:$20 sps:$4 sm:$0xff]  }
 0x62e   :  { %v24641_v15 = vadd.f32 %v17715_v34, %v24445_v7  ;;  %10781 = vmatprep.mubr.bf16.mxu1 %v23936_v43 }
 0x630   :  { %v17716_v59 = vpop.f32.mrb[240].mxu1  ;;  %9789 = vmatpush1.bf16.msra.mxu0 %v20572_v29  ;;  %v27237_v29 = vld [vmem:[#allocation34_spill] sm:$0xff] }
 0x631   :  { %v17717_v13 = vpop.f32.mrb[241].mxu1  ;;  %9790 = vmatprep.subr.bf16.mxu0 %v20577_v40  ;;  %v20578_v40 = vld [vmem:[%s27058_s5 + $0x2f8] ss:$20 sps:$4 sm:$0xff]  }
 0x632   :  { %v17718_v27 = vadd.f32 %v17717_v13, %v17716_v59  ;;  %v17719_v9 = vpop.f32.mrb[242].mxu1  ;;  %v20583_v59 = vld [vmem:[%s27058_s5 + $0x324] ss:$20 sps:$4 sm:$0xff]  }
 0x633   :  { %9696 = vmatmul.mubr.bf16.gmra.mrb[96].mxu0 %v27236_v63  ;;  %v17720_v7 = vpop.f32.mrb[243].mxu1 }
 0x634   :  { %v24652_v34 = vadd.f32 %v17718_v27, %v24456_v11  ;;  %v17721_v3 = vadd.f32 %v17720_v7, %v17719_v9  ;;  %9705 = vmatprep.mubr.bf16.mxu0 %v27237_v29  ;;  %9791 = vmatpush1.bf16.msra.mxu0 %v20575_v37  ;;  %v20581_v37 = vld [vmem:[%s27058_s5 + $0x320] ss:$20 sps:$4 sm:$0xff]   ;;  %v27238_v29 = vld [vmem:[#allocation33_spill] sm:$0xff] }
 0x635   :  { %10782 = vmatmul.mubr.bf16.gmra.mrb[92].mxu1 %v27230_v16  ;;  %9792 = vmatprep.subr.bf16.mxu0 %v20580_v45  ;;  %v20586_v9 = vld [vmem:[%s27058_s5 + $0x34c] ss:$20 sps:$4 sm:$0xff]  }
 0x636   :  { %v24663_v13 = vadd.f32 %v17721_v3, %v24467_v47 }
 0x638   :  { %v17722_v11 = vpop.f32.mrb[244].mxu1  ;;  %9793 = vmatpush1.bf16.msra.mxu0 %v20578_v40  ;;  %v27239_v40 = vld [vmem:[#allocation36_spill] sm:$0xff] }
 0x639   :  { %v17723_v27 = vpop.f32.mrb[245].mxu1  ;;  %9794 = vmatprep.subr.bf16.mxu0 %v20583_v59  ;;  %v20584_v59 = vld [vmem:[%s27058_s5 + $0x348] ss:$20 sps:$4 sm:$0xff]  }
 0x63a   :  { %v17724_v45 = vadd.f32 %v17723_v27, %v17722_v11  ;;  %v17725_v7 = vpop.f32.mrb[246].mxu1  ;;  %v20589_v11 = vld [vmem:[%s27058_s5 + $0x374] ss:$20 sps:$4 sm:$0xff]  }
 0x63b   :  { %9706 = vmatmul.mubr.bf16.gmra.mrb[100].mxu0 %v27238_v29  ;;  %v17726_v63 = vpop.f32.mrb[247].mxu1 }
 0x63c   :  { %v24673_v47 = vadd.f32 %v17724_v45, %v24478_v38  ;;  %v17727_v3 = vadd.f32 %v17726_v63, %v17725_v7  ;;  %9715 = vmatprep.mubr.bf16.mxu0 %v27239_v40  ;;  %9795 = vmatpush1.bf16.msra.mxu0 %v20581_v37  ;;  %v20587_v38 = vld [vmem:[%s27058_s5 + $0x370] ss:$20 sps:$4 sm:$0xff]   ;;  %v27240_v7 = vld [vmem:[#allocation35_spill] sm:$0xff] }
 0x63d   :  { %9796 = vmatprep.subr.bf16.mxu0 %v20586_v9  ;;  %v20592_v37 = vld [vmem:[%s27058_s5 + $0x39c] ss:$20 sps:$4 sm:$0xff]  }
 0x63e   :  { %v24683_v27 = vadd.f32 %v17727_v3, %v24489_v60 }
 0x640   :  { %v17728_v29 = vpop.f32.mrb[248].mxu1  ;;  %9797 = vmatpush1.bf16.msra.mxu0 %v20584_v59  ;;  %v27241_v59 = vld [vmem:[#allocation38_spill] sm:$0xff] }
 0x641   :  { %v17729_v63 = vpop.f32.mrb[249].mxu1  ;;  %9798 = vmatprep.subr.bf16.mxu0 %v20589_v11  ;;  %v20590_v11 = vld [vmem:[%s27058_s5 + $0x398] ss:$20 sps:$4 sm:$0xff]  }
 0x642   :  { %v17730_v9 = vadd.f32 %v17729_v63, %v17728_v29  ;;  %v17731_v45 = vpop.f32.mrb[250].mxu1  ;;  %v20595_v29 = vld [vmem:[%s27058_s5 + $0x3c4] ss:$20 sps:$4 sm:$0xff]  }
 0x643   :  { %9716 = vmatmul.mubr.bf16.gmra.mrb[104].mxu0 %v27240_v7  ;;  %v17732_v40 = vpop.f32.mrb[251].mxu1 }
 0x644   :  { %v24693_v60 = vadd.f32 %v17730_v9, %v24500_v24  ;;  %v17733_v3 = vadd.f32 %v17732_v40, %v17731_v45  ;;  %9725 = vmatprep.mubr.bf16.mxu0 %v27241_v59  ;;  %9799 = vmatpush1.bf16.msra.mxu0 %v20587_v38  ;;  %v20593_v24 = vld [vmem:[%s27058_s5 + $0x3c0] ss:$20 sps:$4 sm:$0xff]  }
 0x645   :  { %9800 = vmatprep.subr.bf16.mxu0 %v20592_v37  ;;  %v20598_v38 = vld [vmem:[%s27058_s5 + $0x3ec] ss:$20 sps:$4 sm:$0xff]  }
 0x646   :  { %v24703_v63 = vadd.f32 %v17733_v3, %v24511_v35 }
 0x648   :  { %v17734_v7 = vpop.f32.mrb[252].mxu1  ;;  %9801 = vmatpush1.bf16.msra.mxu0 %v20590_v11  ;;  %v27242_v11 = vld [vmem:[#allocation40_spill] sm:$0xff] }
 0x649   :  { %v17735_v40 = vpop.f32.mrb[253].mxu1  ;;  %9802 = vmatprep.subr.bf16.mxu0 %v20595_v29  ;;  %v20596_v29 = vld [vmem:[%s27058_s5 + $0x3e8] ss:$20 sps:$4 sm:$0xff]  }
 0x64a   :  { %v17736_v37 = vadd.f32 %v17735_v40, %v17734_v7  ;;  %v17737_v9 = vpop.f32.mrb[254].mxu1  ;;  %v20601_v7 = vld [vmem:[%s27058_s5 + $0x414] ss:$20 sps:$4 sm:$0xff]  }
 0x64b   :  { %9726 = vmatmul.mubr.bf16.gmra.mrb[108].mxu0 %v23298_v20  ;;  %v17738_v45 = vpop.f32.mrb[255].mxu1 }
 0x64c   :  { %v24713_v35 = vadd.f32 %v17736_v37, %v24522_v56  ;;  %v17739_v3 = vadd.f32 %v17738_v45, %v17737_v9  ;;  %9735 = vmatprep.mubr.bf16.mxu0 %v27242_v11  ;;  %9803 = vmatpush1.bf16.msra.mxu0 %v20593_v24  ;;  %v20599_v56 = vld [vmem:[%s27058_s5 + $0x410] ss:$20 sps:$4 sm:$0xff]   ;;  %v27243_v45 = vld [vmem:[#allocation39_spill] sm:$0xff] }
 0x64d   :  { %9804 = vmatprep.subr.bf16.mxu0 %v20598_v38  ;;  %v20604_v24 = vld [vmem:[%s27058_s5 + $0x43c] ss:$20 sps:$4 sm:$0xff]  }
 0x64e   :  { %v24723_v40 = vadd.f32 %v17739_v3, %v24533_v31 }
 0x650   :  { %v17740_v20 = vpop.f32.mrb[0].mxu1  ;;  %9805 = vmatpush1.bf16.msra.mxu0 %v20596_v29  ;;  %v27244_v29 = vld [vmem:[#allocation41_spill] sm:$0xff] }
 0x651   :  { %v17741_v37 = vpop.f32.mrb[1].mxu1  ;;  %9806 = vmatprep.subr.bf16.mxu0 %v20601_v7  ;;  %v20602_v7 = vld [vmem:[%s27058_s5 + $0x438] ss:$20 sps:$4 sm:$0xff]  }
 0x652   :  { %v17742_v38 = vadd.f32 %v17741_v37, %v17740_v20  ;;  %v17743_v9 = vpop.f32.mrb[2].mxu1  ;;  %v20607_v20 = vld [vmem:[%s27058_s5 + $0x464] ss:$20 sps:$4 sm:$0xff]  }
 0x653   :  { %9736 = vmatmul.mubr.bf16.gmra.mrb[112].mxu0 %v27243_v45  ;;  %v17744_v11 = vpop.f32.mrb[3].mxu1 }
 0x654   :  { %v24733_v31 = vadd.f32 %v17742_v38, %v24544_v58  ;;  %v17745_v3 = vadd.f32 %v17744_v11, %v17743_v9  ;;  %9745 = vmatprep.mubr.bf16.mxu0 %v27244_v29  ;;  %9807 = vmatpush1.bf16.msra.mxu0 %v20599_v56  ;;  %v20605_v58 = vld [vmem:[%s27058_s5 + $0x460] ss:$20 sps:$4 sm:$0xff]  }
 0x655   :  { %9808 = vmatprep.subr.bf16.mxu0 %v20604_v24  ;;  %v20610_v56 = vld [vmem:[%s27058_s5 + $0x48c] ss:$20 sps:$4 sm:$0xff]  }
 0x656   :  { %v24743_v37 = vadd.f32 %v17745_v3, %v24555_v50 }
 0x658   :  { %v17746_v45 = vpop.f32.mrb[4].mxu1  ;;  %9809 = vmatpush1.bf16.msra.mxu0 %v20602_v7  ;;  %v20608_v7 = vld [vmem:[%s27058_s5 + $0x488] ss:$20 sps:$4 sm:$0xff]  }
 0x659   :  { %v17747_v11 = vpop.f32.mrb[5].mxu1  ;;  %9810 = vmatprep.subr.bf16.mxu0 %v20607_v20 }
 0x65a   :  { %v17748_v24 = vadd.f32 %v17747_v11, %v17746_v45  ;;  %v17749_v38 = vpop.f32.mrb[6].mxu1  ;;  %v20613_v45 = vld [vmem:[%s27058_s5 + $0x4b4] ss:$20 sps:$4 sm:$0xff]  }
 0x65b   :  { %9746 = vmatmul.mubr.bf16.gmra.mrb[116].mxu0 %v23355_v53  ;;  %v17750_v9 = vpop.f32.mrb[7].mxu1 }
 0x65c   :  { %v24753_v50 = vadd.f32 %v17748_v24, %v24566_v6  ;;  %v17751_v3 = vadd.f32 %v17750_v9, %v17749_v38  ;;  %9755 = vmatprep.mubr.bf16.mxu0 %v23396_v48  ;;  %9811 = vmatpush1.bf16.msra.mxu0 %v20605_v58  ;;  %v20611_v6 = vld [vmem:[%s27058_s5 + $0x4b0] ss:$20 sps:$4 sm:$0xff]  }
 0x65d   :  { %9812 = vmatprep.subr.bf16.mxu0 %v20610_v56  ;;  %v20616_v58 = vld [vmem:[%s27058_s5 + $0x4dc] ss:$20 sps:$4 sm:$0xff]  }
 0x65e   :  { %v24763_v20 = vadd.f32 %v17751_v3, %v24577_v14 }
 0x660   :  { %v17752_v11 = vpop.f32.mrb[8].mxu1  ;;  %9813 = vmatpush1.bf16.msra.mxu0 %v20608_v7  ;;  %v20614_v7 = vld [vmem:[%s27058_s5 + $0x4d8] ss:$20 sps:$4 sm:$0xff]  }
 0x661   :  { %v17753_v24 = vpop.f32.mrb[9].mxu1  ;;  %9814 = vmatprep.subr.bf16.mxu0 %v20613_v45  ;;  %v20619_v45 = vld [vmem:[%s27058_s5 + $0x504] ss:$20 sps:$4 sm:$0xff]  }
 0x662   :  { %v17754_v56 = vadd.f32 %v17753_v24, %v17752_v11  ;;  %v17755_v38 = vpop.f32.mrb[10].mxu1 }
 0x663   :  { %9756 = vmatmul.mubr.bf16.gmra.mrb[120].mxu0 %v23391_v61  ;;  %v17756_v9 = vpop.f32.mrb[11].mxu1 }
 0x664   :  { %v24773_v14 = vadd.f32 %v17754_v56, %v24588_v0  ;;  %v17757_v3 = vadd.f32 %v17756_v9, %v17755_v38  ;;  %9765 = vmatprep.mubr.bf16.mxu0 %v23432_v30  ;;  %9815 = vmatpush1.bf16.msra.mxu0 %v20611_v6  ;;  %v27245_v30 = vld [vmem:[#allocation45_spill] sm:$0xff] }
 0x665   :  { %9816 = vmatprep.subr.bf16.mxu0 %v20616_v58 }
 0x666   :  { %v24783_v11 = vadd.f32 %v17757_v3, %v24599_v18 }
 0x668   :  { %v17758_v24 = vpop.f32.mrb[12].mxu1  ;;  %9817 = vmatpush1.bf16.msra.mxu0 %v20614_v7 }
 0x669   :  { %v17759_v0 = vpop.f32.mrb[13].mxu1  ;;  %9919 = vmatprep.subr.bf16.mxu0 %v20619_v45 }
 0x66a   :  { %v17760_v56 = vadd.f32 %v17759_v0, %v17758_v24  ;;  %v17761_v38 = vpop.f32.mrb[14].mxu1 }
 0x66b   :  { %9766 = vmatmul.mubr.bf16.gmra.mrb[124].mxu0 %v23427_v49  ;;  %v17762_v6 = vpop.f32.mrb[15].mxu1 }
 0x66c   :  { %v24787_v9 = vadd.f32 %v17760_v56, %v24604_v2  ;;  %v17763_v58 = vadd.f32 %v17762_v6, %v17761_v38  ;;  %9775 = vmatprep.mubr.bf16.mxu0 %v27245_v30  ;;  %v20622_v6 = vld [vmem:[%s27058_s5 + $0x52c] ss:$20 sps:$4 sm:$0xff]  }
 0x66e   :  { %v24791_v61 = vadd.f32 %v17763_v58, %v24609_v54  ;;  %v20617_v54 = vld [vmem:[%s27058_s5 + $0x500] ss:$20 sps:$4 sm:$0xff]  }
 0x670   :  { %v17780_v18 = vpop.f32.mrb[16].mxu1 }
 0x671   :  { %v17781_v3 = vpop.f32.mrb[17].mxu1 }
 0x672   :  { %v17782_v48 = vadd.f32 %v17781_v3, %v17780_v18  ;;  %v17783_v7 = vpop.f32.mrb[18].mxu1  ;;  %v27246_v3 = vld [vmem:[#allocation17_spill] sm:$0xff] }
 0x673   :  { %9776 = vmatmul.mubr.bf16.gmra.mrb[128].mxu0 %v23463_v52  ;;  %v17784_v45 = vpop.f32.mrb[19].mxu1 }
 0x674   :  { %v24795_v24 = vadd.f32 %v17782_v48, %v24614_v33  ;;  %v17785_v0 = vadd.f32 %v17784_v45, %v17783_v7  ;;  %9818 = vmatprep.mubr.bf16.mxu0 %v22880_v51  ;;  %v20620_v7 = vld [vmem:[%s27058_s5 + $0x528] ss:$20 sps:$4 sm:$0xff]  }
 0x675   :  { %v20625_v45 = vld [vmem:[%s27058_s5 + $0x554] ss:$20 sps:$4 sm:$0xff]  }
 0x676   :  { %v24799_v2 = vadd.f32 %v17785_v0, %v24619_v46 }
 0x678   :  { %v17786_v56 = vpop.f32.mrb[20].mxu1 }
 0x679   :  { %v17787_v38 = vpop.f32.mrb[21].mxu1 }
 0x67a   :  { %v17788_v58 = vadd.f32 %v17787_v38, %v17786_v56  ;;  %v17789_v18 = vpop.f32.mrb[22].mxu1 }
 0x67b   :  { %9819 = vmatmul.mubr.bf16.vlgmr.msra.gmra.mrb[92].mxu0 %v27214_v26  ;;  %v17790_v48 = vpop.f32.mrb[23].mxu1 }
 0x67c   :  { %v24809_v33 = vadd.f32 %v17788_v58, %v24630_v12  ;;  %v17791_v46 = vadd.f32 %v17790_v48, %v17789_v18  ;;  %9828 = vmatprep.mubr.bf16.mxu0 %v27246_v3  ;;  %9920 = vmatpush1.bf16.msra.mxu0 %v20617_v54  ;;  %v20623_v12 = vld [vmem:[%s27058_s5 + $0x550] ss:$20 sps:$4 sm:$0xff]  }
 0x67d   :  { %9921 = vmatprep.subr.bf16.mxu0 %v20622_v6  ;;  %v20628_v54 = vld [vmem:[%s27058_s5 + $0x57c] ss:$20 sps:$4 sm:$0xff]  }
 0x67e   :  { %v24819_v0 = vadd.f32 %v17791_v46, %v24641_v15  ;;  %v27247_v46 = vld [vmem:[#allocation18_spill] sm:$0xff] }
 0x680   :  { %v17792_v56 = vpop.f32.mrb[24].mxu1  ;;  %9922 = vmatpush1.bf16.msra.mxu0 %v20620_v7  ;;  %v20626_v7 = vld [vmem:[%s27058_s5 + $0x578] ss:$20 sps:$4 sm:$0xff]  }
 0x681   :  { %v17793_v38 = vpop.f32.mrb[25].mxu1  ;;  %9923 = vmatprep.subr.bf16.mxu0 %v20625_v45  ;;  %v20631_v45 = vld [vmem:[%s27058_s5 + $0x5a4] ss:$20 sps:$4 sm:$0xff]  }
 0x682   :  { %v17794_v6 = vadd.f32 %v17793_v38, %v17792_v56  ;;  %v17795_v58 = vpop.f32.mrb[26].mxu1 }
 0x683   :  { %9829 = vmatmul.mubr.bf16.gmra.mrb[96].mxu0 %v22906_v8  ;;  %v17796_v18 = vpop.f32.mrb[27].mxu1 }
 0x684   :  { %v24829_v15 = vadd.f32 %v17794_v6, %v24652_v34  ;;  %v17797_v48 = vadd.f32 %v17796_v18, %v17795_v58  ;;  %9838 = vmatprep.mubr.bf16.mxu0 %v27247_v46  ;;  %9924 = vmatpush1.bf16.msra.mxu0 %v20623_v12  ;;  %v20629_v34 = vld [vmem:[%s27058_s5 + $0x5a0] ss:$20 sps:$4 sm:$0xff]  }
 0x685   :  { %9925 = vmatprep.subr.bf16.mxu0 %v20628_v54  ;;  %v20634_v12 = vld [vmem:[%s27058_s5 + $0x5cc] ss:$20 sps:$4 sm:$0xff]  }
 0x686   :  { %v24839_v56 = vadd.f32 %v17797_v48, %v24663_v13 }
 0x688   :  { %v17798_v38 = vpop.f32.mrb[28].mxu1  ;;  %9926 = vmatpush1.bf16.msra.mxu0 %v20626_v7  ;;  %v20632_v7 = vld [vmem:[%s27058_s5 + $0x5c8] ss:$20 sps:$4 sm:$0xff]  }
 0x689   :  { %v17799_v6 = vpop.f32.mrb[29].mxu1  ;;  %9927 = vmatprep.subr.bf16.mxu0 %v20631_v45  ;;  %v20637_v45 = vld [vmem:[%s27058_s5 + $0x5f4] ss:$20 sps:$4 sm:$0xff]  }
 0x68a   :  { %v17800_v54 = vadd.f32 %v17799_v6, %v17798_v38  ;;  %v17801_v58 = vpop.f32.mrb[30].mxu1 }
 0x68b   :  { %9839 = vmatmul.mubr.bf16.gmra.mrb[100].mxu0 %v22937_v28  ;;  %v17802_v18 = vpop.f32.mrb[31].mxu1 }
 0x68c   :  { %v24849_v13 = vadd.f32 %v17800_v54, %v24673_v47  ;;  %v17803_v48 = vadd.f32 %v17802_v18, %v17801_v58  ;;  %9848 = vmatprep.mubr.bf16.mxu0 %v22964_v25  ;;  %9928 = vmatpush1.bf16.msra.mxu0 %v20629_v34  ;;  %v20635_v47 = vld [vmem:[%s27058_s5 + $0x5f0] ss:$20 sps:$4 sm:$0xff]  }
 0x68d   :  { %9929 = vmatprep.subr.bf16.mxu0 %v20634_v12  ;;  %v20640_v34 = vld [vmem:[%s27058_s5 + $0x61c] ss:$20 sps:$4 sm:$0xff]  }
 0x68e   :  { %v24859_v38 = vadd.f32 %v17803_v48, %v24683_v27 }
 0x690   :  { %v17804_v6 = vpop.f32.mrb[32].mxu1  ;;  %9930 = vmatpush1.bf16.msra.mxu0 %v20632_v7  ;;  %v20638_v7 = vld [vmem:[%s27058_s5 + $0x618] ss:$20 sps:$4 sm:$0xff]  }
 0x691   :  { %v17805_v54 = vpop.f32.mrb[33].mxu1  ;;  %9931 = vmatprep.subr.bf16.mxu0 %v20637_v45  ;;  %v20643_v45 = vld [vmem:[%s27058_s5 + $0x644] ss:$20 sps:$4 sm:$0xff]  }
 0x692   :  { %v17806_v12 = vadd.f32 %v17805_v54, %v17804_v6  ;;  %v17807_v58 = vpop.f32.mrb[34].mxu1 }
 0x693   :  { %9849 = vmatmul.mubr.bf16.gmra.mrb[104].mxu0 %v22962_v23  ;;  %v17808_v18 = vpop.f32.mrb[35].mxu1 }
 0x694   :  { %v24869_v27 = vadd.f32 %v17806_v12, %v24693_v60  ;;  %v17809_v48 = vadd.f32 %v17808_v18, %v17807_v58  ;;  %9858 = vmatprep.mubr.bf16.mxu0 %v22986_v41  ;;  %9932 = vmatpush1.bf16.msra.mxu0 %v20635_v47  ;;  %v20641_v60 = vld [vmem:[%s27058_s5 + $0x640] ss:$20 sps:$4 sm:$0xff]  }
 0x695   :  { %9933 = vmatprep.subr.bf16.mxu0 %v20640_v34  ;;  %v20646_v47 = vld [vmem:[%s27058_s5 + $0x66c] ss:$20 sps:$4 sm:$0xff]  }
 0x696   :  { %v24879_v6 = vadd.f32 %v17809_v48, %v24703_v63 }
 0x698   :  { %v17810_v54 = vpop.f32.mrb[36].mxu1  ;;  %9934 = vmatpush1.bf16.msra.mxu0 %v20638_v7  ;;  %v20644_v7 = vld [vmem:[%s27058_s5 + $0x668] ss:$20 sps:$4 sm:$0xff]  }
 0x699   :  { %v17811_v12 = vpop.f32.mrb[37].mxu1  ;;  %9935 = vmatprep.subr.bf16.mxu0 %v20643_v45  ;;  %v20649_v45 = vld [vmem:[%s27058_s5 + $0x694] ss:$20 sps:$4 sm:$0xff]  }
 0x69a   :  { %v17812_v34 = vadd.f32 %v17811_v12, %v17810_v54  ;;  %v17813_v58 = vpop.f32.mrb[38].mxu1 }
 0x69b   :  { %9859 = vmatmul.mubr.bf16.gmra.mrb[108].mxu0 %v22984_v39  ;;  %v17814_v18 = vpop.f32.mrb[39].mxu1 }
 0x69c   :  { %v24889_v63 = vadd.f32 %v17812_v34, %v24713_v35  ;;  %v17815_v48 = vadd.f32 %v17814_v18, %v17813_v58  ;;  %9868 = vmatprep.mubr.bf16.mxu0 %v23005_v44  ;;  %9936 = vmatpush1.bf16.msra.mxu0 %v20641_v60  ;;  %v20647_v35 = vld [vmem:[%s27058_s5 + $0x690] ss:$20 sps:$4 sm:$0xff]  }
 0x69d   :  { %9937 = vmatprep.subr.bf16.mxu0 %v20646_v47  ;;  %v20652_v60 = vld [vmem:[%s27058_s5 + $0x6bc] ss:$20 sps:$4 sm:$0xff]  }
 0x69e   :  { %v24899_v54 = vadd.f32 %v17815_v48, %v24723_v40 }
 0x6a0   :  { %v17816_v12 = vpop.f32.mrb[40].mxu1  ;;  %9938 = vmatpush1.bf16.msra.mxu0 %v20644_v7  ;;  %v20650_v7 = vld [vmem:[%s27058_s5 + $0x6b8] ss:$20 sps:$4 sm:$0xff]  }
 0x6a1   :  { %v17817_v34 = vpop.f32.mrb[41].mxu1  ;;  %9939 = vmatprep.subr.bf16.mxu0 %v20649_v45  ;;  %v20655_v45 = vld [vmem:[%s27058_s5 + $0x6e4] ss:$20 sps:$4 sm:$0xff]  }
 0x6a2   :  { %v17818_v47 = vadd.f32 %v17817_v34, %v17816_v12  ;;  %v17819_v58 = vpop.f32.mrb[42].mxu1 }
 0x6a3   :  { %9869 = vmatmul.mubr.bf16.gmra.mrb[112].mxu0 %v23003_v5  ;;  %v17820_v18 = vpop.f32.mrb[43].mxu1  ;;  %v27253_v5 = vld [vmem:[#allocation26_spill] sm:$0xff] }
 0x6a4   :  { %v24909_v40 = vadd.f32 %v17818_v47, %v24733_v31  ;;  %v17821_v48 = vadd.f32 %v17820_v18, %v17819_v58  ;;  %9878 = vmatprep.mubr.bf16.mxu0 %v23039_v42  ;;  %9940 = vmatpush1.bf16.msra.mxu0 %v20647_v35  ;;  %v20653_v31 = vld [vmem:[%s27058_s5 + $0x6e0] ss:$20 sps:$4 sm:$0xff]  }
 0x6a5   :  { %9941 = vmatprep.subr.bf16.mxu0 %v20652_v60  ;;  %v20658_v35 = vld [vmem:[%s27058_s5 + $0x70c] ss:$20 sps:$4 sm:$0xff]  }
 0x6a6   :  { %v24919_v12 = vadd.f32 %v17821_v48, %v24743_v37 }
 0x6a8   :  { %v17822_v34 = vpop.f32.mrb[44].mxu1  ;;  %9942 = vmatpush1.bf16.msra.mxu0 %v20650_v7  ;;  %v20656_v7 = vld [vmem:[%s27058_s5 + $0x708] ss:$20 sps:$4 sm:$0xff]  }
 0x6a9   :  { %v17823_v47 = vpop.f32.mrb[45].mxu1  ;;  %9943 = vmatprep.subr.bf16.mxu0 %v20655_v45  ;;  %v20661_v45 = vld [vmem:[%s27058_s5 + $0x734] ss:$20 sps:$4 sm:$0xff]  }
 0x6aa   :  { %v17824_v60 = vadd.f32 %v17823_v47, %v17822_v34  ;;  %v17825_v58 = vpop.f32.mrb[46].mxu1 }
 0x6ab   :  { %9879 = vmatmul.mubr.bf16.gmra.mrb[116].mxu0 %v23031_v19  ;;  %v17826_v18 = vpop.f32.mrb[47].mxu1 }
 0x6ac   :  { %v24929_v37 = vadd.f32 %v17824_v60, %v24753_v50  ;;  %v17827_v48 = vadd.f32 %v17826_v18, %v17825_v58  ;;  %9888 = vmatprep.mubr.bf16.mxu0 %v23073_v57  ;;  %9944 = vmatpush1.bf16.msra.mxu0 %v20653_v31  ;;  %v20659_v50 = vld [vmem:[%s27058_s5 + $0x730] ss:$20 sps:$4 sm:$0xff]   ;;  %v27250_v57 = vld [vmem:[#allocation27_spill] sm:$0xff] }
 0x6ad   :  { %9945 = vmatprep.subr.bf16.mxu0 %v20658_v35  ;;  %v20664_v31 = vld [vmem:[%s27058_s5 + $0x75c] ss:$20 sps:$4 sm:$0xff]  }
 0x6ae   :  { %v24939_v34 = vadd.f32 %v17827_v48, %v24763_v20 }
 0x6b0   :  { %v17828_v47 = vpop.f32.mrb[48].mxu1  ;;  %9946 = vmatpush1.bf16.msra.mxu0 %v20656_v7  ;;  %v27248_v7 = vld [vmem:[#allocation25_spill] sm:$0xff] }
 0x6b1   :  { %v17829_v60 = vpop.f32.mrb[49].mxu1  ;;  %9947 = vmatprep.subr.bf16.mxu0 %v20661_v45  ;;  %v20662_v45 = vld [vmem:[%s27058_s5 + $0x758] ss:$20 sps:$4 sm:$0xff]  }
 0x6b2   :  { %v17830_v35 = vadd.f32 %v17829_v60, %v17828_v47  ;;  %v17831_v58 = vpop.f32.mrb[50].mxu1  ;;  %v20667_v47 = vld [vmem:[%s27058_s5 + $0xc] ss:$20 sps:$4 sm:$0xff]  }
 0x6b3   :  { %9889 = vmatmul.mubr.bf16.gmra.mrb[120].mxu0 %v23065_v17  ;;  %v17832_v18 = vpop.f32.mrb[51].mxu1 }
 0x6b4   :  { %v24949_v20 = vadd.f32 %v17830_v35, %v24773_v14  ;;  %v17833_v48 = vadd.f32 %v17832_v18, %v17831_v58  ;;  %9898 = vmatprep.mubr.bf16.mxu0 %v27248_v7  ;;  %9948 = vmatpush1.bf16.msra.mxu0 %v20659_v50  ;;  %v27249_v18 = vld [vmem:[#allocation24_spill] sm:$0xff] }
 0x6b5   :  { %9949 = vmatprep.subr.bf16.mxu0 %v20664_v31 }
 0x6b6   :  { %v24959_v60 = vadd.f32 %v17833_v48, %v24783_v11  ;;  %v24969_v11 = vld [vmem:[#allocation9] sm:$0x1f] }
 0x6b8   :  { %v17834_v17 = vpop.f32.mrb[52].mxu1  ;;  %9950 = vmatpush1.bf16.msra.mxu0 %v20662_v45 }
 0x6b9   :  { %v17835_v14 = vpop.f32.mrb[53].mxu1  ;;  %10052 = vmatprep.subr.bf16.mxu0 %v20667_v47  ;;  %v27251_v47 = vld [vmem:[#allocation12_spill] sm:$0xff] }
 0x6ba   :  { %v17836_v35 = vadd.f32 %v17835_v14, %v17834_v17  ;;  %v17837_v58 = vpop.f32.mrb[54].mxu1  ;;  %v27252_v17 = vsub.s32 4, %v27251_v47 }
 0x6bb   :  { %9899 = vmatmul.mubr.bf16.gmra.mrb[124].mxu0 %v27249_v18  ;;  %v17838_v50 = vpop.f32.mrb[55].mxu1 }
 0x6bc   :  { %v24963_v7 = vadd.f32 %v17836_v35, %v24787_v9  ;;  %v17839_v31 = vadd.f32 %v17838_v50, %v17837_v58  ;;  %9908 = vmatprep.mubr.bf16.mxu0 %v27250_v57  ;;  %v24974_v14 = vrot.slane %v24969_v11, %v27252_v17  ;;  %v27254_v50 = vld [vmem:[#allocation47_spill] sm:$0xff]  ;;  %v20668_v57 = vld [vmem:[%s27058_s5 + $0x30] ss:$20 sps:$4 sm:$0xff]  }
 0x6bd   :  { %v20665_v17 = vld [vmem:[%s27058_s5 + $0x8] ss:$20 sps:$4 sm:$0xff]  }
 0x6be   :  { %v24967_v19 = vadd.f32 %v17839_v31, %v24791_v61 }
 0x6c0   :  { %v17856_v48 = vpop.f32.mrb[56].mxu1 }
 0x6c1   :  { %v17857_v45 = vpop.f32.mrb[57].mxu1 }
 0x6c2   :  { %v17858_v42 = vadd.f32 %v17857_v45, %v17856_v48  ;;  %v17859_v18 = vpop.f32.mrb[58].mxu1 }
 0x6c3   :  { %9909 = vmatmul.mubr.bf16.gmra.mrb[128].mxu0 %v27253_v5  ;;  %v17860_v9 = vpop.f32.mrb[59].mxu1  ;;  %v20670_v5 = vld [vmem:[%s27058_s5 + $0x34] ss:$20 sps:$4 sm:$0xff]  }
 0x6c4   :  { %v10712_v35 = vadd.f32 %v17858_v42, %v24795_v24  ;;  %v17861_v58 = vadd.f32 %v17860_v9, %v17859_v18  ;;  %9951 = vmatprep.mubr.bf16.mxu0 %v27254_v50  ;;  %v27256_v50 = vld [vmem:[#allocation49_spill] sm:$0xff] }
 0x6c6   :  { %v10821_v61 = vadd.f32 %v24974_v14, %v10712_v35  ;;  %v10715_v31 = vadd.f32 %v17861_v58, %v24799_v2 }
 0x6c8   :  { %v10826_v48 = vadd.f32 %v24974_v14, %v10715_v31  ;;  %v17862_v45 = vpop.f32.mrb[60].mxu1  ;;  %v10921_v42 = vmax.f32 %v10821_v61, 0.0 }
 0x6c9   :  { %v17863_v47 = vpop.f32.mrb[61].mxu1 }
 0x6ca   :  { %v10926_v24 = vmax.f32 %v10826_v48, 0.0  ;;  %v17864_v18 = vadd.f32 %v17863_v47, %v17862_v45  ;;  %v17865_v9 = vpop.f32.mrb[62].mxu1  ;;  %v20673_v47 = vld [vmem:[%s27058_s5 + $0x5c] ss:$20 sps:$4 sm:$0xff]  }
 0x6cb   :  { %9952 = vmatmul.mubr.bf16.vlgmr.msra.gmra.mrb[92].mxu0 %v27224_v32  ;;  %v17866_v35 = vpop.f32.mrb[63].mxu1 }
 0x6cc   :  { %v24989_v2 = vpack.c.bf16 %v10926_v24, %v10921_v42  ;;  %v10720_v58 = vadd.f32 %v17864_v18, %v24809_v33  ;;  %v17867_v31 = vadd.f32 %v17866_v35, %v17865_v9  ;;  %9961 = vmatprep.mubr.bf16.mxu0 %v27256_v50  ;;  %10053 = vmatpush1.bf16.msra.mxu0 %v20665_v17  ;;  %v20671_v17 = vld [vmem:[%s27058_s5 + $0x58] ss:$20 sps:$4 sm:$0xff]  }
 0x6cd   :  { %10054 = vmatprep.subr.bf16.mxu0 %v20670_v5  ;;  %v20676_v5 = vld [vmem:[%s27058_s5 + $0x84] ss:$20 sps:$4 sm:$0xff]  }
 0x6ce   :  { %27255 = vst [vmem:[#allocation16_spill] sm:$0xff] %v24989_v2  ;;  %v10831_v61 = vadd.f32 %v24974_v14, %v10720_v58  ;;  %v10723_v48 = vadd.f32 %v17867_v31, %v24819_v0  ;;  %v27257_v58 = vld [vmem:[#allocation48_spill] sm:$0xff]  ;;  %v27259_v2 = vld [vmem:[#allocation51_spill] sm:$0xff] }
 0x6d0   :  { %v10836_v45 = vadd.f32 %v24974_v14, %v10723_v48  ;;  %v17868_v33 = vpop.f32.mrb[64].mxu1  ;;  %10055 = vmatpush1.bf16.msra.mxu0 %v20668_v57  ;;  %v10931_v24 = vmax.f32 %v10831_v61, 0.0  ;;  %v20679_v61 = vld [vmem:[%s27058_s5 + $0xac] ss:$20 sps:$4 sm:$0xff]  }
 0x6d1   :  { %v17869_v42 = vpop.f32.mrb[65].mxu1  ;;  %10056 = vmatprep.subr.bf16.mxu0 %v20673_v47  ;;  %v20674_v47 = vld [vmem:[%s27058_s5 + $0x80] ss:$20 sps:$4 sm:$0xff]  }
 0x6d2   :  { %v10936_v18 = vmax.f32 %v10836_v45, 0.0  ;;  %v17870_v9 = vadd.f32 %v17869_v42, %v17868_v33  ;;  %v17871_v35 = vpop.f32.mrb[66].mxu1 }
 0x6d3   :  { %9962 = vmatmul.mubr.bf16.gmra.mrb[96].mxu0 %v27257_v58  ;;  %v17872_v0 = vpop.f32.mrb[67].mxu1 }
 0x6d4   :  { %v25009_v31 = vpack.c.bf16 %v10936_v18, %v10931_v24  ;;  %v10728_v57 = vadd.f32 %v17870_v9, %v24829_v15  ;;  %v17873_v48 = vadd.f32 %v17872_v0, %v17871_v35  ;;  %9971 = vmatprep.mubr.bf16.mxu0 %v27259_v2  ;;  %10057 = vmatpush1.bf16.msra.mxu0 %v20671_v17  ;;  %v20677_v17 = vld [vmem:[%s27058_s5 + $0xa8] ss:$20 sps:$4 sm:$0xff]  }
 0x6d5   :  { %10058 = vmatprep.subr.bf16.mxu0 %v20676_v5  ;;  %v20682_v5 = vld [vmem:[%s27058_s5 + $0xd4] ss:$20 sps:$4 sm:$0xff]  }
 0x6d6   :  { %27258 = vst [vmem:[#allocation28_spill] sm:$0xff] %v25009_v31  ;;  %v10841_v45 = vadd.f32 %v24974_v14, %v10728_v57  ;;  %v10731_v33 = vadd.f32 %v17873_v48, %v24839_v56  ;;  %v27260_v57 = vld [vmem:[#allocation50_spill] sm:$0xff]  ;;  %v27262_v31 = vld [vmem:[#allocation53_spill] sm:$0xff] }
 0x6d8   :  { %v10846_v42 = vadd.f32 %v24974_v14, %v10731_v33  ;;  %v17874_v15 = vpop.f32.mrb[68].mxu1  ;;  %10059 = vmatpush1.bf16.msra.mxu0 %v20674_v47  ;;  %v10941_v18 = vmax.f32 %v10841_v45, 0.0  ;;  %v20685_v45 = vld [vmem:[%s27058_s5 + $0xfc] ss:$20 sps:$4 sm:$0xff]  }
 0x6d9   :  { %v17875_v24 = vpop.f32.mrb[69].mxu1  ;;  %10060 = vmatprep.subr.bf16.mxu0 %v20679_v61  ;;  %v20680_v61 = vld [vmem:[%s27058_s5 + $0xd0] ss:$20 sps:$4 sm:$0xff]  }
 0x6da   :  { %v10946_v9 = vmax.f32 %v10846_v42, 0.0  ;;  %v17876_v35 = vadd.f32 %v17875_v24, %v17874_v15  ;;  %v17877_v0 = vpop.f32.mrb[70].mxu1 }
 0x6db   :  { %9972 = vmatmul.mubr.bf16.gmra.mrb[100].mxu0 %v27260_v57  ;;  %v17878_v56 = vpop.f32.mrb[71].mxu1 }
 0x6dc   :  { %v25029_v48 = vpack.c.bf16 %v10946_v9, %v10941_v18  ;;  %v10736_v47 = vadd.f32 %v17876_v35, %v24849_v13  ;;  %v17879_v33 = vadd.f32 %v17878_v56, %v17877_v0  ;;  %9981 = vmatprep.mubr.bf16.mxu0 %v27262_v31  ;;  %10061 = vmatpush1.bf16.msra.mxu0 %v20677_v17  ;;  %v20683_v17 = vld [vmem:[%s27058_s5 + $0xf8] ss:$20 sps:$4 sm:$0xff]  }
 0x6dd   :  { %10062 = vmatprep.subr.bf16.mxu0 %v20682_v5  ;;  %v20688_v5 = vld [vmem:[%s27058_s5 + $0x124] ss:$20 sps:$4 sm:$0xff]  }
 0x6de   :  { %27261 = vst [vmem:[#allocation52_spill] sm:$0xff] %v25029_v48  ;;  %v10851_v42 = vadd.f32 %v24974_v14, %v10736_v47  ;;  %v10739_v15 = vadd.f32 %v17879_v33, %v24859_v38  ;;  %v27266_v48 = vld [vmem:[#allocation58_spill] sm:$0xff] }
 0x6e0   :  { %v10856_v24 = vadd.f32 %v24974_v14, %v10739_v15  ;;  %v17880_v13 = vpop.f32.mrb[72].mxu1  ;;  %10063 = vmatpush1.bf16.msra.mxu0 %v20680_v61  ;;  %v10951_v9 = vmax.f32 %v10851_v42, 0.0  ;;  %v27263_v15 = vld [vmem:[#allocation54_spill] sm:$0xff] }
 0x6e1   :  { %v17881_v18 = vpop.f32.mrb[73].mxu1  ;;  %10064 = vmatprep.subr.bf16.mxu0 %v20685_v45  ;;  %v20686_v45 = vld [vmem:[%s27058_s5 + $0x120] ss:$20 sps:$4 sm:$0xff]  }
 0x6e2   :  { %v10956_v35 = vmax.f32 %v10856_v24, 0.0  ;;  %v17882_v0 = vadd.f32 %v17881_v18, %v17880_v13  ;;  %v17883_v56 = vpop.f32.mrb[74].mxu1  ;;  %v20691_v42 = vld [vmem:[%s27058_s5 + $0x14c] ss:$20 sps:$4 sm:$0xff]  }
 0x6e3   :  { %9982 = vmatmul.mubr.bf16.gmra.mrb[104].mxu0 %v27222_v62  ;;  %v17884_v38 = vpop.f32.mrb[75].mxu1 }
 0x6e4   :  { %v25049_v47 = vpack.c.bf16 %v10956_v35, %v10951_v9  ;;  %v10744_v33 = vadd.f32 %v17882_v0, %v24869_v27  ;;  %v17885_v61 = vadd.f32 %v17884_v38, %v17883_v56  ;;  %9991 = vmatprep.mubr.bf16.mxu0 %v27263_v15  ;;  %10065 = vmatpush1.bf16.msra.mxu0 %v20683_v17  ;;  %v20689_v17 = vld [vmem:[%s27058_s5 + $0x148] ss:$20 sps:$4 sm:$0xff]  }
 0x6e5   :  { %10066 = vmatprep.subr.bf16.mxu0 %v20688_v5  ;;  %v20694_v5 = vld [vmem:[%s27058_s5 + $0x174] ss:$20 sps:$4 sm:$0xff]  }
 0x6e6   :  { %v10861_v24 = vadd.f32 %v24974_v14, %v10744_v33  ;;  %v10747_v13 = vadd.f32 %v17885_v61, %v24879_v6 }
 0x6e8   :  { %v10866_v18 = vadd.f32 %v24974_v14, %v10747_v13  ;;  %v17886_v27 = vpop.f32.mrb[76].mxu1  ;;  %10067 = vmatpush1.bf16.msra.mxu0 %v20686_v45  ;;  %v10961_v35 = vmax.f32 %v10861_v24, 0.0  ;;  %v27264_v13 = vld [vmem:[#allocation56_spill] sm:$0xff] }
 0x6e9   :  { %v17887_v9 = vpop.f32.mrb[77].mxu1  ;;  %10068 = vmatprep.subr.bf16.mxu0 %v20691_v42  ;;  %v20692_v42 = vld [vmem:[%s27058_s5 + $0x170] ss:$20 sps:$4 sm:$0xff]  }
 0x6ea   :  { %v10966_v0 = vmax.f32 %v10866_v18, 0.0  ;;  %v17888_v56 = vadd.f32 %v17887_v9, %v17886_v27  ;;  %v17889_v38 = vpop.f32.mrb[78].mxu1  ;;  %v20697_v24 = vld [vmem:[%s27058_s5 + $0x19c] ss:$20 sps:$4 sm:$0xff]  }
 0x6eb   :  { %9992 = vmatmul.mubr.bf16.gmra.mrb[108].mxu0 %v23775_v4  ;;  %v17890_v6 = vpop.f32.mrb[79].mxu1 }
 0x6ec   :  { %v25069_v33 = vpack.c.bf16 %v10966_v0, %v10961_v35  ;;  %v10752_v61 = vadd.f32 %v17888_v56, %v24889_v63  ;;  %v17891_v45 = vadd.f32 %v17890_v6, %v17889_v38  ;;  %10001 = vmatprep.mubr.bf16.mxu0 %v27264_v13  ;;  %10069 = vmatpush1.bf16.msra.mxu0 %v20689_v17  ;;  %v20695_v17 = vld [vmem:[%s27058_s5 + $0x198] ss:$20 sps:$4 sm:$0xff]  }
 0x6ed   :  { %10070 = vmatprep.subr.bf16.mxu0 %v20694_v5  ;;  %v20700_v5 = vld [vmem:[%s27058_s5 + $0x1c4] ss:$20 sps:$4 sm:$0xff]  }
 0x6ee   :  { %v10871_v18 = vadd.f32 %v24974_v14, %v10752_v61  ;;  %v10755_v27 = vadd.f32 %v17891_v45, %v24899_v54  ;;  %v27265_v61 = vld [vmem:[#allocation55_spill] sm:$0xff] }
 0x6f0   :  { %v10876_v9 = vadd.f32 %v24974_v14, %v10755_v27  ;;  %v17892_v63 = vpop.f32.mrb[80].mxu1  ;;  %10071 = vmatpush1.bf16.msra.mxu0 %v20692_v42  ;;  %v10971_v0 = vmax.f32 %v10871_v18, 0.0  ;;  %v20703_v18 = vld [vmem:[%s27058_s5 + $0x1ec] ss:$20 sps:$4 sm:$0xff]  }
 0x6f1   :  { %v17893_v35 = vpop.f32.mrb[81].mxu1  ;;  %10072 = vmatprep.subr.bf16.mxu0 %v20697_v24  ;;  %v20698_v24 = vld [vmem:[%s27058_s5 + $0x1c0] ss:$20 sps:$4 sm:$0xff]  }
 0x6f2   :  { %v10976_v56 = vmax.f32 %v10876_v9, 0.0  ;;  %v17894_v38 = vadd.f32 %v17893_v35, %v17892_v63  ;;  %v17895_v6 = vpop.f32.mrb[82].mxu1 }
 0x6f3   :  { %10002 = vmatmul.mubr.bf16.gmra.mrb[112].mxu0 %v27265_v61  ;;  %v17896_v54 = vpop.f32.mrb[83].mxu1 }
 0x6f4   :  { %v25089_v45 = vpack.c.bf16 %v10976_v56, %v10971_v0  ;;  %v10760_v42 = vadd.f32 %v17894_v38, %v24909_v40  ;;  %v17897_v27 = vadd.f32 %v17896_v54, %v17895_v6  ;;  %10011 = vmatprep.mubr.bf16.mxu0 %v27266_v48  ;;  %10073 = vmatpush1.bf16.msra.mxu0 %v20695_v17  ;;  %v20701_v17 = vld [vmem:[%s27058_s5 + $0x1e8] ss:$20 sps:$4 sm:$0xff]  }
 0x6f5   :  { %10074 = vmatprep.subr.bf16.mxu0 %v20700_v5  ;;  %v20706_v5 = vld [vmem:[%s27058_s5 + $0x214] ss:$20 sps:$4 sm:$0xff]  }
 0x6f6   :  { %v10881_v9 = vadd.f32 %v24974_v14, %v10760_v42  ;;  %v10763_v63 = vadd.f32 %v17897_v27, %v24919_v12 }
 0x6f8   :  { %v10886_v35 = vadd.f32 %v24974_v14, %v10763_v63  ;;  %v17898_v40 = vpop.f32.mrb[84].mxu1  ;;  %10075 = vmatpush1.bf16.msra.mxu0 %v20698_v24  ;;  %v10981_v56 = vmax.f32 %v10881_v9, 0.0  ;;  %v20709_v9 = vld [vmem:[%s27058_s5 + $0x23c] ss:$20 sps:$4 sm:$0xff]  }
 0x6f9   :  { %v17899_v0 = vpop.f32.mrb[85].mxu1  ;;  %10076 = vmatprep.subr.bf16.mxu0 %v20703_v18  ;;  %v20704_v18 = vld [vmem:[%s27058_s5 + $0x210] ss:$20 sps:$4 sm:$0xff]  }
 0x6fa   :  { %v10986_v38 = vmax.f32 %v10886_v35, 0.0  ;;  %v17900_v6 = vadd.f32 %v17899_v0, %v17898_v40  ;;  %v17901_v54 = vpop.f32.mrb[86].mxu1 }
 0x6fb   :  { %10012 = vmatmul.mubr.bf16.gmra.mrb[116].mxu0 %v27228_v22  ;;  %v17902_v12 = vpop.f32.mrb[87].mxu1 }
 0x6fc   :  { %v25109_v42 = vpack.c.bf16 %v10986_v38, %v10981_v56  ;;  %v10768_v27 = vadd.f32 %v17900_v6, %v24929_v37  ;;  %v17903_v24 = vadd.f32 %v17902_v12, %v17901_v54  ;;  %10021 = vmatprep.mubr.bf16.mxu0 %v27229_v36  ;;  %10077 = vmatpush1.bf16.msra.mxu0 %v20701_v17  ;;  %v20707_v17 = vld [vmem:[%s27058_s5 + $0x238] ss:$20 sps:$4 sm:$0xff]  }
 0x6fd   :  { %10078 = vmatprep.subr.bf16.mxu0 %v20706_v5  ;;  %v20712_v5 = vld [vmem:[%s27058_s5 + $0x264] ss:$20 sps:$4 sm:$0xff]  }
 0x6fe   :  { %v10891_v63 = vadd.f32 %v24974_v14, %v10768_v27  ;;  %v10771_v35 = vadd.f32 %v17903_v24, %v24939_v34 }
 0x700   :  { %v10896_v40 = vadd.f32 %v24974_v14, %v10771_v35  ;;  %v17904_v37 = vpop.f32.mrb[88].mxu1  ;;  %10079 = vmatpush1.bf16.msra.mxu0 %v20704_v18  ;;  %v10991_v56 = vmax.f32 %v10891_v63, 0.0  ;;  %v20710_v18 = vld [vmem:[%s27058_s5 + $0x260] ss:$20 sps:$4 sm:$0xff]  }
 0x701   :  { %v17905_v0 = vpop.f32.mrb[89].mxu1  ;;  %10080 = vmatprep.subr.bf16.mxu0 %v20709_v9  ;;  %v20715_v9 = vld [vmem:[%s27058_s5 + $0x28c] ss:$20 sps:$4 sm:$0xff]  }
 0x702   :  { %v10996_v38 = vmax.f32 %v10896_v40, 0.0  ;;  %v17906_v6 = vadd.f32 %v17905_v0, %v17904_v37  ;;  %v17907_v54 = vpop.f32.mrb[90].mxu1 }
 0x703   :  { %10022 = vmatmul.mubr.bf16.gmra.mrb[120].mxu0 %v23883_v1  ;;  %v17908_v34 = vpop.f32.mrb[91].mxu1 }
 0x704   :  { %v25129_v12 = vpack.c.bf16 %v10996_v38, %v10991_v56  ;;  %v10776_v27 = vadd.f32 %v17906_v6, %v24949_v20  ;;  %v17909_v24 = vadd.f32 %v17908_v34, %v17907_v54  ;;  %10031 = vmatprep.mubr.bf16.mxu0 %v23912_v21  ;;  %10081 = vmatpush1.bf16.msra.mxu0 %v20707_v17 }
 0x705   :  { %10082 = vmatprep.subr.bf16.mxu0 %v20712_v5 }
 0x706   :  { %v10901_v63 = vadd.f32 %v24974_v14, %v10776_v27  ;;  %v10779_v35 = vadd.f32 %v17909_v24, %v24959_v60  ;;  %v20785_v60 = vld [vmem:[%s27060_s7 + $0x180] sm:$0xff]  }
 0x707   :  { %v20786_v27 = vld [vmem:[%s27060_s7 + $0x140] sm:$0xff]   ;;  %17916 = vmatprep.subr.bf16.mxu1 %v20785_v60 }
 0x708   :  { %v10906_v40 = vadd.f32 %v24974_v14, %v10779_v35  ;;  %v17910_v20 = vpop.f32.mrb[92].mxu1  ;;  %10083 = vmatpush1.bf16.msra.mxu0 %v20710_v18  ;;  %v11001_v17 = vmax.f32 %v10901_v63, 0.0  ;;  %17917 = vmatpush3.bf16.msra.mxu1 %v20786_v27  ;;  %v20802_v60 = vld [vmem:[%s27060_s7 + $0x1a0] sm:$0xff]  }
 0x709   :  { %v17911_v37 = vpop.f32.mrb[93].mxu1  ;;  %10185 = vmatprep.subr.bf16.mxu0 %v20715_v9  ;;  %v20724_v27 = vld [vmem:[%s27058_s5 + $0x304] ss:$20 sps:$4 sm:$0xff]  }
 0x70a   :  { %v11006_v0 = vmax.f32 %v10906_v40, 0.0  ;;  %v17912_v56 = vadd.f32 %v17911_v37, %v17910_v20  ;;  %v17913_v38 = vpop.f32.mrb[94].mxu1  ;;  %v20790_v40 = vld [vmem:[%s27060_s7 + $0x188] sm:$0xff]   ;;  %v20796_v20 = vld [vmem:[%s27060_s7 + $0x150] sm:$0xff]  }
 0x70b   :  { %10032 = vmatmul.mubr.bf16.gmra.mrb[124].mxu0 %v23910_v55  ;;  %v17914_v5 = vpop.f32.mrb[95].mxu1  ;;  %17918 = vmatprep.subr.bf16.mxu1 %v20790_v40  ;;  %v20718_v37 = vld [vmem:[%s27058_s5 + $0x2b4] ss:$20 sps:$4 sm:$0xff]   ;;  %v20727_v40 = vld [vmem:[%s27058_s5 + $0x32c] ss:$20 sps:$4 sm:$0xff]  }
 0x70c   :  { %v25143_v6 = vpack.c.bf16 %v11006_v0, %v11001_v17  ;;  %v10784_v54 = vadd.f32 %v17912_v56, %v24963_v7  ;;  %v17915_v34 = vadd.f32 %v17914_v5, %v17913_v38  ;;  %10041 = vmatprep.mubr.bf16.mxu0 %v23936_v43  ;;  %v27267_v17 = vld [vmem:[#allocation29_spill] sm:$0xff]  ;;  %v27268_v0 = vld [vmem:[#allocation32_spill] sm:$0xff] }
 0x70d   :  { %v20716_v56 = vld [vmem:[%s27058_s5 + $0x2b0] ss:$20 sps:$4 sm:$0xff]   ;;  %v20800_v38 = vld [vmem:[%s27060_s7 + $0x198] sm:$0xff]  }
 0x70e   :  { %v10911_v24 = vadd.f32 %v24974_v14, %v10784_v54  ;;  %v10787_v18 = vadd.f32 %v17915_v34, %v24967_v19  ;;  %v20791_v19 = vld [vmem:[%s27060_s7 + $0x148] sm:$0xff]   ;;  %v20721_v5 = vld [vmem:[%s27058_s5 + $0x2dc] ss:$20 sps:$4 sm:$0xff]  }
 0x70f   :  { %17919 = vmatpush3.bf16.msra.mxu1 %v20791_v19  ;;  %v20801_v54 = vld [vmem:[%s27060_s7 + $0x158] sm:$0xff]   ;;  %v20808_v19 = vld [vmem:[%s27060_s7 + $0x168] sm:$0xff]  }
 0x710   :  { %v10916_v9 = vadd.f32 %v24974_v14, %v10787_v18  ;;  %v11011_v7 = vmax.f32 %v10911_v24, 0.0  ;;  %v20795_v14 = vld [vmem:[%s27060_s7 + $0x190] sm:$0xff]   ;;  %v20719_v34 = vld [vmem:[%s27058_s5 + $0x2d8] ss:$20 sps:$4 sm:$0xff]   ;;  %v20806_v24 = vld [vmem:[%s27060_s7 + $0x160] sm:$0xff]  }
 0x711   :  { %17920 = vmatprep.subr.bf16.mxu1 %v20795_v14  ;;  %v27269_v18 = vld [vmem:[#allocation31_spill] sm:$0xff] }
 0x712   :  { %v11016_v63 = vmax.f32 %v10916_v9, 0.0  ;;  %v27270_v9 = vld [vmem:[#allocation34_spill] sm:$0xff]  ;;  %v20725_v14 = vld [vmem:[%s27058_s5 + $0x328] ss:$20 sps:$4 sm:$0xff]  }
 0x713   :  { %10042 = vmatmul.mubr.bf16.gmra.mrb[128].mxu0 %v27230_v16  ;;  %17921 = vmatpush3.bf16.msra.mxu1 %v20796_v20  ;;  %v20812_v20 = vld [vmem:[%s27060_s7 + $0x1b0] sm:$0xff]  }
 0x714   :  { %v25157_v35 = vpack.c.bf16 %v11016_v63, %v11011_v7  ;;  %10084 = vmatprep.mubr.bf16.mxu0 %v27233_v10  ;;  %v20713_v10 = vld [vmem:[%s27058_s5 + $0x288] ss:$20 sps:$4 sm:$0xff]   ;;  %17922 = vmatprep.subr.bf16.mxu1 %v20800_v38  ;;  %v20722_v7 = vld [vmem:[%s27058_s5 + $0x300] ss:$20 sps:$4 sm:$0xff]  }
 0x715   :  { %v20807_v63 = vld [vmem:[%s27060_s7 + $0x1a8] sm:$0xff]   ;;  %v20817_v38 = vld [vmem:[%s27060_s7 + $0x1b8] sm:$0xff]  }
 0x717   :  { %17923 = vmatpush3.bf16.msra.mxu1 %v20801_v54  ;;  %v20818_v54 = vld [vmem:[%s27060_s7 + $0x178] sm:$0xff]  }
 0x718   :  { %17924 = vmatprep.subr.bf16.mxu1 %v20802_v60  ;;  %v20736_v60 = vld [vmem:[%s27058_s5 + $0x3a4] ss:$20 sps:$4 sm:$0xff]  }
 0x71b   :  { %10085 = vmatmul.mubr.bf16.vlgmr.msra.gmra.mrb[132].mxu0 %v27267_v17  ;;  %17925 = vmatpush3.bf16.msra.mxu1 %v20806_v24  ;;  %v27271_v17 = vld [vmem:[#allocation33_spill] sm:$0xff]  ;;  %v20734_v24 = vld [vmem:[%s27058_s5 + $0x3a0] ss:$20 sps:$4 sm:$0xff]  }
 0x71c   :  { %10094 = vmatprep.mubr.bf16.mxu0 %v27268_v0  ;;  %10186 = vmatpush1.bf16.msra.mxu0 %v20713_v10  ;;  %v20730_v10 = vld [vmem:[%s27058_s5 + $0x354] ss:$20 sps:$4 sm:$0xff]  }
 0x71d   :  { %10187 = vmatprep.subr.bf16.mxu0 %v20718_v37  ;;  %17926 = vmatprep.subr.bf16.mxu1 %v20807_v63  ;;  %v20813_v37 = vld [vmem:[%s27060_s7 + $0x170] sm:$0xff]  }
 0x71e   :  { %v27272_v0 = vld [vmem:[#allocation36_spill] sm:$0xff] }
 0x71f   :  { %17927 = vmatpush3.bf16.msra.mxu1 %v20808_v19  ;;  %v27275_v63 = vld [vmem:[#allocation40_spill] sm:$0xff] }
 0x720   :  { %10188 = vmatpush1.bf16.msra.mxu0 %v20716_v56  ;;  %17928 = vmatprep.subr.bf16.mxu1 %v20812_v20  ;;  %v20728_v56 = vld [vmem:[%s27058_s5 + $0x350] ss:$20 sps:$4 sm:$0xff]  }
 0x721   :  { %10189 = vmatprep.subr.bf16.mxu0 %v20721_v5  ;;  %v20733_v5 = vld [vmem:[%s27058_s5 + $0x37c] ss:$20 sps:$4 sm:$0xff]   ;;  %v20748_v20 = vld [vmem:[%s27058_s5 + $0x444] ss:$20 sps:$4 sm:$0xff]  }
 0x722   :  { %v20745_v19 = vld [vmem:[%s27058_s5 + $0x41c] ss:$20 sps:$4 sm:$0xff]  }
 0x723   :  { %10095 = vmatmul.mubr.bf16.gmra.mrb[136].mxu0 %v27269_v18  ;;  %17929 = vmatpush3.bf16.msra.mxu1 %v20813_v37  ;;  %v20739_v18 = vld [vmem:[%s27058_s5 + $0x3cc] ss:$20 sps:$4 sm:$0xff]  }
 0x724   :  { %10104 = vmatprep.mubr.bf16.mxu0 %v27270_v9  ;;  %10190 = vmatpush1.bf16.msra.mxu0 %v20719_v34  ;;  %v20731_v34 = vld [vmem:[%s27058_s5 + $0x378] ss:$20 sps:$4 sm:$0xff]   ;;  %v20737_v9 = vld [vmem:[%s27058_s5 + $0x3c8] ss:$20 sps:$4 sm:$0xff]   ;;  %v20746_v37 = vld [vmem:[%s27058_s5 + $0x440] ss:$20 sps:$4 sm:$0xff]  }
 0x725   :  { %10191 = vmatprep.subr.bf16.mxu0 %v20724_v27  ;;  %17930 = vmatprep.subr.bf16.mxu1 %v20817_v38  ;;  %v27273_v27 = vld [vmem:[#allocation35_spill] sm:$0xff]  ;;  %v20752_v38 = vld [vmem:[%s27058_s5 + $0x490] ss:$20 sps:$4 sm:$0xff]  }
 0x727   :  { %17931 = vmatpush3.bf16.msra.mxu1 %v20818_v54  ;;  %v20755_v54 = vld [vmem:[%s27058_s5 + $0x4b8] ss:$20 sps:$4 sm:$0xff]  }
 0x728   :  { %10192 = vmatpush1.bf16.msra.mxu0 %v20722_v7  ;;  %v27274_v7 = vld [vmem:[#allocation37_spill] sm:$0xff] }
 0x729   :  { %10193 = vmatprep.subr.bf16.mxu0 %v20727_v40  ;;  %v20740_v40 = vld [vmem:[%s27058_s5 + $0x3f0] ss:$20 sps:$4 sm:$0xff]  }
 0x72b   :  { %10105 = vmatmul.mubr.bf16.gmra.mrb[140].mxu0 %v27271_v17  ;;  %v20751_v17 = vld [vmem:[%s27058_s5 + $0x46c] ss:$20 sps:$4 sm:$0xff]  }
 0x72c   :  { %10114 = vmatprep.mubr.bf16.mxu0 %v27272_v0  ;;  %10194 = vmatpush1.bf16.msra.mxu0 %v20725_v14  ;;  %v20743_v14 = vld [vmem:[%s27058_s5 + $0x418] ss:$20 sps:$4 sm:$0xff]   ;;  %v20749_v0 = vld [vmem:[%s27058_s5 + $0x468] ss:$20 sps:$4 sm:$0xff]  }
 0x72d   :  { %10195 = vmatprep.subr.bf16.mxu0 %v20730_v10  ;;  %v27276_v10 = vld [vmem:[#allocation39_spill] sm:$0xff] }
 0x730   :  { %10196 = vmatpush1.bf16.msra.mxu0 %v20728_v56  ;;  %v27277_v56 = vld [vmem:[#allocation43_spill] sm:$0xff] }
 0x731   :  { %10197 = vmatprep.subr.bf16.mxu0 %v20733_v5  ;;  %v20757_v5 = vld [vmem:[%s27058_s5 + $0x4bc] ss:$20 sps:$4 sm:$0xff]  }
 0x733   :  { %10115 = vmatmul.mubr.bf16.gmra.mrb[144].mxu0 %v27273_v27  ;;  %v20758_v27 = vld [vmem:[%s27058_s5 + $0x4e0] ss:$20 sps:$4 sm:$0xff]  }
 0x734   :  { %10124 = vmatprep.mubr.bf16.mxu0 %v27241_v59  ;;  %10198 = vmatpush1.bf16.msra.mxu0 %v20731_v34  ;;  %v20742_v59 = vld [vmem:[%s27058_s5 + $0x3f4] ss:$20 sps:$4 sm:$0xff]   ;;  %v27278_v34 = vld [vmem:[#allocation42_spill] sm:$0xff] }
 0x735   :  { %10199 = vmatprep.subr.bf16.mxu0 %v20736_v60  ;;  %v27279_v60 = vld [vmem:[#allocation44_spill] sm:$0xff] }
 0x738   :  { %10200 = vmatpush1.bf16.msra.mxu0 %v20734_v24  ;;  %v20763_v24 = vld [vmem:[%s27058_s5 + $0x50c] ss:$20 sps:$4 sm:$0xff]  }
 0x739   :  { %10201 = vmatprep.subr.bf16.mxu0 %v20739_v18  ;;  %v20761_v18 = vld [vmem:[%s27058_s5 + $0x508] ss:$20 sps:$4 sm:$0xff]  }
 0x73b   :  { %10125 = vmatmul.mubr.bf16.gmra.mrb[148].mxu0 %v27274_v7  ;;  %v20781_v7 = vld [vmem:[%s27058_s5 + $0x5fc] ss:$20 sps:$4 sm:$0xff]  }
 0x73c   :  { %10134 = vmatprep.mubr.bf16.mxu0 %v27275_v63  ;;  %10202 = vmatpush1.bf16.msra.mxu0 %v20737_v9  ;;  %v20766_v9 = vld [vmem:[%s27058_s5 + $0x534] ss:$20 sps:$4 sm:$0xff]   ;;  %v20779_v63 = vld [vmem:[%s27058_s5 + $0x5f8] ss:$20 sps:$4 sm:$0xff]  }
 0x73d   :  { %10203 = vmatprep.subr.bf16.mxu0 %v20742_v59  ;;  %v20773_v59 = vld [vmem:[%s27058_s5 + $0x5a8] ss:$20 sps:$4 sm:$0xff]  }
 0x740   :  { %10204 = vmatpush1.bf16.msra.mxu0 %v20740_v40  ;;  %v20782_v40 = vld [vmem:[%s27058_s5 + $0x620] ss:$20 sps:$4 sm:$0xff]  }
 0x741   :  { %10205 = vmatprep.subr.bf16.mxu0 %v20745_v19  ;;  %v20789_v19 = vld [vmem:[%s27058_s5 + $0x64c] ss:$20 sps:$4 sm:$0xff]  }
 0x743   :  { %10135 = vmatmul.mubr.bf16.gmra.mrb[152].mxu0 %v27276_v10  ;;  %v20797_v10 = vld [vmem:[%s27058_s5 + $0x698] ss:$20 sps:$4 sm:$0xff]  }
 0x744   :  { %10144 = vmatprep.mubr.bf16.mxu0 %v27244_v29  ;;  %10206 = vmatpush1.bf16.msra.mxu0 %v20743_v14  ;;  %v20754_v29 = vld [vmem:[%s27058_s5 + $0x494] ss:$20 sps:$4 sm:$0xff]   ;;  %v20792_v14 = vld [vmem:[%s27058_s5 + $0x670] ss:$20 sps:$4 sm:$0xff]  }
 0x745   :  { %10207 = vmatprep.subr.bf16.mxu0 %v20748_v20  ;;  %v20799_v20 = vld [vmem:[%s27058_s5 + $0x69c] ss:$20 sps:$4 sm:$0xff]  }
 0x748   :  { %10208 = vmatpush1.bf16.msra.mxu0 %v20746_v37  ;;  %v27281_v37 = vld [vmem:[#allocation21_spill] sm:$0xff] }
 0x749   :  { %10209 = vmatprep.subr.bf16.mxu0 %v20751_v17  ;;  %v20803_v17 = vld [vmem:[%s27058_s5 + $0x6c0] ss:$20 sps:$4 sm:$0xff]  }
 0x74b   :  { %10145 = vmatmul.mubr.bf16.gmra.mrb[156].mxu0 %v23355_v53  ;;  %v20760_v53 = vld [vmem:[%s27058_s5 + $0x4e4] ss:$20 sps:$4 sm:$0xff]  }
 0x74c   :  { %10154 = vmatprep.mubr.bf16.mxu0 %v27277_v56  ;;  %10210 = vmatpush1.bf16.msra.mxu0 %v20749_v0  ;;  %v20811_v0 = vld [vmem:[%s27058_s5 + $0x6ec] ss:$20 sps:$4 sm:$0xff]   ;;  %v20816_v56 = vld [vmem:[%s27058_s5 + $0x714] ss:$20 sps:$4 sm:$0xff]  }
 0x74d   :  { %10211 = vmatprep.subr.bf16.mxu0 %v20754_v29  ;;  %v20809_v29 = vld [vmem:[%s27058_s5 + $0x6e8] ss:$20 sps:$4 sm:$0xff]  }
 0x750   :  { %10212 = vmatpush1.bf16.msra.mxu0 %v20752_v38  ;;  %v27282_v38 = vld [vmem:[#allocation20_spill] sm:$0xff] }
 0x751   :  { %10213 = vmatprep.subr.bf16.mxu0 %v20757_v5  ;;  %v27283_v5 = vld [vmem:[#allocation14_spill] sm:$0xff] }
 0x753   :  { %10155 = vmatmul.mubr.bf16.gmra.mrb[160].mxu0 %v27278_v34  ;;  %v27285_v34 = vld [vmem:[#allocation15_spill] sm:$0xff] }
 0x754   :  { %10164 = vmatprep.mubr.bf16.mxu0 %v27279_v60  ;;  %10214 = vmatpush1.bf16.msra.mxu0 %v20755_v54  ;;  %v25414_v54 = vrot.slane %v24969_v11, %v27283_v5  ;;  %v25419_v60 = vrot.slane %v24969_v11, %v27285_v34  ;;  %v20819_v11 = vld [vmem:[%s27058_s5 + $0x738] ss:$20 sps:$4 sm:$0xff]  }
 0x755   :  { %10215 = vmatprep.subr.bf16.mxu0 %v20760_v53  ;;  %v27284_v53 = vld [vmem:[#allocation23_spill] sm:$0xff] }
 0x758   :  { %10216 = vmatpush1.bf16.msra.mxu0 %v20758_v27  ;;  %v20814_v27 = vld [vmem:[%s27058_s5 + $0x710] ss:$20 sps:$4 sm:$0xff]  }
 0x759   :  { %10318 = vmatprep.subr.bf16.mxu0 %v20763_v24  ;;  %v20821_v24 = vld [vmem:[%s27058_s5 + $0x73c] ss:$20 sps:$4 sm:$0xff]  }
 0x75b   :  { %10165 = vmatmul.mubr.bf16.gmra.mrb[164].mxu0 %v23427_v49  ;;  %v20764_v49 = vld [vmem:[%s27058_s5 + $0x530] ss:$20 sps:$4 sm:$0xff]  }
 0x75c   :  { %10174 = vmatprep.mubr.bf16.mxu0 %v27245_v30  ;;  %v20767_v30 = vld [vmem:[%s27058_s5 + $0x558] ss:$20 sps:$4 sm:$0xff]  }
 0x763   :  { %10175 = vmatmul.mubr.bf16.gmra.mrb[168].mxu0 %v23463_v52  ;;  %v20772_v52 = vld [vmem:[%s27058_s5 + $0x584] ss:$20 sps:$4 sm:$0xff]  }
 0x764   :  { %10217 = vmatprep.mubr.bf16.mxu0 %v22880_v51  ;;  %v20769_v51 = vld [vmem:[%s27058_s5 + $0x55c] ss:$20 sps:$4 sm:$0xff]  }
 0x76b   :  { %10218 = vmatmul.mubr.bf16.vlgmr.msra.gmra.mrb[132].mxu0 %v27214_v26  ;;  %v20770_v26 = vld [vmem:[%s27058_s5 + $0x580] ss:$20 sps:$4 sm:$0xff]  }
 0x76c   :  { %10227 = vmatprep.mubr.bf16.mxu0 %v27246_v3  ;;  %10319 = vmatpush1.bf16.msra.mxu0 %v20761_v18  ;;  %v20775_v3 = vld [vmem:[%s27058_s5 + $0x5ac] ss:$20 sps:$4 sm:$0xff]  }
 0x76d   :  { %10320 = vmatprep.subr.bf16.mxu0 %v20766_v9 }
 0x770   :  { %10321 = vmatpush1.bf16.msra.mxu0 %v20764_v49 }
 0x771   :  { %10322 = vmatprep.subr.bf16.mxu0 %v20769_v51 }
 0x773   :  { %10228 = vmatmul.mubr.bf16.gmra.mrb[136].mxu0 %v22906_v8  ;;  %v20778_v8 = vld [vmem:[%s27058_s5 + $0x5d4] ss:$20 sps:$4 sm:$0xff]  }
 0x774   :  { %10237 = vmatprep.mubr.bf16.mxu0 %v27247_v46  ;;  %10323 = vmatpush1.bf16.msra.mxu0 %v20767_v30  ;;  %v20776_v46 = vld [vmem:[%s27058_s5 + $0x5d0] ss:$20 sps:$4 sm:$0xff]  }
 0x775   :  { %10324 = vmatprep.subr.bf16.mxu0 %v20772_v52 }
 0x778   :  { %10325 = vmatpush1.bf16.msra.mxu0 %v20770_v26 }
 0x779   :  { %10326 = vmatprep.subr.bf16.mxu0 %v20775_v3  ;;  %v20824_v3 = vld [vmem:[%s27058_s5 + $0x764] ss:$20 sps:$4 sm:$0xff]  }
 0x77b   :  { %10238 = vmatmul.mubr.bf16.gmra.mrb[140].mxu0 %v22937_v28  ;;  %v20784_v28 = vld [vmem:[%s27058_s5 + $0x624] ss:$20 sps:$4 sm:$0xff]  }
 0x77c   :  { %10247 = vmatprep.mubr.bf16.mxu0 %v22964_v25  ;;  %10327 = vmatpush1.bf16.msra.mxu0 %v20773_v59  ;;  %v20825_v25 = vld [vmem:[%s27060_s7 + $0x200] sm:$0xff]  }
 0x77d   :  { %10328 = vmatprep.subr.bf16.mxu0 %v20778_v8  ;;  %17938 = vmatprep.subr.bf16.mxu1 %v20825_v25  ;;  %v27287_v25 = vld [vmem:[#allocation25_spill] sm:$0xff] }
 0x780   :  { %10329 = vmatpush1.bf16.msra.mxu0 %v20776_v46 }
 0x781   :  { %10330 = vmatprep.subr.bf16.mxu0 %v20781_v7  ;;  %v27286_v7 = vld [vmem:[#allocation22_spill] sm:$0xff] }
 0x783   :  { %10248 = vmatmul.mubr.bf16.gmra.mrb[144].mxu0 %v22962_v23  ;;  %v20787_v23 = vld [vmem:[%s27058_s5 + $0x648] ss:$20 sps:$4 sm:$0xff]  }
 0x784   :  { %10257 = vmatprep.mubr.bf16.mxu0 %v22986_v41  ;;  %10331 = vmatpush1.bf16.msra.mxu0 %v20779_v63  ;;  %v20794_v41 = vld [vmem:[%s27058_s5 + $0x674] ss:$20 sps:$4 sm:$0xff]  }
 0x785   :  { %10332 = vmatprep.subr.bf16.mxu0 %v20784_v28 }
 0x788   :  { %10333 = vmatpush1.bf16.msra.mxu0 %v20782_v40  ;;  %v20822_v40 = vld [vmem:[%s27058_s5 + $0x760] ss:$20 sps:$4 sm:$0xff]  }
 0x789   :  { %10334 = vmatprep.subr.bf16.mxu0 %v20789_v19 }
 0x78b   :  { %10258 = vmatmul.mubr.bf16.gmra.mrb[148].mxu0 %v22984_v39  ;;  %v20805_v39 = vld [vmem:[%s27058_s5 + $0x6c4] ss:$20 sps:$4 sm:$0xff]  }
 0x78c   :  { %10267 = vmatprep.mubr.bf16.mxu0 %v23005_v44  ;;  %10335 = vmatpush1.bf16.msra.mxu0 %v20787_v23  ;;  %v27280_v44 = vld [vmem:[#allocation19_spill] sm:$0xff] }
 0x78d   :  { %10336 = vmatprep.subr.bf16.mxu0 %v20794_v41 }
 0x790   :  { %10337 = vmatpush1.bf16.msra.mxu0 %v20792_v14 }
 0x791   :  { %10338 = vmatprep.subr.bf16.mxu0 %v20799_v20 }
 0x793   :  { %10268 = vmatmul.mubr.bf16.gmra.mrb[152].mxu0 %v27280_v44 }
 0x794   :  { %10277 = vmatprep.mubr.bf16.mxu0 %v27281_v37  ;;  %10339 = vmatpush1.bf16.msra.mxu0 %v20797_v10 }
 0x795   :  { %10340 = vmatprep.subr.bf16.mxu0 %v20805_v39 }
 0x798   :  { %10341 = vmatpush1.bf16.msra.mxu0 %v20803_v17 }
 0x799   :  { %10342 = vmatprep.subr.bf16.mxu0 %v20811_v0 }
 0x79b   :  { %10278 = vmatmul.mubr.bf16.gmra.mrb[156].mxu0 %v27282_v38 }
 0x79c   :  { %10287 = vmatprep.mubr.bf16.mxu0 %v27284_v53  ;;  %10343 = vmatpush1.bf16.msra.mxu0 %v20809_v29  ;;  %v27289_v53 = vld [vmem:[#allocation27_spill] sm:$0xff] }
 0x79d   :  { %10344 = vmatprep.subr.bf16.mxu0 %v20816_v56  ;;  %v27288_v56 = vld [vmem:[#allocation24_spill] sm:$0xff] }
 0x79e   :  { %v9953_v18 = vpop.f32.mrb[92].mxu0 }
 0x79f   :  { %v10817_v9 = vadd.f32 %v25414_v54, %v9953_v18  ;;  %v9955_v49 = vpop.f32.mrb[93].mxu0  ;;  %v20826_v18 = vld [vmem:[%s27060_s7 + $0x1c0] sm:$0xff]  }
 0x7a0   :  { %v10818_v51 = vadd.f32 %v25419_v60, %v9955_v49  ;;  %v9957_v30 = vpop.f32.mrb[94].mxu0  ;;  %10345 = vmatpush1.bf16.msra.mxu0 %v20814_v27 }
 0x7a1   :  { %v10822_v52 = vadd.f32 %v25414_v54, %v9957_v30  ;;  %v9959_v26 = vpop.f32.mrb[95].mxu0  ;;  %10346 = vmatprep.subr.bf16.mxu0 %v20821_v24  ;;  %v10917_v8 = vmax.f32 %v10817_v9, 0.0 }
 0x7a2   :  { %v10823_v59 = vadd.f32 %v25419_v60, %v9959_v26  ;;  %v10918_v63 = vmax.f32 %v10818_v51, 0.0 }
 0x7a3   :  { %v10922_v46 = vmax.f32 %v10822_v52, 0.0  ;;  %10288 = vmatmul.mubr.bf16.gmra.mrb[160].mxu0 %v27286_v7 }
 0x7a4   :  { %v10923_v28 = vmax.f32 %v10823_v59, 0.0  ;;  %10297 = vmatprep.mubr.bf16.mxu0 %v27287_v25  ;;  %10347 = vmatpush1.bf16.msra.mxu0 %v20819_v11 }
 0x7a5   :  { %v25442_v19 = vpack.c.bf16 %v10922_v46, %v10917_v8  ;;  %10348 = vmatprep.subr.bf16.mxu0 %v20824_v3  ;;  %v27290_v8 = vld [vmem:[#allocation26_spill] sm:$0xff] }
 0x7a6   :  { %v25444_v23 = vpack.c.bf16 %v10923_v28, %v10918_v63  ;;  %v9963_v41 = vpop.f32.mrb[96].mxu0  ;;  %v27291_v63 = vld [vmem:[#allocation47_spill] sm:$0xff] }
 0x7a7   :  { %v10827_v14 = vadd.f32 %v25414_v54, %v9963_v41  ;;  %v9965_v20 = vpop.f32.mrb[97].mxu0 }
 0x7a8   :  { %v10828_v10 = vadd.f32 %v25419_v60, %v9965_v20  ;;  %v9967_v39 = vpop.f32.mrb[98].mxu0  ;;  %10349 = vmatpush1.bf16.msra.mxu0 %v20822_v40 }
 0x7a9   :  { %v10832_v44 = vadd.f32 %v25414_v54, %v9967_v39  ;;  %v9969_v37 = vpop.f32.mrb[99].mxu0  ;;  %v10927_v0 = vmax.f32 %v10827_v14, 0.0 }
 0x7aa   :  { %v10833_v17 = vadd.f32 %v25419_v60, %v9969_v37  ;;  %v10928_v38 = vmax.f32 %v10828_v10, 0.0 }
 0x7ab   :  { %v10932_v29 = vmax.f32 %v10832_v44, 0.0  ;;  %10298 = vmatmul.mubr.bf16.gmra.mrb[164].mxu0 %v27288_v56 }
 0x7ac   :  { %v10933_v5 = vmax.f32 %v10833_v17, 0.0  ;;  %10307 = vmatprep.mubr.bf16.mxu0 %v27289_v53 }
 0x7ad   :  { %v11022_v34 = vpack.c.bf16 %v10932_v29, %v10927_v0 }
 0x7ae   :  { %v11023_v27 = vpack.c.bf16 %v10933_v5, %v10928_v38  ;;  %v9973_v24 = vpop.f32.mrb[100].mxu0 }
 0x7af   :  { %v10837_v9 = vadd.f32 %v25414_v54, %v9973_v24  ;;  %v9975_v49 = vpop.f32.mrb[101].mxu0 }
 0x7b0   :  { %v10838_v51 = vadd.f32 %v25419_v60, %v9975_v49  ;;  %v9977_v30 = vpop.f32.mrb[102].mxu0  ;;  %11559 = vmatprep.mubr.bf16.mxu1 %v11023_v27 }
 0x7b1   :  { %v10842_v11 = vadd.f32 %v25414_v54, %v9977_v30  ;;  %v9979_v52 = vpop.f32.mrb[103].mxu0  ;;  %11560 = vmatmul.mubr.bf16.vlgmr.msra.gmra.mrb[96].mxu1 %v11022_v34  ;;  %v10937_v3 = vmax.f32 %v10837_v9, 0.0 }
 0x7b2   :  { %v10843_v26 = vadd.f32 %v25419_v60, %v9979_v52  ;;  %17939 = vmatpush3.bf16.msra.mxu1 %v20826_v18  ;;  %v10938_v46 = vmax.f32 %v10838_v51, 0.0 }
 0x7b3   :  { %v10942_v59 = vmax.f32 %v10842_v11, 0.0  ;;  %10308 = vmatmul.mubr.bf16.gmra.mrb[168].mxu0 %v27290_v8 }
 0x7b4   :  { %v10943_v7 = vmax.f32 %v10843_v26, 0.0  ;;  %10350 = vmatprep.mubr.bf16.mxu0 %v27291_v63 }
 0x7b5   :  { %v25461_v28 = vpack.c.bf16 %v10942_v59, %v10937_v3 }
 0x7b6   :  { %v25463_v25 = vpack.c.bf16 %v10943_v7, %v10938_v46  ;;  %v9983_v40 = vpop.f32.mrb[104].mxu0 }
 0x7b7   :  { %v10847_v41 = vadd.f32 %v25414_v54, %v9983_v40  ;;  %v9985_v14 = vpop.f32.mrb[105].mxu0 }
 0x7b8   :  { %v10848_v20 = vadd.f32 %v25419_v60, %v9985_v14  ;;  %v9987_v10 = vpop.f32.mrb[106].mxu0 }
 0x7b9   :  { %v10852_v39 = vadd.f32 %v25414_v54, %v9987_v10  ;;  %v9989_v44 = vpop.f32.mrb[107].mxu0  ;;  %v10947_v17 = vmax.f32 %v10847_v41, 0.0 }
 0x7ba   :  { %v10853_v37 = vadd.f32 %v25419_v60, %v9989_v44  ;;  %v10948_v29 = vmax.f32 %v10848_v20, 0.0 }
 0x7bb   :  { %v10952_v0 = vmax.f32 %v10852_v39, 0.0  ;;  %10351 = vmatmul.mubr.bf16.vlgmr.msra.gmra.mrb[132].mxu0 %v27224_v32 }
 0x7bc   :  { %v10953_v56 = vmax.f32 %v10853_v37, 0.0  ;;  %10360 = vmatprep.mubr.bf16.mxu0 %v27256_v50 }
 0x7bd   :  { %v25471_v38 = vpack.c.bf16 %v10952_v0, %v10947_v17 }
 0x7be   :  { %v25473_v5 = vpack.c.bf16 %v10953_v56, %v10948_v29  ;;  %v9993_v53 = vpop.f32.mrb[108].mxu0 }
 0x7bf   :  { %v10857_v34 = vadd.f32 %v25414_v54, %v9993_v53  ;;  %v9995_v27 = vpop.f32.mrb[109].mxu0 }
 0x7c0   :  { %v10858_v24 = vadd.f32 %v25419_v60, %v9995_v27  ;;  %v9997_v18 = vpop.f32.mrb[110].mxu0 }
 0x7c1   :  { %v10862_v9 = vadd.f32 %v25414_v54, %v9997_v18  ;;  %v9999_v49 = vpop.f32.mrb[111].mxu0  ;;  %v10957_v51 = vmax.f32 %v10857_v34, 0.0 }
 0x7c2   :  { %v10863_v32 = vadd.f32 %v25419_v60, %v9999_v49  ;;  %v10958_v50 = vmax.f32 %v10858_v24, 0.0 }
 0x7c3   :  { %v10962_v30 = vmax.f32 %v10862_v9, 0.0  ;;  %10361 = vmatmul.mubr.bf16.gmra.mrb[136].mxu0 %v27257_v58 }
 0x7c4   :  { %v10963_v11 = vmax.f32 %v10863_v32, 0.0  ;;  %10370 = vmatprep.mubr.bf16.mxu0 %v27259_v2 }
 0x7c5   :  { %v25481_v52 = vpack.c.bf16 %v10962_v30, %v10957_v51 }
 0x7c6   :  { %v25483_v26 = vpack.c.bf16 %v10963_v11, %v10958_v50  ;;  %v10003_v3 = vpop.f32.mrb[112].mxu0 }
 0x7c7   :  { %v10867_v59 = vadd.f32 %v25414_v54, %v10003_v3  ;;  %v10005_v8 = vpop.f32.mrb[113].mxu0 }
 0x7c8   :  { %v10868_v46 = vadd.f32 %v25419_v60, %v10005_v8  ;;  %v10007_v7 = vpop.f32.mrb[114].mxu0 }
 0x7c9   :  { %v10872_v63 = vadd.f32 %v25414_v54, %v10007_v7  ;;  %v10009_v40 = vpop.f32.mrb[115].mxu0  ;;  %v10967_v41 = vmax.f32 %v10867_v59, 0.0 }
 0x7ca   :  { %v10873_v58 = vadd.f32 %v25419_v60, %v10009_v40  ;;  %v10968_v2 = vmax.f32 %v10868_v46, 0.0 }
 0x7cb   :  { %v10972_v14 = vmax.f32 %v10872_v63, 0.0  ;;  %10371 = vmatmul.mubr.bf16.gmra.mrb[140].mxu0 %v27260_v57 }
 0x7cc   :  { %v10973_v20 = vmax.f32 %v10873_v58, 0.0  ;;  %10380 = vmatprep.mubr.bf16.mxu0 %v27262_v31 }
 0x7cd   :  { %v25491_v10 = vpack.c.bf16 %v10972_v14, %v10967_v41 }
 0x7ce   :  { %v25493_v39 = vpack.c.bf16 %v10973_v20, %v10968_v2  ;;  %v10013_v44 = vpop.f32.mrb[116].mxu0 }
 0x7cf   :  { %v10877_v37 = vadd.f32 %v25414_v54, %v10013_v44  ;;  %v10015_v17 = vpop.f32.mrb[117].mxu0 }
 0x7d0   :  { %v10878_v0 = vadd.f32 %v25419_v60, %v10015_v17  ;;  %v10017_v29 = vpop.f32.mrb[118].mxu0 }
 0x7d1   :  { %v10882_v56 = vadd.f32 %v25414_v54, %v10017_v29  ;;  %v10019_v53 = vpop.f32.mrb[119].mxu0  ;;  %v10977_v34 = vmax.f32 %v10877_v37, 0.0 }
 0x7d2   :  { %v10883_v57 = vadd.f32 %v25419_v60, %v10019_v53  ;;  %v10978_v31 = vmax.f32 %v10878_v0, 0.0 }
 0x7d3   :  { %v10982_v27 = vmax.f32 %v10882_v56, 0.0  ;;  %10381 = vmatmul.mubr.bf16.gmra.mrb[144].mxu0 %v27222_v62 }
 0x7d4   :  { %v10983_v24 = vmax.f32 %v10883_v57, 0.0  ;;  %10390 = vmatprep.mubr.bf16.mxu0 %v27263_v15 }
 0x7d5   :  { %v25501_v18 = vpack.c.bf16 %v10982_v27, %v10977_v34 }
 0x7d6   :  { %v25503_v9 = vpack.c.bf16 %v10983_v24, %v10978_v31  ;;  %v10023_v49 = vpop.f32.mrb[120].mxu0 }
 0x7d7   :  { %v10887_v32 = vadd.f32 %v25414_v54, %v10023_v49  ;;  %v10025_v51 = vpop.f32.mrb[121].mxu0 }
 0x7d8   :  { %v10888_v30 = vadd.f32 %v25419_v60, %v10025_v51  ;;  %v10027_v50 = vpop.f32.mrb[122].mxu0 }
 0x7d9   :  { %v10892_v11 = vadd.f32 %v25414_v54, %v10027_v50  ;;  %v10029_v3 = vpop.f32.mrb[123].mxu0  ;;  %v10987_v59 = vmax.f32 %v10887_v32, 0.0 }
 0x7da   :  { %v10893_v62 = vadd.f32 %v25419_v60, %v10029_v3  ;;  %v10988_v15 = vmax.f32 %v10888_v30, 0.0  ;;  %v20836_v3 = vld [vmem:[%s27060_s7 + $0x1e8] sm:$0xff]  }
 0x7db   :  { %v10992_v8 = vmax.f32 %v10892_v11, 0.0  ;;  %10391 = vmatmul.mubr.bf16.gmra.mrb[148].mxu0 %v23775_v4 }
 0x7dc   :  { %v10993_v46 = vmax.f32 %v10893_v62, 0.0  ;;  %10400 = vmatprep.mubr.bf16.mxu0 %v27264_v13  ;;  %v20837_v62 = vld [vmem:[%s27060_s7 + $0x230] sm:$0xff]  }
 0x7dd   :  { %v25511_v7 = vpack.c.bf16 %v10992_v8, %v10987_v59  ;;  %v20838_v59 = vld [vmem:[%s27060_s7 + $0x1f0] sm:$0xff]   ;;  %v20839_v8 = vld [vmem:[%s27060_s7 + $0x238] sm:$0xff]  }
 0x7de   :  { %v25513_v63 = vpack.c.bf16 %v10993_v46, %v10988_v15  ;;  %v10033_v40 = vpop.f32.mrb[124].mxu0  ;;  %v20840_v15 = vld [vmem:[%s27060_s7 + $0x1f8] sm:$0xff]   ;;  %v20841_v46 = vld [vmem:[%s27060_s7 + $0x700] sm:$0xff]  }
 0x7df   :  { %v10897_v58 = vadd.f32 %v25414_v54, %v10033_v40  ;;  %v10035_v41 = vpop.f32.mrb[125].mxu0  ;;  %v20843_v40 = vld [vmem:[%s27060_s7 + $0x6c0] sm:$0xff]   ;;  %18044 = vmatprep.subr.bf16.mxu0 %v20841_v46 }
 0x7e0   :  { %v10898_v14 = vadd.f32 %v25419_v60, %v10035_v41  ;;  %v10037_v2 = vpop.f32.mrb[126].mxu0  ;;  %18045 = vmatpush3.bf16.msra.mxu0 %v20843_v40  ;;  %v20844_v41 = vld [vmem:[%s27060_s7 + $0x708] sm:$0xff]  }
 0x7e1   :  { %v10902_v20 = vadd.f32 %v25414_v54, %v10037_v2  ;;  %v10039_v44 = vpop.f32.mrb[127].mxu0  ;;  %v10997_v37 = vmax.f32 %v10897_v58, 0.0  ;;  %v21289_v58 = vmov 0.0   ;;  %18046 = vmatprep.subr.bf16.mxu0 %v20844_v41  ;;  %v20847_v2 = vld [vmem:[%s27060_s7 + $0x710] sm:$0xff]  }
 0x7e2   :  { %v10903_v4 = vadd.f32 %v25419_v60, %v10039_v44  ;;  %v10998_v13 = vmax.f32 %v10898_v14, 0.0  ;;  %v20846_v14 = vld [vmem:[%s27060_s7 + $0x6c8] sm:$0xff]   ;;  %v20850_v44 = vld [vmem:[%s27060_s7 + $0x718] sm:$0xff]  }
 0x7e3   :  { %v11002_v17 = vmax.f32 %v10902_v20, 0.0  ;;  %10401 = vmatmul.mubr.bf16.gmra.mrb[152].mxu0 %v27265_v61  ;;  %v20849_v20 = vld [vmem:[%s27060_s7 + $0x6d0] sm:$0xff]  }
 0x7e4   :  { %v11003_v0 = vmax.f32 %v10903_v4, 0.0  ;;  %10410 = vmatprep.mubr.bf16.mxu0 %v27266_v48  ;;  %18047 = vmatpush3.bf16.msra.mxu0 %v20846_v14  ;;  %v20852_v4 = vld [vmem:[%s27060_s7 + $0x6d8] sm:$0xff]  }
 0x7e5   :  { %v25521_v29 = vpack.c.bf16 %v11002_v17, %v10997_v37  ;;  %18048 = vmatprep.subr.bf16.mxu0 %v20847_v2  ;;  %v20853_v37 = vld [vmem:[%s27060_s7 + $0x720] sm:$0xff]  }
 0x7e6   :  { %v25523_v56 = vpack.c.bf16 %v11003_v0, %v10998_v13  ;;  %v10043_v53 = vpop.f32.mrb[128].mxu0  ;;  %v20855_v17 = vld [vmem:[%s27060_s7 + $0x6e0] sm:$0xff]   ;;  %v20856_v13 = vld [vmem:[%s27060_s7 + $0x728] sm:$0xff]  }
 0x7e7   :  { %v10907_v57 = vadd.f32 %v25414_v54, %v10043_v53  ;;  %v10045_v34 = vpop.f32.mrb[129].mxu0  ;;  %v20858_v0 = vld [vmem:[%s27060_s7 + $0x6e8] sm:$0xff]   ;;  %v20859_v53 = vld [vmem:[%s27060_s7 + $0x730] sm:$0xff]  }
 0x7e8   :  { %v10908_v27 = vadd.f32 %v25419_v60, %v10045_v34  ;;  %v10047_v31 = vpop.f32.mrb[130].mxu0  ;;  %18049 = vmatpush3.bf16.msra.mxu0 %v20849_v20  ;;  %v20862_v34 = vld [vmem:[%s27060_s7 + $0x738] sm:$0xff]  }
 0x7e9   :  { %v10912_v24 = vadd.f32 %v25414_v54, %v10047_v31  ;;  %v10049_v49 = vpop.f32.mrb[131].mxu0  ;;  %v11007_v32 = vmax.f32 %v10907_v57, 0.0  ;;  %v20834_v54 = vld [vmem:[%s27060_s7 + $0x1e0] sm:$0xff]   ;;  %18050 = vmatprep.subr.bf16.mxu0 %v20850_v44  ;;  %v20861_v57 = vld [vmem:[%s27060_s7 + $0x6f0] sm:$0xff]  }
 0x7ea   :  { %v10913_v61 = vadd.f32 %v25419_v60, %v10049_v49  ;;  %v11008_v48 = vmax.f32 %v10908_v27, 0.0  ;;  %v20835_v60 = vld [vmem:[%s27060_s7 + $0x228] sm:$0xff]   ;;  %v20864_v27 = vld [vmem:[%s27060_s7 + $0x6f8] sm:$0xff]   ;;  %v20866_v31 = vld [vmem:[%s27060_s7 + $0x900] sm:$0xff]  }
 0x7eb   :  { %v11012_v51 = vmax.f32 %v10912_v24, 0.0  ;;  %10411 = vmatmul.mubr.bf16.gmra.mrb[156].mxu0 %v27228_v22  ;;  %v20827_v22 = vld [vmem:[%s27060_s7 + $0x208] sm:$0xff]  }
 0x7ec   :  { %v11013_v30 = vmax.f32 %v10913_v61, 0.0  ;;  %10420 = vmatprep.mubr.bf16.mxu0 %v27229_v36  ;;  %v20828_v36 = vld [vmem:[%s27060_s7 + $0x1c8] sm:$0xff]   ;;  %17940 = vmatprep.subr.bf16.mxu1 %v20827_v22  ;;  %v27292_v22 = vld [vmem:[#allocation13_spill] sm:$0xff] }
 0x7ed   :  { %v25531_v50 = vpack.c.bf16 %v11012_v51, %v11007_v32  ;;  %17941 = vmatpush3.bf16.msra.mxu1 %v20828_v36  ;;  %18051 = vmatpush3.bf16.msra.mxu0 %v20852_v4 }
 0x7ee   :  { %v25533_v11 = vpack.c.bf16 %v11013_v30, %v11008_v48  ;;  %18052 = vmatprep.subr.bf16.mxu0 %v20853_v37  ;;  %v21214_v30 = vld [vmem:[#allocation9] sm:$0x1f] }
 0x7ef   :  { %v25639_v36 = vrot.slane %v21214_v30, %v27292_v22 }
 0x7f1   :  { %18053 = vmatpush3.bf16.msra.mxu0 %v20855_v17 }
 0x7f2   :  { %18054 = vmatprep.subr.bf16.mxu0 %v20856_v13 }
 0x7f3   :  { %10421 = vmatmul.mubr.bf16.gmra.mrb[160].mxu0 %v23883_v1  ;;  %v20829_v1 = vld [vmem:[%s27060_s7 + $0x210] sm:$0xff]  }
 0x7f4   :  { %10430 = vmatprep.mubr.bf16.mxu0 %v23912_v21  ;;  %v20831_v21 = vld [vmem:[%s27060_s7 + $0x218] sm:$0xff]   ;;  %17942 = vmatprep.subr.bf16.mxu1 %v20829_v1  ;;  %v27293_v1 = vld [vmem:[#allocation12_spill] sm:$0xff] }
 0x7f5   :  { %18055 = vmatpush3.bf16.msra.mxu0 %v20858_v0 }
 0x7f6   :  { %18056 = vmatprep.subr.bf16.mxu0 %v20859_v53 }
 0x7f9   :  { %18057 = vmatpush3.bf16.msra.mxu0 %v20861_v57 }
 0x7fa   :  { %18058 = vmatprep.subr.bf16.mxu0 %v20862_v34 }
 0x7fb   :  { %10431 = vmatmul.mubr.bf16.gmra.mrb[164].mxu0 %v23910_v55  ;;  %v20830_v55 = vld [vmem:[%s27060_s7 + $0x1d0] sm:$0xff]  }
 0x7fc   :  { %10440 = vmatprep.mubr.bf16.mxu0 %v23936_v43  ;;  %17943 = vmatpush3.bf16.msra.mxu1 %v20830_v55  ;;  %v20832_v43 = vld [vmem:[%s27060_s7 + $0x1d8] sm:$0xff]   ;;  %v27294_v55 = vsub.s32 3, %v27293_v1 }
 0x7fd   :  { %17944 = vmatprep.subr.bf16.mxu1 %v20831_v21  ;;  %18059 = vmatpush3.bf16.msra.mxu0 %v20864_v27 }
 0x7fe   :  { %18075 = vmatprep.subr.bf16.mxu0 %v20866_v31  ;;  %v25643_v21 = vrot.slane %v21214_v30, %v27294_v55 }
 0x800   :  { %17945 = vmatpush3.bf16.msra.mxu1 %v20832_v43 }
 0x803   :  { %10441 = vmatmul.mubr.bf16.gmra.mrb[168].mxu0 %v27230_v16  ;;  %v20833_v16 = vld [vmem:[%s27060_s7 + $0x220] sm:$0xff]  }
 0x804   :  { %17946 = vmatprep.subr.bf16.mxu1 %v20833_v16 }
 0x805   :  { %17947 = vmatpush3.bf16.msra.mxu1 %v20834_v54 }
 0x806   :  { %17948 = vmatprep.subr.bf16.mxu1 %v20835_v60 }
 0x809   :  { %17949 = vmatpush3.bf16.msra.mxu1 %v20836_v3 }
 0x80a   :  { %17950 = vmatprep.subr.bf16.mxu1 %v20837_v62 }
 0x80d   :  { %17951 = vmatpush3.bf16.msra.mxu1 %v20838_v59 }
 0x80e   :  { %17952 = vmatprep.subr.bf16.mxu1 %v20839_v8 }
 0x811   :  { %17953 = vmatpush3.bf16.msra.mxu1 %v20840_v15 }
 0x812   :  { %18531 = vmatprep.subr.bf16.mxu1 %v21289_v58 }
 0x884   :  { %v17932_v24 = vpop.f32.mrb[96].mxu1 }
 0x885   :  { %v17933_v49 = vpop.f32.mrb[97].mxu1 }
 0x886   :  { %v25634_v61 = vadd.f32 %v17933_v49, %v17932_v24  ;;  %v17935_v32 = vpop.f32.mrb[98].mxu1 }
 0x887   :  { %v17936_v51 = vpop.f32.mrb[99].mxu1 }
 0x888   :  { %v25636_v48 = vadd.f32 %v17936_v51, %v17935_v32  ;;  %v20842_v51 = vld [vmem:[%s27060_s7 + $0x240] sm:$0xff]  }
 0x88e   :  { %v10352_v43 = vpop.f32.mrb[132].mxu0 }
 0x88f   :  { %v10819_v16 = vadd.f32 %v25639_v36, %v10352_v43  ;;  %v10354_v54 = vpop.f32.mrb[133].mxu0 }
 0x890   :  { %v10820_v60 = vadd.f32 %v25643_v21, %v10354_v54  ;;  %v10356_v3 = vpop.f32.mrb[134].mxu0 }
 0x891   :  { %v10824_v62 = vadd.f32 %v25639_v36, %v10356_v3  ;;  %v10358_v59 = vpop.f32.mrb[135].mxu0  ;;  %v10919_v15 = vmax.f32 %v10819_v16, 0.0 }
 0x892   :  { %v10825_v8 = vadd.f32 %v25643_v21, %v10358_v59  ;;  %v10920_v40 = vmax.f32 %v10820_v60, 0.0  ;;  %v20845_v60 = vld [vmem:[%s27060_s7 + $0x248] sm:$0xff]  }
 0x893   :  { %v10924_v46 = vmax.f32 %v10824_v62, 0.0 }
 0x894   :  { %v10925_v41 = vmax.f32 %v10825_v8, 0.0 }
 0x895   :  { %v25649_v14 = vpack.c.bf16 %v10924_v46, %v10919_v15 }
 0x896   :  { %v25651_v2 = vpack.c.bf16 %v10925_v41, %v10920_v40  ;;  %v10362_v20 = vpop.f32.mrb[136].mxu0  ;;  %v20848_v41 = vld [vmem:[%s27060_s7 + $0x250] sm:$0xff]  }
 0x897   :  { %v10829_v44 = vadd.f32 %v25639_v36, %v10362_v20  ;;  %v10364_v4 = vpop.f32.mrb[137].mxu0 }
 0x898   :  { %v10830_v37 = vadd.f32 %v25643_v21, %v10364_v4  ;;  %v10366_v17 = vpop.f32.mrb[138].mxu0 }
 0x899   :  { %v10834_v13 = vadd.f32 %v25639_v36, %v10366_v17  ;;  %v10368_v0 = vpop.f32.mrb[139].mxu0  ;;  %v10929_v57 = vmax.f32 %v10829_v44, 0.0 }
 0x89a   :  { %v10835_v53 = vadd.f32 %v25643_v21, %v10368_v0  ;;  %v10930_v27 = vmax.f32 %v10830_v37, 0.0 }
 0x89b   :  { %v10934_v34 = vmax.f32 %v10834_v13, 0.0 }
 0x89c   :  { %v10935_v31 = vmax.f32 %v10835_v53, 0.0  ;;  %v20851_v53 = vld [vmem:[%s27060_s7 + $0x258] sm:$0xff]  }
 0x89d   :  { %v11024_v24 = vpack.c.bf16 %v10934_v34, %v10929_v57 }
 0x89e   :  { %v11025_v49 = vpack.c.bf16 %v10935_v31, %v10930_v27  ;;  %v10372_v32 = vpop.f32.mrb[140].mxu0 }
 0x89f   :  { %v10839_v30 = vadd.f32 %v25639_v36, %v10372_v32  ;;  %v10374_v22 = vpop.f32.mrb[141].mxu0 }
 0x8a0   :  { %v10840_v1 = vadd.f32 %v25643_v21, %v10374_v22  ;;  %v10376_v55 = vpop.f32.mrb[142].mxu0  ;;  %11600 = vmatprep.mubr.bf16.mxu1 %v11025_v49 }
 0x8a1   :  { %v10844_v43 = vadd.f32 %v25639_v36, %v10376_v55  ;;  %v10378_v16 = vpop.f32.mrb[143].mxu0  ;;  %11601 = vmatmul.mubr.bf16.vlgmr.msra.gmra.mrb[100].mxu1 %v11024_v24  ;;  %v10939_v3 = vmax.f32 %v10839_v30, 0.0 }
 0x8a2   :  { %v10845_v54 = vadd.f32 %v25643_v21, %v10378_v16  ;;  %18532 = vmatpush3.bf16.msra.mxu1 %v20842_v51  ;;  %18547 = vmatprep.mubr.msk.bf16.mxu1 %vm21290_vm0, %v21289_v58  ;;  %v10940_v59 = vmax.f32 %v10840_v1, 0.0  ;;  %v20854_v51 = vld [vmem:[%s27060_s7 + $0x260] sm:$0xff]  }
 0x8a3   :  { %v10944_v62 = vmax.f32 %v10844_v43, 0.0  ;;  %18533 = vmatprep.subr.bf16.mxu1 %v21289_v58 }
 0x8a4   :  { %v10945_v8 = vmax.f32 %v10845_v54, 0.0 }
 0x8a5   :  { %v25670_v15 = vpack.c.bf16 %v10944_v62, %v10939_v3 }
 0x8a6   :  { %v25672_v46 = vpack.c.bf16 %v10945_v8, %v10940_v59  ;;  %18534 = vmatpush3.bf16.msra.mxu1 %v20845_v60  ;;  %v10382_v40 = vpop.f32.mrb[144].mxu0  ;;  %v20857_v60 = vld [vmem:[%s27060_s7 + $0x268] sm:$0xff]  }
 0x8a7   :  { %v10849_v20 = vadd.f32 %v25639_v36, %v10382_v40  ;;  %v10384_v44 = vpop.f32.mrb[145].mxu0  ;;  %18535 = vmatprep.subr.bf16.mxu1 %v21289_v58 }
 0x8a8   :  { %v10850_v4 = vadd.f32 %v25643_v21, %v10384_v44  ;;  %v10386_v37 = vpop.f32.mrb[146].mxu0  ;;  %v20860_v44 = vld [vmem:[%s27060_s7 + $0x270] sm:$0xff]  }
 0x8a9   :  { %v10854_v17 = vadd.f32 %v25639_v36, %v10386_v37  ;;  %v10388_v13 = vpop.f32.mrb[147].mxu0  ;;  %v10949_v57 = vmax.f32 %v10849_v20, 0.0 }
 0x8aa   :  { %v10855_v0 = vadd.f32 %v25643_v21, %v10388_v13  ;;  %18536 = vmatpush3.bf16.msra.mxu1 %v20848_v41  ;;  %v10950_v27 = vmax.f32 %v10850_v4, 0.0 }
 0x8ab   :  { %v10954_v34 = vmax.f32 %v10854_v17, 0.0  ;;  %18537 = vmatprep.subr.bf16.mxu1 %v21289_v58 }
 0x8ac   :  { %v10955_v31 = vmax.f32 %v10855_v0, 0.0 }
 0x8ad   :  { %v25686_v24 = vpack.c.bf16 %v10954_v34, %v10949_v57  ;;  %v20863_v34 = vld [vmem:[%s27060_s7 + $0x278] sm:$0xff]  }
 0x8ae   :  { %v25688_v49 = vpack.c.bf16 %v10955_v31, %v10950_v27  ;;  %18538 = vmatpush3.bf16.msra.mxu1 %v20851_v53  ;;  %v10392_v32 = vpop.f32.mrb[148].mxu0 }
 0x8af   :  { %v10859_v30 = vadd.f32 %v25639_v36, %v10392_v32  ;;  %v10394_v22 = vpop.f32.mrb[149].mxu0  ;;  %18539 = vmatprep.subr.bf16.mxu1 %v21289_v58  ;;  %v20865_v32 = vld [vmem:[%s27060_s7 + $0x400] sm:$0xff]  }
 0x8b0   :  { %v10860_v1 = vadd.f32 %v25643_v21, %v10394_v22  ;;  %v10396_v55 = vpop.f32.mrb[150].mxu0 }
 0x8b1   :  { %v10864_v43 = vadd.f32 %v25639_v36, %v10396_v55  ;;  %v10398_v16 = vpop.f32.mrb[151].mxu0  ;;  %v10959_v3 = vmax.f32 %v10859_v30, 0.0 }
 0x8b2   :  { %v10865_v54 = vadd.f32 %v25643_v21, %v10398_v16  ;;  %18540 = vmatpush3.bf16.msra.mxu1 %v20854_v51  ;;  %v10960_v59 = vmax.f32 %v10860_v1, 0.0 }
 0x8b3   :  { %v10964_v62 = vmax.f32 %v10864_v43, 0.0  ;;  %18541 = vmatprep.subr.bf16.mxu1 %v21289_v58  ;;  %v20867_v43 = vld [vmem:[%s27060_s7 + $0x3c0] sm:$0xff]  }
 0x8b4   :  { %v10965_v8 = vmax.f32 %v10865_v54, 0.0 }
 0x8b5   :  { %v25702_v40 = vpack.c.bf16 %v10964_v62, %v10959_v3 }
 0x8b6   :  { %v25704_v41 = vpack.c.bf16 %v10965_v8, %v10960_v59  ;;  %18542 = vmatpush3.bf16.msra.mxu1 %v20857_v60  ;;  %v10402_v20 = vpop.f32.mrb[152].mxu0  ;;  %v20868_v60 = vld [vmem:[%s27060_s7 + $0x8c0] sm:$0xff]   ;;  %v20869_v59 = vld [vmem:[%s27060_s7 + $0x408] sm:$0xff]  }
 0x8b7   :  { %v10869_v4 = vadd.f32 %v25639_v36, %v10402_v20  ;;  %v10404_v37 = vpop.f32.mrb[153].mxu0  ;;  %18543 = vmatprep.subr.bf16.mxu1 %v21289_v58  ;;  %v20870_v8 = vld [vmem:[%s27060_s7 + $0x908] sm:$0xff]  }
 0x8b8   :  { %v10870_v17 = vadd.f32 %v25643_v21, %v10404_v37  ;;  %v10406_v13 = vpop.f32.mrb[154].mxu0 }
 0x8b9   :  { %v10874_v0 = vadd.f32 %v25639_v36, %v10406_v13  ;;  %v10408_v53 = vpop.f32.mrb[155].mxu0  ;;  %v10969_v27 = vmax.f32 %v10869_v4, 0.0 }
 0x8ba   :  { %v10875_v57 = vadd.f32 %v25643_v21, %v10408_v53  ;;  %18544 = vmatpush3.bf16.msra.mxu1 %v20860_v44  ;;  %v10970_v51 = vmax.f32 %v10870_v17, 0.0  ;;  %v27295_v44 = vld [vmem:[#allocation28_spill] sm:$0xff]  ;;  %v20871_v17 = vld [vmem:[%s27060_s7 + $0x3c8] sm:$0xff]  }
 0x8bb   :  { %v10974_v31 = vmax.f32 %v10874_v0, 0.0  ;;  %18545 = vmatprep.subr.bf16.mxu1 %v21289_v58  ;;  %v20872_v53 = vld [vmem:[%s27060_s7 + $0x8c8] sm:$0xff]  }
 0x8bc   :  { %v10975_v30 = vmax.f32 %v10875_v57, 0.0  ;;  %v20873_v57 = vld [vmem:[%s27060_s7 + $0x410] sm:$0xff]  }
 0x8bd   :  { %v11044_v22 = vpack.c.bf16 %v10974_v31, %v10969_v27 }
 0x8be   :  { %v11045_v1 = vpack.c.bf16 %v10975_v30, %v10970_v51  ;;  %18546 = vmatpush3.bf16.msra.mxu1 %v20863_v34  ;;  %v10412_v55 = vpop.f32.mrb[156].mxu0  ;;  %v20875_v51 = vld [vmem:[%s27060_s7 + $0x3d0] sm:$0xff]  }
 0x8bf   :  { %v10879_v16 = vadd.f32 %v25639_v36, %v10412_v55  ;;  %v10414_v54 = vpop.f32.mrb[157].mxu0  ;;  %17969 = vmatprep.subr.bf16.mxu1 %v20865_v32  ;;  %v20877_v55 = vld [vmem:[%s27060_s7 + $0x418] sm:$0xff]  }
 0x8c0   :  { %v10880_v3 = vadd.f32 %v25643_v21, %v10414_v54  ;;  %v10416_v62 = vpop.f32.mrb[158].mxu0  ;;  %12666 = vmatprep.mubr.bf16.mxu0 %v11045_v1  ;;  %v20876_v1 = vld [vmem:[%s27060_s7 + $0x8d0] sm:$0xff]   ;;  %v20878_v54 = vld [vmem:[%s27060_s7 + $0x918] sm:$0xff]  }
 0x8c1   :  { %v10884_v20 = vadd.f32 %v25639_v36, %v10416_v62  ;;  %18548 = vmatmul.mubr.bf16.vlgmr.msra.gmra.mrb[104].mxu1 %v27295_v44  ;;  %v10418_v4 = vpop.f32.mrb[159].mxu0  ;;  %12667 = vmatmul.mubr.bf16.vlgmr.msra.gmra.mrb[172].mxu0 %v11044_v22  ;;  %v10979_v13 = vmax.f32 %v10879_v16, 0.0  ;;  %v20880_v44 = vld [vmem:[%s27060_s7 + $0x8d8] sm:$0xff]  }
 0x8c2   :  { %v10885_v37 = vadd.f32 %v25643_v21, %v10418_v4  ;;  %17970 = vmatpush3.bf16.msra.mxu1 %v20867_v43  ;;  %12092 = vmatprep.mubr.bf16.mxu1 %v25473_v5  ;;  %v10980_v34 = vmax.f32 %v10880_v3, 0.0  ;;  %v20874_v5 = vld [vmem:[%s27060_s7 + $0x910] sm:$0xff]   ;;  %v20881_v4 = vld [vmem:[%s27060_s7 + $0x420] sm:$0xff]  }
 0x8c3   :  { %v10984_v0 = vmax.f32 %v10884_v20, 0.0  ;;  %18076 = vmatpush3.bf16.msra.mxu0 %v20868_v60  ;;  %13158 = vmatprep.mubr.bf16.mxu0 %v25513_v63 }
 0x8c4   :  { %v10985_v27 = vmax.f32 %v10885_v37, 0.0  ;;  %17971 = vmatprep.subr.bf16.mxu1 %v20869_v59  ;;  %18077 = vmatprep.subr.bf16.mxu0 %v20870_v8  ;;  %v20879_v59 = vld [vmem:[%s27060_s7 + $0x3d8] sm:$0xff]  }
 0x8c5   :  { %v25752_v31 = vpack.c.bf16 %v10984_v0, %v10979_v13  ;;  %v20882_v13 = vld [vmem:[%s27060_s7 + $0x920] sm:$0xff]  }
 0x8c6   :  { %v25754_v32 = vpack.c.bf16 %v10985_v27, %v10980_v34  ;;  %17972 = vmatpush3.bf16.msra.mxu1 %v20871_v17  ;;  %v10422_v63 = vpop.f32.mrb[160].mxu0  ;;  %v20883_v34 = vld [vmem:[%s27060_s7 + $0x3e0] sm:$0xff]  }
 0x8c7   :  { %18078 = vmatpush3.bf16.msra.mxu0 %v20872_v53  ;;  %v10889_v30 = vadd.f32 %v25639_v36, %v10422_v63  ;;  %v10424_v22 = vpop.f32.mrb[161].mxu0  ;;  %17973 = vmatprep.subr.bf16.mxu1 %v20873_v57  ;;  %v20884_v63 = vld [vmem:[%s27060_s7 + $0x8e0] sm:$0xff]  }
 0x8c8   :  { %v10890_v43 = vadd.f32 %v25643_v21, %v10424_v22  ;;  %v10426_v16 = vpop.f32.mrb[162].mxu0  ;;  %18079 = vmatprep.subr.bf16.mxu0 %v20874_v5 }
 0x8c9   :  { %v10894_v60 = vadd.f32 %v25639_v36, %v10426_v16  ;;  %v10428_v3 = vpop.f32.mrb[163].mxu0  ;;  %v10989_v8 = vmax.f32 %v10889_v30, 0.0 }
 0x8ca   :  { %v10895_v62 = vadd.f32 %v25643_v21, %v10428_v3  ;;  %17974 = vmatpush3.bf16.msra.mxu1 %v20875_v51  ;;  %v10990_v37 = vmax.f32 %v10890_v43, 0.0  ;;  %v20885_v51 = vld [vmem:[%s27060_s7 + $0x428] sm:$0xff]  }
 0x8cb   :  { %v10994_v20 = vmax.f32 %v10894_v60, 0.0  ;;  %18080 = vmatpush3.bf16.msra.mxu0 %v20876_v1  ;;  %17975 = vmatprep.subr.bf16.mxu1 %v20877_v55  ;;  %v20886_v1 = vld [vmem:[%s27060_s7 + $0x928] sm:$0xff]  }
 0x8cc   :  { %v10995_v17 = vmax.f32 %v10895_v62, 0.0  ;;  %18081 = vmatprep.subr.bf16.mxu0 %v20878_v54  ;;  %v20887_v54 = vld [vmem:[%s27060_s7 + $0x3e8] sm:$0xff]  }
 0x8cd   :  { %v25784_v0 = vpack.c.bf16 %v10994_v20, %v10989_v8  ;;  %v20888_v62 = vld [vmem:[%s27060_s7 + $0x8e8] sm:$0xff]  }
 0x8ce   :  { %v25786_v53 = vpack.c.bf16 %v10995_v17, %v10990_v37  ;;  %17976 = vmatpush3.bf16.msra.mxu1 %v20879_v59  ;;  %v10432_v57 = vpop.f32.mrb[164].mxu0  ;;  %v20889_v59 = vld [vmem:[%s27060_s7 + $0x430] sm:$0xff]  }
 0x8cf   :  { %18082 = vmatpush3.bf16.msra.mxu0 %v20880_v44  ;;  %v10899_v27 = vadd.f32 %v25639_v36, %v10432_v57  ;;  %v10434_v5 = vpop.f32.mrb[165].mxu0  ;;  %17977 = vmatprep.subr.bf16.mxu1 %v20881_v4  ;;  %v20890_v44 = vld [vmem:[%s27060_s7 + $0x930] sm:$0xff]  }
 0x8d0   :  { %v10900_v30 = vadd.f32 %v25643_v21, %v10434_v5  ;;  %v10436_v22 = vpop.f32.mrb[166].mxu0  ;;  %18083 = vmatprep.subr.bf16.mxu0 %v20882_v13  ;;  %v20891_v13 = vld [vmem:[%s27060_s7 + $0x3f0] sm:$0xff]   ;;  %v20893_v5 = vld [vmem:[%s27060_s7 + $0x438] sm:$0xff]  }
 0x8d1   :  { %v10904_v55 = vadd.f32 %v25639_v36, %v10436_v22  ;;  %v10438_v43 = vpop.f32.mrb[167].mxu0  ;;  %v10999_v60 = vmax.f32 %v10899_v27, 0.0  ;;  %v20892_v27 = vld [vmem:[%s27060_s7 + $0x8f0] sm:$0xff]  }
 0x8d2   :  { %v10905_v16 = vadd.f32 %v25643_v21, %v10438_v43  ;;  %17978 = vmatpush3.bf16.msra.mxu1 %v20883_v34  ;;  %v11000_v8 = vmax.f32 %v10900_v30, 0.0  ;;  %v20894_v30 = vld [vmem:[%s27060_s7 + $0x938] sm:$0xff]  }
 0x8d3   :  { %v11004_v3 = vmax.f32 %v10904_v55, 0.0  ;;  %18084 = vmatpush3.bf16.msra.mxu0 %v20884_v63  ;;  %17979 = vmatprep.subr.bf16.mxu1 %v20885_v51  ;;  %v20895_v43 = vld [vmem:[%s27060_s7 + $0x3f8] sm:$0xff]  }
 0x8d4   :  { %v11005_v20 = vmax.f32 %v10905_v16, 0.0  ;;  %18085 = vmatprep.subr.bf16.mxu0 %v20886_v1 }
 0x8d5   :  { %v25816_v4 = vpack.c.bf16 %v11004_v3, %v10999_v60  ;;  %v20896_v60 = vld [vmem:[%s27060_s7 + $0x8f8] sm:$0xff]  }
 0x8d6   :  { %v25818_v37 = vpack.c.bf16 %v11005_v20, %v11000_v8  ;;  %17980 = vmatpush3.bf16.msra.mxu1 %v20887_v54  ;;  %v10442_v17 = vpop.f32.mrb[168].mxu0  ;;  %v20898_v8 = vld [vmem:[%s27060_s7 + $0x440] sm:$0xff]  }
 0x8d7   :  { %18086 = vmatpush3.bf16.msra.mxu0 %v20888_v62  ;;  %v10909_v57 = vadd.f32 %v25639_v36, %v10442_v17  ;;  %v10444_v34 = vpop.f32.mrb[169].mxu0  ;;  %17981 = vmatprep.subr.bf16.mxu1 %v20889_v59  ;;  %v20899_v20 = vld [vmem:[%s27060_s7 + $0x9c0] sm:$0xff]   ;;  %v20901_v17 = vld [vmem:[%s27060_s7 + $0x448] sm:$0xff]  }
 0x8d8   :  { %v10910_v63 = vadd.f32 %v25643_v21, %v10444_v34  ;;  %v10446_v51 = vpop.f32.mrb[170].mxu0  ;;  %18087 = vmatprep.subr.bf16.mxu0 %v20890_v44  ;;  %v20900_v44 = vld [vmem:[%s27060_s7 + $0x488] sm:$0xff]   ;;  %v20907_v34 = vld [vmem:[%s27060_s7 + $0x458] sm:$0xff]  }
 0x8d9   :  { %v10914_v22 = vadd.f32 %v25639_v36, %v10446_v51  ;;  %v10448_v1 = vpop.f32.mrb[171].mxu0  ;;  %v11009_v16 = vmax.f32 %v10909_v57, 0.0  ;;  %v20897_v36 = vld [vmem:[%s27060_s7 + $0x480] sm:$0xff]   ;;  %v20903_v57 = vld [vmem:[%s27060_s7 + $0x490] sm:$0xff]  }
 0x8da   :  { %v10915_v55 = vadd.f32 %v25643_v21, %v10448_v1  ;;  %17982 = vmatpush3.bf16.msra.mxu1 %v20891_v13  ;;  %v11010_v3 = vmax.f32 %v10910_v63, 0.0  ;;  %v20902_v13 = vld [vmem:[%s27060_s7 + $0x9c8] sm:$0xff]   ;;  %v20910_v63 = vld [vmem:[%s27060_s7 + $0x460] sm:$0xff]  }
 0x8db   :  { %v11014_v54 = vmax.f32 %v10914_v22, 0.0  ;;  %18088 = vmatpush3.bf16.msra.mxu0 %v20892_v27  ;;  %17983 = vmatprep.subr.bf16.mxu1 %v20893_v5  ;;  %v20908_v27 = vld [vmem:[%s27060_s7 + $0x9d8] sm:$0xff]   ;;  %v20909_v5 = vld [vmem:[%s27060_s7 + $0x4a0] sm:$0xff]   ;;  %v20913_v22 = vld [vmem:[%s27060_s7 + $0x468] sm:$0xff]  }
 0x8dc   :  { %v11015_v62 = vmax.f32 %v10915_v55, 0.0  ;;  %18089 = vmatprep.subr.bf16.mxu0 %v20894_v30  ;;  %v20911_v51 = vld [vmem:[%s27060_s7 + $0x9e0] sm:$0xff]   ;;  %v20912_v30 = vld [vmem:[%s27060_s7 + $0x4a8] sm:$0xff]   ;;  %v20915_v55 = vld [vmem:[%s27060_s7 + $0x4b0] sm:$0xff]  }
 0x8dd   :  { %v25845_v21 = vpack.c.bf16 %v11014_v54, %v11009_v16  ;;  %v20914_v1 = vld [vmem:[%s27060_s7 + $0x9e8] sm:$0xff]   ;;  %v20917_v16 = vld [vmem:[%s27060_s7 + $0x9f0] sm:$0xff]   ;;  %v20918_v54 = vld [vmem:[%s27060_s7 + $0x4b8] sm:$0xff]  }
 0x8de   :  { %v25847_v59 = vpack.c.bf16 %v11015_v62, %v11010_v3  ;;  %17984 = vmatpush3.bf16.msra.mxu1 %v20895_v43  ;;  %v20916_v43 = vld [vmem:[%s27060_s7 + $0x470] sm:$0xff]   ;;  %v20921_v3 = vld [vmem:[%s27060_s7 + $0xc00] sm:$0xff]  }
 0x8df   :  { %18090 = vmatpush3.bf16.msra.mxu0 %v20896_v60  ;;  %17991 = vmatprep.subr.bf16.mxu1 %v20897_v36  ;;  %v20919_v60 = vld [vmem:[%s27060_s7 + $0x478] sm:$0xff]   ;;  %v20922_v62 = vld [vmem:[%s27060_s7 + $0x4c0] sm:$0xff]  }
 0x8e0   :  { %18591 = vmatprep.subr.bf16.mxu0 %v21289_v58  ;;  %v20920_v36 = vld [vmem:[%s27060_s7 + $0x9f8] sm:$0xff]  }
 0x8e1   :  { %12093 = vmatmul.mubr.bf16.vlgmr.msra.gmra.mrb[108].mxu1 %v25471_v38  ;;  %v20904_v38 = vld [vmem:[%s27060_s7 + $0x450] sm:$0xff]  }
 0x8e2   :  { %13159 = vmatmul.mubr.bf16.vlgmr.msra.gmra.mrb[176].mxu0 %v25511_v7  ;;  %17992 = vmatpush3.bf16.msra.mxu1 %v20898_v8  ;;  %v20905_v7 = vld [vmem:[%s27060_s7 + $0x9d0] sm:$0xff]   ;;  %v20923_v8 = vld [vmem:[%s27060_s7 + $0xbc0] sm:$0xff]  }
 0x8e3   :  { %12133 = vmatprep.mubr.bf16.mxu1 %v25688_v49  ;;  %18592 = vmatpush3.bf16.msra.mxu0 %v20899_v20  ;;  %v20906_v49 = vld [vmem:[%s27060_s7 + $0x498] sm:$0xff]   ;;  %v20924_v20 = vld [vmem:[%s27060_s7 + $0xc08] sm:$0xff]  }
 0x8e4   :  { %17993 = vmatprep.subr.bf16.mxu1 %v20900_v44  ;;  %18593 = vmatprep.subr.bf16.mxu0 %v21289_v58  ;;  %v20925_v44 = vld [vmem:[%s27060_s7 + $0x4c8] sm:$0xff]  }
 0x8e5   :  { %18607 = vmatprep.mubr.msk.bf16.mxu0 %vm21290_vm0, %v21289_v58 }
 0x8e6   :  { %17994 = vmatpush3.bf16.msra.mxu1 %v20901_v17  ;;  %v20926_v17 = vld [vmem:[%s27060_s7 + $0xbc8] sm:$0xff]  }
 0x8e7   :  { %18594 = vmatpush3.bf16.msra.mxu0 %v20902_v13  ;;  %17995 = vmatprep.subr.bf16.mxu1 %v20903_v57  ;;  %v20930_v13 = vld [vmem:[%s27060_s7 + $0xc18] sm:$0xff]  }
 0x8e8   :  { %18595 = vmatprep.subr.bf16.mxu0 %v21289_v58  ;;  %v20931_v57 = vld [vmem:[%s27060_s7 + $0x4d8] sm:$0xff]  }
 0x8ea   :  { %17996 = vmatpush3.bf16.msra.mxu1 %v20904_v38  ;;  %v20932_v38 = vld [vmem:[%s27060_s7 + $0xbd8] sm:$0xff]  }
 0x8eb   :  { %18596 = vmatpush3.bf16.msra.mxu0 %v20905_v7  ;;  %17997 = vmatprep.subr.bf16.mxu1 %v20906_v49  ;;  %v20933_v7 = vld [vmem:[%s27060_s7 + $0xc20] sm:$0xff]  }
 0x8ec   :  { %18597 = vmatprep.subr.bf16.mxu0 %v21289_v58  ;;  %v20934_v49 = vld [vmem:[%s27060_s7 + $0x4e0] sm:$0xff]  }
 0x8ee   :  { %17998 = vmatpush3.bf16.msra.mxu1 %v20907_v34  ;;  %v20935_v34 = vld [vmem:[%s27060_s7 + $0xbe0] sm:$0xff]  }
 0x8ef   :  { %18598 = vmatpush3.bf16.msra.mxu0 %v20908_v27  ;;  %17999 = vmatprep.subr.bf16.mxu1 %v20909_v5  ;;  %v20936_v27 = vld [vmem:[%s27060_s7 + $0xc28] sm:$0xff]  }
 0x8f0   :  { %18599 = vmatprep.subr.bf16.mxu0 %v21289_v58  ;;  %v20937_v5 = vld [vmem:[%s27060_s7 + $0x4e8] sm:$0xff]  }
 0x8f2   :  { %18000 = vmatpush3.bf16.msra.mxu1 %v20910_v63  ;;  %v20938_v63 = vld [vmem:[%s27060_s7 + $0xbe8] sm:$0xff]  }
 0x8f3   :  { %18600 = vmatpush3.bf16.msra.mxu0 %v20911_v51  ;;  %18001 = vmatprep.subr.bf16.mxu1 %v20912_v30  ;;  %v20939_v51 = vld [vmem:[%s27060_s7 + $0xc30] sm:$0xff]  }
 0x8f4   :  { %18601 = vmatprep.subr.bf16.mxu0 %v21289_v58  ;;  %v20940_v30 = vld [vmem:[%s27060_s7 + $0x4f0] sm:$0xff]  }
 0x8f6   :  { %18002 = vmatpush3.bf16.msra.mxu1 %v20913_v22  ;;  %v20941_v22 = vld [vmem:[%s27060_s7 + $0xbf0] sm:$0xff]  }
 0x8f7   :  { %18602 = vmatpush3.bf16.msra.mxu0 %v20914_v1  ;;  %18003 = vmatprep.subr.bf16.mxu1 %v20915_v55  ;;  %v20942_v1 = vld [vmem:[%s27060_s7 + $0xc38] sm:$0xff]  }
 0x8f8   :  { %18603 = vmatprep.subr.bf16.mxu0 %v21289_v58  ;;  %v20943_v55 = vld [vmem:[%s27060_s7 + $0x4f8] sm:$0xff]  }
 0x8fa   :  { %18004 = vmatpush3.bf16.msra.mxu1 %v20916_v43  ;;  %v20944_v43 = vld [vmem:[%s27060_s7 + $0xbf8] sm:$0xff]  }
 0x8fb   :  { %18604 = vmatpush3.bf16.msra.mxu0 %v20917_v16  ;;  %18005 = vmatprep.subr.bf16.mxu1 %v20918_v54  ;;  %v20945_v16 = vld [vmem:[%s27060_s7 + $0x680] sm:$0xff]  }
 0x8fc   :  { %18605 = vmatprep.subr.bf16.mxu0 %v21289_v58  ;;  %v20946_v54 = vld [vmem:[%s27060_s7 + $0x40] sm:$0xff]  }
 0x8fe   :  { %18006 = vmatpush3.bf16.msra.mxu1 %v20919_v60  ;;  %v20947_v60 = vld [vmem:[%s27060_s7 + $0x640] sm:$0xff]  }
 0x8ff   :  { %18606 = vmatpush3.bf16.msra.mxu0 %v20920_v36  ;;  %18551 = vmatprep.subr.bf16.mxu1 %v21289_v58  ;;  %v20948_v36 = vld [vmem:[%s27060_s7] sm:$0xff]  }
 0x900   :  { %18150 = vmatprep.subr.bf16.mxu0 %v20921_v3  ;;  %v20949_v3 = vld [vmem:[%s27060_s7 + $0x688] sm:$0xff]  }
 0x901   :  { %12134 = vmatmul.mubr.bf16.vlgmr.msra.gmra.mrb[112].mxu1 %v25686_v24  ;;  %v20927_v24 = vld [vmem:[%s27060_s7 + $0xc10] sm:$0xff]  }
 0x902   :  { %18608 = vmatmul.mubr.bf16.vlgmr.msra.gmra.mrb[180].mxu0 %v25129_v12  ;;  %18552 = vmatpush3.bf16.msra.mxu1 %v20922_v62  ;;  %v20928_v12 = vld [vmem:[%s27060_s7 + $0x4d0] sm:$0xff]   ;;  %v20950_v62 = vld [vmem:[%s27060_s7 + $0x48] sm:$0xff]  }
 0x903   :  { %18151 = vmatpush3.bf16.msra.mxu0 %v20923_v8  ;;  %13732 = vmatprep.mubr.bf16.mxu0 %v25847_v59  ;;  %v20929_v59 = vld [vmem:[%s27060_s7 + $0xbd0] sm:$0xff]   ;;  %v20951_v8 = vld [vmem:[%s27060_s7 + $0x648] sm:$0xff]  }
 0x904   :  { %18553 = vmatprep.subr.bf16.mxu1 %v21289_v58  ;;  %18152 = vmatprep.subr.bf16.mxu0 %v20924_v20  ;;  %v20952_v20 = vld [vmem:[%s27060_s7 + $0x8] sm:$0xff]  }
 0x905   :  { %18567 = vmatprep.mubr.msk.bf16.mxu1 %vm21290_vm0, %v21289_v58 }
 0x906   :  { %18554 = vmatpush3.bf16.msra.mxu1 %v20925_v44  ;;  %v20956_v44 = vld [vmem:[%s27060_s7 + $0x10] sm:$0xff]  }
 0x907   :  { %18153 = vmatpush3.bf16.msra.mxu0 %v20926_v17  ;;  %18555 = vmatprep.subr.bf16.mxu1 %v21289_v58  ;;  %v20958_v17 = vld [vmem:[%s27060_s7 + $0x58] sm:$0xff]  }
 0x908   :  { %18154 = vmatprep.subr.bf16.mxu0 %v20927_v24  ;;  %v20959_v24 = vld [vmem:[%s27060_s7 + $0x658] sm:$0xff]  }
 0x90a   :  { %18556 = vmatpush3.bf16.msra.mxu1 %v20928_v12  ;;  %v20960_v12 = vld [vmem:[%s27060_s7 + $0x18] sm:$0xff]  }
 0x90b   :  { %18155 = vmatpush3.bf16.msra.mxu0 %v20929_v59  ;;  %18557 = vmatprep.subr.bf16.mxu1 %v21289_v58  ;;  %v20961_v59 = vld [vmem:[%s27060_s7 + $0x6a0] sm:$0xff]  }
 0x90c   :  { %18156 = vmatprep.subr.bf16.mxu0 %v20930_v13  ;;  %v20962_v13 = vld [vmem:[%s27060_s7 + $0x60] sm:$0xff]  }
 0x90e   :  { %18558 = vmatpush3.bf16.msra.mxu1 %v20931_v57  ;;  %v20963_v57 = vld [vmem:[%s27060_s7 + $0x660] sm:$0xff]  }
 0x90f   :  { %18157 = vmatpush3.bf16.msra.mxu0 %v20932_v38  ;;  %18559 = vmatprep.subr.bf16.mxu1 %v21289_v58  ;;  %v20964_v38 = vld [vmem:[%s27060_s7 + $0x20] sm:$0xff]  }
 0x910   :  { %18158 = vmatprep.subr.bf16.mxu0 %v20933_v7  ;;  %v20965_v7 = vld [vmem:[%s27060_s7 + $0x6a8] sm:$0xff]  }
 0x912   :  { %18560 = vmatpush3.bf16.msra.mxu1 %v20934_v49  ;;  %v20966_v49 = vld [vmem:[%s27060_s7 + $0x68] sm:$0xff]  }
 0x913   :  { %18159 = vmatpush3.bf16.msra.mxu0 %v20935_v34  ;;  %18561 = vmatprep.subr.bf16.mxu1 %v21289_v58  ;;  %v20967_v34 = vld [vmem:[%s27060_s7 + $0x668] sm:$0xff]  }
 0x914   :  { %18160 = vmatprep.subr.bf16.mxu0 %v20936_v27  ;;  %v20968_v27 = vld [vmem:[%s27060_s7 + $0x28] sm:$0xff]  }
 0x916   :  { %18562 = vmatpush3.bf16.msra.mxu1 %v20937_v5  ;;  %v20969_v5 = vld [vmem:[%s27060_s7 + $0x6b0] sm:$0xff]  }
 0x917   :  { %18161 = vmatpush3.bf16.msra.mxu0 %v20938_v63  ;;  %18563 = vmatprep.subr.bf16.mxu1 %v21289_v58  ;;  %v20970_v63 = vld [vmem:[%s27060_s7 + $0x70] sm:$0xff]  }
 0x918   :  { %18162 = vmatprep.subr.bf16.mxu0 %v20939_v51  ;;  %v20971_v51 = vld [vmem:[%s27060_s7 + $0x670] sm:$0xff]  }
 0x91a   :  { %18564 = vmatpush3.bf16.msra.mxu1 %v20940_v30  ;;  %v20972_v30 = vld [vmem:[%s27060_s7 + $0x30] sm:$0xff]  }
 0x91b   :  { %18163 = vmatpush3.bf16.msra.mxu0 %v20941_v22  ;;  %18565 = vmatprep.subr.bf16.mxu1 %v21289_v58  ;;  %v20973_v22 = vld [vmem:[%s27060_s7 + $0x6b8] sm:$0xff]  }
 0x91c   :  { %18164 = vmatprep.subr.bf16.mxu0 %v20942_v1  ;;  %v20974_v1 = vld [vmem:[%s27060_s7 + $0x78] sm:$0xff]  }
 0x91e   :  { %18566 = vmatpush3.bf16.msra.mxu1 %v20943_v55  ;;  %v20975_v55 = vld [vmem:[%s27060_s7 + $0x678] sm:$0xff]  }
 0x91f   :  { %18165 = vmatpush3.bf16.msra.mxu0 %v20944_v43  ;;  %18022 = vmatprep.subr.bf16.mxu1 %v20945_v16  ;;  %v20976_v43 = vld [vmem:[%s27060_s7 + $0x38] sm:$0xff]   ;;  %v20977_v16 = vld [vmem:[%s27060_s7 + $0x740] sm:$0xff]  }
 0x920   :  { %18181 = vmatprep.subr.bf16.mxu0 %v20946_v54  ;;  %v20978_v54 = vld [vmem:[%s27060_s7 + $0x100] sm:$0xff]  }
 0x921   :  { %18568 = vmatmul.mubr.bf16.vlgmr.msra.gmra.mrb[116].mxu1 %v25049_v47  ;;  %v20953_v47 = vld [vmem:[%s27060_s7 + $0x690] sm:$0xff]  }
 0x922   :  { %13733 = vmatmul.mubr.bf16.vlgmr.msra.gmra.mrb[184].mxu0 %v25845_v21  ;;  %18023 = vmatpush3.bf16.msra.mxu1 %v20947_v60  ;;  %v20954_v21 = vld [vmem:[%s27060_s7 + $0x50] sm:$0xff]   ;;  %v20979_v60 = vld [vmem:[%s27060_s7 + $0x748] sm:$0xff]  }
 0x923   :  { %12625 = vmatprep.mubr.bf16.mxu1 %v25493_v39  ;;  %18182 = vmatpush3.bf16.msra.mxu0 %v20948_v36  ;;  %v20955_v39 = vld [vmem:[%s27060_s7 + $0x650] sm:$0xff]   ;;  %v20980_v36 = vld [vmem:[%s27060_s7 + $0x108] sm:$0xff]  }
 0x924   :  { %14054 = vmatprep.mubr.bf16.mxu0 %v25444_v23  ;;  %18024 = vmatprep.subr.bf16.mxu1 %v20949_v3  ;;  %v20957_v23 = vld [vmem:[%s27060_s7 + $0x698] sm:$0xff]  }
 0x925   :  { %18183 = vmatprep.subr.bf16.mxu0 %v20950_v62  ;;  %v20983_v3 = vld [vmem:[%s27060_s7 + $0x758] sm:$0xff]  }
 0x926   :  { %18025 = vmatpush3.bf16.msra.mxu1 %v20951_v8  ;;  %v20984_v62 = vld [vmem:[%s27060_s7 + $0x118] sm:$0xff]   ;;  %v20985_v8 = vld [vmem:[%s27060_s7 + $0x760] sm:$0xff]  }
 0x927   :  { %18184 = vmatpush3.bf16.msra.mxu0 %v20952_v20  ;;  %18026 = vmatprep.subr.bf16.mxu1 %v20953_v47  ;;  %v20986_v20 = vld [vmem:[%s27060_s7 + $0x120] sm:$0xff]   ;;  %v20987_v47 = vld [vmem:[%s27060_s7 + $0x768] sm:$0xff]  }
 0x928   :  { %18185 = vmatprep.subr.bf16.mxu0 %v20954_v21  ;;  %v20988_v21 = vld [vmem:[%s27060_s7 + $0x128] sm:$0xff]  }
 0x92a   :  { %18027 = vmatpush3.bf16.msra.mxu1 %v20955_v39  ;;  %v20989_v39 = vld [vmem:[%s27060_s7 + $0x770] sm:$0xff]  }
 0x92b   :  { %18186 = vmatpush3.bf16.msra.mxu0 %v20956_v44  ;;  %18028 = vmatprep.subr.bf16.mxu1 %v20957_v23  ;;  %v20990_v44 = vld [vmem:[%s27060_s7 + $0x130] sm:$0xff]   ;;  %v20991_v23 = vld [vmem:[%s27060_s7 + $0x778] sm:$0xff]  }
 0x92c   :  { %18187 = vmatprep.subr.bf16.mxu0 %v20958_v17  ;;  %v20992_v17 = vld [vmem:[%s27060_s7 + $0x138] sm:$0xff]  }
 0x92e   :  { %18029 = vmatpush3.bf16.msra.mxu1 %v20959_v24  ;;  %v20993_v24 = vld [vmem:[%s27060_s7 + $0x980] sm:$0xff]  }
 0x92f   :  { %18188 = vmatpush3.bf16.msra.mxu0 %v20960_v12  ;;  %18030 = vmatprep.subr.bf16.mxu1 %v20961_v59  ;;  %v20994_v12 = vld [vmem:[%s27060_s7 + $0x340] sm:$0xff]  }
 0x930   :  { %18189 = vmatprep.subr.bf16.mxu0 %v20962_v13  ;;  %v20995_v59 = vld [vmem:[%s27060_s7 + $0x940] sm:$0xff]  }
 0x931   :  { %v20996_v13 = vld [vmem:[%s27060_s7 + $0x300] sm:$0xff]  }
 0x932   :  { %18031 = vmatpush3.bf16.msra.mxu1 %v20963_v57  ;;  %v20997_v57 = vld [vmem:[%s27060_s7 + $0x988] sm:$0xff]  }
 0x933   :  { %18190 = vmatpush3.bf16.msra.mxu0 %v20964_v38  ;;  %18032 = vmatprep.subr.bf16.mxu1 %v20965_v7  ;;  %v20998_v38 = vld [vmem:[%s27060_s7 + $0x348] sm:$0xff]   ;;  %v27296_v7 = vld [vmem:[#allocation16_spill] sm:$0xff] }
 0x934   :  { %18191 = vmatprep.subr.bf16.mxu0 %v20966_v49  ;;  %v20999_v49 = vld [vmem:[%s27060_s7 + $0x948] sm:$0xff]  }
 0x936   :  { %18033 = vmatpush3.bf16.msra.mxu1 %v20967_v34  ;;  %v21000_v34 = vld [vmem:[%s27060_s7 + $0x308] sm:$0xff]  }
 0x937   :  { %18192 = vmatpush3.bf16.msra.mxu0 %v20968_v27  ;;  %18034 = vmatprep.subr.bf16.mxu1 %v20969_v5  ;;  %v21002_v27 = vld [vmem:[%s27060_s7 + $0x350] sm:$0xff]  }
 0x938   :  { %18193 = vmatprep.subr.bf16.mxu0 %v20970_v63  ;;  %v21004_v5 = vld [vmem:[%s27060_s7 + $0x310] sm:$0xff]   ;;  %v21006_v63 = vld [vmem:[%s27060_s7 + $0x358] sm:$0xff]  }
 0x93a   :  { %18035 = vmatpush3.bf16.msra.mxu1 %v20971_v51  ;;  %v21007_v51 = vld [vmem:[%s27060_s7 + $0x958] sm:$0xff]  }
 0x93b   :  { %18194 = vmatpush3.bf16.msra.mxu0 %v20972_v30  ;;  %18036 = vmatprep.subr.bf16.mxu1 %v20973_v22  ;;  %v21008_v30 = vld [vmem:[%s27060_s7 + $0x318] sm:$0xff]   ;;  %v21009_v22 = vld [vmem:[%s27060_s7 + $0x9a0] sm:$0xff]  }
 0x93c   :  { %18195 = vmatprep.subr.bf16.mxu0 %v20974_v1  ;;  %v21010_v1 = vld [vmem:[%s27060_s7 + $0x360] sm:$0xff]  }
 0x93e   :  { %18037 = vmatpush3.bf16.msra.mxu1 %v20975_v55  ;;  %v21011_v55 = vld [vmem:[%s27060_s7 + $0x960] sm:$0xff]  }
 0x93f   :  { %18196 = vmatpush3.bf16.msra.mxu0 %v20976_v43  ;;  %18571 = vmatprep.subr.bf16.mxu1 %v21289_v58  ;;  %v21012_v43 = vld [vmem:[%s27060_s7 + $0x320] sm:$0xff]  }
 0x940   :  { %18631 = vmatprep.subr.bf16.mxu0 %v21289_v58 }
 0x941   :  { %12626 = vmatmul.mubr.bf16.vlgmr.msra.gmra.mrb[120].mxu1 %v25491_v10  ;;  %v20982_v10 = vld [vmem:[%s27060_s7 + $0x110] sm:$0xff]  }
 0x942   :  { %14055 = vmatmul.mubr.bf16.vlgmr.msra.gmra.mrb[188].mxu0 %v25442_v19  ;;  %18572 = vmatpush3.bf16.msra.mxu1 %v20977_v16  ;;  %v20981_v19 = vld [vmem:[%s27060_s7 + $0x750] sm:$0xff]   ;;  %v21013_v16 = vld [vmem:[%s27060_s7 + $0x9a8] sm:$0xff]  }
 0x943   :  { %18632 = vmatpush3.bf16.msra.mxu0 %v20978_v54  ;;  %18573 = vmatprep.subr.bf16.mxu1 %v21289_v58  ;;  %v21014_v54 = vld [vmem:[%s27060_s7 + $0x368] sm:$0xff]  }
 0x944   :  { %18633 = vmatprep.subr.bf16.mxu0 %v21289_v58  ;;  %18587 = vmatprep.mubr.msk.bf16.mxu1 %vm21290_vm0, %v21289_v58 }
 0x945   :  { %18647 = vmatprep.mubr.msk.bf16.mxu0 %vm21290_vm0, %v21289_v58 }
 0x946   :  { %18574 = vmatpush3.bf16.msra.mxu1 %v20979_v60  ;;  %v21015_v60 = vld [vmem:[%s27060_s7 + $0x968] sm:$0xff]  }
 0x947   :  { %18634 = vmatpush3.bf16.msra.mxu0 %v20980_v36  ;;  %18575 = vmatprep.subr.bf16.mxu1 %v21289_v58  ;;  %v21016_v36 = vld [vmem:[%s27060_s7 + $0x328] sm:$0xff]  }
 0x948   :  { %18635 = vmatprep.subr.bf16.mxu0 %v21289_v58 }
 0x94a   :  { %18576 = vmatpush3.bf16.msra.mxu1 %v20981_v19  ;;  %v21017_v19 = vld [vmem:[%s27060_s7 + $0x9b0] sm:$0xff]  }
 0x94b   :  { %18636 = vmatpush3.bf16.msra.mxu0 %v20982_v10  ;;  %18577 = vmatprep.subr.bf16.mxu1 %v21289_v58 }
 0x94c   :  { %18637 = vmatprep.subr.bf16.mxu0 %v21289_v58 }
 0x94e   :  { %18578 = vmatpush3.bf16.msra.mxu1 %v20983_v3  ;;  %v21018_v3 = vld [vmem:[%s27060_s7 + $0x370] sm:$0xff]  }
 0x94f   :  { %18638 = vmatpush3.bf16.msra.mxu0 %v20984_v62  ;;  %18579 = vmatprep.subr.bf16.mxu1 %v21289_v58 }
 0x950   :  { %18639 = vmatprep.subr.bf16.mxu0 %v21289_v58 }
 0x952   :  { %18580 = vmatpush3.bf16.msra.mxu1 %v20985_v8 }
 0x953   :  { %18640 = vmatpush3.bf16.msra.mxu0 %v20986_v20  ;;  %18581 = vmatprep.subr.bf16.mxu1 %v21289_v58 }
 0x954   :  { %18641 = vmatprep.subr.bf16.mxu0 %v21289_v58 }
 0x956   :  { %18582 = vmatpush3.bf16.msra.mxu1 %v20987_v47  ;;  %v21019_v47 = vld [vmem:[%s27060_s7 + $0x970] sm:$0xff]  }
 0x957   :  { %18642 = vmatpush3.bf16.msra.mxu0 %v20988_v21  ;;  %18583 = vmatprep.subr.bf16.mxu1 %v21289_v58 }
 0x958   :  { %18643 = vmatprep.subr.bf16.mxu0 %v21289_v58 }
 0x95a   :  { %18584 = vmatpush3.bf16.msra.mxu1 %v20989_v39  ;;  %v21020_v39 = vld [vmem:[%s27060_s7 + $0x330] sm:$0xff]  }
 0x95b   :  { %18644 = vmatpush3.bf16.msra.mxu0 %v20990_v44  ;;  %18585 = vmatprep.subr.bf16.mxu1 %v21289_v58  ;;  %v21021_v44 = vld [vmem:[%s27060_s7 + $0x9b8] sm:$0xff]  }
 0x95c   :  { %18645 = vmatprep.subr.bf16.mxu0 %v21289_v58 }
 0x95e   :  { %18586 = vmatpush3.bf16.msra.mxu1 %v20991_v23 }
 0x95f   :  { %18646 = vmatpush3.bf16.msra.mxu0 %v20992_v17  ;;  %18097 = vmatprep.subr.bf16.mxu1 %v20993_v24  ;;  %v21022_v17 = vld [vmem:[%s27060_s7 + $0x378] sm:$0xff]  }
 0x960   :  { %18256 = vmatprep.subr.bf16.mxu0 %v20994_v12  ;;  %v21023_v12 = vld [vmem:[%s27060_s7 + $0x978] sm:$0xff]  }
 0x961   :  { %18588 = vmatmul.mubr.bf16.vlgmr.msra.gmra.mrb[124].mxu1 %v25089_v45  ;;  %v21001_v45 = vld [vmem:[%s27060_s7 + $0x990] sm:$0xff]  }
 0x962   :  { %18648 = vmatmul.mubr.bf16.vlgmr.msra.gmra.mrb[192].mxu0 %v27296_v7  ;;  %18098 = vmatpush3.bf16.msra.mxu1 %v20995_v59  ;;  %v21029_v7 = vld [vmem:[%s27060_s7 + $0xb88] sm:$0xff]  }
 0x963   :  { %13199 = vmatprep.mubr.bf16.mxu1 %v25786_v53  ;;  %18257 = vmatpush3.bf16.msra.mxu0 %v20996_v13  ;;  %v21003_v53 = vld [vmem:[%s27060_s7 + $0x950] sm:$0xff]   ;;  %v21024_v13 = vld [vmem:[%s27060_s7 + $0x338] sm:$0xff]  }
 0x964   :  { %14458 = vmatprep.mubr.bf16.mxu0 %v25672_v46  ;;  %18099 = vmatprep.subr.bf16.mxu1 %v20997_v57  ;;  %v21005_v46 = vld [vmem:[%s27060_s7 + $0x998] sm:$0xff]   ;;  %v21025_v57 = vld [vmem:[%s27060_s7 + $0xb80] sm:$0xff]  }
 0x965   :  { %18258 = vmatprep.subr.bf16.mxu0 %v20998_v38  ;;  %v21028_v38 = vld [vmem:[%s27060_s7 + $0x500] sm:$0xff]  }
 0x966   :  { %18100 = vmatpush3.bf16.msra.mxu1 %v20999_v49  ;;  %v21030_v49 = vld [vmem:[%s27060_s7 + $0x548] sm:$0xff]  }
 0x967   :  { %18259 = vmatpush3.bf16.msra.mxu0 %v21000_v34  ;;  %18101 = vmatprep.subr.bf16.mxu1 %v21001_v45  ;;  %v21031_v34 = vld [vmem:[%s27060_s7 + $0xb48] sm:$0xff]  }
 0x968   :  { %18260 = vmatprep.subr.bf16.mxu0 %v21002_v27  ;;  %v21032_v45 = vld [vmem:[%s27060_s7 + $0x508] sm:$0xff]   ;;  %v21036_v27 = vld [vmem:[%s27060_s7 + $0x510] sm:$0xff]  }
 0x96a   :  { %18102 = vmatpush3.bf16.msra.mxu1 %v21003_v53  ;;  %v21038_v53 = vld [vmem:[%s27060_s7 + $0x558] sm:$0xff]  }
 0x96b   :  { %18261 = vmatpush3.bf16.msra.mxu0 %v21004_v5  ;;  %18103 = vmatprep.subr.bf16.mxu1 %v21005_v46  ;;  %v21039_v5 = vld [vmem:[%s27060_s7 + $0xb58] sm:$0xff]  }
 0x96c   :  { %18262 = vmatprep.subr.bf16.mxu0 %v21006_v63  ;;  %v21040_v46 = vld [vmem:[%s27060_s7 + $0x518] sm:$0xff]   ;;  %v21041_v63 = vld [vmem:[%s27060_s7 + $0xba0] sm:$0xff]  }
 0x96e   :  { %18104 = vmatpush3.bf16.msra.mxu1 %v21007_v51  ;;  %v21042_v51 = vld [vmem:[%s27060_s7 + $0x560] sm:$0xff]  }
 0x96f   :  { %18263 = vmatpush3.bf16.msra.mxu0 %v21008_v30  ;;  %18105 = vmatprep.subr.bf16.mxu1 %v21009_v22  ;;  %v21043_v30 = vld [vmem:[%s27060_s7 + $0xb60] sm:$0xff]  }
 0x970   :  { %18264 = vmatprep.subr.bf16.mxu0 %v21010_v1  ;;  %v21044_v22 = vld [vmem:[%s27060_s7 + $0x520] sm:$0xff]   ;;  %v21045_v1 = vld [vmem:[%s27060_s7 + $0xba8] sm:$0xff]  }
 0x972   :  { %18106 = vmatpush3.bf16.msra.mxu1 %v21011_v55  ;;  %v21046_v55 = vld [vmem:[%s27060_s7 + $0x568] sm:$0xff]  }
 0x973   :  { %18265 = vmatpush3.bf16.msra.mxu0 %v21012_v43  ;;  %18107 = vmatprep.subr.bf16.mxu1 %v21013_v16  ;;  %v21047_v43 = vld [vmem:[%s27060_s7 + $0xb68] sm:$0xff]  }
 0x974   :  { %v17954_v10 = vpop.f32.mrb[100].mxu1  ;;  %18266 = vmatprep.subr.bf16.mxu0 %v21014_v54  ;;  %v21048_v16 = vld [vmem:[%s27060_s7 + $0x528] sm:$0xff]   ;;  %v21049_v54 = vld [vmem:[%s27060_s7 + $0xbb0] sm:$0xff]  }
 0x975   :  { %v17955_v62 = vpop.f32.mrb[101].mxu1 }
 0x976   :  { %v17956_v8 = vadd.f32 %v17955_v62, %v17954_v10  ;;  %18108 = vmatpush3.bf16.msra.mxu1 %v21015_v60  ;;  %v17957_v20 = vpop.f32.mrb[102].mxu1 }
 0x977   :  { %18267 = vmatpush3.bf16.msra.mxu0 %v21016_v36  ;;  %v17958_v21 = vpop.f32.mrb[103].mxu1  ;;  %18109 = vmatprep.subr.bf16.mxu1 %v21017_v19  ;;  %v21050_v19 = vld [vmem:[%s27060_s7 + $0x570] sm:$0xff]  }
 0x978   :  { %v17959_v23 = vadd.f32 %v17958_v21, %v17957_v20  ;;  %18268 = vmatprep.subr.bf16.mxu0 %v21018_v3  ;;  %v26281_v24 = vadd.f32 %v17956_v8, %v25634_v61  ;;  %v21026_v61 = vld [vmem:[%s27060_s7 + $0x540] sm:$0xff]   ;;  %v21051_v21 = vld [vmem:[%s27060_s7 + $0xb70] sm:$0xff]  }
 0x97a   :  { %18110 = vmatpush3.bf16.msra.mxu1 %v21019_v47  ;;  %v26287_v59 = vadd.f32 %v17959_v23, %v25636_v48  ;;  %v21027_v48 = vld [vmem:[%s27060_s7 + $0xb40] sm:$0xff]  }
 0x97b   :  { %18269 = vmatpush3.bf16.msra.mxu0 %v21020_v39  ;;  %18111 = vmatprep.subr.bf16.mxu1 %v21021_v44 }
 0x97c   :  { %18270 = vmatprep.subr.bf16.mxu0 %v21022_v17  ;;  %v21052_v17 = vld [vmem:[%s27060_s7 + $0x530] sm:$0xff]  }
 0x97e   :  { %18112 = vmatpush3.bf16.msra.mxu1 %v21023_v12 }
 0x97f   :  { %18271 = vmatpush3.bf16.msra.mxu0 %v21024_v13  ;;  %18128 = vmatprep.subr.bf16.mxu1 %v21025_v57  ;;  %v21055_v13 = vld [vmem:[%s27060_s7 + $0xb78] sm:$0xff]  }
 0x980   :  { %18287 = vmatprep.subr.bf16.mxu0 %v21026_v61  ;;  %v21056_v57 = vld [vmem:[%s27060_s7 + $0x538] sm:$0xff]   ;;  %v21057_v61 = vld [vmem:[%s27060_s7 + $0xc40] sm:$0xff]  }
 0x981   :  { %13200 = vmatmul.mubr.bf16.vlgmr.msra.gmra.mrb[128].mxu1 %v25784_v0  ;;  %v21033_v0 = vld [vmem:[%s27060_s7 + $0xb90] sm:$0xff]  }
 0x982   :  { %14459 = vmatmul.mubr.bf16.vlgmr.msra.gmra.mrb[196].mxu0 %v25670_v15  ;;  %18129 = vmatpush3.bf16.msra.mxu1 %v21027_v48  ;;  %v21034_v15 = vld [vmem:[%s27060_s7 + $0x550] sm:$0xff]   ;;  %v21058_v48 = vld [vmem:[%s27060_s7 + $0x600] sm:$0xff]  }
 0x983   :  { %13691 = vmatprep.mubr.bf16.mxu1 %v25533_v11  ;;  %18288 = vmatpush3.bf16.msra.mxu0 %v21028_v38  ;;  %v21035_v11 = vld [vmem:[%s27060_s7 + $0xb50] sm:$0xff]   ;;  %v21059_v38 = vld [vmem:[%s27060_s7 + $0xc48] sm:$0xff]  }
 0x984   :  { %14780 = vmatprep.mubr.bf16.mxu0 %v25483_v26  ;;  %18130 = vmatprep.subr.bf16.mxu1 %v21029_v7  ;;  %v21037_v26 = vld [vmem:[%s27060_s7 + $0xb98] sm:$0xff]   ;;  %v21060_v7 = vld [vmem:[%s27060_s7 + $0x608] sm:$0xff]  }
 0x985   :  { %18289 = vmatprep.subr.bf16.mxu0 %v21030_v49  ;;  %v21063_v49 = vld [vmem:[%s27060_s7 + $0xc58] sm:$0xff]  }
 0x986   :  { %18131 = vmatpush3.bf16.msra.mxu1 %v21031_v34  ;;  %v21064_v34 = vld [vmem:[%s27060_s7 + $0x618] sm:$0xff]  }
 0x987   :  { %18290 = vmatpush3.bf16.msra.mxu0 %v21032_v45  ;;  %18132 = vmatprep.subr.bf16.mxu1 %v21033_v0  ;;  %v21065_v45 = vld [vmem:[%s27060_s7 + $0xc60] sm:$0xff]  }
 0x988   :  { %18291 = vmatprep.subr.bf16.mxu0 %v21034_v15  ;;  %v21066_v0 = vld [vmem:[%s27060_s7 + $0x620] sm:$0xff]   ;;  %v21067_v15 = vld [vmem:[%s27060_s7 + $0xc68] sm:$0xff]  }
 0x98a   :  { %18133 = vmatpush3.bf16.msra.mxu1 %v21035_v11  ;;  %v21068_v11 = vld [vmem:[%s27060_s7 + $0x628] sm:$0xff]  }
 0x98b   :  { %18292 = vmatpush3.bf16.msra.mxu0 %v21036_v27  ;;  %18134 = vmatprep.subr.bf16.mxu1 %v21037_v26 }
 0x98c   :  { %18293 = vmatprep.subr.bf16.mxu0 %v21038_v53 }
 0x98e   :  { %18135 = vmatpush3.bf16.msra.mxu1 %v21039_v5 }
 0x98f   :  { %18294 = vmatpush3.bf16.msra.mxu0 %v21040_v46  ;;  %18136 = vmatprep.subr.bf16.mxu1 %v21041_v63 }
 0x990   :  { %18295 = vmatprep.subr.bf16.mxu0 %v21042_v51  ;;  %v21069_v51 = vld [vmem:[%s27060_s7 + $0xc70] sm:$0xff]  }
 0x992   :  { %18137 = vmatpush3.bf16.msra.mxu1 %v21043_v30 }
 0x993   :  { %18296 = vmatpush3.bf16.msra.mxu0 %v21044_v22  ;;  %18138 = vmatprep.subr.bf16.mxu1 %v21045_v1 }
 0x994   :  { %v11643_v60 = vpop.f32.mrb[104].mxu1  ;;  %v18060_v36 = vpop.f32.mrb[172].mxu0  ;;  %18297 = vmatprep.subr.bf16.mxu0 %v21046_v55  ;;  %v21070_v55 = vld [vmem:[%s27060_s7 + $0x630] sm:$0xff]  }
 0x995   :  { %v26375_v10 = vadd.f32 %v11643_v60, %v26281_v24  ;;  %v18549_v3 = vpop.f32.mrb[105].mxu1  ;;  %v18061_v62 = vpop.f32.mrb[173].mxu0  ;;  %v21053_v24 = vld [vmem:[%s27060_s7 + $0xbb8] sm:$0xff]  }
 0x996   :  { %v11646_v8 = vpop.f32.mrb[106].mxu1  ;;  %v26377_v20 = vadd.f32 %v18061_v62, %v18060_v36  ;;  %18139 = vmatpush3.bf16.msra.mxu1 %v21047_v43  ;;  %v18063_v47 = vpop.f32.mrb[174].mxu0  ;;  %v21071_v60 = vld [vmem:[%s27060_s7 + $0xc78] sm:$0xff]   ;;  %v21074_v3 = vld [vmem:[%s27060_s7 + $0x840] sm:$0xff]  }
 0x997   :  { %v26383_v39 = vadd.f32 %v11646_v8, %v26287_v59  ;;  %18298 = vmatpush3.bf16.msra.mxu0 %v21048_v16  ;;  %v18550_v44 = vpop.f32.mrb[107].mxu1  ;;  %v18064_v23 = vpop.f32.mrb[175].mxu0  ;;  %18140 = vmatprep.subr.bf16.mxu1 %v21049_v54  ;;  %v21054_v59 = vld [vmem:[%s27060_s7 + $0x578] sm:$0xff]   ;;  %v21075_v62 = vld [vmem:[%s27060_s7 + $0x80] sm:$0xff]  }
 0x998   :  { %v26391_v12 = vadd.f32 %v18064_v23, %v18063_v47  ;;  %18299 = vmatprep.subr.bf16.mxu0 %v21050_v19  ;;  %v21072_v36 = vld [vmem:[%s27060_s7 + $0x638] sm:$0xff]   ;;  %v21073_v19 = vld [vmem:[%s27060_s7 + $0xc0] sm:$0xff]   ;;  %v21077_v47 = vld [vmem:[%s27060_s7 + $0xc8] sm:$0xff]  }
 0x999   :  { %v21076_v8 = vld [vmem:[%s27060_s7 + $0x800] sm:$0xff]   ;;  %v21079_v44 = vld [vmem:[%s27060_s7 + $0x88] sm:$0xff]  }
 0x99a   :  { %18141 = vmatpush3.bf16.msra.mxu1 %v21051_v21  ;;  %v21078_v21 = vld [vmem:[%s27060_s7 + $0x848] sm:$0xff]  }
 0x99b   :  { %18300 = vmatpush3.bf16.msra.mxu0 %v21052_v17  ;;  %18142 = vmatprep.subr.bf16.mxu1 %v21053_v24  ;;  %v21080_v23 = vld [vmem:[%s27060_s7 + $0x808] sm:$0xff]   ;;  %v21084_v17 = vld [vmem:[%s27060_s7 + $0x810] sm:$0xff]   ;;  %v21086_v24 = vld [vmem:[%s27060_s7 + $0x858] sm:$0xff]  }
 0x99c   :  { %18301 = vmatprep.subr.bf16.mxu0 %v21054_v59  ;;  %v21087_v59 = vld [vmem:[%s27060_s7 + $0x98] sm:$0xff]  }
 0x99e   :  { %18143 = vmatpush3.bf16.msra.mxu1 %v21055_v13  ;;  %v21088_v13 = vld [vmem:[%s27060_s7 + $0x818] sm:$0xff]  }
 0x99f   :  { %18302 = vmatpush3.bf16.msra.mxu0 %v21056_v57  ;;  %18611 = vmatprep.subr.bf16.mxu1 %v21289_v58  ;;  %v21089_v57 = vld [vmem:[%s27060_s7 + $0xe0] sm:$0xff]  }
 0x9a0   :  { %18671 = vmatprep.subr.bf16.mxu0 %v21289_v58 }
 0x9a1   :  { %13692 = vmatmul.mubr.bf16.vlgmr.msra.gmra.mrb[132].mxu1 %v25531_v50  ;;  %v21062_v50 = vld [vmem:[%s27060_s7 + $0x610] sm:$0xff]  }
 0x9a2   :  { %14781 = vmatmul.mubr.bf16.vlgmr.msra.gmra.mrb[200].mxu0 %v25481_v52  ;;  %18612 = vmatpush3.bf16.msra.mxu1 %v21057_v61  ;;  %v21061_v52 = vld [vmem:[%s27060_s7 + $0xc50] sm:$0xff]   ;;  %v21090_v61 = vld [vmem:[%s27060_s7 + $0x860] sm:$0xff]  }
 0x9a3   :  { %18672 = vmatpush3.bf16.msra.mxu0 %v21058_v48  ;;  %18613 = vmatprep.subr.bf16.mxu1 %v21289_v58  ;;  %v21091_v48 = vld [vmem:[%s27060_s7 + $0xa0] sm:$0xff]  }
 0x9a4   :  { %18673 = vmatprep.subr.bf16.mxu0 %v21289_v58  ;;  %18627 = vmatprep.mubr.msk.bf16.mxu1 %vm21290_vm0, %v21289_v58 }
 0x9a5   :  { %18687 = vmatprep.mubr.msk.bf16.mxu0 %vm21290_vm0, %v21289_v58 }
 0x9a6   :  { %18614 = vmatpush3.bf16.msra.mxu1 %v21059_v38  ;;  %v21092_v38 = vld [vmem:[%s27060_s7 + $0x820] sm:$0xff]  }
 0x9a7   :  { %18674 = vmatpush3.bf16.msra.mxu0 %v21060_v7  ;;  %18615 = vmatprep.subr.bf16.mxu1 %v21289_v58  ;;  %v21093_v7 = vld [vmem:[%s27060_s7 + $0xe8] sm:$0xff]  }
 0x9a8   :  { %18675 = vmatprep.subr.bf16.mxu0 %v21289_v58 }
 0x9aa   :  { %18616 = vmatpush3.bf16.msra.mxu1 %v21061_v52  ;;  %v21094_v52 = vld [vmem:[%s27060_s7 + $0x868] sm:$0xff]  }
 0x9ab   :  { %18676 = vmatpush3.bf16.msra.mxu0 %v21062_v50  ;;  %18617 = vmatprep.subr.bf16.mxu1 %v21289_v58  ;;  %v21095_v50 = vld [vmem:[%s27060_s7 + $0xa8] sm:$0xff]  }
 0x9ac   :  { %18677 = vmatprep.subr.bf16.mxu0 %v21289_v58 }
 0x9ae   :  { %18618 = vmatpush3.bf16.msra.mxu1 %v21063_v49  ;;  %v21096_v49 = vld [vmem:[%s27060_s7 + $0x828] sm:$0xff]  }
 0x9af   :  { %18678 = vmatpush3.bf16.msra.mxu0 %v21064_v34  ;;  %18619 = vmatprep.subr.bf16.mxu1 %v21289_v58  ;;  %v21097_v34 = vld [vmem:[%s27060_s7 + $0xf0] sm:$0xff]  }
 0x9b0   :  { %18679 = vmatprep.subr.bf16.mxu0 %v21289_v58 }
 0x9b2   :  { %18620 = vmatpush3.bf16.msra.mxu1 %v21065_v45 }
 0x9b3   :  { %18680 = vmatpush3.bf16.msra.mxu0 %v21066_v0  ;;  %18621 = vmatprep.subr.bf16.mxu1 %v21289_v58  ;;  %v21098_v0 = vld [vmem:[%s27060_s7 + $0x870] sm:$0xff]  }
 0x9b4   :  { %v17985_v27 = vpop.f32.mrb[108].mxu1  ;;  %18681 = vmatprep.subr.bf16.mxu0 %v21289_v58 }
 0x9b5   :  { %v18091_v26 = vpop.f32.mrb[176].mxu0  ;;  %v17986_v53 = vpop.f32.mrb[109].mxu1 }
 0x9b6   :  { %v26456_v5 = vadd.f32 %v17986_v53, %v17985_v27  ;;  %v18092_v46 = vpop.f32.mrb[177].mxu0  ;;  %v17988_v63 = vpop.f32.mrb[110].mxu1  ;;  %18622 = vmatpush3.bf16.msra.mxu1 %v21067_v15 }
 0x9b7   :  { %v26461_v30 = vadd.f32 %v18092_v46, %v18091_v26  ;;  %v18094_v22 = vpop.f32.mrb[178].mxu0  ;;  %18682 = vmatpush3.bf16.msra.mxu0 %v21068_v11  ;;  %v17989_v1 = vpop.f32.mrb[111].mxu1  ;;  %18623 = vmatprep.subr.bf16.mxu1 %v21289_v58  ;;  %v21099_v46 = vld [vmem:[%s27060_s7 + $0xb0] sm:$0xff]  }
 0x9b8   :  { %v26467_v43 = vadd.f32 %v17989_v1, %v17988_v63  ;;  %v18095_v16 = vpop.f32.mrb[179].mxu0  ;;  %18683 = vmatprep.subr.bf16.mxu0 %v21289_v58  ;;  %v21101_v1 = vld [vmem:[%s27060_s7 + $0xf8] sm:$0xff]  }
 0x9b9   :  { %v26470_v54 = vadd.f32 %v18095_v16, %v18094_v22  ;;  %v21100_v22 = vld [vmem:[%s27060_s7 + $0x830] sm:$0xff]  }
 0x9ba   :  { %18624 = vmatpush3.bf16.msra.mxu1 %v21069_v51 }
 0x9bb   :  { %18684 = vmatpush3.bf16.msra.mxu0 %v21070_v55  ;;  %18625 = vmatprep.subr.bf16.mxu1 %v21289_v58 }
 0x9bc   :  { %18685 = vmatprep.subr.bf16.mxu0 %v21289_v58 }
 0x9be   :  { %18626 = vmatpush3.bf16.msra.mxu1 %v21071_v60  ;;  %v21102_v60 = vld [vmem:[%s27060_s7 + $0x878] sm:$0xff]  }
 0x9bf   :  { %18686 = vmatpush3.bf16.msra.mxu0 %v21072_v36  ;;  %18203 = vmatprep.subr.bf16.mxu1 %v21073_v19  ;;  %v21103_v19 = vld [vmem:[%s27060_s7 + $0xb8] sm:$0xff]  }
 0x9c0   :  { %18362 = vmatprep.subr.bf16.mxu0 %v21074_v3 }
 0x9c1   :  { %18628 = vmatmul.mubr.bf16.vlgmr.msra.gmra.mrb[136].mxu1 %v25157_v35  ;;  %v21081_v35 = vld [vmem:[%s27060_s7 + $0xd0] sm:$0xff]  }
 0x9c2   :  { %18688 = vmatmul.mubr.bf16.vlgmr.msra.gmra.mrb[204].mxu0 %v25069_v33  ;;  %18204 = vmatpush3.bf16.msra.mxu1 %v21075_v62  ;;  %v21082_v33 = vld [vmem:[%s27060_s7 + $0x850] sm:$0xff]   ;;  %v21104_v62 = vld [vmem:[%s27060_s7 + $0x838] sm:$0xff]  }
 0x9c3   :  { %14095 = vmatprep.mubr.bf16.mxu1 %v25651_v2  ;;  %18363 = vmatpush3.bf16.msra.mxu0 %v21076_v8  ;;  %v21083_v2 = vld [vmem:[%s27060_s7 + $0x90] sm:$0xff]   ;;  %v21105_v8 = vld [vmem:[%s27060_s7 + $0x2c0] sm:$0xff]  }
 0x9c4   :  { %15184 = vmatprep.mubr.bf16.mxu0 %v25754_v32  ;;  %18205 = vmatprep.subr.bf16.mxu1 %v21077_v47  ;;  %v21085_v32 = vld [vmem:[%s27060_s7 + $0xd8] sm:$0xff]   ;;  %v21108_v47 = vld [vmem:[%s27060_s7 + $0xa00] sm:$0xff]  }
 0x9c5   :  { %18364 = vmatprep.subr.bf16.mxu0 %v21078_v21  ;;  %v21109_v21 = vld [vmem:[%s27060_s7 + $0x2c8] sm:$0xff]  }
 0x9c6   :  { %18206 = vmatpush3.bf16.msra.mxu1 %v21079_v44  ;;  %v21110_v44 = vld [vmem:[%s27060_s7 + $0xa48] sm:$0xff]  }
 0x9c7   :  { %18365 = vmatpush3.bf16.msra.mxu0 %v21080_v23  ;;  %18207 = vmatprep.subr.bf16.mxu1 %v21081_v35  ;;  %v21111_v23 = vld [vmem:[%s27060_s7 + $0x288] sm:$0xff]  }
 0x9c8   :  { %18366 = vmatprep.subr.bf16.mxu0 %v21082_v33  ;;  %v21112_v35 = vld [vmem:[%s27060_s7 + $0xa08] sm:$0xff]   ;;  %v21116_v33 = vld [vmem:[%s27060_s7 + $0xa10] sm:$0xff]  }
 0x9ca   :  { %18208 = vmatpush3.bf16.msra.mxu1 %v21083_v2  ;;  %v21118_v2 = vld [vmem:[%s27060_s7 + $0xa58] sm:$0xff]  }
 0x9cb   :  { %18367 = vmatpush3.bf16.msra.mxu0 %v21084_v17  ;;  %18209 = vmatprep.subr.bf16.mxu1 %v21085_v32  ;;  %v21119_v17 = vld [vmem:[%s27060_s7 + $0x298] sm:$0xff]  }
 0x9cc   :  { %18368 = vmatprep.subr.bf16.mxu0 %v21086_v24  ;;  %v21120_v32 = vld [vmem:[%s27060_s7 + $0xa18] sm:$0xff]   ;;  %v21121_v24 = vld [vmem:[%s27060_s7 + $0x2e0] sm:$0xff]  }
 0x9ce   :  { %18210 = vmatpush3.bf16.msra.mxu1 %v21087_v59  ;;  %v21122_v59 = vld [vmem:[%s27060_s7 + $0xa60] sm:$0xff]  }
 0x9cf   :  { %18369 = vmatpush3.bf16.msra.mxu0 %v21088_v13  ;;  %18211 = vmatprep.subr.bf16.mxu1 %v21089_v57  ;;  %v21123_v13 = vld [vmem:[%s27060_s7 + $0x2a0] sm:$0xff]  }
 0x9d0   :  { %18370 = vmatprep.subr.bf16.mxu0 %v21090_v61  ;;  %v21124_v57 = vld [vmem:[%s27060_s7 + $0xa20] sm:$0xff]   ;;  %v21125_v61 = vld [vmem:[%s27060_s7 + $0x2e8] sm:$0xff]  }
 0x9d2   :  { %18212 = vmatpush3.bf16.msra.mxu1 %v21091_v48  ;;  %v21126_v48 = vld [vmem:[%s27060_s7 + $0xa68] sm:$0xff]  }
 0x9d3   :  { %18371 = vmatpush3.bf16.msra.mxu0 %v21092_v38  ;;  %18213 = vmatprep.subr.bf16.mxu1 %v21093_v7  ;;  %v21127_v38 = vld [vmem:[%s27060_s7 + $0x2a8] sm:$0xff]  }
 0x9d4   :  { %v18007_v45 = vpop.f32.mrb[112].mxu1  ;;  %18372 = vmatprep.subr.bf16.mxu0 %v21094_v52  ;;  %v21128_v7 = vld [vmem:[%s27060_s7 + $0xa28] sm:$0xff]   ;;  %v21129_v52 = vld [vmem:[%s27060_s7 + $0x2f0] sm:$0xff]  }
 0x9d5   :  { %v26562_v15 = vpop.f32.mrb[180].mxu0  ;;  %v18008_v11 = vpop.f32.mrb[113].mxu1 }
 0x9d6   :  { %v18009_v27 = vadd.f32 %v18008_v11, %v18007_v45  ;;  %v18609_v26 = vpop.f32.mrb[181].mxu0  ;;  %v18010_v53 = vpop.f32.mrb[114].mxu1  ;;  %18214 = vmatpush3.bf16.msra.mxu1 %v21095_v50 }
 0x9d7   :  { %v26567_v63 = vpop.f32.mrb[182].mxu0  ;;  %18373 = vmatpush3.bf16.msra.mxu0 %v21096_v49  ;;  %v18011_v51 = vpop.f32.mrb[115].mxu1  ;;  %18215 = vmatprep.subr.bf16.mxu1 %v21097_v34  ;;  %v21130_v49 = vld [vmem:[%s27060_s7 + $0xa70] sm:$0xff]  }
 0x9d8   :  { %v18012_v55 = vadd.f32 %v18011_v51, %v18010_v53  ;;  %v18610_v16 = vpop.f32.mrb[183].mxu0  ;;  %18374 = vmatprep.subr.bf16.mxu0 %v21098_v0  ;;  %v26579_v36 = vadd.f32 %v18009_v27, %v26456_v5  ;;  %v21106_v5 = vld [vmem:[%s27060_s7 + $0xa40] sm:$0xff]   ;;  %v21131_v26 = vld [vmem:[%s27060_s7 + $0x2b0] sm:$0xff]  }
 0x9da   :  { %18216 = vmatpush3.bf16.msra.mxu1 %v21099_v46  ;;  %v26585_v3 = vadd.f32 %v18012_v55, %v26467_v43  ;;  %v21107_v43 = vld [vmem:[%s27060_s7 + $0x280] sm:$0xff]   ;;  %v21133_v55 = vld [vmem:[%s27060_s7 + $0x2f8] sm:$0xff]  }
 0x9db   :  { %18375 = vmatpush3.bf16.msra.mxu0 %v21100_v22  ;;  %18217 = vmatprep.subr.bf16.mxu1 %v21101_v1  ;;  %v21132_v1 = vld [vmem:[%s27060_s7 + $0xa30] sm:$0xff]  }
 0x9dc   :  { %18376 = vmatprep.subr.bf16.mxu0 %v21102_v60  ;;  %v21134_v60 = vld [vmem:[%s27060_s7 + $0xa78] sm:$0xff]  }
 0x9de   :  { %18218 = vmatpush3.bf16.msra.mxu1 %v21103_v19  ;;  %v21135_v19 = vld [vmem:[%s27060_s7 + $0x2b8] sm:$0xff]  }
 0x9df   :  { %18377 = vmatpush3.bf16.msra.mxu0 %v21104_v62  ;;  %18234 = vmatprep.subr.bf16.mxu1 %v21105_v8  ;;  %v21137_v62 = vld [vmem:[%s27060_s7 + $0x380] sm:$0xff]  }
 0x9e0   :  { %18393 = vmatprep.subr.bf16.mxu0 %v21106_v5  ;;  %v21138_v8 = vld [vmem:[%s27060_s7 + $0xb00] sm:$0xff]   ;;  %v21139_v5 = vld [vmem:[%s27060_s7 + $0x388] sm:$0xff]  }
 0x9e1   :  { %14096 = vmatmul.mubr.bf16.vlgmr.msra.gmra.mrb[140].mxu1 %v25649_v14  ;;  %v21113_v14 = vld [vmem:[%s27060_s7 + $0x2d0] sm:$0xff]  }
 0x9e2   :  { %15185 = vmatmul.mubr.bf16.vlgmr.msra.gmra.mrb[208].mxu0 %v25752_v31  ;;  %18235 = vmatpush3.bf16.msra.mxu1 %v21107_v43  ;;  %v21114_v31 = vld [vmem:[%s27060_s7 + $0xa50] sm:$0xff]   ;;  %v21140_v43 = vld [vmem:[%s27060_s7 + $0xb08] sm:$0xff]  }
 0x9e3   :  { %14417 = vmatprep.mubr.bf16.mxu1 %v25463_v25  ;;  %18394 = vmatpush3.bf16.msra.mxu0 %v21108_v47  ;;  %v21115_v25 = vld [vmem:[%s27060_s7 + $0x290] sm:$0xff]   ;;  %v21143_v47 = vld [vmem:[%s27060_s7 + $0x398] sm:$0xff]  }
 0x9e4   :  { %15506 = vmatprep.mubr.bf16.mxu0 %v25523_v56  ;;  %18236 = vmatprep.subr.bf16.mxu1 %v21109_v21  ;;  %v21117_v56 = vld [vmem:[%s27060_s7 + $0x2d8] sm:$0xff]  }
 0x9e5   :  { %18395 = vmatprep.subr.bf16.mxu0 %v21110_v44  ;;  %v21144_v21 = vld [vmem:[%s27060_s7 + $0xb18] sm:$0xff]   ;;  %v21145_v44 = vld [vmem:[%s27060_s7 + $0x3a0] sm:$0xff]  }
 0x9e6   :  { %18237 = vmatpush3.bf16.msra.mxu1 %v21111_v23  ;;  %v21146_v23 = vld [vmem:[%s27060_s7 + $0xb20] sm:$0xff]  }
 0x9e7   :  { %18396 = vmatpush3.bf16.msra.mxu0 %v21112_v35  ;;  %18238 = vmatprep.subr.bf16.mxu1 %v21113_v14  ;;  %v21147_v35 = vld [vmem:[%s27060_s7 + $0x3a8] sm:$0xff]  }
 0x9e8   :  { %18397 = vmatprep.subr.bf16.mxu0 %v21114_v31  ;;  %v21148_v14 = vld [vmem:[%s27060_s7 + $0xb28] sm:$0xff]  }
 0x9ea   :  { %18239 = vmatpush3.bf16.msra.mxu1 %v21115_v25 }
 0x9eb   :  { %18398 = vmatpush3.bf16.msra.mxu0 %v21116_v33  ;;  %18240 = vmatprep.subr.bf16.mxu1 %v21117_v56 }
 0x9ec   :  { %18399 = vmatprep.subr.bf16.mxu0 %v21118_v2 }
 0x9ee   :  { %18241 = vmatpush3.bf16.msra.mxu1 %v21119_v17 }
 0x9ef   :  { %18400 = vmatpush3.bf16.msra.mxu0 %v21120_v32  ;;  %18242 = vmatprep.subr.bf16.mxu1 %v21121_v24  ;;  %v21149_v32 = vld [vmem:[%s27060_s7 + $0x3b0] sm:$0xff]  }
 0x9f0   :  { %18401 = vmatprep.subr.bf16.mxu0 %v21122_v59 }
 0x9f2   :  { %18243 = vmatpush3.bf16.msra.mxu1 %v21123_v13 }
 0x9f3   :  { %18402 = vmatpush3.bf16.msra.mxu0 %v21124_v57  ;;  %18244 = vmatprep.subr.bf16.mxu1 %v21125_v61  ;;  %v21150_v57 = vld [vmem:[%s27060_s7 + $0xb30] sm:$0xff]  }
 0x9f4   :  { %v12176_v50 = vpop.f32.mrb[116].mxu1  ;;  %18403 = vmatprep.subr.bf16.mxu0 %v21126_v48 }
 0x9f5   :  { %v26673_v34 = vadd.f32 %v12176_v50, %v26579_v36  ;;  %v18166_v45 = vpop.f32.mrb[184].mxu0  ;;  %v18569_v0 = vpop.f32.mrb[117].mxu1  ;;  %v21151_v50 = vld [vmem:[%s27060_s7 + $0x3b8] sm:$0xff]  }
 0x9f6   :  { %v18167_v11 = vpop.f32.mrb[185].mxu0  ;;  %v12179_v27 = vpop.f32.mrb[118].mxu1  ;;  %18245 = vmatpush3.bf16.msra.mxu1 %v21127_v38  ;;  %v27297_v0 = vld [vmem:[#allocation52_spill] sm:$0xff] }
 0x9f7   :  { %v26678_v53 = vadd.f32 %v18167_v11, %v18166_v45  ;;  %v26681_v46 = vadd.f32 %v12179_v27, %v26585_v3  ;;  %v18169_v51 = vpop.f32.mrb[186].mxu0  ;;  %18404 = vmatpush3.bf16.msra.mxu0 %v21128_v7  ;;  %v18570_v22 = vpop.f32.mrb[119].mxu1  ;;  %18246 = vmatprep.subr.bf16.mxu1 %v21129_v52  ;;  %v21136_v3 = vld [vmem:[%s27060_s7 + $0xa38] sm:$0xff]   ;;  %v21156_v11 = vld [vmem:[%s27060_s7 + $0x588] sm:$0xff]   ;;  %v21157_v27 = vld [vmem:[%s27060_s7 + $0x5d0] sm:$0xff]  }
 0x9f8   :  { %v18170_v16 = vpop.f32.mrb[187].mxu0  ;;  %18405 = vmatprep.subr.bf16.mxu0 %v21130_v49  ;;  %v21162_v22 = vld [vmem:[%s27060_s7 + $0x5a0] sm:$0xff]  }
 0x9f9   :  { %v26692_v36 = vadd.f32 %v18170_v16, %v18169_v51  ;;  %v21161_v51 = vld [vmem:[%s27060_s7 + $0x5e0] sm:$0xff]   ;;  %v21165_v16 = vld [vmem:[%s27060_s7 + $0x5f0] sm:$0xff]  }
 0x9fa   :  { %18247 = vmatpush3.bf16.msra.mxu1 %v21131_v26  ;;  %v21158_v26 = vld [vmem:[%s27060_s7 + $0x590] sm:$0xff]  }
 0x9fb   :  { %18406 = vmatpush3.bf16.msra.mxu0 %v21132_v1  ;;  %18248 = vmatprep.subr.bf16.mxu1 %v21133_v55  ;;  %v21163_v1 = vld [vmem:[%s27060_s7 + $0x5e8] sm:$0xff]  }
 0x9fc   :  { %18407 = vmatprep.subr.bf16.mxu0 %v21134_v60  ;;  %v21164_v55 = vld [vmem:[%s27060_s7 + $0x5a8] sm:$0xff]  }
 0x9fe   :  { %18249 = vmatpush3.bf16.msra.mxu1 %v21135_v19 }
 0x9ff   :  { %18408 = vmatpush3.bf16.msra.mxu0 %v21136_v3  ;;  %18651 = vmatprep.subr.bf16.mxu1 %v21289_v58 }
 0xa00   :  { %18711 = vmatprep.subr.bf16.mxu0 %v21289_v58 }
 0xa01   :  { %14418 = vmatmul.mubr.bf16.vlgmr.msra.gmra.mrb[144].mxu1 %v25461_v28  ;;  %v21141_v28 = vld [vmem:[%s27060_s7 + $0x390] sm:$0xff]  }
 0xa02   :  { %15507 = vmatmul.mubr.bf16.vlgmr.msra.gmra.mrb[212].mxu0 %v25521_v29  ;;  %18652 = vmatpush3.bf16.msra.mxu1 %v21137_v62  ;;  %v21142_v29 = vld [vmem:[%s27060_s7 + $0xb10] sm:$0xff]  }
 0xa03   :  { %18712 = vmatpush3.bf16.msra.mxu0 %v21138_v8  ;;  %18653 = vmatprep.subr.bf16.mxu1 %v21289_v58 }
 0xa04   :  { %18713 = vmatprep.subr.bf16.mxu0 %v21289_v58  ;;  %18667 = vmatprep.mubr.msk.bf16.mxu1 %vm21290_vm0, %v21289_v58 }
 0xa05   :  { %18727 = vmatprep.mubr.msk.bf16.mxu0 %vm21290_vm0, %v21289_v58 }
 0xa06   :  { %18654 = vmatpush3.bf16.msra.mxu1 %v21139_v5 }
 0xa07   :  { %18714 = vmatpush3.bf16.msra.mxu0 %v21140_v43  ;;  %18655 = vmatprep.subr.bf16.mxu1 %v21289_v58  ;;  %v21166_v43 = vld [vmem:[%s27060_s7 + $0x5b0] sm:$0xff]  }
 0xa08   :  { %18715 = vmatprep.subr.bf16.mxu0 %v21289_v58 }
 0xa0a   :  { %18656 = vmatpush3.bf16.msra.mxu1 %v21141_v28 }
 0xa0b   :  { %18716 = vmatpush3.bf16.msra.mxu0 %v21142_v29  ;;  %18657 = vmatprep.subr.bf16.mxu1 %v21289_v58 }
 0xa0c   :  { %18717 = vmatprep.subr.bf16.mxu0 %v21289_v58 }
 0xa0e   :  { %18658 = vmatpush3.bf16.msra.mxu1 %v21143_v47 }
 0xa0f   :  { %18718 = vmatpush3.bf16.msra.mxu0 %v21144_v21  ;;  %18659 = vmatprep.subr.bf16.mxu1 %v21289_v58  ;;  %v21167_v21 = vld [vmem:[%s27060_s7 + $0x5f8] sm:$0xff]  }
 0xa10   :  { %18719 = vmatprep.subr.bf16.mxu0 %v21289_v58 }
 0xa12   :  { %18660 = vmatpush3.bf16.msra.mxu1 %v21145_v44 }
 0xa13   :  { %18720 = vmatpush3.bf16.msra.mxu0 %v21146_v23  ;;  %18661 = vmatprep.subr.bf16.mxu1 %v21289_v58  ;;  %v21168_v23 = vld [vmem:[%s27060_s7 + $0x5b8] sm:$0xff]  }
 0xa14   :  { %v18038_v31 = vpop.f32.mrb[120].mxu1  ;;  %18721 = vmatprep.subr.bf16.mxu0 %v21289_v58 }
 0xa15   :  { %v18197_v25 = vpop.f32.mrb[188].mxu0  ;;  %v18039_v33 = vpop.f32.mrb[121].mxu1 }
 0xa16   :  { %v18040_v56 = vadd.f32 %v18039_v33, %v18038_v31  ;;  %v18198_v2 = vpop.f32.mrb[189].mxu0  ;;  %v18041_v17 = vpop.f32.mrb[122].mxu1  ;;  %18662 = vmatpush3.bf16.msra.mxu1 %v21147_v35  ;;  %v21169_v35 = vld [vmem:[%s27060_s7 + $0x7c0] sm:$0xff]   ;;  %v21171_v31 = vld [vmem:[%s27060_s7 + $0x7c8] sm:$0xff]   ;;  %v21173_v33 = vld [vmem:[%s27060_s7 + $0x7d0] sm:$0xff]  }
 0xa17   :  { %v18199_v24 = vadd.f32 %v18198_v2, %v18197_v25  ;;  %v18200_v59 = vpop.f32.mrb[190].mxu0  ;;  %18722 = vmatpush3.bf16.msra.mxu0 %v21148_v14  ;;  %v18042_v13 = vpop.f32.mrb[123].mxu1  ;;  %18663 = vmatprep.subr.bf16.mxu1 %v21289_v58  ;;  %v21170_v14 = vld [vmem:[%s27060_s7 + $0x780] sm:$0xff]   ;;  %v21172_v25 = vld [vmem:[%s27060_s7 + $0x788] sm:$0xff]  }
 0xa18   :  { %v18043_v61 = vadd.f32 %v18042_v13, %v18041_v17  ;;  %v18201_v48 = vpop.f32.mrb[191].mxu0  ;;  %18723 = vmatprep.subr.bf16.mxu0 %v21289_v58  ;;  %v12669_v38 = vadd.f32 %v26377_v20, %v18040_v56  ;;  %v21152_v20 = vld [vmem:[%s27060_s7 + $0xb38] sm:$0xff]   ;;  %v21174_v56 = vld [vmem:[%s27060_s7 + $0x790] sm:$0xff]   ;;  %v21177_v2 = vld [vmem:[%s27060_s7 + $0x7e0] sm:$0xff]  }
 0xa19   :  { %v26764_v7 = vadd.f32 %v18199_v24, %v26375_v10  ;;  %v18202_v52 = vadd.f32 %v18201_v48, %v18200_v59  ;;  %v21153_v10 = vld [vmem:[%s27060_s7 + $0x5c0] sm:$0xff]   ;;  %v21180_v24 = vld [vmem:[%s27060_s7 + $0x7a8] sm:$0xff]   ;;  %v21181_v59 = vld [vmem:[%s27060_s7 + $0x7f0] sm:$0xff]  }
 0xa1a   :  { %18664 = vmatpush3.bf16.msra.mxu1 %v21149_v32  ;;  %v12672_v49 = vadd.f32 %v26391_v12, %v18043_v61  ;;  %v21154_v12 = vld [vmem:[%s27060_s7 + $0x580] sm:$0xff]   ;;  %v21179_v32 = vld [vmem:[%s27060_s7 + $0x7e8] sm:$0xff]  }
 0xa1b   :  { %v26771_v45 = vadd.f32 %v18202_v52, %v26383_v39  ;;  %18724 = vmatpush3.bf16.msra.mxu0 %v21150_v57  ;;  %18665 = vmatprep.subr.bf16.mxu1 %v21289_v58  ;;  %v21155_v39 = vld [vmem:[%s27060_s7 + $0x5c8] sm:$0xff]   ;;  %v21178_v17 = vld [vmem:[%s27060_s7 + $0x7a0] sm:$0xff]  }
 0xa1c   :  { %18725 = vmatprep.subr.bf16.mxu0 %v21289_v58 }
 0xa1e   :  { %18666 = vmatpush3.bf16.msra.mxu1 %v21151_v50  ;;  %v21182_v50 = vld [vmem:[%s27060_s7 + $0x7b0] sm:$0xff]  }
 0xa1f   :  { %18726 = vmatpush3.bf16.msra.mxu0 %v21152_v20  ;;  %18309 = vmatprep.subr.bf16.mxu1 %v21153_v10 }
 0xa21   :  { %18668 = vmatmul.mubr.bf16.vlgmr.msra.gmra.mrb[148].mxu1 %v27297_v0 }
 0xa22   :  { %18728 = vmatmul.mubr.bf16.vlgmr.msra.gmra.mrb[216].mxu0 %v25143_v6  ;;  %18310 = vmatpush3.bf16.msra.mxu1 %v21154_v12  ;;  %v21159_v6 = vld [vmem:[%s27060_s7 + $0x5d8] sm:$0xff]  }
 0xa23   :  { %14821 = vmatprep.mubr.bf16.mxu1 %v25704_v41  ;;  %18311 = vmatprep.subr.bf16.mxu1 %v21155_v39  ;;  %v21160_v41 = vld [vmem:[%s27060_s7 + $0x598] sm:$0xff]  }
 0xa24   :  { %v21183_v12 = vld [vmem:[%s27060_s7 + $0x7f8] sm:$0xff]  }
 0xa26   :  { %18312 = vmatpush3.bf16.msra.mxu1 %v21156_v11 }
 0xa27   :  { %18313 = vmatprep.subr.bf16.mxu1 %v21157_v27 }
 0xa2a   :  { %18314 = vmatpush3.bf16.msra.mxu1 %v21158_v26 }
 0xa2b   :  { %18315 = vmatprep.subr.bf16.mxu1 %v21159_v6  ;;  %v21184_v6 = vld [vmem:[%s27060_s7 + $0x7b8] sm:$0xff]  }
 0xa2e   :  { %18316 = vmatpush3.bf16.msra.mxu1 %v21160_v41 }
 0xa2f   :  { %18317 = vmatprep.subr.bf16.mxu1 %v21161_v51 }
 0xa32   :  { %18318 = vmatpush3.bf16.msra.mxu1 %v21162_v22  ;;  %v21190_v22 = vld [vmem:[%s27060_s7 + $0x8a8] sm:$0xff]  }
 0xa33   :  { %18319 = vmatprep.subr.bf16.mxu1 %v21163_v1 }
 0xa34   :  { %v12709_v60 = vpop.f32.mrb[124].mxu1 }
 0xa35   :  { %v26820_v19 = vadd.f32 %v12709_v60, %v12669_v38  ;;  %v26822_v3 = vpop.f32.mrb[192].mxu0  ;;  %v18589_v62 = vpop.f32.mrb[125].mxu1 }
 0xa36   :  { %v18649_v8 = vpop.f32.mrb[193].mxu0  ;;  %v12712_v5 = vpop.f32.mrb[126].mxu1  ;;  %18320 = vmatpush3.bf16.msra.mxu1 %v21164_v55 }
 0xa37   :  { %v26827_v28 = vadd.f32 %v12712_v5, %v12672_v49  ;;  %v26829_v29 = vpop.f32.mrb[194].mxu0  ;;  %v18590_v47 = vpop.f32.mrb[127].mxu1  ;;  %18321 = vmatprep.subr.bf16.mxu1 %v21165_v16  ;;  %v21191_v5 = vld [vmem:[%s27060_s7 + $0x8b0] sm:$0xff]  }
 0xa38   :  { %v18650_v44 = vpop.f32.mrb[195].mxu0 }
 0xa3a   :  { %18322 = vmatpush3.bf16.msra.mxu1 %v21166_v43 }
 0xa3b   :  { %18323 = vmatprep.subr.bf16.mxu1 %v21167_v21 }
 0xa3e   :  { %18324 = vmatpush3.bf16.msra.mxu1 %v21168_v23 }
 0xa3f   :  { %18340 = vmatprep.subr.bf16.mxu1 %v21169_v35 }
 0xa41   :  { %14822 = vmatmul.mubr.bf16.vlgmr.msra.gmra.mrb[152].mxu1 %v25702_v40  ;;  %v21175_v40 = vld [vmem:[%s27060_s7 + $0x7d8] sm:$0xff]  }
 0xa42   :  { %18341 = vmatpush3.bf16.msra.mxu1 %v21170_v14  ;;  %15143 = vmatprep.mubr.bf16.mxu1 %v25503_v9  ;;  %v21176_v9 = vld [vmem:[%s27060_s7 + $0x798] sm:$0xff]  }
 0xa43   :  { %18342 = vmatprep.subr.bf16.mxu1 %v21171_v31 }
 0xa46   :  { %18343 = vmatpush3.bf16.msra.mxu1 %v21172_v25  ;;  %v21192_v25 = vld [vmem:[%s27060_s7 + $0x8b8] sm:$0xff]  }
 0xa47   :  { %18344 = vmatprep.subr.bf16.mxu1 %v21173_v33 }
 0xa4a   :  { %18345 = vmatpush3.bf16.msra.mxu1 %v21174_v56 }
 0xa4b   :  { %18346 = vmatprep.subr.bf16.mxu1 %v21175_v40  ;;  %v21195_v40 = vld [vmem:[%s27060_s7 + $0xac8] sm:$0xff]  }
 0xa4e   :  { %18347 = vmatpush3.bf16.msra.mxu1 %v21176_v9  ;;  %v21198_v9 = vld [vmem:[%s27060_s7 + $0xa90] sm:$0xff]  }
 0xa4f   :  { %18348 = vmatprep.subr.bf16.mxu1 %v21177_v2  ;;  %v21201_v2 = vld [vmem:[%s27060_s7 + $0xae0] sm:$0xff]  }
 0xa52   :  { %18349 = vmatpush3.bf16.msra.mxu1 %v21178_v17  ;;  %v21202_v17 = vld [vmem:[%s27060_s7 + $0xaa0] sm:$0xff]  }
 0xa53   :  { %18350 = vmatprep.subr.bf16.mxu1 %v21179_v32  ;;  %v21203_v32 = vld [vmem:[%s27060_s7 + $0xae8] sm:$0xff]  }
 0xa54   :  { %v18113_v13 = vpop.f32.mrb[128].mxu1 }
 0xa55   :  { %v18272_v57 = vpop.f32.mrb[196].mxu0  ;;  %v18114_v61 = vpop.f32.mrb[129].mxu1 }
 0xa56   :  { %v18115_v48 = vadd.f32 %v18114_v61, %v18113_v13  ;;  %v18273_v38 = vpop.f32.mrb[197].mxu0  ;;  %v18116_v52 = vpop.f32.mrb[130].mxu1  ;;  %18351 = vmatpush3.bf16.msra.mxu1 %v21180_v24  ;;  %v21204_v24 = vld [vmem:[%s27060_s7 + $0xaa8] sm:$0xff]  }
 0xa57   :  { %v26881_v49 = vadd.f32 %v18273_v38, %v18272_v57  ;;  %v18275_v20 = vpop.f32.mrb[198].mxu0  ;;  %v18117_v10 = vpop.f32.mrb[131].mxu1  ;;  %18352 = vmatprep.subr.bf16.mxu1 %v21181_v59  ;;  %v21205_v59 = vld [vmem:[%s27060_s7 + $0xaf0] sm:$0xff]  }
 0xa58   :  { %v13202_v39 = vadd.f32 %v18115_v48, %v26461_v30  ;;  %v18118_v0 = vadd.f32 %v18117_v10, %v18116_v52  ;;  %v18276_v11 = vpop.f32.mrb[199].mxu0  ;;  %v21185_v30 = vld [vmem:[%s27060_s7 + $0x880] sm:$0xff]  }
 0xa59   :  { %v26887_v27 = vadd.f32 %v18276_v11, %v18275_v20  ;;  %v21208_v11 = vld [vmem:[%s27060_s7 + $0xab8] sm:$0xff]  }
 0xa5a   :  { %v13205_v26 = vadd.f32 %v18118_v0, %v26470_v54  ;;  %18353 = vmatpush3.bf16.msra.mxu1 %v21182_v50  ;;  %v26894_v41 = vadd.f32 %v26562_v15, %v13202_v39  ;;  %v21186_v54 = vld [vmem:[%s27060_s7 + $0x888] sm:$0xff]   ;;  %v21187_v15 = vld [vmem:[%s27060_s7 + $0x890] sm:$0xff]   ;;  %v21207_v39 = vld [vmem:[%s27060_s7 + $0xaf8] sm:$0xff]  }
 0xa5b   :  { %18354 = vmatprep.subr.bf16.mxu1 %v21183_v12  ;;  %v21206_v50 = vld [vmem:[%s27060_s7 + $0xab0] sm:$0xff]  }
 0xa5c   :  { %v26897_v51 = vadd.f32 %v26567_v63, %v13205_v26  ;;  %v21189_v63 = vld [vmem:[%s27060_s7 + $0x8a0] sm:$0xff]  }
 0xa5e   :  { %18355 = vmatpush3.bf16.msra.mxu1 %v21184_v6 }
 0xa5f   :  { %18691 = vmatprep.subr.bf16.mxu1 %v21289_v58 }
 0xa61   :  { %15144 = vmatmul.mubr.bf16.vlgmr.msra.gmra.mrb[156].mxu1 %v25501_v18  ;;  %v21188_v18 = vld [vmem:[%s27060_s7 + $0x898] sm:$0xff]  }
 0xa62   :  { %18692 = vmatpush3.bf16.msra.mxu1 %v21185_v30  ;;  %18707 = vmatprep.mubr.msk.bf16.mxu1 %vm21290_vm0, %v21289_v58 }
 0xa63   :  { %18693 = vmatprep.subr.bf16.mxu1 %v21289_v58 }
 0xa66   :  { %18694 = vmatpush3.bf16.msra.mxu1 %v21186_v54 }
 0xa67   :  { %18695 = vmatprep.subr.bf16.mxu1 %v21289_v58 }
 0xa6a   :  { %18696 = vmatpush3.bf16.msra.mxu1 %v21187_v15 }
 0xa6b   :  { %18697 = vmatprep.subr.bf16.mxu1 %v21289_v58 }
 0xa6e   :  { %18698 = vmatpush3.bf16.msra.mxu1 %v21188_v18 }
 0xa6f   :  { %18699 = vmatprep.subr.bf16.mxu1 %v21289_v58 }
 0xa72   :  { %18700 = vmatpush3.bf16.msra.mxu1 %v21189_v63 }
 0xa73   :  { %18701 = vmatprep.subr.bf16.mxu1 %v21289_v58 }
 0xa74   :  { %v18144_v1 = vpop.f32.mrb[132].mxu1 }
 0xa75   :  { %v18303_v55 = vpop.f32.mrb[200].mxu0  ;;  %v18145_v16 = vpop.f32.mrb[133].mxu1 }
 0xa76   :  { %v18146_v60 = vadd.f32 %v18145_v16, %v18144_v1  ;;  %v18304_v62 = vpop.f32.mrb[201].mxu0  ;;  %v18147_v8 = vpop.f32.mrb[134].mxu1  ;;  %18702 = vmatpush3.bf16.msra.mxu1 %v21190_v22 }
 0xa77   :  { %v18305_v43 = vadd.f32 %v18304_v62, %v18303_v55  ;;  %v18306_v47 = vpop.f32.mrb[202].mxu0  ;;  %v18148_v21 = vpop.f32.mrb[135].mxu1  ;;  %18703 = vmatprep.subr.bf16.mxu1 %v21289_v58 }
 0xa78   :  { %v18149_v44 = vadd.f32 %v18148_v21, %v18147_v8  ;;  %v18307_v23 = vpop.f32.mrb[203].mxu0  ;;  %v13735_v35 = vadd.f32 %v26678_v53, %v18146_v60  ;;  %v21193_v53 = vld [vmem:[%s27060_s7 + $0xac0] sm:$0xff]  }
 0xa79   :  { %v26932_v14 = vadd.f32 %v18305_v43, %v26820_v19  ;;  %v18308_v31 = vadd.f32 %v18307_v23, %v18306_v47  ;;  %v21194_v19 = vld [vmem:[%s27060_s7 + $0xa80] sm:$0xff]  }
 0xa7a   :  { %18704 = vmatpush3.bf16.msra.mxu1 %v21191_v5  ;;  %v13738_v33 = vadd.f32 %v26692_v36, %v18149_v44  ;;  %v21196_v36 = vld [vmem:[%s27060_s7 + $0xa88] sm:$0xff]  }
 0xa7b   :  { %v26939_v56 = vadd.f32 %v18308_v31, %v26827_v28  ;;  %18705 = vmatprep.subr.bf16.mxu1 %v21289_v58  ;;  %v21197_v28 = vld [vmem:[%s27060_s7 + $0xad0] sm:$0xff]  }
 0xa7e   :  { %18706 = vmatpush3.bf16.msra.mxu1 %v21192_v25 }
 0xa7f   :  { %18415 = vmatprep.subr.bf16.mxu1 %v21193_v53 }
 0xa81   :  { %18708 = vmatmul.mubr.bf16.vlgmr.msra.gmra.mrb[160].mxu1 %v25109_v42  ;;  %v21199_v42 = vld [vmem:[%s27060_s7 + $0xad8] sm:$0xff]  }
 0xa82   :  { %18416 = vmatpush3.bf16.msra.mxu1 %v21194_v19  ;;  %15547 = vmatprep.mubr.bf16.mxu1 %v25818_v37  ;;  %v21200_v37 = vld [vmem:[%s27060_s7 + $0xa98] sm:$0xff]  }
 0xa83   :  { %18417 = vmatprep.subr.bf16.mxu1 %v21195_v40 }
 0xa86   :  { %18418 = vmatpush3.bf16.msra.mxu1 %v21196_v36 }
 0xa87   :  { %18419 = vmatprep.subr.bf16.mxu1 %v21197_v28 }
 0xa8a   :  { %18420 = vmatpush3.bf16.msra.mxu1 %v21198_v9 }
 0xa8b   :  { %18421 = vmatprep.subr.bf16.mxu1 %v21199_v42 }
 0xa8e   :  { %18422 = vmatpush3.bf16.msra.mxu1 %v21200_v37 }
 0xa8f   :  { %18423 = vmatprep.subr.bf16.mxu1 %v21201_v2 }
 0xa92   :  { %18424 = vmatpush3.bf16.msra.mxu1 %v21202_v17 }
 0xa93   :  { %18425 = vmatprep.subr.bf16.mxu1 %v21203_v32 }
 0xa94   :  { %v13775_v13 = vpop.f32.mrb[136].mxu1 }
 0xa95   :  { %v13776_v57 = vadd.f32 %v13775_v13, %v13735_v35  ;;  %v26983_v61 = vpop.f32.mrb[204].mxu0  ;;  %v18629_v48 = vpop.f32.mrb[137].mxu1 }
 0xa96   :  { %v18689_v38 = vpop.f32.mrb[205].mxu0  ;;  %v13778_v52 = vpop.f32.mrb[138].mxu1  ;;  %18426 = vmatpush3.bf16.msra.mxu1 %v21204_v24  ;;  %v21211_v48 = vld [vmem:[%s27062_s9 + $0x10] sm:$0xff]  }
 0xa97   :  { %v13779_v20 = vadd.f32 %v13778_v52, %v13738_v33  ;;  %v26988_v10 = vpop.f32.mrb[206].mxu0  ;;  %v18630_v12 = vpop.f32.mrb[139].mxu1  ;;  %18427 = vmatprep.subr.bf16.mxu1 %v21205_v59  ;;  %v21212_v38 = vld [vmem:[%s27062_s9 + $0x18] sm:$0xff]  }
 0xa98   :  { %v18690_v0 = vpop.f32.mrb[207].mxu0 }
 0xa9a   :  { %18428 = vmatpush3.bf16.msra.mxu1 %v21206_v50 }
 0xa9b   :  { %18429 = vmatprep.subr.bf16.mxu1 %v21207_v39 }
 0xa9e   :  { %18430 = vmatpush3.bf16.msra.mxu1 %v21208_v11 }
 0xa9f   :  { %18731 = vmatprep.subr.bf16.mxu1 %v21289_v58 }
 0xaa1   :  { %15548 = vmatmul.mubr.bf16.vlgmr.msra.gmra.mrb[164].mxu1 %v25816_v4 }
 0xaa2   :  { %18739 = vmatprep.mubr.msk.bf16.mxu1 %vm21290_vm0, %v21289_v58 }
 0xab4   :  { %v18219_v26 = vpop.f32.mrb[140].mxu1 }
 0xab5   :  { %v18378_v6 = vpop.f32.mrb[208].mxu0  ;;  %v18220_v30 = vpop.f32.mrb[141].mxu1 }
 0xab6   :  { %v18221_v54 = vadd.f32 %v18220_v30, %v18219_v26  ;;  %v18379_v15 = vpop.f32.mrb[209].mxu0  ;;  %v18222_v18 = vpop.f32.mrb[142].mxu1 }
 0xab7   :  { %v27000_v63 = vadd.f32 %v18379_v15, %v18378_v6  ;;  %v18381_v22 = vpop.f32.mrb[210].mxu0  ;;  %v18223_v1 = vpop.f32.mrb[143].mxu1 }
 0xab8   :  { %v14098_v55 = vadd.f32 %v18221_v54, %v26764_v7  ;;  %v18224_v16 = vadd.f32 %v18223_v1, %v18222_v18  ;;  %v18382_v60 = vpop.f32.mrb[211].mxu0 }
 0xab9   :  { %v27003_v62 = vadd.f32 %v18382_v60, %v18381_v22 }
 0xaba   :  { %v14101_v4 = vadd.f32 %v18224_v16, %v26771_v45  ;;  %v14139_v8 = vadd.f32 %v26822_v3, %v14098_v55 }
 0xabc   :  { %v14142_v5 = vadd.f32 %v26829_v29, %v14101_v4 }
 0xad4   :  { %v18250_v43 = vpop.f32.mrb[144].mxu1 }
 0xad5   :  { %v18409_v47 = vpop.f32.mrb[212].mxu0  ;;  %v18251_v21 = vpop.f32.mrb[145].mxu1 }
 0xad6   :  { %v18252_v44 = vadd.f32 %v18251_v21, %v18250_v43  ;;  %v18410_v23 = vpop.f32.mrb[213].mxu0  ;;  %v18253_v35 = vpop.f32.mrb[146].mxu1 }
 0xad7   :  { %v18411_v31 = vadd.f32 %v18410_v23, %v18409_v47  ;;  %v18412_v25 = vpop.f32.mrb[214].mxu0  ;;  %v18254_v33 = vpop.f32.mrb[147].mxu1 }
 0xad8   :  { %v14420_v7 = vadd.f32 %v18252_v44, %v26673_v34  ;;  %v18255_v53 = vadd.f32 %v18254_v33, %v18253_v35  ;;  %v18413_v19 = vpop.f32.mrb[215].mxu0 }
 0xad9   :  { %v27009_v40 = vadd.f32 %v18411_v31, %v13776_v57  ;;  %v18414_v45 = vadd.f32 %v18413_v19, %v18412_v25 }
 0xada   :  { %v14423_v3 = vadd.f32 %v18255_v53, %v26681_v46  ;;  %v14461_v29 = vadd.f32 %v26881_v49, %v14420_v7  ;;  %v21209_v46 = vld [vmem:[%s27062_s9] sm:$0xff]  }
 0xadb   :  { %v27013_v36 = vadd.f32 %v18414_v45, %v13779_v20  ;;  %18732 = vmatpush3.bf16.msra.mxu1 %v21209_v46  ;;  %v17413_v7 = vld [vmem:[%s27061_s8] ss:$0 sm:$0xff] }
 0xadc   :  { %v14464_v28 = vadd.f32 %v26887_v27, %v14423_v3  ;;  %18733 = vmatprep.subr.bf16.mxu1 %v21289_v58  ;;  %v21210_v27 = vld [vmem:[%s27062_s9 + $0x8] sm:$0xff]  }
 0xadf   :  { %18734 = vmatpush3.bf16.msra.mxu1 %v21210_v27 }
 0xae0   :  { %18735 = vmatprep.subr.bf16.mxu1 %v21289_v58 }
 0xae3   :  { %18736 = vmatpush3.bf16.msra.mxu1 %v21211_v48 }
 0xae4   :  { %18737 = vmatprep.subr.bf16.mxu1 %v21289_v58 }
 0xae7   :  { %18738 = vmatpush3.bf16.msra.mxu1 %v21212_v38 }
 0xaf4   :  { %v14501_v9 = vpop.f32.mrb[148].mxu1 }
 0xaf5   :  { %v14502_v42 = vadd.f32 %v14501_v9, %v14461_v29  ;;  %v15590_v37 = vpop.f32.mrb[216].mxu0  ;;  %v18669_v2 = vpop.f32.mrb[149].mxu1 }
 0xaf6   :  { %v18729_v17 = vpop.f32.mrb[217].mxu0  ;;  %v14504_v32 = vpop.f32.mrb[150].mxu1 }
 0xaf7   :  { %v15597_v34 = vadd.f32 %v14502_v42, %v14139_v8  ;;  %v14505_v24 = vadd.f32 %v14504_v32, %v14464_v28  ;;  %v15593_v59 = vpop.f32.mrb[218].mxu0  ;;  %v18670_v13 = vpop.f32.mrb[151].mxu1 }
 0xaf8   :  { %v18730_v57 = vpop.f32.mrb[219].mxu0 }
 0xaf9   :  { %v15598_v49 = vadd.f32 %v14505_v24, %v14142_v5 }
 0xb14   :  { %v18325_v52 = vpop.f32.mrb[152].mxu1 }
 0xb15   :  { %v18326_v50 = vpop.f32.mrb[153].mxu1 }
 0xb16   :  { %v18327_v20 = vadd.f32 %v18326_v50, %v18325_v52  ;;  %v18328_v12 = vpop.f32.mrb[154].mxu1 }
 0xb17   :  { %v18329_v39 = vpop.f32.mrb[155].mxu1 }
 0xb18   :  { %v14824_v0 = vadd.f32 %v18327_v20, %v26932_v14  ;;  %v18330_v11 = vadd.f32 %v18329_v39, %v18328_v12 }
 0xb1a   :  { %v14827_v26 = vadd.f32 %v18330_v11, %v26939_v56  ;;  %v14865_v6 = vadd.f32 %v26983_v61, %v14824_v0 }
 0xb1c   :  { %v14868_v30 = vadd.f32 %v26988_v10, %v14827_v26 }
 0xb34   :  { %v18356_v58 = vpop.f32.mrb[156].mxu1 }
 0xb35   :  { %v18357_v54 = vpop.f32.mrb[157].mxu1 }
 0xb36   :  { %v18358_v15 = vadd.f32 %v18357_v54, %v18356_v58  ;;  %v18359_v18 = vpop.f32.mrb[158].mxu1 }
 0xb37   :  { %v18360_v22 = vpop.f32.mrb[159].mxu1 }
 0xb38   :  { %v15146_v1 = vadd.f32 %v18358_v15, %v26894_v41  ;;  %v18361_v55 = vadd.f32 %v18360_v22, %v18359_v18 }
 0xb3a   :  { %v15149_v16 = vadd.f32 %v18361_v55, %v26897_v51  ;;  %v15187_v60 = vadd.f32 %v27000_v63, %v15146_v1 }
 0xb3c   :  { %v15190_v14 = vadd.f32 %v27003_v62, %v15149_v16 }
 0xb54   :  { %v15227_v4 = vpop.f32.mrb[160].mxu1 }
 0xb55   :  { %v15228_v56 = vadd.f32 %v15227_v4, %v15187_v60  ;;  %v18709_v8 = vpop.f32.mrb[161].mxu1 }
 0xb56   :  { %v15230_v61 = vpop.f32.mrb[162].mxu1 }
 0xb57   :  { %v15599_v5 = vadd.f32 %v15228_v56, %v14865_v6  ;;  %v15231_v10 = vadd.f32 %v15230_v61, %v15190_v14  ;;  %v18710_v43 = vpop.f32.mrb[163].mxu1 }
 0xb59   :  { %v15601_v47 = vadd.f32 %v15599_v5, %v15597_v34  ;;  %v15600_v21 = vadd.f32 %v15231_v10, %v14868_v30 }
 0xb5b   :  { %v15602_v44 = vadd.f32 %v15600_v21, %v15598_v49 }
 0xb74   :  { %v18431_v23 = vpop.f32.mrb[164].mxu1 }
 0xb75   :  { %v18432_v35 = vpop.f32.mrb[165].mxu1 }
 0xb76   :  { %v18433_v41 = vadd.f32 %v18432_v35, %v18431_v23  ;;  %v18434_v31 = vpop.f32.mrb[166].mxu1 }
 0xb77   :  { %v18435_v25 = vpop.f32.mrb[167].mxu1 }
 0xb78   :  { %v15550_v51 = vadd.f32 %v18433_v41, %v27009_v40  ;;  %v18436_v63 = vadd.f32 %v18435_v25, %v18434_v31  ;;  %v17414_v40 = vld [vmem:[%s27063_s10] ss:$0 sm:$0xff] }
 0xb7a   :  { %v15591_v33 = vadd.f32 %v15590_v37, %v15550_v51  ;;  %v15553_v62 = vadd.f32 %v18436_v63, %v27013_v36 }
 0xb7c   :  { %v15603_v53 = vadd.f32 %v15601_v47, %v15591_v33  ;;  %v15594_v19 = vadd.f32 %v15593_v59, %v15553_v62 }
 0xb7e   :  { %v15612_v45 = vadd.f32 %v17413_v7, %v15603_v53  ;;  %v15604_v3 = vadd.f32 %v15602_v44, %v15594_v19 }
 0xb80   :  { %v15613_v29 = vadd.f32 %v17413_v7, %v15604_v3  ;;  %v15614_v28 = vmax.f32 %v15612_v45, 0.0 }
 0xb82   :  { %v15615_v9 = vmax.f32 %v15613_v29, 0.0 }
 0xb84   :  { %v15616_v42 = vpack.c.bf16 %v15615_v9, %v15614_v28 }
 0xb86   :  { %18740 = vmatmul.mubr.msk.bf16.vlgmr.msra.gmra.mrb[168].mxu1 %vm15656_vm1, %v15616_v42 }
 0xc59   :  { %v15694_v37 = vpop.f32.mrb[168].mxu1 }
 0xc5a   :  { %v15695_v36 = vadd.f32 %v17414_v40, %v15694_v37  ;;  %v18741_v2 = vpop.f32.mrb[169].mxu1 }
 0xc5b   :  { %v15697_v17 = vpop.f32.mrb[170].mxu1 }
 0xc5c   :  { %15701 = vst [vmem:[%s27064_s11] sm:$0xff] %v15695_v36  ;;  %v15698_v32 = vadd.f32 %v17414_v40, %v15697_v17  ;;  %v18742_v34 = vpop.f32.mrb[171].mxu1 }
 0xc5e   :  { %15702 = vst [vmem:[%s27064_s11 + $0x8] sm:$0xff] %v15698_v32 }
 0xc5f   :  { %15707 = vsyncpa [#allocation6], 1 }
 0xc60   :  { %15708 = vsyncpa [#allocation8], 1 }

</bundles_post_ra>
